<compile_context>
chip_gen: v7x
topology: tpu7x:2x2x1
jax: 0.10.0
libtpu: 0.0.40
codegen_flags: <defaults>
</compile_context>

<pallas_src>
import functools
import math

import jax
import jax.numpy as jnp
from jax.experimental import pallas as pl
from jax.experimental.pallas import tpu as pltpu

PE_FREQS = 6
HIDDEN = 256
NUM_LAYERS = 8
SKIP = 4
PE_DIM = 3 + 2 * PE_FREQS * 3        # 39
INPUT_DIM = PE_DIM + 3               # 42  (pe + rgb)
BETA = 100.0                         # Softplus beta, folded into the params


def _device_kind():
    try:
        return jax.devices()[0].device_kind.lower()
    except Exception:
        return ""


def _has_bf16_eup(kind):
    # v6e / v7x have a bf16-capable EUP; v5e/v5p and older do not.
    return ("v6" in kind) or ("v7" in kind) or ("7x" in kind)


def _make_kernel(bf16_eup):
    def softplus_x100(z):
        # z is already in the beta-folded "x100 domain":
        #   softplus_beta100  ->  z if z > 20 else log1p(exp(z))
        # exp overflow -> inf lands only in the discarded branch (no NaN),
        # so no clamp is needed.
        if bf16_eup:
            soft = jnp.log1p(jnp.exp(z.astype(jnp.bfloat16))).astype(jnp.float32)
        else:
            soft = jnp.log1p(jnp.exp(z))
        return jnp.where(z > 20.0, z, soft)

    def kernel(inp_ref, w0w4_ref, b0_ref, wmid_ref, bmid_ref,
               w4h_ref, b4_ref, wsdf_ref, bsdf_ref, out_ref):
        inp = inp_ref[...]                                     # (tm, 42) bf16
        # fused layer-0 + skip-input contraction: (tm,42) x (42,512) -> f32
        z = jnp.dot(inp, w0w4_ref[...], preferred_element_type=jnp.float32)
        h = softplus_x100(z[:, :HIDDEN] + b0_ref[...])         # layer 0
        skip = z[:, HIDDEN:]                                   # reused at layer 4
        # layers 1..3
        for j in range(3):
            h = softplus_x100(
                jnp.dot(h.astype(jnp.bfloat16), wmid_ref[j],
                        preferred_element_type=jnp.float32) + bmid_ref[j:j + 1, :])
        # layer 4 (skip): cat([h, input]) @ W4 == h @ W4_hidden + input @ W4_in
        h = softplus_x100(
            jnp.dot(h.astype(jnp.bfloat16), w4h_ref[...],
                    preferred_element_type=jnp.float32) + skip + b4_ref[...])
        # layers 5..7
        for j in range(3, 6):
            h = softplus_x100(
                jnp.dot(h.astype(jnp.bfloat16), wmid_ref[j],
                        preferred_element_type=jnp.float32) + bmid_ref[j:j + 1, :])
        # sdf head: VPU broadcast-mul + XLU lane reduce (w_sdf pre-scaled 1/beta)
        d = jnp.sum(h * wsdf_ref[...], axis=-1, keepdims=True) + bsdf_ref[...]
        out_ref[...] = d.astype(out_ref.dtype)

    return kernel


def init_params(key):
    """Deterministic synthetic parameters matching SDFNet.__init__ shapes."""
    keys = jax.random.split(key, NUM_LAYERS + 1)
    Ws, bs = [], []
    for i in range(NUM_LAYERS):
        in_dim = INPUT_DIM if i == 0 else HIDDEN
        if i == SKIP:
            in_dim += INPUT_DIM
        k1, k2, k3 = jax.random.split(keys[i], 3)
        v = jax.random.normal(k1, (HIDDEN, in_dim), jnp.float32) / math.sqrt(in_dim)
        g = 1.0 + 0.1 * jax.random.normal(k2, (HIDDEN,), jnp.float32)
        b = 0.01 * jax.random.normal(k3, (HIDDEN,), jnp.float32)
        # weight_norm (dim=0): W = g * v / ||v||_row  -> fold into a plain weight
        w = g[:, None] * v / jnp.linalg.norm(v, axis=1, keepdims=True)
        Ws.append(w)
        bs.append(b)
    k1, k2 = jax.random.split(keys[-1], 2)
    w_sdf = jax.random.normal(k1, (1, HIDDEN), jnp.float32) / math.sqrt(HIDDEN)
    b_sdf = 0.01 * jax.random.normal(k2, (1,), jnp.float32)
    # `feature_out` exists in the torch module but is unused in forward(); omitted.
    return Ws, bs, w_sdf, b_sdf


def pack_params(Ws, bs, w_sdf, b_sdf):
    """Transpose to [in,out], fuse W0 with W4's input half, fold beta=100, bf16."""
    wdt = jnp.bfloat16
    w4_t = Ws[SKIP].T                                  # (H + 42, H)
    # fused [100*W0 ; 100*W4_input-half] : (42, 2H)
    w0w4 = jnp.concatenate([Ws[0].T * BETA, w4_t[HIDDEN:, :] * BETA], axis=1)
    b0 = (bs[0] * BETA)[None, :]
    mid_idx = [1, 2, 3, 5, 6, 7]
    wmid = jnp.stack([Ws[i].T for i in mid_idx])       # (6, H, H)  (unscaled)
    bmid = jnp.stack([bs[i] * BETA for i in mid_idx])  # (6, H)
    w4h = w4_t[:HIDDEN, :]                             # (H, H)  (unscaled)
    b4 = (bs[SKIP] * BETA)[None, :]
    wsdf = (w_sdf / BETA).reshape(1, HIDDEN).astype(jnp.float32)  # head stays f32
    bsdf = b_sdf.reshape(1, 1).astype(jnp.float32)
    return (w0w4.astype(wdt), b0, wmid.astype(wdt), bmid,
            w4h.astype(wdt), b4, wsdf, bsdf)


def pos_enc(p):
    # order per PyTorch: [x, sin(f0 x), cos(f0 x), sin(f1 x), cos(f1 x), ...]
    freqs = (2.0 ** jnp.arange(PE_FREQS, dtype=jnp.float32)) * math.pi
    ang = p[:, None, :] * freqs[None, :, None]                   # (N, F, 3)
    sc = jnp.stack([jnp.sin(ang), jnp.cos(ang)], axis=2)         # (N, F, 2, 3)
    return jnp.concatenate([p, sc.reshape(p.shape[0], -1)], axis=-1)


@functools.partial(jax.jit, static_argnames=("tm",))
def sdf_forward(x, packed, *, tm=None):
    N = x.shape[0]
    kind = _device_kind()
    v6plus = _has_bf16_eup(kind)

    # ---- row-tile selection -------------------------------------------------
    if tm is None:
        tm = 2048 if v6plus else 1024        # large tiles amortize ~0.35us/step
    tm = min(max(int(tm), 128), 2048)
    tm = 1 << (tm.bit_length() - 1)          # power of two in [128, 2048]
    while tm > 128 and pl.cdiv(N, tm) < 2:   # >=2 tiles when N allows (megacore)
        tm //= 2
    if ("v7" in kind or "7x" in kind) and tm > 128:
        # v7x: 2 TensorCores share the "parallel" axis -> prefer an even tile count.
        if pl.cdiv(N, tm) % 2 == 1 and pl.cdiv(N, tm // 2) % 2 == 0:
            tm //= 2
    n_tiles = pl.cdiv(N, tm)
    n_pad = n_tiles * tm

    # ---- wrapper: positional encoding, lane-tight bf16 input ----------------
    # TODO(synk): sin/cos pos-enc could also move inside the kernel (~1% extra
    # EUP work) to drop this remaining full-N XLA pass; kept in the wrapper.
    p, rgb = x[:, :3], x[:, 3:]
    inp = jnp.concatenate([pos_enc(p), rgb], axis=-1).astype(jnp.bfloat16)  # (N,42)
    if n_pad != N:
        inp = jnp.pad(inp, ((0, n_pad - N), (0, 0)))

    w0w4, b0, wmid, bmid, w4h, b4, wsdf, bsdf = packed

    def full(*shape):                        # grid-invariant (weight) blocks
        return pl.BlockSpec(shape, lambda i, s=shape: (0,) * len(s))

    out = pl.pallas_call(
        _make_kernel(bf16_eup=v6plus),
        out_shape=jax.ShapeDtypeStruct((n_pad, 1), jnp.float32),
        grid_spec=pltpu.PrefetchScalarGridSpec(
            num_scalar_prefetch=0,
            grid=(n_tiles,),
            in_specs=[
                pl.BlockSpec((tm, INPUT_DIM), lambda i: (i, 0)),  # rows, tiled over N
                full(INPUT_DIM, 2 * HIDDEN),   # fused [100*W0 ; 100*W4_in]  (bf16)
                full(1, HIDDEN),               # 100*b0
                full(6, HIDDEN, HIDDEN),       # W1-3, W5-7                  (bf16)
                full(6, HIDDEN),               # 100*(b1-3, b5-7)
                full(HIDDEN, HIDDEN),          # W4 hidden half              (bf16)
                full(1, HIDDEN),               # 100*b4
                full(1, HIDDEN),               # w_sdf / 100                 (f32)
                full(1, 1),                    # b_sdf
            ],
            out_specs=pl.BlockSpec((tm, 1), lambda i: (i, 0)),
        ),
        compiler_params=pltpu.CompilerParams(
            dimension_semantics=("parallel",),
            vmem_limit_bytes=32 * 1024 * 1024),
    )(inp, w0w4, b0, wmid, bmid, w4h, b4, wsdf, bsdf)
    return out[:N, 0]                                            # [N] signed distances


def reference_forward(x, Ws, bs, w_sdf, b_sdf):
    p, rgb = x[:, :3], x[:, 3:]
    h0 = jnp.concatenate([pos_enc(p), rgb], axis=-1)
    h = h0
    for i in range(NUM_LAYERS):
        if i == SKIP:
            h = jnp.concatenate([h, h0], axis=-1)
        z = h @ Ws[i].T + bs[i]
        h = jnp.where(100.0 * z > 20.0, z,
                      jnp.log1p(jnp.exp(jnp.minimum(100.0 * z, 20.0))) / 100.0)
    return (h @ w_sdf.T + b_sdf)[:, 0]


if __name__ == "__main__":
    key = jax.random.PRNGKey(0)
    kx, kp = jax.random.split(key)
    N = 256
    x = jax.random.normal(kx, (N, 6), jnp.float32)               # [N,6] = [xyz, rgb]

    Ws, bs, w_sdf, b_sdf = init_params(kp)
    packed = pack_params(Ws, bs, w_sdf, b_sdf)

    d = jax.block_until_ready(sdf_forward(x, packed))
    ref = reference_forward(x, Ws, bs, w_sdf, b_sdf)

    assert d.shape == (N,), d.shape
    # bf16 matmul operands (f32 accumulate) + optional bf16 EUP transcendentals
    # drift ~1e-2..3e-2 through 8 layers vs the f32 reference.
    err = float(jnp.max(jnp.abs(d - ref)))
    scale = float(jnp.maximum(1.0, jnp.max(jnp.abs(ref))))
    assert err <= 8e-2 * scale, err
    print("KERNEL_OK")
</pallas_src>

<mosaic_0001>
module attributes {stable_mosaic.version = 11 : i64} {
  func.func @kernel(%arg0: i32, %arg1: memref<128x42xbf16, #tpu.memory_space<vmem>>, %arg2: memref<42x512xbf16, #tpu.memory_space<vmem>>, %arg3: memref<1x256xf32, #tpu.memory_space<vmem>>, %arg4: memref<6x256x256xbf16, #tpu.memory_space<vmem>>, %arg5: memref<6x256xf32, #tpu.memory_space<vmem>>, %arg6: memref<256x256xbf16, #tpu.memory_space<vmem>>, %arg7: memref<1x256xf32, #tpu.memory_space<vmem>>, %arg8: memref<1x256xf32, #tpu.memory_space<vmem>>, %arg9: memref<1x1xf32, #tpu.memory_space<vmem>>, %arg10: memref<128x1xf32, #tpu.memory_space<vmem>>) attributes {dimension_semantics = [#tpu.dimension_semantics<parallel>], iteration_bounds = array<i64: 2>, scalar_prefetch = 0 : i64, scratch_operands = 0 : i64, tpu.core_type = #tpu.core_type<tc>, window_params = [{transform_indices = @transform_0, window_bounds = array<i64: 128, 42>}, {pipeline_mode = #tpu.pipeline_mode<synchronous>, transform_indices = @transform_1, window_bounds = array<i64: 42, 512>}, {pipeline_mode = #tpu.pipeline_mode<synchronous>, transform_indices = @transform_2, window_bounds = array<i64: 1, 256>}, {pipeline_mode = #tpu.pipeline_mode<synchronous>, transform_indices = @transform_3, window_bounds = array<i64: 6, 256, 256>}, {pipeline_mode = #tpu.pipeline_mode<synchronous>, transform_indices = @transform_4, window_bounds = array<i64: 6, 256>}, {pipeline_mode = #tpu.pipeline_mode<synchronous>, transform_indices = @transform_5, window_bounds = array<i64: 256, 256>}, {pipeline_mode = #tpu.pipeline_mode<synchronous>, transform_indices = @transform_6, window_bounds = array<i64: 1, 256>}, {pipeline_mode = #tpu.pipeline_mode<synchronous>, transform_indices = @transform_7, window_bounds = array<i64: 1, 256>}, {pipeline_mode = #tpu.pipeline_mode<synchronous>, transform_indices = @transform_8, window_bounds = array<i64: 1, 1>}, {transform_indices = @transform_9, window_bounds = array<i64: 128, 1>}]} {
    %c0 = arith.constant 0 : index
    %c0_0 = arith.constant 0 : index
    %0 = vector.load %arg1[%c0, %c0_0] : memref<128x42xbf16, #tpu.memory_space<vmem>>, vector<128x42xbf16>
    %c0_1 = arith.constant 0 : index
    %c0_2 = arith.constant 0 : index
    %1 = vector.load %arg2[%c0_1, %c0_2] : memref<42x512xbf16, #tpu.memory_space<vmem>>, vector<42x512xbf16>
    %cst = arith.constant dense<0.000000e+00> : vector<128x512xf32>
    %2 = tpu.matmul %0, %1, %cst {dimension_numbers = #tpu.dot_dimension_numbers<[1], [0], [0], [1], [0, 0, 1, 1], [], []>} : vector<128x42xbf16>, vector<42x512xbf16>, vector<128x512xf32> -> vector<128x512xf32>
    %3 = vector.extract_strided_slice %2 {offsets = [0, 0], sizes = [128, 256], strides = [1, 1]} : vector<128x512xf32> to vector<128x256xf32>
    %c0_3 = arith.constant 0 : index
    %c0_4 = arith.constant 0 : index
    %4 = vector.load %arg3[%c0_3, %c0_4] : memref<1x256xf32, #tpu.memory_space<vmem>>, vector<1x256xf32>
    %5 = vector.broadcast %4 : vector<1x256xf32> to vector<128x256xf32>
    %6 = arith.addf %3, %5 : vector<128x256xf32>
    %7 = math.exp %6 : vector<128x256xf32>
    %8 = math.log1p %7 : vector<128x256xf32>
    %cst_5 = arith.constant 2.000000e+01 : f32
    %9 = vector.broadcast %cst_5 : f32 to vector<128x256xf32>
    %10 = arith.cmpf ogt, %6, %9 : vector<128x256xf32>
    %11 = arith.select %10, %6, %8 : vector<128x256xi1>, vector<128x256xf32>
    %12 = vector.extract_strided_slice %2 {offsets = [0, 256], sizes = [128, 256], strides = [1, 1]} : vector<128x512xf32> to vector<128x256xf32>
    %13 = arith.truncf %11 : vector<128x256xf32> to vector<128x256xbf16>
    %c0_6 = arith.constant 0 : index
    %c0_7 = arith.constant 0 : index
    %c0_8 = arith.constant 0 : index
    %14 = vector.load %arg4[%c0_6, %c0_7, %c0_8] : memref<6x256x256xbf16, #tpu.memory_space<vmem>>, vector<1x256x256xbf16>
    %15 = vector.shape_cast %14 : vector<1x256x256xbf16> to vector<256x256xbf16>
    %cst_9 = arith.constant dense<0.000000e+00> : vector<128x256xf32>
    %16 = tpu.matmul %13, %15, %cst_9 {dimension_numbers = #tpu.dot_dimension_numbers<[1], [0], [0], [1], [0, 0, 1, 1], [], []>} : vector<128x256xbf16>, vector<256x256xbf16>, vector<128x256xf32> -> vector<128x256xf32>
    %c0_10 = arith.constant 0 : index
    %c0_11 = arith.constant 0 : index
    %17 = vector.load %arg5[%c0_10, %c0_11] : memref<6x256xf32, #tpu.memory_space<vmem>>, vector<1x256xf32>
    %18 = vector.broadcast %17 : vector<1x256xf32> to vector<128x256xf32>
    %19 = arith.addf %16, %18 : vector<128x256xf32>
    %20 = math.exp %19 : vector<128x256xf32>
    %21 = math.log1p %20 : vector<128x256xf32>
    %cst_12 = arith.constant 2.000000e+01 : f32
    %22 = vector.broadcast %cst_12 : f32 to vector<128x256xf32>
    %23 = arith.cmpf ogt, %19, %22 : vector<128x256xf32>
    %24 = arith.select %23, %19, %21 : vector<128x256xi1>, vector<128x256xf32>
    %25 = arith.truncf %24 : vector<128x256xf32> to vector<128x256xbf16>
    %c1 = arith.constant 1 : index
    %c0_13 = arith.constant 0 : index
    %c0_14 = arith.constant 0 : index
    %26 = vector.load %arg4[%c1, %c0_13, %c0_14] : memref<6x256x256xbf16, #tpu.memory_space<vmem>>, vector<1x256x256xbf16>
    %27 = vector.shape_cast %26 : vector<1x256x256xbf16> to vector<256x256xbf16>
    %cst_15 = arith.constant dense<0.000000e+00> : vector<128x256xf32>
    %28 = tpu.matmul %25, %27, %cst_15 {dimension_numbers = #tpu.dot_dimension_numbers<[1], [0], [0], [1], [0, 0, 1, 1], [], []>} : vector<128x256xbf16>, vector<256x256xbf16>, vector<128x256xf32> -> vector<128x256xf32>
    %c1_16 = arith.constant 1 : index
    %c0_17 = arith.constant 0 : index
    %29 = vector.load %arg5[%c1_16, %c0_17] : memref<6x256xf32, #tpu.memory_space<vmem>>, vector<1x256xf32>
    %30 = vector.broadcast %29 : vector<1x256xf32> to vector<128x256xf32>
    %31 = arith.addf %28, %30 : vector<128x256xf32>
    %32 = math.exp %31 : vector<128x256xf32>
    %33 = math.log1p %32 : vector<128x256xf32>
    %cst_18 = arith.constant 2.000000e+01 : f32
    %34 = vector.broadcast %cst_18 : f32 to vector<128x256xf32>
    %35 = arith.cmpf ogt, %31, %34 : vector<128x256xf32>
    %36 = arith.select %35, %31, %33 : vector<128x256xi1>, vector<128x256xf32>
    %37 = arith.truncf %36 : vector<128x256xf32> to vector<128x256xbf16>
    %c2 = arith.constant 2 : index
    %c0_19 = arith.constant 0 : index
    %c0_20 = arith.constant 0 : index
    %38 = vector.load %arg4[%c2, %c0_19, %c0_20] : memref<6x256x256xbf16, #tpu.memory_space<vmem>>, vector<1x256x256xbf16>
    %39 = vector.shape_cast %38 : vector<1x256x256xbf16> to vector<256x256xbf16>
    %cst_21 = arith.constant dense<0.000000e+00> : vector<128x256xf32>
    %40 = tpu.matmul %37, %39, %cst_21 {dimension_numbers = #tpu.dot_dimension_numbers<[1], [0], [0], [1], [0, 0, 1, 1], [], []>} : vector<128x256xbf16>, vector<256x256xbf16>, vector<128x256xf32> -> vector<128x256xf32>
    %c2_22 = arith.constant 2 : index
    %c0_23 = arith.constant 0 : index
    %41 = vector.load %arg5[%c2_22, %c0_23] : memref<6x256xf32, #tpu.memory_space<vmem>>, vector<1x256xf32>
    %42 = vector.broadcast %41 : vector<1x256xf32> to vector<128x256xf32>
    %43 = arith.addf %40, %42 : vector<128x256xf32>
    %44 = math.exp %43 : vector<128x256xf32>
    %45 = math.log1p %44 : vector<128x256xf32>
    %cst_24 = arith.constant 2.000000e+01 : f32
    %46 = vector.broadcast %cst_24 : f32 to vector<128x256xf32>
    %47 = arith.cmpf ogt, %43, %46 : vector<128x256xf32>
    %48 = arith.select %47, %43, %45 : vector<128x256xi1>, vector<128x256xf32>
    %49 = arith.truncf %48 : vector<128x256xf32> to vector<128x256xbf16>
    %c0_25 = arith.constant 0 : index
    %c0_26 = arith.constant 0 : index
    %50 = vector.load %arg6[%c0_25, %c0_26] : memref<256x256xbf16, #tpu.memory_space<vmem>>, vector<256x256xbf16>
    %cst_27 = arith.constant dense<0.000000e+00> : vector<128x256xf32>
    %51 = tpu.matmul %49, %50, %cst_27 {dimension_numbers = #tpu.dot_dimension_numbers<[1], [0], [0], [1], [0, 0, 1, 1], [], []>} : vector<128x256xbf16>, vector<256x256xbf16>, vector<128x256xf32> -> vector<128x256xf32>
    %52 = arith.addf %51, %12 : vector<128x256xf32>
    %c0_28 = arith.constant 0 : index
    %c0_29 = arith.constant 0 : index
    %53 = vector.load %arg7[%c0_28, %c0_29] : memref<1x256xf32, #tpu.memory_space<vmem>>, vector<1x256xf32>
    %54 = vector.broadcast %53 : vector<1x256xf32> to vector<128x256xf32>
    %55 = arith.addf %52, %54 : vector<128x256xf32>
    %56 = math.exp %55 : vector<128x256xf32>
    %57 = math.log1p %56 : vector<128x256xf32>
    %cst_30 = arith.constant 2.000000e+01 : f32
    %58 = vector.broadcast %cst_30 : f32 to vector<128x256xf32>
    %59 = arith.cmpf ogt, %55, %58 : vector<128x256xf32>
    %60 = arith.select %59, %55, %57 : vector<128x256xi1>, vector<128x256xf32>
    %61 = arith.truncf %60 : vector<128x256xf32> to vector<128x256xbf16>
    %c3 = arith.constant 3 : index
    %c0_31 = arith.constant 0 : index
    %c0_32 = arith.constant 0 : index
    %62 = vector.load %arg4[%c3, %c0_31, %c0_32] : memref<6x256x256xbf16, #tpu.memory_space<vmem>>, vector<1x256x256xbf16>
    %63 = vector.shape_cast %62 : vector<1x256x256xbf16> to vector<256x256xbf16>
    %cst_33 = arith.constant dense<0.000000e+00> : vector<128x256xf32>
    %64 = tpu.matmul %61, %63, %cst_33 {dimension_numbers = #tpu.dot_dimension_numbers<[1], [0], [0], [1], [0, 0, 1, 1], [], []>} : vector<128x256xbf16>, vector<256x256xbf16>, vector<128x256xf32> -> vector<128x256xf32>
    %c3_34 = arith.constant 3 : index
    %c0_35 = arith.constant 0 : index
    %65 = vector.load %arg5[%c3_34, %c0_35] : memref<6x256xf32, #tpu.memory_space<vmem>>, vector<1x256xf32>
    %66 = vector.broadcast %65 : vector<1x256xf32> to vector<128x256xf32>
    %67 = arith.addf %64, %66 : vector<128x256xf32>
    %68 = math.exp %67 : vector<128x256xf32>
    %69 = math.log1p %68 : vector<128x256xf32>
    %cst_36 = arith.constant 2.000000e+01 : f32
    %70 = vector.broadcast %cst_36 : f32 to vector<128x256xf32>
    %71 = arith.cmpf ogt, %67, %70 : vector<128x256xf32>
    %72 = arith.select %71, %67, %69 : vector<128x256xi1>, vector<128x256xf32>
    %73 = arith.truncf %72 : vector<128x256xf32> to vector<128x256xbf16>
    %c4 = arith.constant 4 : index
    %c0_37 = arith.constant 0 : index
    %c0_38 = arith.constant 0 : index
    %74 = vector.load %arg4[%c4, %c0_37, %c0_38] : memref<6x256x256xbf16, #tpu.memory_space<vmem>>, vector<1x256x256xbf16>
    %75 = vector.shape_cast %74 : vector<1x256x256xbf16> to vector<256x256xbf16>
    %cst_39 = arith.constant dense<0.000000e+00> : vector<128x256xf32>
    %76 = tpu.matmul %73, %75, %cst_39 {dimension_numbers = #tpu.dot_dimension_numbers<[1], [0], [0], [1], [0, 0, 1, 1], [], []>} : vector<128x256xbf16>, vector<256x256xbf16>, vector<128x256xf32> -> vector<128x256xf32>
    %c4_40 = arith.constant 4 : index
    %c0_41 = arith.constant 0 : index
    %77 = vector.load %arg5[%c4_40, %c0_41] : memref<6x256xf32, #tpu.memory_space<vmem>>, vector<1x256xf32>
    %78 = vector.broadcast %77 : vector<1x256xf32> to vector<128x256xf32>
    %79 = arith.addf %76, %78 : vector<128x256xf32>
    %80 = math.exp %79 : vector<128x256xf32>
    %81 = math.log1p %80 : vector<128x256xf32>
    %cst_42 = arith.constant 2.000000e+01 : f32
    %82 = vector.broadcast %cst_42 : f32 to vector<128x256xf32>
    %83 = arith.cmpf ogt, %79, %82 : vector<128x256xf32>
    %84 = arith.select %83, %79, %81 : vector<128x256xi1>, vector<128x256xf32>
    %85 = arith.truncf %84 : vector<128x256xf32> to vector<128x256xbf16>
    %c5 = arith.constant 5 : index
    %c0_43 = arith.constant 0 : index
    %c0_44 = arith.constant 0 : index
    %86 = vector.load %arg4[%c5, %c0_43, %c0_44] : memref<6x256x256xbf16, #tpu.memory_space<vmem>>, vector<1x256x256xbf16>
    %87 = vector.shape_cast %86 : vector<1x256x256xbf16> to vector<256x256xbf16>
    %cst_45 = arith.constant dense<0.000000e+00> : vector<128x256xf32>
    %88 = tpu.matmul %85, %87, %cst_45 {dimension_numbers = #tpu.dot_dimension_numbers<[1], [0], [0], [1], [0, 0, 1, 1], [], []>} : vector<128x256xbf16>, vector<256x256xbf16>, vector<128x256xf32> -> vector<128x256xf32>
    %c5_46 = arith.constant 5 : index
    %c0_47 = arith.constant 0 : index
    %89 = vector.load %arg5[%c5_46, %c0_47] : memref<6x256xf32, #tpu.memory_space<vmem>>, vector<1x256xf32>
    %90 = vector.broadcast %89 : vector<1x256xf32> to vector<128x256xf32>
    %91 = arith.addf %88, %90 : vector<128x256xf32>
    %92 = math.exp %91 : vector<128x256xf32>
    %93 = math.log1p %92 : vector<128x256xf32>
    %cst_48 = arith.constant 2.000000e+01 : f32
    %94 = vector.broadcast %cst_48 : f32 to vector<128x256xf32>
    %95 = arith.cmpf ogt, %91, %94 : vector<128x256xf32>
    %96 = arith.select %95, %91, %93 : vector<128x256xi1>, vector<128x256xf32>
    %c0_49 = arith.constant 0 : index
    %c0_50 = arith.constant 0 : index
    %97 = vector.load %arg8[%c0_49, %c0_50] : memref<1x256xf32, #tpu.memory_space<vmem>>, vector<1x256xf32>
    %98 = vector.broadcast %97 : vector<1x256xf32> to vector<128x256xf32>
    %99 = arith.mulf %96, %98 : vector<128x256xf32>
    %cst_51 = arith.constant dense<0.000000e+00> : vector<128xf32>
    %100 = vector.multi_reduction <add>, %99, %cst_51 [1] : vector<128x256xf32> to vector<128xf32>
    %101 = vector.shape_cast %100 : vector<128xf32> to vector<128x1xf32>
    %c0_52 = arith.constant 0 : index
    %c0_53 = arith.constant 0 : index
    %102 = vector.load %arg9[%c0_52, %c0_53] : memref<1x1xf32, #tpu.memory_space<vmem>>, vector<1x1xf32>
    %103 = vector.broadcast %102 : vector<1x1xf32> to vector<128x1xf32>
    %104 = arith.addf %101, %103 : vector<128x1xf32>
    %c0_54 = arith.constant 0 : index
    %c0_55 = arith.constant 0 : index
    %105 = vector.load %arg10[%c0_54, %c0_55] : memref<128x1xf32, #tpu.memory_space<vmem>>, vector<128x1xf32>
    tpu.vector_store %arg10[%c0_54, %c0_55], %104 {strides = array<i32>} : memref<128x1xf32, #tpu.memory_space<vmem>>, vector<128x1xf32>,
    return
  }
  func.func @transform_0(%arg0: i32) -> (i32, i32) {
    %c0_i32 = arith.constant 0 : i32
    %c0_i32_0 = arith.constant 0 : i32
    return %arg0, %c0_i32 : i32, i32
  }
  func.func @transform_1(%arg0: i32) -> (i32, i32) {
    %c0_i32 = arith.constant 0 : i32
    %c0_i32_0 = arith.constant 0 : i32
    %c0_i32_1 = arith.constant 0 : i32
    return %c0_i32, %c0_i32_0 : i32, i32
  }
  func.func @transform_2(%arg0: i32) -> (i32, i32) {
    %c0_i32 = arith.constant 0 : i32
    %c0_i32_0 = arith.constant 0 : i32
    %c0_i32_1 = arith.constant 0 : i32
    return %c0_i32, %c0_i32_0 : i32, i32
  }
  func.func @transform_3(%arg0: i32) -> (i32, i32, i32) {
    %c0_i32 = arith.constant 0 : i32
    %c0_i32_0 = arith.constant 0 : i32
    %c0_i32_1 = arith.constant 0 : i32
    %c0_i32_2 = arith.constant 0 : i32
    return %c0_i32, %c0_i32_0, %c0_i32_1 : i32, i32, i32
  }
  func.func @transform_4(%arg0: i32) -> (i32, i32) {
    %c0_i32 = arith.constant 0 : i32
    %c0_i32_0 = arith.constant 0 : i32
    %c0_i32_1 = arith.constant 0 : i32
    return %c0_i32, %c0_i32_0 : i32, i32
  }
  func.func @transform_5(%arg0: i32) -> (i32, i32) {
    %c0_i32 = arith.constant 0 : i32
    %c0_i32_0 = arith.constant 0 : i32
    %c0_i32_1 = arith.constant 0 : i32
    return %c0_i32, %c0_i32_0 : i32, i32
  }
  func.func @transform_6(%arg0: i32) -> (i32, i32) {
    %c0_i32 = arith.constant 0 : i32
    %c0_i32_0 = arith.constant 0 : i32
    %c0_i32_1 = arith.constant 0 : i32
    return %c0_i32, %c0_i32_0 : i32, i32
  }
  func.func @transform_7(%arg0: i32) -> (i32, i32) {
    %c0_i32 = arith.constant 0 : i32
    %c0_i32_0 = arith.constant 0 : i32
    %c0_i32_1 = arith.constant 0 : i32
    return %c0_i32, %c0_i32_0 : i32, i32
  }
  func.func @transform_8(%arg0: i32) -> (i32, i32) {
    %c0_i32 = arith.constant 0 : i32
    %c0_i32_0 = arith.constant 0 : i32
    %c0_i32_1 = arith.constant 0 : i32
    return %c0_i32, %c0_i32_0 : i32, i32
  }
  func.func @transform_9(%arg0: i32) -> (i32, i32) {
    %c0_i32 = arith.constant 0 : i32
    %c0_i32_0 = arith.constant 0 : i32
    return %arg0, %c0_i32 : i32, i32
  }
}

</mosaic_0001>

<bundles_post_ra>
// kernel: sdf_forward.1
= control target key start
LH: loop header
LB: loop body
LE: loop exit
PB: predicated region body
PF: predicated region fallthrough
CT: control target
= control target key end

     0   :  { %s12843_s0 = inlined_call_operand.vmem [shape: bf16[256,42], index: 0, kind: input, shape index: {}]   ;;  %s12844_s1 = inlined_call_operand.vmem [shape: bf16[42,512], index: 1, kind: input, shape index: {}]   ;;  %s12845_s2 = inlined_call_operand.vmem [shape: f32[1,256], index: 2, kind: input, shape index: {}]   ;;  %s12846_s3 = inlined_call_operand.hbm [shape: bf16[6,256,256], index: 3, kind: input, shape index: {}]   ;;  %s12847_s4 = inlined_call_operand.vmem [shape: f32[6,256], index: 4, kind: input, shape index: {}]   ;;  %s12848_s5 = inlined_call_operand.vmem [shape: bf16[256,256], index: 5, kind: input, shape index: {}]   ;;  %s12849_s6 = inlined_call_operand.vmem [shape: f32[1,256], index: 6, kind: input, shape index: {}]   ;;  %s12850_s7 = inlined_call_operand.vmem [shape: f32[1,256], index: 7, kind: input, shape index: {}]   ;;  %s12851_s8 = inlined_call_operand.<no memory space> [shape: f32[1,1], index: 8, kind: input, shape index: {}]   ;;  %s12852_s9 = inlined_call_operand.vmem [shape: f32[256,1], index: 9, kind: output, shape index: {}]  }
   0x1   :  { %v14_v0 = vstv %s12851_s8 }
   0x2   :  { %15 = vst [vmem:[#allocation2] sm:$0x1] %v14_v0 }
   0x3   :  { %16 = vsyncpa [#allocation4], 0  ;;  %s8538_s11 = smov 0  }
   0x4 LB: > { %s6687_s12 = sadd.s32 4294967295, %s8479_s11   ;;  %p6689_p0 = scmp.ge.s32.totalorder %s8479_s11, 1  ;;  %s8479_s11 = sphi %s8538_s11, %s22_s11  }
   0x5   : > { %p247_p1 = scmp.lt.s32.totalorder %s8479_s11, 3  ;;  %s8481_s13 = smov [#allocation3]  }
   0x6   : > { %s265_s14 = sshll.u32 %s8481_s13, 4  ;;  %p8552_p3 = scmp.eq.s32.totalorder %s6687_s12, 0  ;;  %s266_s14 = int_to_ptr.vmem [resolvable:$true] %s265_s14 }
   0x7   : > { %p8546_p2 = pnand %p6689_p0, %p247_p1  ;;  %s8441_s19 = scalar_lea.hbm %s12846_s3, 24576 }
   0x8   : > { %s12863_s15 = scalar_select %p8552_p3, 1, 0 }
   0x9   : > { %s12862_s8 = scalar_select %p8546_p2, 1, 0 }
   0xa   : > { %p7036_p4 = pneg %p8546_p2  ;;  %p8442_p6 = scmp.ne.s32.totalorder %s12846_s3, %s8441_s19 }
   0xb   : > { %p8448_p10 = scmp.lt.u32.totalorder %s8441_s19, %s12846_s3 }
   0xc   : > { %p8560_p5 = pnand %p8552_p3, %p7036_p4 }
   0xe   : > { %p8443_p7 = pneg %p8560_p5 }
  0x10   : > { %p8444_p8 = pnand %p8443_p7, %p8442_p6 }
  0x12   : > { %p8445_p9 = pneg %p8444_p8 }
  0x14   : > { %p8450_p11 = pnand %p8448_p10, %p8445_p9 }
  0x16   : > { %8453 = shalt.err (!%p8450_p11)
}
  0x17   : > { %s8454_s24 = scalar_lea.vmem %s266_s14, 24576  ;;  %p8462_p1 = scmp.lt.s32.totalorder %s266_s14, %s266_s14 }
  0x18   : > { %p8455_p12 = scmp.ne.s32.totalorder %s266_s14, %s8454_s24  ;;  %p8463_p4 = scmp.lt.s32.totalorder %s8454_s24, %s8454_s24 }
  0x1a   : > { %p8457_p13 = pnand %p8455_p12, %p8443_p7  ;;  %p8464_p3 = por %p8463_p4, %p8462_p1 }
  0x1c   : > { %p8458_p0 = pneg %p8457_p13 }
  0x1e   : > { %p8465_p2 = pnand %p8464_p3, %p8458_p0 }
  0x20   : > { %8468 = shalt.err (!%p8465_p2)
}
  0x21   : > { %s8482_s25 = smov 128   ;;  %s8483_s26 = smov 8  }
  0x22   : > { %7039 = dma.hbm_to_vmem [thread:$0]  (!%p8560_p5), %s12846_s3, 24576, %s266_s14, [#allocation4], %s8482_s25, %s8482_s25, %s8483_s26  }
  0x23   : > { %p12865_p6 = scmp.ne.s32.totalorder %s12862_s8, 0 }
  0x25   : > { %305 = sbr.rel (%p12865_p6) target bundleno = 2361 (0x939), region = 56 }
  0x2c   : > { %p12866_p8 = scmp.ne.s32.totalorder %s12863_s15, 0 }
  0x2e   : > { %8474 = dma.done.wait (%p12866_p8), [#allocation4], 24576  }
  0x2f   : > { %8476 = vsyncadd (%p12866_p8), [#allocation4], 4294942720  ;;  %s6694_s29 = sshll.u32 %s6687_s12, 4  ;;  %v12856_v1 = vmov 0   ;;  %v7054_v2 = vld [vmem:[%s12844_s1 + $0x4] ss:$16 sps:$4 sm:$0xff]   ;;  %v744_v49 = vlaneseq }
  0x30   : > { %548 = vmatprep.mubr.bf16.mxu0 %v12856_v1  ;;  %p342_p2 = scmp.lt.s32.totalorder %s6694_s29, 31  ;;  %661 = vmatprep.mubr.bf16.mxu1 %v12856_v1  ;;  %v7056_v3 = vld [vmem:[%s12844_s1] ss:$16 sps:$4 sm:$0xff]   ;;  %v7057_v4 = vld [vmem:[%s12844_s1 + $0x24] ss:$16 sps:$4 sm:$0xff]   ;;  %vm503_vm0 = vcmask 1044480  }
  0x31   : > { %516 = vmatprep.subr.bf16.mxu0 %v7054_v2  ;;  %v7059_v5 = vld [vmem:[%s12844_s1 + $0x20] ss:$16 sps:$4 sm:$0xff]   ;;  %v7060_v6 = vld [vmem:[%s12844_s1 + $0x44] ss:$16 sps:$4 sm:$0x1f]   ;;  %vm478_vm1 = vcmask 343040  }
  0x32   : > { %s13169_s29 = smov (!%p342_p2, %s6694_s29), 31  ;;  %517 = vmatpush1.bf16.msra.mxu0 %v7056_v3  ;;  %v7062_v7 = vld [vmem:[%s12844_s1 + $0x40] ss:$16 sps:$4 sm:$0x1f]   ;;  %v7074_v13 = vld [vmem:[#allocation3 + $0x10] ss:$8 sps:$4 sm:$0xff]  }
  0x33   : > { %s6695_s13 = sshll.u32 %s13169_s29, 2  ;;  %518 = vmatprep.subr.bf16.mxu0 %v7057_v4  ;;  %v505_v8 = vsel %vm503_vm0, %v7062_v7, 0  ;;  %v7071_v10 = vld [vmem:[#allocation3] ss:$8 sps:$4 sm:$0xff]   ;;  %v7073_v11 = vld [vmem:[#allocation3 + $0x4] ss:$8 sps:$4 sm:$0xff]  }
  0x34   : > { %s8611_s22 = scalar_lea.vmem %s12843_s0, %s6695_s13  ;;  %v7076_v12 = vld [vmem:[#allocation3 + $0x14] ss:$8 sps:$4 sm:$0xff]   ;;  %v7079_v14 = vld [vmem:[#allocation3 + $0x24] ss:$8 sps:$4 sm:$0xff]   ;;  %v7077_v16 = vld [vmem:[#allocation3 + $0x20] ss:$8 sps:$4 sm:$0xff]  }
  0x35   : > { %v8619_v9 = vld [vmem:[%s8611_s22] sm:$0xff]   ;;  %v8625_v15 = vld [vmem:[%s8611_s22 + $0x8] sm:$0xff]   ;;  %v7080_v18 = vld [vmem:[#allocation3 + $0x30] ss:$8 sps:$4 sm:$0xff]   ;;  %v745_v50 = vshrl.u32 %v744_v49, 7  ;;  %s6697_s19 = sshll.u32 %s13169_s29, 3 }
  0x36   : > { %519 = vmatpush1.bf16.msra.mxu0 %v7059_v5  ;;  %v7082_v17 = vld [vmem:[#allocation3 + $0x34] ss:$8 sps:$4 sm:$0xff]   ;;  %v7085_v19 = vld [vmem:[#allocation3 + $0x44] ss:$8 sps:$4 sm:$0xff]   ;;  %v7083_v21 = vld [vmem:[#allocation3 + $0x40] ss:$8 sps:$4 sm:$0xff]   ;;  %s12770_s21 = scalar_lea.vmem %s12852_s9, %s6697_s19 }
  0x37   : > { %6718 = vmatprep.subr.msk.bf16.mxu0 %vm503_vm0, %v7060_v6  ;;  %v8631_v20 = vld [vmem:[%s8611_s22 + $0x10] sm:$0xff]   ;;  %v8637_v25 = vld [vmem:[%s8611_s22 + $0x18] sm:$0xff]   ;;  %v7089_v26 = vld [vmem:[#allocation3 + $0x60] ss:$8 sps:$4 sm:$0xff]   ;;  %v8662_v51 = vsub.s32 0, %v745_v50  ;;  %v8667_v53 = vsub.s32 1, %v745_v50 }
  0x38   : > { %v7088_v22 = vld [vmem:[#allocation3 + $0x54] ss:$8 sps:$4 sm:$0xff]   ;;  %v7086_v23 = vld [vmem:[#allocation3 + $0x50] ss:$8 sps:$4 sm:$0xff]   ;;  %v7091_v24 = vld [vmem:[#allocation3 + $0x64] ss:$8 sps:$4 sm:$0xff]  }
  0x39   : > { %v8643_v27 = vld [vmem:[%s8611_s22 + $0x20] sm:$0xff]   ;;  %v8649_v28 = vld [vmem:[%s8611_s22 + $0x28] sm:$0xff]   ;;  %v8655_v29 = vld [vmem:[%s8611_s22 + $0x30] sm:$0xff]   ;;  %12867 = vst [vmem:[#allocation6_spill] sm:$0xff] %v8662_v51 }
  0x3a   : > { %521 = vmatpush1.bf16.msra.mxu0 %v505_v8  ;;  %v7070_v30 = vld [vmem:[%s8611_s22 + $0x38] sm:$0xff]   ;;  %v7097_v33 = vld [vmem:[#allocation3 + $0x84] ss:$8 sps:$4 sm:$0xff]   ;;  %v7095_v34 = vld [vmem:[#allocation3 + $0x80] ss:$8 sps:$4 sm:$0xff]   ;;  %12868 = vst [vmem:[#allocation7_spill] sm:$0xff] %v8667_v53 }
  0x3b   : > { %1422 = vmatprep.subr.bf16.mxu0 %v7073_v11  ;;  %v7094_v31 = vld [vmem:[#allocation3 + $0x74] ss:$8 sps:$4 sm:$0xff]   ;;  %v7092_v32 = vld [vmem:[#allocation3 + $0x70] ss:$8 sps:$4 sm:$0xff]   ;;  %v7103_v37 = vld [vmem:[#allocation3 + $0xa4] ss:$8 sps:$4 sm:$0xff]  }
  0x3c   : > { %v7100_v35 = vld [vmem:[#allocation3 + $0x94] ss:$8 sps:$4 sm:$0xff]   ;;  %v7098_v36 = vld [vmem:[#allocation3 + $0x90] ss:$8 sps:$4 sm:$0xff]   ;;  %v7101_v38 = vld [vmem:[#allocation3 + $0xa0] ss:$8 sps:$4 sm:$0xff]  }
  0x3d   : > { %6719 = vmatmul.mubr.msk.bf16.vlgmr.msra.gmra.mrb[0].mxu0 %vm478_vm1, %v8619_v9  ;;  %v7106_v39 = vld [vmem:[#allocation3 + $0xb4] ss:$8 sps:$4 sm:$0xff]   ;;  %v7104_v40 = vld [vmem:[#allocation3 + $0xb0] ss:$8 sps:$4 sm:$0xff]   ;;  %v7109_v41 = vld [vmem:[#allocation3 + $0xc4] ss:$8 sps:$4 sm:$0xff]  }
  0x3e   : > { %558 = vmatprep.mubr.bf16.mxu0 %v12856_v1  ;;  %1423 = vmatpush1.bf16.msra.mxu0 %v7071_v10  ;;  %v7107_v42 = vld [vmem:[#allocation3 + $0xc0] ss:$8 sps:$4 sm:$0xff]   ;;  %v7112_v43 = vld [vmem:[#allocation3 + $0xd4] ss:$8 sps:$4 sm:$0xff]   ;;  %v7110_v44 = vld [vmem:[#allocation3 + $0xd0] ss:$8 sps:$4 sm:$0xff]  }
  0x3f   : > { %1424 = vmatprep.subr.bf16.mxu0 %v7076_v12  ;;  %v7115_v45 = vld [vmem:[#allocation3 + $0xe4] ss:$8 sps:$4 sm:$0xff]   ;;  %v7113_v46 = vld [vmem:[#allocation3 + $0xe0] ss:$8 sps:$4 sm:$0xff]   ;;  %v7118_v47 = vld [vmem:[#allocation3 + $0xf4] ss:$8 sps:$4 sm:$0xff]  }
  0x40   : > { %v7116_v48 = vld [vmem:[#allocation3 + $0xf0] ss:$8 sps:$4 sm:$0xff]   ;;  %v742_v52 = vld [vmem:[%s12845_s2] sm:$0x3] }
  0x41   : > { %v8670_v54 = vrot.slane %v742_v52, %v8662_v51  ;;  %v8673_v55 = vrot.slane %v742_v52, %v8667_v53  ;;  %v7119_v6 = vld [vmem:[%s12844_s1 + $0xc] ss:$16 sps:$4 sm:$0xff]   ;;  %v7121_v7 = vld [vmem:[%s12844_s1 + $0x8] ss:$16 sps:$4 sm:$0xff]   ;;  %v12881_v51 = vmov 0  }
  0x42   : > { %1425 = vmatpush1.bf16.msra.mxu0 %v7074_v13  ;;  %v7122_v10 = vld [vmem:[%s12844_s1 + $0x2c] ss:$16 sps:$4 sm:$0xff]   ;;  %629 = vmatprep.subr.bf16.mxu1 %v7119_v6 }
  0x43   : > { %1426 = vmatprep.subr.bf16.mxu0 %v7079_v14  ;;  %630 = vmatpush1.bf16.msra.mxu1 %v7121_v7  ;;  %v7124_v14 = vld [vmem:[%s12844_s1 + $0x28] ss:$16 sps:$4 sm:$0xff]  }
  0x44   : > { %631 = vmatprep.subr.bf16.mxu1 %v7122_v10  ;;  %v7131_v50 = vld [vmem:[#allocation3 + $0x110] ss:$8 sps:$4 sm:$0xff]   ;;  %v7134_v6 = vld [vmem:[#allocation3 + $0x120] ss:$8 sps:$4 sm:$0xff]  }
  0x45   : > { %6720 = vmatmul.mubr.msk.bf16.gmra.mrb[4].mxu0 %vm478_vm1, %v8625_v15 }
  0x46   : > { %568 = vmatprep.mubr.bf16.mxu0 %v12856_v1  ;;  %1427 = vmatpush1.bf16.msra.mxu0 %v7077_v16  ;;  %v7125_v16 = vld [vmem:[%s12844_s1 + $0x4c] ss:$16 sps:$4 sm:$0x1f]  }
  0x47   : > { %1428 = vmatprep.subr.bf16.mxu0 %v7082_v17  ;;  %v7127_v17 = vld [vmem:[%s12844_s1 + $0x48] ss:$16 sps:$4 sm:$0x1f]   ;;  %632 = vmatpush1.bf16.msra.mxu1 %v7124_v14 }
  0x48   : > { %6727 = vmatprep.subr.msk.bf16.mxu1 %vm503_vm0, %v7125_v16 }
  0x4a   : > { %1429 = vmatpush1.bf16.msra.mxu0 %v7080_v18 }
  0x4b   : > { %1430 = vmatprep.subr.bf16.mxu0 %v7085_v19 }
  0x4d   : > { %6721 = vmatmul.mubr.msk.bf16.gmra.mrb[8].mxu0 %vm478_vm1, %v8631_v20 }
  0x4e   : > { %578 = vmatprep.mubr.bf16.mxu0 %v12856_v1  ;;  %1431 = vmatpush1.bf16.msra.mxu0 %v7083_v21 }
  0x4f   : > { %1432 = vmatprep.subr.bf16.mxu0 %v7088_v22 }
  0x52   : > { %1433 = vmatpush1.bf16.msra.mxu0 %v7086_v23 }
  0x53   : > { %1434 = vmatprep.subr.bf16.mxu0 %v7091_v24 }
  0x55   : > { %6722 = vmatmul.mubr.msk.bf16.gmra.mrb[12].mxu0 %vm478_vm1, %v8637_v25 }
  0x56   : > { %588 = vmatprep.mubr.bf16.mxu0 %v12856_v1  ;;  %1435 = vmatpush1.bf16.msra.mxu0 %v7089_v26  ;;  %v511_v26 = vsel %vm503_vm0, %v7127_v17, 0 }
  0x57   : > { %1436 = vmatprep.subr.bf16.mxu0 %v7094_v31  ;;  %634 = vmatpush1.bf16.msra.mxu1 %v511_v26 }
  0x5a   : > { %1437 = vmatpush1.bf16.msra.mxu0 %v7092_v32  ;;  %6728 = vmatmul.mubr.msk.bf16.vlgmr.msra.gmra.mrb[0].mxu1 %vm478_vm1, %v8619_v9  ;;  %v7136_v9 = vld [vmem:[#allocation3 + $0x124] ss:$8 sps:$4 sm:$0xff]  }
  0x5b   : > { %1438 = vmatprep.subr.bf16.mxu0 %v7097_v33  ;;  %671 = vmatprep.mubr.bf16.mxu1 %v12856_v1 }
  0x5d   : > { %6723 = vmatmul.mubr.msk.bf16.gmra.mrb[16].mxu0 %vm478_vm1, %v8643_v27 }
  0x5e   : > { %598 = vmatprep.mubr.bf16.mxu0 %v12856_v1  ;;  %1439 = vmatpush1.bf16.msra.mxu0 %v7095_v34 }
  0x5f   : > { %1440 = vmatprep.subr.bf16.mxu0 %v7100_v35 }
  0x62   : > { %1441 = vmatpush1.bf16.msra.mxu0 %v7098_v36  ;;  %6729 = vmatmul.mubr.msk.bf16.gmra.mrb[4].mxu1 %vm478_vm1, %v8625_v15 }
  0x63   : > { %1442 = vmatprep.subr.bf16.mxu0 %v7103_v37  ;;  %681 = vmatprep.mubr.bf16.mxu1 %v12856_v1 }
  0x65   : > { %6724 = vmatmul.mubr.msk.bf16.gmra.mrb[20].mxu0 %vm478_vm1, %v8649_v28 }
  0x66   : > { %608 = vmatprep.mubr.bf16.mxu0 %v12856_v1  ;;  %1443 = vmatpush1.bf16.msra.mxu0 %v7101_v38  ;;  %v7128_v38 = vld [vmem:[#allocation3 + $0x100] ss:$8 sps:$4 sm:$0xff]  }
  0x67   : > { %1444 = vmatprep.subr.bf16.mxu0 %v7106_v39 }
  0x6a   : > { %1445 = vmatpush1.bf16.msra.mxu0 %v7104_v40  ;;  %6730 = vmatmul.mubr.msk.bf16.gmra.mrb[8].mxu1 %vm478_vm1, %v8631_v20 }
  0x6b   : > { %1446 = vmatprep.subr.bf16.mxu0 %v7109_v41  ;;  %691 = vmatprep.mubr.bf16.mxu1 %v12856_v1 }
  0x6d   : > { %6725 = vmatmul.mubr.msk.bf16.gmra.mrb[24].mxu0 %vm478_vm1, %v8655_v29 }
  0x6e   : > { %618 = vmatprep.mubr.bf16.mxu0 %v12856_v1  ;;  %1447 = vmatpush1.bf16.msra.mxu0 %v7107_v42  ;;  %v7133_v42 = vld [vmem:[#allocation3 + $0x114] ss:$8 sps:$4 sm:$0xff]  }
  0x6f   : > { %1448 = vmatprep.subr.bf16.mxu0 %v7112_v43 }
  0x72   : > { %1449 = vmatpush1.bf16.msra.mxu0 %v7110_v44  ;;  %6731 = vmatmul.mubr.msk.bf16.gmra.mrb[12].mxu1 %vm478_vm1, %v8637_v25 }
  0x73   : > { %1450 = vmatprep.subr.bf16.mxu0 %v7115_v45  ;;  %701 = vmatprep.mubr.bf16.mxu1 %v12856_v1 }
  0x75   : > { %6726 = vmatmul.mubr.msk.bf16.gmra.mrb[28].mxu0 %vm478_vm1, %v7070_v30  ;;  %v7130_v30 = vld [vmem:[#allocation3 + $0x104] ss:$8 sps:$4 sm:$0xff]  }
  0x76   : > { %1451 = vmatpush1.bf16.msra.mxu0 %v7113_v46  ;;  %2173 = vmatprep.subr.bf16.mxu1 %v7130_v30 }
  0x77   : > { %1452 = vmatprep.subr.bf16.mxu0 %v7118_v47  ;;  %2174 = vmatpush1.bf16.msra.mxu1 %v7128_v38 }
  0x78   : > { %2175 = vmatprep.subr.bf16.mxu1 %v7133_v42  ;;  %v7137_v42 = vld [vmem:[#allocation3 + $0x130] ss:$8 sps:$4 sm:$0xff]  }
  0x7a   : > { %1453 = vmatpush1.bf16.msra.mxu0 %v7116_v48  ;;  %6732 = vmatmul.mubr.msk.bf16.gmra.mrb[16].mxu1 %vm478_vm1, %v8643_v27 }
  0x7b   : > { %2176 = vmatpush1.bf16.msra.mxu1 %v7131_v50  ;;  %711 = vmatprep.mubr.bf16.mxu1 %v12856_v1 }
  0x7c   : > { %2177 = vmatprep.subr.bf16.mxu1 %v7136_v9 }
  0x7f   : > { %2178 = vmatpush1.bf16.msra.mxu1 %v7134_v6 }
  0x82   : > { %6733 = vmatmul.mubr.msk.bf16.gmra.mrb[20].mxu1 %vm478_vm1, %v8649_v28 }
  0x83   : > { %721 = vmatprep.mubr.bf16.mxu1 %v12881_v51 }
  0x8a   : > { %6734 = vmatmul.mubr.msk.bf16.gmra.mrb[24].mxu1 %vm478_vm1, %v8655_v29 }
  0x8b   : > { %731 = vmatprep.mubr.bf16.mxu1 %v12881_v51 }
 0x110   : > { %v550_v56 = vpop.f32.mrb[0].mxu0 }
 0x111   : > { %v8676_v57 = vadd.f32 %v8670_v54, %v550_v56  ;;  %v552_v58 = vpop.f32.mrb[1].mxu0 }
 0x112   : > { %v8679_v59 = vadd.f32 %v8673_v55, %v552_v58  ;;  %v554_v60 = vpop.f32.mrb[2].mxu0 }
 0x113   : > { %v786_v61 = vmul.f32 1.442695, %v8676_v57  ;;  %v8683_v62 = vadd.f32 %v8670_v54, %v554_v60  ;;  %v556_v63 = vpop.f32.mrb[3].mxu0  ;;  %vm1138_vm2 = vcmp.gt.f32.partialorder %v8676_v57, 20.0 }
 0x114   : > { %v788_v0 = vmul.f32 1.442695, %v8679_v59  ;;  %v8687_v2 = vadd.f32 %v8673_v55, %v556_v63  ;;  %vm1139_vm6 = vcmp.gt.f32.partialorder %v8679_v59, 20.0 }
 0x115   : > { %7416 = vpow2.f32 %v786_v61  ;;  %v790_v3 = vmul.f32 1.442695, %v8683_v62  ;;  %vm1140_vm3 = vcmp.gt.f32.partialorder %v8683_v62, 20.0 }
 0x116   : > { %7418 = vpow2.f32 %v788_v0  ;;  %v792_v4 = vmul.f32 1.442695, %v8687_v2  ;;  %vm1141_vm7 = vcmp.gt.f32.partialorder %v8687_v2, 20.0 }
 0x117   : > { %7420 = vpow2.f32 %v790_v3 }
 0x118   : > { %v560_v5 = vpop.f32.mrb[4].mxu0  ;;  %7422 = vpow2.f32 %v792_v4 }
 0x119   : > { %v562_v8 = vpop.f32.mrb[5].mxu0  ;;  %v8726_v32 = vadd.f32 %v8670_v54, %v560_v5 }
 0x11a   : > { %v8701_v11 = vadd.f32 %v8673_v55, %v562_v8  ;;  %v564_v12 = vpop.f32.mrb[6].mxu0 }
 0x11b   : > { %v566_v13 = vpop.f32.mrb[7].mxu0  ;;  %v8730_v35 = vadd.f32 %v8670_v54, %v564_v12  ;;  %v794_v44 = vmul.f32 1.442695, %v8726_v32  ;;  %vm1142_vm14 = vcmp.gt.f32.partialorder %v8726_v32, 20.0 }
 0x11c   : > { %v796_v18 = vmul.f32 1.442695, %v8701_v11  ;;  %v8719_v23 = vadd.f32 %v8673_v55, %v566_v13  ;;  %vm1143_vm10 = vcmp.gt.f32.partialorder %v8701_v11, 20.0 }
 0x11d   : > { %v798_v46 = vmul.f32 1.442695, %v8730_v35  ;;  %vm1144_vm15 = vcmp.gt.f32.partialorder %v8730_v35, 20.0 }
 0x11e   : > { %7424 = vpow2.f32 %v796_v18  ;;  %v800_v40 = vmul.f32 1.442695, %v8719_v23  ;;  %vm1145_vm11 = vcmp.gt.f32.partialorder %v8719_v23, 20.0 }
 0x11f   : > { %v8713_v19 = vpop.eup %7416 }
 0x120   : > { %v8715_v21 = vpop.eup %7418  ;;  %v850_v22 = vadd.f32 1.0, %v8713_v19  ;;  %v570_v24 = vpop.f32.mrb[8].mxu0  ;;  %v853_v39 = vmul.f32 -0.5, %v8713_v19  ;;  %v856_v48 = vand.u32 2147483647, %v8713_v19 }
 0x121   : > { %v8723_v31 = vpop.eup %7420  ;;  %v572_v33 = vpop.f32.mrb[9].mxu0  ;;  %v859_v37 = vadd.f32 1.0, %v8715_v21  ;;  %v8741_v47 = vadd.f32 %v8670_v54, %v570_v24  ;;  %v862_v12 = vmul.f32 -0.5, %v8715_v21  ;;  %v865_v13 = vand.u32 2147483647, %v8715_v21 }
 0x122   : > { %7426 = vlog2.f32 %v850_v22  ;;  %v868_v34 = vadd.f32 1.0, %v8723_v31  ;;  %v574_v36 = vpop.f32.mrb[10].mxu0  ;;  %v8735_v43 = vpop.eup %7422  ;;  %v871_v45 = vmul.f32 -0.5, %v8723_v31  ;;  %v8747_v49 = vadd.f32 %v8673_v55, %v572_v33  ;;  %v7139_v24 = vld [vmem:[#allocation3 + $0x134] ss:$8 sps:$4 sm:$0xff]  }
 0x123   : > { %v576_v41 = vpop.f32.mrb[11].mxu0  ;;  %v854_v52 = vadd.f32 1.0, %v853_v39  ;;  %v8751_v56 = vadd.f32 %v8670_v54, %v574_v36  ;;  %v877_v60 = vadd.f32 1.0, %v8735_v43  ;;  %v874_v61 = vand.u32 2147483647, %v8723_v31  ;;  %2179 = vmatprep.subr.bf16.mxu1 %v7139_v24 }
 0x124   : > { %7428 = vlog2.f32 %v868_v34  ;;  %v872_v0 = vadd.f32 1.0, %v871_v45  ;;  %v802_v3 = vmul.f32 1.442695, %v8741_v47  ;;  %v8759_v4 = vadd.f32 %v8673_v55, %v576_v41  ;;  %v7142_v45 = vld [vmem:[#allocation3 + $0x144] ss:$8 sps:$4 sm:$0xff]   ;;  %2180 = vmatpush1.bf16.msra.mxu1 %v7137_v42 }
 0x125   : > { %7430 = vlog2.f32 %v859_v37  ;;  %v804_v8 = vmul.f32 1.442695, %v8747_v49  ;;  %v855_v16 = vmul.f32 %v8713_v19, %v854_v52  ;;  %vm8767_vm4 = vcmp.lt.f32.partialorder %v856_v48, 0.0004427343  ;;  %2181 = vmatprep.subr.bf16.mxu1 %v7142_v45 }
 0x126   : > { %7432 = vpow2.f32 %v800_v40  ;;  %v806_v18 = vmul.f32 1.442695, %v8751_v56  ;;  %vm8775_vm5 = vcmp.lt.f32.partialorder %v874_v61, 0.0004427343  ;;  %v880_v19 = vmul.f32 -0.5, %v8735_v43 }
 0x127   : > { %7434 = vpow2.f32 %v794_v44  ;;  %v873_v36 = vmul.f32 %v8723_v31, %v872_v0  ;;  %v808_v37 = vmul.f32 1.442695, %v8759_v4  ;;  %v863_v44 = vadd.f32 1.0, %v862_v12 }
 0x128   : > { %v580_v58 = vpop.f32.mrb[12].mxu0  ;;  %7436 = vpow2.f32 %v798_v46  ;;  %v8761_v7 = vpop.eup %7424  ;;  %vm8833_vm8 = vcmp.lt.f32.partialorder %v865_v13, 0.0004427343 }
 0x129   : > { %v582_v63 = vpop.f32.mrb[13].mxu0  ;;  %7438 = vlog2.f32 %v877_v60  ;;  %v8773_v22 = vadd.f32 %v8670_v54, %v580_v58  ;;  %v895_v38 = vadd.f32 1.0, %v8761_v7  ;;  %v881_v60 = vadd.f32 1.0, %v880_v19 }
 0x12a   : > { %v584_v5 = vpop.f32.mrb[14].mxu0  ;;  %v8780_v33 = vadd.f32 %v8673_v55, %v582_v63  ;;  %7440 = vpow2.f32 %v802_v3  ;;  %v864_v17 = vmul.f32 %v8715_v21, %v863_v44  ;;  %v898_v13 = vmul.f32 -0.5, %v8761_v7 }
 0x12b   : > { %v586_v10 = vpop.f32.mrb[15].mxu0  ;;  %7442 = vpow2.f32 %v804_v8  ;;  %v8791_v41 = vadd.f32 %v8670_v54, %v584_v5  ;;  %v810_v31 = vmul.f32 1.442695, %v8773_v22  ;;  %v7140_v5 = vld [vmem:[#allocation3 + $0x140] ss:$8 sps:$4 sm:$0xff]  }
 0x12c   : > { %v7427_v14 = vpop.eup %7426  ;;  %7444 = vpow2.f32 %v806_v18  ;;  %v812_v50 = vmul.f32 1.442695, %v8780_v33  ;;  %v8801_v52 = vadd.f32 %v8673_v55, %v586_v10  ;;  %v7145_v18 = vld [vmem:[#allocation3 + $0x154] ss:$8 sps:$4 sm:$0xff]   ;;  %2182 = vmatpush1.bf16.msra.mxu1 %v7140_v5 }
 0x12d   : > { %v852_v26 = vmul.f32 0.6931472, %v7427_v14  ;;  %7446 = vlog2.f32 %v895_v38  ;;  %v814_v10 = vmul.f32 1.442695, %v8791_v41  ;;  %v882_v38 = vmul.f32 %v8735_v43, %v881_v60  ;;  %2183 = vmatprep.subr.bf16.mxu1 %v7145_v18 }
 0x12e   : > { %v7429_v34 = vpop.eup %7428  ;;  %7448 = vpow2.f32 %v808_v37 }
 0x12f   : > { %v858_v39 = vsel %vm8767_vm4, %v855_v16, %v852_v26  ;;  %v870_v40 = vmul.f32 0.6931472, %v7429_v34  ;;  %v7431_v46 = vpop.eup %7430  ;;  %7450 = vpow2.f32 %v810_v31  ;;  %v816_v26 = vmul.f32 1.442695, %v8801_v52 }
 0x130   : > { %v590_v15 = vpop.f32.mrb[16].mxu0  ;;  %v8803_v9 = vpop.eup %7432  ;;  %v8808_v61 = vsel %vm1138_vm2, %v8676_v57, %v858_v39  ;;  %v861_v3 = vmul.f32 0.6931472, %v7431_v46  ;;  %v883_v57 = vand.u32 2147483647, %v8735_v43  ;;  %7452 = vpow2.f32 %v812_v50 }
 0x131   : > { %v876_v48 = vsel %vm8775_vm5, %v873_v36, %v870_v40  ;;  %v592_v58 = vpop.f32.mrb[17].mxu0  ;;  %v8815_v6 = vpop.eup %7434  ;;  %v913_v19 = vadd.f32 1.0, %v8803_v9  ;;  %v7143_v39 = vld [vmem:[#allocation3 + $0x150] ss:$8 sps:$4 sm:$0xff]   ;;  %7454 = vpow2.f32 %v814_v10  ;;  %v7148_v40 = vld [vmem:[#allocation3 + $0x164] ss:$8 sps:$4 sm:$0xff]  }
 0x132   : > { %v8813_v63 = vsel %vm1140_vm3, %v8683_v62, %v876_v48  ;;  %v594_v0 = vpop.f32.mrb[18].mxu0  ;;  %v8821_v14 = vpop.eup %7436  ;;  %v8824_v62 = vadd.f32 %v8670_v54, %v590_v15  ;;  %v8827_v16 = vadd.f32 %v8673_v55, %v592_v58  ;;  %v867_v36 = vsel %vm8833_vm8, %v864_v17, %v861_v3  ;;  %2184 = vmatpush1.bf16.msra.mxu1 %v7143_v39  ;;  %v7146_v17 = vld [vmem:[#allocation3 + $0x160] ss:$8 sps:$4 sm:$0xff]  }
 0x133   : > { %v1202_v8 = vpack.c.bf16 %v8813_v63, %v8808_v61  ;;  %v596_v12 = vpop.f32.mrb[19].mxu0  ;;  %v7439_v24 = vpop.eup %7438  ;;  %v8839_v34 = vadd.f32 %v8670_v54, %v594_v0  ;;  %vm884_vm9 = vcmp.lt.f32.partialorder %v883_v57, 0.0004427343  ;;  %v886_v44 = vadd.f32 1.0, %v8815_v6  ;;  %2185 = vmatprep.subr.bf16.mxu1 %v7148_v40 }
 0x134   : > { %v879_v37 = vmul.f32 0.6931472, %v7439_v24  ;;  %v8847_v21 = vadd.f32 %v8673_v55, %v596_v12  ;;  %v8851_v42 = vpop.eup %7440  ;;  %v818_v31 = vmul.f32 1.442695, %v8824_v62  ;;  %v820_v43 = vmul.f32 1.442695, %v8827_v16 }
 0x135   : > { %v8856_v45 = vpop.eup %7442  ;;  %v1171_v46 = vsel %vm1139_vm6, %v8679_v59, %v867_v36  ;;  %7456 = vlog2.f32 %v913_v19  ;;  %v822_v0 = vmul.f32 1.442695, %v8839_v34  ;;  %v916_v10 = vmul.f32 -0.5, %v8803_v9 }
 0x136   : > { %v885_v15 = vsel %vm884_vm9, %v882_v38, %v879_v37  ;;  %v8867_v60 = vpop.eup %7444  ;;  %7458 = vlog2.f32 %v886_v44  ;;  %v824_v59 = vmul.f32 1.442695, %v8847_v21  ;;  %v899_v57 = vadd.f32 1.0, %v898_v13  ;;  %2186 = vmatpush1.bf16.msra.mxu1 %v7146_v17 }
 0x137   : > { %v1173_v48 = vsel %vm1141_vm7, %v8687_v2, %v885_v15  ;;  %7460 = vpow2.f32 %v816_v26  ;;  %v7447_v18 = vpop.eup %7446  ;;  %v901_v36 = vand.u32 2147483647, %v8761_v7  ;;  %v917_v37 = vadd.f32 1.0, %v916_v10 }
 0x138   : > { %v600_v20 = vpop.f32.mrb[20].mxu0  ;;  %v1203_v3 = vpack.c.bf16 %v1173_v48, %v1171_v46  ;;  %7462 = vpow2.f32 %v818_v31  ;;  %v8878_v30 = vpop.eup %7448  ;;  %v897_v39 = vmul.f32 0.6931472, %v7447_v18  ;;  %v900_v61 = vmul.f32 %v8761_v7, %v899_v57 }
 0x139   : > { %v8865_v50 = vadd.f32 %v8670_v54, %v600_v20  ;;  %v602_v58 = vpop.f32.mrb[21].mxu0  ;;  %7464 = vpow2.f32 %v820_v43  ;;  %v8884_v19 = vpop.eup %7450  ;;  %v919_v63 = vand.u32 2147483647, %v8803_v9  ;;  %v889_v40 = vmul.f32 -0.5, %v8815_v6 }
 0x13a   : > { %v604_v5 = vpop.f32.mrb[22].mxu0  ;;  %1454 = vmatprep.mubr.bf16.mxu0 %v1203_v3  ;;  %v8876_v24 = vadd.f32 %v8673_v55, %v602_v58  ;;  %7466 = vpow2.f32 %v822_v0  ;;  %v8890_v38 = vpop.eup %7452  ;;  %v904_v25 = vadd.f32 1.0, %v8821_v14  ;;  %v931_v44 = vadd.f32 1.0, %v8856_v45 }
 0x13b   : > { %v8873_v12 = vadd.f32 %v8670_v54, %v604_v5  ;;  %v606_v2 = vpop.f32.mrb[23].mxu0  ;;  %1455 = vmatmul.mubr.bf16.vlgmr.msra.gmra.mrb[32].mxu0 %v1202_v8  ;;  %v826_v26 = vmul.f32 1.442695, %v8865_v50  ;;  %7468 = vpow2.f32 %v824_v59  ;;  %v8901_v43 = vpop.eup %7454  ;;  %vm8909_vm12 = vcmp.lt.f32.partialorder %v901_v36, 0.0004427343 }
 0x13c   : > { %v828_v8 = vmul.f32 1.442695, %v8876_v24  ;;  %v8897_v13 = vadd.f32 %v8673_v55, %v606_v2  ;;  %v918_v48 = vmul.f32 %v8803_v9, %v917_v37  ;;  %v903_v3 = vsel %vm8909_vm12, %v900_v61, %v897_v39 }
 0x13d   : > { %7470 = vpow2.f32 %v826_v26  ;;  %v830_v7 = vmul.f32 1.442695, %v8873_v12  ;;  %v907_v5 = vmul.f32 -0.5, %v8821_v14  ;;  %v890_v18 = vadd.f32 1.0, %v889_v40 }
 0x13e   : > { %7472 = vlog2.f32 %v904_v25  ;;  %v832_v57 = vmul.f32 1.442695, %v8897_v13  ;;  %vm920_vm13 = vcmp.lt.f32.partialorder %v919_v63, 0.0004427343  ;;  %v892_v26 = vand.u32 2147483647, %v8815_v6 }
 0x13f   : > { %v7457_v0 = vpop.eup %7456  ;;  %7474 = vlog2.f32 %v931_v44  ;;  %v1175_v61 = vsel %vm1143_vm10, %v8701_v11, %v903_v3  ;;  %v934_v25 = vmul.f32 -0.5, %v8856_v45  ;;  %v891_v46 = vmul.f32 %v8815_v6, %v890_v18 }
 0x140   : > { %v610_v31 = vpop.f32.mrb[24].mxu0  ;;  %v7459_v2 = vpop.eup %7458  ;;  %7476 = vpow2.f32 %v828_v8  ;;  %v915_v17 = vmul.f32 0.6931472, %v7457_v0  ;;  %vm8950_vm0 = vcmp.lt.f32.partialorder %v892_v26, 0.0004427343  ;;  %vm1147_vm3 = vcmp.gt.f32.partialorder %v8747_v49, 20.0 }
 0x141   : > { %v8905_v15 = vadd.f32 %v8670_v54, %v610_v31  ;;  %v612_v20 = vpop.f32.mrb[25].mxu0  ;;  %v8921_v9 = vpop.eup %7460  ;;  %7478 = vpow2.f32 %v830_v7  ;;  %v888_v8 = vmul.f32 0.6931472, %v7459_v2  ;;  %v908_v31 = vadd.f32 1.0, %v907_v5 }
 0x142   : > { %v614_v58 = vpop.f32.mrb[26].mxu0  ;;  %v8925_v37 = vpop.eup %7462  ;;  %v921_v39 = vsel %vm920_vm13, %v918_v48, %v915_v17  ;;  %v910_v7 = vand.u32 2147483647, %v8821_v14  ;;  %v8940_v44 = vadd.f32 %v8673_v55, %v612_v20  ;;  %7480 = vpow2.f32 %v832_v57 }
 0x143   : > { %v8918_v10 = vadd.f32 %v8670_v54, %v614_v58  ;;  %v616_v59 = vpop.f32.mrb[27].mxu0  ;;  %v834_v36 = vmul.f32 1.442695, %v8905_v15  ;;  %v8933_v40 = vpop.eup %7464  ;;  %v1177_v63 = vsel %vm1145_vm11, %v8719_v23, %v921_v39  ;;  %v949_v20 = vadd.f32 1.0, %v8878_v30 }
 0x144   : > { %v8943_v11 = vpop.eup %7466  ;;  %v1205_v27 = vpack.c.bf16 %v1177_v63, %v1175_v61  ;;  %v894_v3 = vsel %vm8950_vm0, %v891_v46, %v888_v8  ;;  %v8958_v5 = vadd.f32 %v8673_v55, %v616_v59  ;;  %v935_v6 = vadd.f32 1.0, %v934_v25 }
 0x145   : > { %v8947_v58 = vpop.eup %7468  ;;  %7482 = vpow2.f32 %v834_v36  ;;  %v922_v2 = vadd.f32 1.0, %v8851_v42  ;;  %v909_v18 = vmul.f32 %v8821_v14, %v908_v31  ;;  %vm8964_vm2 = vcmp.lt.f32.partialorder %v910_v7, 0.0004427343 }
 0x146   : > { %1464 = vmatprep.mubr.bf16.mxu0 %v1205_v27  ;;  %v836_v36 = vmul.f32 1.442695, %v8940_v44  ;;  %7484 = vlog2.f32 %v949_v20  ;;  %v838_v59 = vmul.f32 1.442695, %v8918_v10  ;;  %v952_v8 = vmul.f32 -0.5, %v8878_v30 }
 0x147   : > { %v8961_v17 = vpop.eup %7470  ;;  %7486 = vlog2.f32 %v922_v2  ;;  %v940_v25 = vadd.f32 1.0, %v8867_v60  ;;  %v1174_v31 = vsel %vm1142_vm14, %v8726_v32, %v894_v3  ;;  %v937_v7 = vand.u32 2147483647, %v8856_v45 }
 0x148   : > { %v620_v48 = vpop.f32.mrb[28].mxu0  ;;  %v7473_v61 = vpop.eup %7472  ;;  %v925_v27 = vmul.f32 -0.5, %v8851_v42  ;;  %v840_v23 = vmul.f32 1.442695, %v8958_v5  ;;  %v936_v20 = vmul.f32 %v8856_v45, %v935_v6  ;;  %v955_v2 = vand.u32 2147483647, %v8878_v30 }
 0x149   : > { %v622_v0 = vpop.f32.mrb[29].mxu0  ;;  %v7475_v63 = vpop.eup %7474  ;;  %v906_v14 = vmul.f32 0.6931472, %v7473_v61  ;;  %7488 = vlog2.f32 %v940_v25  ;;  %v8992_v1 = vadd.f32 %v8670_v54, %v620_v48  ;;  %v953_v6 = vadd.f32 1.0, %v952_v8 }
 0x14a   : > { %v624_v57 = vpop.f32.mrb[30].mxu0  ;;  %v8980_v46 = vpop.eup %7476  ;;  %v933_v3 = vmul.f32 0.6931472, %v7475_v63  ;;  %v8995_v53 = vadd.f32 %v8673_v55, %v622_v0  ;;  %v943_v28 = vmul.f32 -0.5, %v8867_v60  ;;  %v926_v26 = vadd.f32 1.0, %v925_v27 }
 0x14b   : > { %v8969_v39 = vpop.f32.mrb[31].mxu0  ;;  %v8987_v61 = vpop.eup %7478  ;;  %v912_v32 = vsel %vm8964_vm2, %v909_v18, %v906_v14  ;;  %v9003_v25 = vadd.f32 %v8670_v54, %v624_v57  ;;  %v928_v48 = vand.u32 2147483647, %v8851_v42  ;;  %v842_v63 = vmul.f32 1.442695, %v8992_v1 }
 0x14c   : > { %v1176_v45 = vsel %vm1144_vm15, %v8730_v35, %v912_v32  ;;  %v9007_v0 = vpop.eup %7480  ;;  %vm1149_vm4 = vcmp.gt.f32.partialorder %v8759_v4, 20.0  ;;  %7490 = vpow2.f32 %v836_v36  ;;  %vm9010_vm5 = vcmp.lt.f32.partialorder %v937_v7, 0.0004427343 }
 0x14d   : > { %v1204_v18 = vpack.c.bf16 %v1176_v45, %v1174_v31  ;;  %v946_v35 = vand.u32 2147483647, %v8867_v60  ;;  %vm1146_vm6 = vcmp.gt.f32.partialorder %v8741_v47, 20.0  ;;  %vm1148_vm7 = vcmp.gt.f32.partialorder %v8751_v56, 20.0 }
 0x14e   : > { %7492 = vpow2.f32 %v838_v59  ;;  %v939_v54 = vsel %vm9010_vm5, %v936_v20, %v933_v3  ;;  %v844_v57 = vmul.f32 1.442695, %v8995_v53  ;;  %v967_v36 = vadd.f32 1.0, %v8890_v38 }
 0x14f   : > { %v9015_v8 = vpop.eup %7482  ;;  %1465 = vmatmul.mubr.bf16.gmra.mrb[36].mxu0 %v1204_v18  ;;  %7494 = vpow2.f32 %v840_v23  ;;  %vm9023_vm8 = vcmp.lt.f32.partialorder %v955_v2, 0.0004427343  ;;  %v944_v7 = vadd.f32 1.0, %v943_v28  ;;  %v985_v27 = vadd.f32 1.0, %v8921_v9 }
 0x150   : > { %v7485_v32 = vpop.eup %7484  ;;  %v954_v45 = vmul.f32 %v8878_v30, %v953_v6  ;;  %v927_v59 = vmul.f32 %v8851_v42, %v926_v26  ;;  %vm9030_vm9 = vcmp.lt.f32.partialorder %v928_v48, 0.0004427343  ;;  %7496 = vpow2.f32 %v842_v63 }
 0x151   : > { %v7487_v20 = vpop.eup %7486  ;;  %v951_v3 = vmul.f32 0.6931472, %v7485_v32  ;;  %v1179_v23 = vsel %vm1147_vm3, %v8747_v49, %v939_v54  ;;  %vm9037_vm10 = vcmp.lt.f32.partialorder %v946_v35, 0.0004427343  ;;  %7498 = vlog2.f32 %v967_v36 }
 0x152   : > { %v924_v42 = vmul.f32 0.6931472, %v7487_v20  ;;  %7500 = vpow2.f32 %v844_v57  ;;  %v846_v30 = vmul.f32 1.442695, %v9003_v25  ;;  %v9046_v6 = vadd.f32 %v8673_v55, %v8969_v39 }
 0x153   : > { %v7489_v28 = vpop.eup %7488  ;;  %v957_v49 = vsel %vm9023_vm8, %v954_v45, %v951_v3  ;;  %v945_v26 = vmul.f32 %v8867_v60, %v944_v7  ;;  %7502 = vlog2.f32 %v985_v27  ;;  %v958_v48 = vadd.f32 1.0, %v8884_v19  ;;  %v8440_v3 = vld [vmem:[%s8611_s22 + $0x38] sm:$0xff]  }
 0x154   : > { %v1181_v29 = vsel %vm1149_vm4, %v8759_v4, %v957_v49  ;;  %v930_v63 = vsel %vm9030_vm9, %v927_v59, %v924_v42  ;;  %v942_v55 = vmul.f32 0.6931472, %v7489_v28  ;;  %v970_v39 = vmul.f32 -0.5, %v8890_v38  ;;  %6735 = vmatmul.mubr.msk.bf16.gmra.mrb[28].mxu1 %vm478_vm1, %v8440_v3 }
 0x155   : > { %v1207_v51 = vpack.c.bf16 %v1181_v29, %v1179_v23  ;;  %v973_v14 = vand.u32 2147483647, %v8890_v38  ;;  %v988_v35 = vmul.f32 -0.5, %v8921_v9  ;;  %7504 = vlog2.f32 %v958_v48 }
 0x156   : > { %v948_v60 = vsel %vm9037_vm10, %v945_v26, %v942_v55  ;;  %7506 = vpow2.f32 %v846_v30  ;;  %v848_v54 = vmul.f32 1.442695, %v9046_v6  ;;  %v976_v4 = vadd.f32 1.0, %v8901_v43  ;;  %v9065_v57 = vpop.eup %7490 }
 0x157   : > { %1474 = vmatprep.mubr.bf16.mxu0 %v1207_v51  ;;  %v1178_v36 = vsel %vm1146_vm6, %v8741_v47, %v930_v63  ;;  %v1180_v31 = vsel %vm1148_vm7, %v8751_v56, %v948_v60  ;;  %v961_v7 = vmul.f32 -0.5, %v8884_v19  ;;  %v1003_v27 = vadd.f32 1.0, %v8933_v40 }
 0x158   : > { %v9075_v32 = vpop.eup %7492  ;;  %vm1151_vm11 = vcmp.gt.f32.partialorder %v8780_v33, 20.0  ;;  %v1206_v45 = vpack.c.bf16 %v1180_v31, %v1178_v36  ;;  %v971_v59 = vadd.f32 1.0, %v970_v39  ;;  %7508 = vlog2.f32 %v976_v4 }
 0x159   : > { %v979_v18 = vmul.f32 -0.5, %v8901_v43  ;;  %v9079_v20 = vpop.eup %7494  ;;  %vm1153_vm12 = vcmp.gt.f32.partialorder %v8801_v52, 20.0  ;;  %v989_v47 = vadd.f32 1.0, %v988_v35  ;;  %v991_v56 = vand.u32 2147483647, %v8921_v9 }
 0x15a   : > { %7510 = vlog2.f32 %v1003_v27  ;;  %v9085_v23 = vpop.eup %7496  ;;  %1475 = vmatmul.mubr.bf16.gmra.mrb[40].mxu0 %v1206_v45  ;;  %vm9087_vm13 = vcmp.lt.f32.partialorder %v973_v14, 0.0004427343  ;;  %v964_v42 = vand.u32 2147483647, %v8884_v19  ;;  %v1021_v30 = vadd.f32 1.0, %v8947_v58 }
 0x15b   : > { %7512 = vpow2.f32 %v848_v54  ;;  %v7499_v28 = vpop.eup %7498  ;;  %v962_v49 = vadd.f32 1.0, %v961_v7  ;;  %v982_v26 = vand.u32 2147483647, %v8901_v43  ;;  %v1006_v48 = vmul.f32 -0.5, %v8933_v40 }
 0x15c   : > { %v994_v29 = vadd.f32 1.0, %v8925_v37  ;;  %v9096_v63 = vpop.eup %7500  ;;  %v969_v55 = vmul.f32 0.6931472, %v7499_v28  ;;  %v972_v39 = vmul.f32 %v8890_v38, %v971_v59  ;;  %v980_v51 = vadd.f32 1.0, %v979_v18 }
 0x15d   : > { %7514 = vlog2.f32 %v1021_v30  ;;  %v7503_v14 = vpop.eup %7502  ;;  %vm1150_vm1 = vcmp.gt.f32.partialorder %v8773_v22, 20.0  ;;  %vm1152_vm14 = vcmp.gt.f32.partialorder %v8791_v41, 20.0  ;;  %v990_v35 = vmul.f32 %v8921_v9, %v989_v47 }
 0x15e   : > { %vm9102_vm15 = vcmp.lt.f32.partialorder %v991_v56, 0.0004427343  ;;  %v1024_v54 = vmul.f32 -0.5, %v8947_v58  ;;  %7516 = vlog2.f32 %v994_v29  ;;  %v975_v4 = vsel %vm9087_vm13, %v972_v39, %v969_v55 }
 0x15f   : > { %v987_v38 = vmul.f32 0.6931472, %v7503_v14  ;;  %vm9109_vm0 = vcmp.lt.f32.partialorder %v964_v42, 0.0004427343  ;;  %v1009_v31 = vand.u32 2147483647, %v8933_v40  ;;  %v7505_v7 = vpop.eup %7504  ;;  %v963_v9 = vmul.f32 %v8884_v19, %v962_v49 }
 0x160   : > { %vm9115_vm2 = vcmp.lt.f32.partialorder %v982_v26, 0.0004427343  ;;  %v1007_v45 = vadd.f32 1.0, %v1006_v48  ;;  %v1012_v59 = vadd.f32 1.0, %v8943_v11  ;;  %v9120_v18 = vpop.eup %7506  ;;  %v960_v56 = vmul.f32 0.6931472, %v7505_v7 }
 0x161   : > { %v993_v47 = vsel %vm9102_vm15, %v990_v35, %v987_v38  ;;  %v981_v3 = vmul.f32 %v8901_v43, %v980_v51  ;;  %v997_v2 = vmul.f32 -0.5, %v8925_v37  ;;  %vm1155_vm3 = vcmp.gt.f32.partialorder %v8827_v16, 20.0 }
 0x162   : > { %vm1157_vm4 = vcmp.gt.f32.partialorder %v8847_v21, 20.0  ;;  %v1183_v19 = vsel %vm1151_vm11, %v8780_v33, %v975_v4  ;;  %v1185_v42 = vsel %vm1153_vm12, %v8801_v52, %v993_v47  ;;  %v1025_v30 = vadd.f32 1.0, %v1024_v54  ;;  %v7509_v28 = vpop.eup %7508 }
 0x163   : > { %7518 = vlog2.f32 %v1012_v59  ;;  %v1209_v49 = vpack.c.bf16 %v1185_v42, %v1183_v19  ;;  %vm9134_vm5 = vcmp.lt.f32.partialorder %v1009_v31, 0.0004427343  ;;  %v1027_v26 = vand.u32 2147483647, %v8947_v58 }
 0x164   : > { %v1039_v48 = vadd.f32 1.0, %v8980_v46  ;;  %v7511_v29 = vpop.eup %7510  ;;  %v966_v33 = vsel %vm9109_vm0, %v963_v9, %v960_v56  ;;  %v978_v55 = vmul.f32 0.6931472, %v7509_v28  ;;  %v1008_v39 = vmul.f32 %v8933_v40, %v1007_v45 }
 0x165   : > { %v1015_v52 = vmul.f32 -0.5, %v8943_v11  ;;  %v9144_v51 = vpop.eup %7512  ;;  %1484 = vmatprep.mubr.bf16.mxu0 %v1209_v49  ;;  %v1005_v14 = vmul.f32 0.6931472, %v7511_v29  ;;  %v998_v35 = vadd.f32 1.0, %v997_v2  ;;  %v1057_v60 = vadd.f32 1.0, %v9007_v0 }
 0x166   : > { %7520 = vlog2.f32 %v1039_v48  ;;  %v984_v54 = vsel %vm9115_vm2, %v981_v3, %v978_v55  ;;  %v1026_v4 = vmul.f32 %v8947_v58, %v1025_v30  ;;  %v1000_v38 = vand.u32 2147483647, %v8925_v37 }
 0x167   : > { %v1018_v36 = vand.u32 2147483647, %v8943_v11  ;;  %v7515_v40 = vpop.eup %7514  ;;  %vm1154_vm6 = vcmp.gt.f32.partialorder %v8824_v62, 20.0  ;;  %vm1156_vm7 = vcmp.gt.f32.partialorder %v8839_v34, 20.0  ;;  %v1182_v31 = vsel %vm1150_vm1, %v8773_v22, %v966_v33 }
 0x168   : > { %v1184_v7 = vsel %vm1152_vm14, %v8791_v41, %v984_v54  ;;  %v1042_v9 = vmul.f32 -0.5, %v8980_v46  ;;  %7522 = vlog2.f32 %v1057_v60  ;;  %v7517_v58 = vpop.eup %7516  ;;  %v1011_v45 = vsel %vm9134_vm5, %v1008_v39, %v1005_v14 }
 0x169   : > { %v1208_v27 = vpack.c.bf16 %v1184_v7, %v1182_v31  ;;  %v1023_v59 = vmul.f32 0.6931472, %v7515_v40  ;;  %v1016_v47 = vadd.f32 1.0, %v1015_v52  ;;  %vm1028_vm8 = vcmp.lt.f32.partialorder %v1027_v26, 0.0004427343 }
 0x16a   : > { %v996_v56 = vmul.f32 0.6931472, %v7517_v58  ;;  %v999_v3 = vmul.f32 %v8925_v37, %v998_v35  ;;  %v1030_v22 = vadd.f32 1.0, %v8961_v17  ;;  %v1045_v41 = vand.u32 2147483647, %v8980_v46 }
 0x16b   : > { %1485 = vmatmul.mubr.bf16.gmra.mrb[44].mxu0 %v1208_v27  ;;  %v1029_v2 = vsel %vm1028_vm8, %v1026_v4, %v1023_v59  ;;  %v1060_v19 = vmul.f32 -0.5, %v9007_v0  ;;  %v1048_v42 = vadd.f32 1.0, %v8987_v61  ;;  %v1187_v30 = vsel %vm1155_vm3, %v8827_v16, %v1011_v45 }
 0x16c   : > { %v1189_v28 = vsel %vm1157_vm4, %v8847_v21, %v1029_v2  ;;  %v1043_v49 = vadd.f32 1.0, %v1042_v9  ;;  %7524 = vlog2.f32 %v1030_v22  ;;  %vm1159_vm9 = vcmp.gt.f32.partialorder %v8876_v24, 20.0 }
 0x16d   : > { %v7519_v37 = vpop.eup %7518  ;;  %vm1161_vm10 = vcmp.gt.f32.partialorder %v8897_v13, 20.0  ;;  %v1211_v43 = vpack.c.bf16 %v1189_v28, %v1187_v30  ;;  %vm9176_vm11 = vcmp.lt.f32.partialorder %v1000_v38, 0.0004427343  ;;  %v1017_v48 = vmul.f32 %v8943_v11, %v1016_v47 }
 0x16e   : > { %vm9181_vm12 = vcmp.lt.f32.partialorder %v1018_v36, 0.0004427343  ;;  %v1002_v21 = vsel %vm9176_vm11, %v999_v3, %v996_v56  ;;  %v1014_v29 = vmul.f32 0.6931472, %v7519_v37  ;;  %v1063_v33 = vand.u32 2147483647, %v9007_v0 }
 0x16f   : > { %7526 = vlog2.f32 %v1048_v42  ;;  %1494 = vmatprep.mubr.bf16.mxu0 %v1211_v43  ;;  %vm9188_vm13 = vcmp.lt.f32.partialorder %v1045_v41, 0.0004427343  ;;  %v1061_v39 = vadd.f32 1.0, %v1060_v19  ;;  %v1033_v52 = vmul.f32 -0.5, %v8961_v17 }
 0x170   : > { %v1075_v11 = vadd.f32 1.0, %v9065_v57  ;;  %v7521_v14 = vpop.eup %7520  ;;  %v1020_v35 = vsel %vm9181_vm12, %v1017_v48, %v1014_v29  ;;  %v1044_v60 = vmul.f32 %v8980_v46, %v1043_v49  ;;  %v1051_v54 = vmul.f32 -0.5, %v8987_v61 }
 0x171   : > { %v1093_v4 = vadd.f32 1.0, %v9079_v20  ;;  %v1186_v38 = vsel %vm1154_vm6, %v8824_v62, %v1002_v21  ;;  %v1188_v36 = vsel %vm1156_vm7, %v8839_v34, %v1020_v35  ;;  %v1041_v40 = vmul.f32 0.6931472, %v7521_v14 }
 0x172   : > { %7528 = vlog2.f32 %v1075_v11  ;;  %v7523_v31 = vpop.eup %7522  ;;  %v1210_v7 = vpack.c.bf16 %v1188_v36, %v1186_v38  ;;  %v1036_v9 = vand.u32 2147483647, %v8961_v17  ;;  %v1078_v46 = vmul.f32 -0.5, %v9065_v57 }
 0x173   : > { %7530 = vlog2.f32 %v1093_v4  ;;  %vm1158_vm1 = vcmp.gt.f32.partialorder %v8865_v50, 20.0  ;;  %vm1160_vm14 = vcmp.gt.f32.partialorder %v8873_v12, 20.0  ;;  %v1047_v62 = vsel %vm9188_vm13, %v1044_v60, %v1041_v40 }
 0x174   : > { %v1059_v58 = vmul.f32 0.6931472, %v7523_v31  ;;  %v1062_v27 = vmul.f32 %v9007_v0, %v1061_v39  ;;  %v1034_v34 = vadd.f32 1.0, %v1033_v52  ;;  %1495 = vmatmul.mubr.bf16.gmra.mrb[48].mxu0 %v1210_v7  ;;  %vm1064_vm15 = vcmp.lt.f32.partialorder %v1063_v33, 0.0004427343 }
 0x175   : > { %v1052_v45 = vadd.f32 1.0, %v1051_v54  ;;  %v1054_v59 = vand.u32 2147483647, %v8987_v61  ;;  %v1066_v47 = vadd.f32 1.0, %v9015_v8  ;;  %v1081_v3 = vand.u32 2147483647, %v9065_v57 }
 0x176   : > { %v1065_v56 = vsel %vm1064_vm15, %v1062_v27, %v1059_v58  ;;  %v1096_v22 = vmul.f32 -0.5, %v9079_v20  ;;  %v1084_v2 = vadd.f32 1.0, %v9075_v32  ;;  %v7525_v41 = vpop.eup %7524  ;;  %v1191_v0 = vsel %vm1159_vm9, %v8876_v24, %v1047_v62 }
 0x177   : > { %v1193_v19 = vsel %vm1161_vm10, %v8897_v13, %v1065_v56  ;;  %v1079_v42 = vadd.f32 1.0, %v1078_v46  ;;  %7532 = vlog2.f32 %v1066_v47  ;;  %vm1163_vm0 = vcmp.gt.f32.partialorder %v8940_v44, 20.0 }
 0x178   : > { %v1213_v30 = vpack.c.bf16 %v1193_v19, %v1191_v0  ;;  %v1032_v28 = vmul.f32 0.6931472, %v7525_v41  ;;  %v1035_v49 = vmul.f32 %v8961_v17, %v1034_v34  ;;  %vm9225_vm2 = vcmp.lt.f32.partialorder %v1036_v9, 0.0004427343 }
 0x179   : > { %v7527_v43 = vpop.eup %7526  ;;  %v1053_v26 = vmul.f32 %v8987_v61, %v1052_v45  ;;  %vm9230_vm3 = vcmp.lt.f32.partialorder %v1054_v59, 0.0004427343  ;;  %v1069_v13 = vmul.f32 -0.5, %v9015_v8  ;;  %7534 = vlog2.f32 %v1084_v2 }
 0x17a   : > { %1504 = vmatprep.mubr.bf16.mxu0 %v1213_v30  ;;  %v1038_v48 = vsel %vm9225_vm2, %v1035_v49, %v1032_v28  ;;  %v1050_v16 = vmul.f32 0.6931472, %v7527_v43  ;;  %v1097_v17 = vadd.f32 1.0, %v1096_v22  ;;  %v1111_v21 = vadd.f32 1.0, %v9096_v63 }
 0x17b   : > { %v1080_v29 = vmul.f32 %v9065_v57, %v1079_v42  ;;  %vm9239_vm4 = vcmp.lt.f32.partialorder %v1081_v3, 0.0004427343  ;;  %v1099_v61 = vand.u32 2147483647, %v9079_v20  ;;  %v1072_v55 = vand.u32 2147483647, %v9015_v8 }
 0x17c   : > { %v7529_v39 = vpop.eup %7528  ;;  %v1056_v52 = vsel %vm9230_vm3, %v1053_v26, %v1050_v16  ;;  %v1087_v11 = vmul.f32 -0.5, %v9075_v32  ;;  %7536 = vlog2.f32 %v1111_v21  ;;  %v1129_v14 = vadd.f32 1.0, %v9144_v51 }
 0x17d   : > { %v7531_v35 = vpop.eup %7530  ;;  %v1190_v57 = vsel %vm1158_vm1, %v8865_v50, %v1038_v48  ;;  %v1192_v60 = vsel %vm1160_vm14, %v8873_v12, %v1056_v52  ;;  %v1077_v54 = vmul.f32 0.6931472, %v7529_v39  ;;  %v1070_v4 = vadd.f32 1.0, %v1069_v13 }
 0x17e   : > { %v1212_v38 = vpack.c.bf16 %v1192_v60, %v1190_v57  ;;  %v1095_v36 = vmul.f32 0.6931472, %v7531_v35  ;;  %v1098_v40 = vmul.f32 %v9079_v20, %v1097_v17  ;;  %7538 = vlog2.f32 %v1129_v14 }
 0x17f   : > { %v1083_v31 = vsel %vm9239_vm4, %v1080_v29, %v1077_v54  ;;  %vm1100_vm5 = vcmp.lt.f32.partialorder %v1099_v61, 0.0004427343  ;;  %v1114_v7 = vmul.f32 -0.5, %v9096_v63  ;;  %v1102_v9 = vadd.f32 1.0, %v9085_v23  ;;  %v7151_v54 = vld [vmem:[#allocation3 + $0x174] ss:$8 sps:$4 sm:$0xff]  }
 0x180   : > { %vm1165_vm6 = vcmp.gt.f32.partialorder %v8958_v5, 20.0  ;;  %1505 = vmatmul.mubr.bf16.gmra.mrb[52].mxu0 %v1212_v38  ;;  %v1101_v50 = vsel %vm1100_vm5, %v1098_v40, %v1095_v36  ;;  %v1088_v12 = vadd.f32 1.0, %v1087_v11  ;;  %v1090_v46 = vand.u32 2147483647, %v9075_v32  ;;  %2187 = vmatprep.subr.bf16.mxu1 %v7151_v54  ;;  %v7152_v38 = vld [vmem:[#allocation3 + $0x180] ss:$8 sps:$4 sm:$0xff]  }
 0x181   : > { %v7533_v62 = vpop.eup %7532  ;;  %v1195_v20 = vsel %vm1163_vm0, %v8940_v44, %v1083_v31  ;;  %v1197_v58 = vsel %vm1165_vm6, %v8958_v5, %v1101_v50  ;;  %v1132_v27 = vmul.f32 -0.5, %v9144_v51  ;;  %7540 = vlog2.f32 %v1102_v9  ;;  %v7155_v36 = vld [vmem:[#allocation3 + $0x190] ss:$8 sps:$4 sm:$0xff]   ;;  %v7160_v40 = vld [vmem:[#allocation3 + $0x1a4] ss:$8 sps:$4 sm:$0xff]  }
 0x182   : > { %v1215_v34 = vpack.c.bf16 %v1197_v58, %v1195_v20  ;;  %v1068_v45 = vmul.f32 0.6931472, %v7533_v62  ;;  %v1071_v59 = vmul.f32 %v9015_v8, %v1070_v4  ;;  %vm9268_vm7 = vcmp.lt.f32.partialorder %v1072_v55, 0.0004427343  ;;  %v7154_v4 = vld [vmem:[#allocation3 + $0x184] ss:$8 sps:$4 sm:$0xff]  }
 0x183   : > { %v7535_v47 = vpop.eup %7534  ;;  %v1115_v3 = vadd.f32 1.0, %v1114_v7  ;;  %v1120_v22 = vadd.f32 1.0, %v9120_v18  ;;  %v1089_v2 = vmul.f32 %v9075_v32, %v1088_v12  ;;  %v1117_v41 = vand.u32 2147483647, %v9096_v63  ;;  %v7158_v31 = vld [vmem:[#allocation3 + $0x1a0] ss:$8 sps:$4 sm:$0xff]  }
 0x184   : > { %1514 = vmatprep.mubr.bf16.mxu0 %v1215_v34  ;;  %v1074_v44 = vsel %vm9268_vm7, %v1071_v59, %v1068_v45  ;;  %v1086_v5 = vmul.f32 0.6931472, %v7535_v47  ;;  %vm1162_vm8 = vcmp.gt.f32.partialorder %v8905_v15, 20.0  ;;  %vm1091_vm9 = vcmp.lt.f32.partialorder %v1090_v46, 0.0004427343  ;;  %v12914_v34 = vld [vmem:[#allocation6_spill] sm:$0xff] }
 0x185   : > { %v1133_v8 = vadd.f32 1.0, %v1132_v27  ;;  %7542 = vlog2.f32 %v1120_v22  ;;  %vm1164_vm10 = vcmp.gt.f32.partialorder %v8918_v10, 20.0  ;;  %v1135_v42 = vand.u32 2147483647, %v9144_v51  ;;  %v7166_v7 = vld [vmem:[#allocation3 + $0x1c4] ss:$8 sps:$4 sm:$0xff]  }
 0x186   : > { %v7537_v0 = vpop.eup %7536  ;;  %v1092_v19 = vsel %vm1091_vm9, %v1089_v2, %v1086_v5  ;;  %v1105_v30 = vmul.f32 -0.5, %v9085_v23  ;;  %v1194_v28 = vsel %vm1162_vm8, %v8905_v15, %v1074_v44  ;;  %v1116_v37 = vmul.f32 %v9096_v63, %v1115_v3  ;;  %v7164_v9 = vld [vmem:[#allocation3 + $0x1c0] ss:$8 sps:$4 sm:$0xff]   ;;  %v7169_v50 = vld [vmem:[#allocation3 + $0x1d4] ss:$8 sps:$4 sm:$0xff]  }
 0x187   : > { %v1196_v49 = vsel %vm1164_vm10, %v8918_v10, %v1092_v19  ;;  %v1113_v32 = vmul.f32 0.6931472, %v7537_v0  ;;  %vm1118_vm11 = vcmp.lt.f32.partialorder %v1117_v41, 0.0004427343  ;;  %v1123_v24 = vmul.f32 -0.5, %v9120_v18  ;;  %v12915_v59 = vld [vmem:[#allocation7_spill] sm:$0xff] }
 0x188   : > { %v7539_v43 = vpop.eup %7538  ;;  %v1214_v26 = vpack.c.bf16 %v1196_v49, %v1194_v28  ;;  %v1134_v16 = vmul.f32 %v9144_v51, %v1133_v8  ;;  %vm1136_vm12 = vcmp.lt.f32.partialorder %v1135_v42, 0.0004427343  ;;  %v1106_v17 = vadd.f32 1.0, %v1105_v30  ;;  %v7167_v12 = vld [vmem:[#allocation3 + $0x1d0] ss:$8 sps:$4 sm:$0xff]  }
 0x189   : > { %v1119_v13 = vsel %vm1118_vm11, %v1116_v37, %v1113_v32  ;;  %v1131_v48 = vmul.f32 0.6931472, %v7539_v43  ;;  %vm1167_vm13 = vcmp.gt.f32.partialorder %v8995_v53, 20.0  ;;  %vm1169_vm1 = vcmp.gt.f32.partialorder %v9046_v6, 20.0  ;;  %v7172_v46 = vld [vmem:[#allocation3 + $0x1e4] ss:$8 sps:$4 sm:$0xff]  }
 0x18a   : > { %1515 = vmatmul.mubr.bf16.gmra.mrb[56].mxu0 %v1214_v26  ;;  %v1108_v10 = vand.u32 2147483647, %v9085_v23  ;;  %v1199_v63 = vsel %vm1167_vm13, %v8995_v53, %v1119_v13  ;;  %v1124_v61 = vadd.f32 1.0, %v1123_v24  ;;  %v1126_v51 = vand.u32 2147483647, %v9120_v18 }
 0x18b   : > { %v7541_v21 = vpop.eup %7540  ;;  %v1137_v15 = vsel %vm1136_vm12, %v1134_v16, %v1131_v48  ;;  %v1107_v39 = vmul.f32 %v9085_v23, %v1106_v17  ;;  %vm1166_vm0 = vcmp.gt.f32.partialorder %v8992_v1, 20.0  ;;  %vm1168_vm2 = vcmp.gt.f32.partialorder %v9003_v25, 20.0  ;;  %v7149_v23 = vld [vmem:[#allocation3 + $0x170] ss:$8 sps:$4 sm:$0xff]   ;;  %v7170_v62 = vld [vmem:[#allocation3 + $0x1e0] ss:$8 sps:$4 sm:$0xff]  }
 0x18c   : > { %v1201_v29 = vsel %vm1169_vm1, %v9046_v6, %v1137_v15  ;;  %v1104_v33 = vmul.f32 0.6931472, %v7541_v21  ;;  %vm1109_vm14 = vcmp.lt.f32.partialorder %v1108_v10, 0.0004427343  ;;  %v1125_v35 = vmul.f32 %v9120_v18, %v1124_v61  ;;  %2188 = vmatpush1.bf16.msra.mxu1 %v7149_v23  ;;  %v7157_v18 = vld [vmem:[#allocation3 + $0x194] ss:$8 sps:$4 sm:$0xff]  }
 0x18d   : > { %v1217_v55 = vpack.c.bf16 %v1201_v29, %v1199_v63  ;;  %vm1127_vm15 = vcmp.lt.f32.partialorder %v1126_v51, 0.0004427343  ;;  %2189 = vmatprep.subr.bf16.mxu1 %v7154_v4  ;;  %v7175_v20 = vld [vmem:[#allocation3 + $0x1f4] ss:$8 sps:$4 sm:$0xff]   ;;  %v7173_v58 = vld [vmem:[#allocation3 + $0x1f0] ss:$8 sps:$4 sm:$0xff]  }
 0x18e   : > { %v1110_v11 = vsel %vm1109_vm14, %v1107_v39, %v1104_v33  ;;  %v1250_v27 = vld [vmem:[%s12847_s4] ss:$8 sm:$0x3]  ;;  %v7176_v16 = vld [vmem:[#allocation3 + $0x200] ss:$8 sps:$4 sm:$0xff]  }
 0x18f   : > { %v7543_v52 = vpop.eup %7542  ;;  %1524 = vmatprep.mubr.bf16.mxu0 %v1217_v55  ;;  %v1198_v6 = vsel %vm1166_vm0, %v8992_v1, %v1110_v11  ;;  %v7163_v1 = vld [vmem:[#allocation3 + $0x1b4] ss:$8 sps:$4 sm:$0xff]   ;;  %v9302_v45 = vrot.slane %v1250_v27, %v12914_v34  ;;  %v9305_v47 = vrot.slane %v1250_v27, %v12915_v59  ;;  %v7178_v17 = vld [vmem:[#allocation3 + $0x204] ss:$8 sps:$4 sm:$0xff]   ;;  %v7179_v39 = vld [vmem:[#allocation3 + $0x210] ss:$8 sps:$4 sm:$0xff]  }
 0x190   : > { %v1122_v14 = vmul.f32 0.6931472, %v7543_v52  ;;  %2190 = vmatpush1.bf16.msra.mxu1 %v7152_v38  ;;  %2924 = vmatprep.subr.bf16.mxu0 %v7178_v17  ;;  %v7181_v33 = vld [vmem:[#allocation3 + $0x214] ss:$8 sps:$4 sm:$0xff]  }
 0x191   : > { %2191 = vmatprep.subr.bf16.mxu1 %v7157_v18  ;;  %2925 = vmatpush1.bf16.msra.mxu0 %v7176_v16 }
 0x192   : > { %v1128_v53 = vsel %vm1127_vm15, %v1125_v35, %v1122_v14  ;;  %2926 = vmatprep.subr.bf16.mxu0 %v7181_v33  ;;  %v7193_v33 = vld [vmem:[#allocation3 + $0x254] ss:$8 sps:$4 sm:$0xff]  }
 0x193   : > { %v1200_v57 = vsel %vm1168_vm2, %v9003_v25, %v1128_v53  ;;  %v7161_v25 = vld [vmem:[#allocation3 + $0x1b0] ss:$8 sps:$4 sm:$0xff]   ;;  %v7184_v53 = vld [vmem:[#allocation3 + $0x224] ss:$8 sps:$4 sm:$0xff]  }
 0x194   : > { %v1216_v60 = vpack.c.bf16 %v1200_v57, %v1198_v6  ;;  %2192 = vmatpush1.bf16.msra.mxu1 %v7155_v36 }
 0x195   : > { %2193 = vmatprep.subr.bf16.mxu1 %v7160_v40  ;;  %2927 = vmatpush1.bf16.msra.mxu0 %v7179_v39 }
 0x196   : > { %1525 = vmatmul.mubr.bf16.gmra.mrb[60].mxu0 %v1216_v60  ;;  %2928 = vmatprep.subr.bf16.mxu0 %v7184_v53  ;;  %v7196_v53 = vld [vmem:[#allocation3 + $0x264] ss:$8 sps:$4 sm:$0xff]  }
 0x198   : > { %2194 = vmatpush1.bf16.msra.mxu1 %v7158_v31  ;;  %v7182_v31 = vld [vmem:[#allocation3 + $0x220] ss:$8 sps:$4 sm:$0xff]  }
 0x199   : > { %2195 = vmatprep.subr.bf16.mxu1 %v7163_v1  ;;  %2929 = vmatpush1.bf16.msra.mxu0 %v7182_v31 }
 0x19c   : > { %2196 = vmatpush1.bf16.msra.mxu1 %v7161_v25 }
 0x19d   : > { %2197 = vmatprep.subr.bf16.mxu1 %v7166_v7 }
 0x1a0   : > { %2198 = vmatpush1.bf16.msra.mxu1 %v7164_v9 }
 0x1a1   : > { %2199 = vmatprep.subr.bf16.mxu1 %v7169_v50  ;;  %v7187_v50 = vld [vmem:[#allocation3 + $0x234] ss:$8 sps:$4 sm:$0xff]  }
 0x1a2   : > { %2930 = vmatprep.subr.bf16.mxu0 %v7187_v50 }
 0x1a4   : > { %2200 = vmatpush1.bf16.msra.mxu1 %v7167_v12 }
 0x1a5   : > { %2201 = vmatprep.subr.bf16.mxu1 %v7172_v46 }
 0x1a8   : > { %2202 = vmatpush1.bf16.msra.mxu1 %v7170_v62 }
 0x1a9   : > { %2203 = vmatprep.subr.bf16.mxu1 %v7175_v20 }
 0x1ac   : > { %2204 = vmatpush1.bf16.msra.mxu1 %v7173_v58 }
 0x20e   : > { %v1456_v56 = vpop.f32.mrb[32].mxu0 }
 0x20f   : > { %v9308_v3 = vadd.f32 %v1456_v56, %v9302_v45  ;;  %v1458_v22 = vpop.f32.mrb[33].mxu0 }
 0x210   : > { %v9311_v44 = vadd.f32 %v1458_v22, %v9305_v47  ;;  %v1460_v5 = vpop.f32.mrb[34].mxu0 }
 0x211   : > { %v1535_v2 = vmul.f32 1.442695, %v9308_v3  ;;  %v9315_v41 = vadd.f32 %v1460_v5, %v9302_v45  ;;  %v1462_v8 = vpop.f32.mrb[35].mxu0  ;;  %vm1887_vm3 = vcmp.gt.f32.partialorder %v9308_v3, 20.0 }
 0x212   : > { %v1537_v0 = vmul.f32 1.442695, %v9311_v44  ;;  %v9319_v19 = vadd.f32 %v1462_v8, %v9305_v47  ;;  %v7185_v8 = vld [vmem:[#allocation3 + $0x230] ss:$8 sps:$4 sm:$0xff]   ;;  %vm1888_vm8 = vcmp.gt.f32.partialorder %v9311_v44, 20.0 }
 0x213   : > { %7544 = vpow2.f32 %v1535_v2  ;;  %v1539_v42 = vmul.f32 1.442695, %v9315_v41  ;;  %vm1889_vm4 = vcmp.gt.f32.partialorder %v9315_v41, 20.0  ;;  %2931 = vmatpush1.bf16.msra.mxu0 %v7185_v8 }
 0x214   : > { %7546 = vpow2.f32 %v1537_v0  ;;  %v1541_v30 = vmul.f32 1.442695, %v9319_v19  ;;  %vm1890_vm10 = vcmp.gt.f32.partialorder %v9319_v19, 20.0 }
 0x215   : > { %7548 = vpow2.f32 %v1539_v42 }
 0x216   : > { %7550 = vpow2.f32 %v1541_v30 }
 0x21d   : > { %v7545_v28 = vpop.eup %7544 }
 0x21e   : > { %v9323_v49 = vpop.eup %7546  ;;  %v1599_v32 = vadd.f32 1.0, %v7545_v28  ;;  %v1602_v13 = vmul.f32 -0.5, %v7545_v28  ;;  %v1605_v6 = vand.u32 2147483647, %v7545_v28 }
 0x21f   : > { %v7549_v37 = vpop.eup %7548  ;;  %v1608_v43 = vadd.f32 1.0, %v9323_v49  ;;  %v1611_v29 = vmul.f32 -0.5, %v9323_v49  ;;  %v1614_v23 = vand.u32 2147483647, %v9323_v49 }
 0x220   : > { %v9326_v26 = vpop.eup %7550  ;;  %7552 = vlog2.f32 %v1599_v32  ;;  %v1617_v24 = vadd.f32 1.0, %v7549_v37  ;;  %v1620_v15 = vmul.f32 -0.5, %v7549_v37  ;;  %v1603_v61 = vadd.f32 1.0, %v1602_v13  ;;  %v7190_v32 = vld [vmem:[#allocation3 + $0x244] ss:$8 sps:$4 sm:$0xff]  }
 0x221   : > { %7554 = vlog2.f32 %v1608_v43  ;;  %v1626_v48 = vadd.f32 1.0, %v9326_v26  ;;  %v1629_v35 = vmul.f32 -0.5, %v9326_v26  ;;  %v1623_v4 = vand.u32 2147483647, %v7549_v37  ;;  %2932 = vmatprep.subr.bf16.mxu0 %v7190_v32 }
 0x222   : > { %7556 = vlog2.f32 %v1617_v24  ;;  %v1466_v21 = vpop.f32.mrb[36].mxu0  ;;  %v1621_v54 = vadd.f32 1.0, %v1620_v15  ;;  %v1612_v38 = vadd.f32 1.0, %v1611_v29  ;;  %v1604_v7 = vmul.f32 %v7545_v28, %v1603_v61 }
 0x223   : > { %7558 = vlog2.f32 %v1626_v48  ;;  %v9330_v10 = vadd.f32 %v1466_v21, %v9302_v45  ;;  %v1468_v63 = vpop.f32.mrb[37].mxu0  ;;  %v1630_v9 = vadd.f32 1.0, %v1629_v35  ;;  %vm9350_vm5 = vcmp.lt.f32.partialorder %v1605_v6, 0.0004427343 }
 0x224   : > { %v9334_v55 = vadd.f32 %v1468_v63, %v9305_v47  ;;  %v1470_v51 = vpop.f32.mrb[38].mxu0  ;;  %v1632_v20 = vand.u32 2147483647, %v9326_v26  ;;  %v1622_v56 = vmul.f32 %v7549_v37, %v1621_v54  ;;  %v1613_v22 = vmul.f32 %v9323_v49, %v1612_v38 }
 0x225   : > { %v1543_v52 = vmul.f32 1.442695, %v9330_v10  ;;  %v9339_v11 = vadd.f32 %v1470_v51, %v9302_v45  ;;  %v1472_v14 = vpop.f32.mrb[39].mxu0  ;;  %vm1624_vm6 = vcmp.lt.f32.partialorder %v1623_v4, 0.0004427343  ;;  %v1631_v28 = vmul.f32 %v9326_v26, %v1630_v9 }
 0x226   : > { %v1545_v57 = vmul.f32 1.442695, %v9334_v55  ;;  %v9344_v60 = vadd.f32 %v1472_v14, %v9305_v47  ;;  %vm9358_vm7 = vcmp.lt.f32.partialorder %v1614_v23, 0.0004427343  ;;  %vm1633_vm9 = vcmp.lt.f32.partialorder %v1632_v20, 0.0004427343 }
 0x227   : > { %7560 = vpow2.f32 %v1543_v52  ;;  %v1547_v36 = vmul.f32 1.442695, %v9339_v11  ;;  %v7194_v4 = vld [vmem:[#allocation3 + $0x260] ss:$8 sps:$4 sm:$0xff]   ;;  %vm1892_vm11 = vcmp.gt.f32.partialorder %v9334_v55, 20.0  ;;  %vm1891_vm13 = vcmp.gt.f32.partialorder %v9330_v10, 20.0 }
 0x228   : > { %7562 = vpow2.f32 %v1545_v57  ;;  %v1549_v40 = vmul.f32 1.442695, %v9344_v60  ;;  %vm1894_vm12 = vcmp.gt.f32.partialorder %v9344_v60, 20.0  ;;  %vm1893_vm2 = vcmp.gt.f32.partialorder %v9339_v11, 20.0 }
 0x22a   : > { %v7553_v18 = vpop.eup %7552  ;;  %7564 = vpow2.f32 %v1549_v40 }
 0x22b   : > { %v7555_v1 = vpop.eup %7554  ;;  %v1601_v25 = vmul.f32 0.6931472, %v7553_v18  ;;  %7566 = vpow2.f32 %v1547_v36 }
 0x22c   : > { %v7557_v12 = vpop.eup %7556  ;;  %v1610_v62 = vmul.f32 0.6931472, %v7555_v1 }
 0x22d   : > { %v1607_v58 = vsel %vm9350_vm5, %v1604_v7, %v1601_v25  ;;  %v1619_v27 = vmul.f32 0.6931472, %v7557_v12  ;;  %v7559_v5 = vpop.eup %7558  ;;  %v1476_v43 = vpop.f32.mrb[40].mxu0 }
 0x22e   : > { %v1616_v42 = vsel %vm9358_vm7, %v1613_v22, %v1610_v62  ;;  %v1628_v30 = vmul.f32 0.6931472, %v7559_v5  ;;  %v1919_v49 = vsel %vm1887_vm3, %v9308_v3, %v1607_v58  ;;  %v9374_v13 = vadd.f32 %v1476_v43, %v9302_v45  ;;  %v1478_v26 = vpop.f32.mrb[41].mxu0 }
 0x22f   : > { %v1625_v0 = vsel %vm1624_vm6, %v1622_v56, %v1619_v27  ;;  %v9377_v16 = vadd.f32 %v1478_v26, %v9305_v47  ;;  %v1480_v3 = vpop.f32.mrb[42].mxu0  ;;  %v1920_v17 = vsel %vm1888_vm8, %v9311_v44, %v1616_v42  ;;  %v7191_v44 = vld [vmem:[#allocation3 + $0x250] ss:$8 sps:$4 sm:$0xff]  }
 0x230   : > { %v1921_v37 = vsel %vm1889_vm4, %v9315_v41, %v1625_v0  ;;  %v1634_v48 = vsel %vm1633_vm9, %v1631_v28, %v1628_v30  ;;  %v7188_v41 = vld [vmem:[#allocation3 + $0x240] ss:$8 sps:$4 sm:$0xff]   ;;  %v1482_v63 = vpop.f32.mrb[43].mxu0  ;;  %v1551_v51 = vmul.f32 1.442695, %v9374_v13  ;;  %v9392_v23 = vadd.f32 %v1480_v3, %v9302_v45 }
 0x231   : > { %v1951_v24 = vpack.c.bf16 %v1921_v37, %v1919_v49  ;;  %v1922_v21 = vsel %vm1890_vm10, %v9319_v19, %v1634_v48  ;;  %v9381_v15 = vpop.eup %7560  ;;  %v1553_v39 = vmul.f32 1.442695, %v9377_v16  ;;  %2933 = vmatpush1.bf16.msra.mxu0 %v7188_v41  ;;  %v9389_v57 = vadd.f32 %v1482_v63, %v9305_v47 }
 0x232   : > { %v1952_v29 = vpack.c.bf16 %v1922_v21, %v1920_v17  ;;  %v7563_v61 = vpop.eup %7562  ;;  %v1635_v35 = vadd.f32 1.0, %v9381_v15  ;;  %2934 = vmatprep.subr.bf16.mxu0 %v7193_v33  ;;  %v1638_v40 = vmul.f32 -0.5, %v9381_v15  ;;  %v1555_v31 = vmul.f32 1.442695, %v9392_v23 }
 0x233   : > { %v1644_v52 = vadd.f32 1.0, %v7563_v61  ;;  %7568 = vpow2.f32 %v1553_v39  ;;  %v1647_v54 = vmul.f32 -0.5, %v7563_v61  ;;  %v1557_v18 = vmul.f32 1.442695, %v9389_v57 }
 0x234   : > { %2205 = vmatprep.mubr.bf16.mxu1 %v1952_v29  ;;  %v7565_v14 = vpop.eup %7564  ;;  %7570 = vpow2.f32 %v1551_v51  ;;  %v1650_v25 = vand.u32 2147483647, %v7563_v61  ;;  %v1639_v20 = vadd.f32 1.0, %v1638_v40  ;;  %v1641_v58 = vand.u32 2147483647, %v9381_v15 }
 0x235   : > { %2206 = vmatmul.mubr.bf16.vlgmr.msra.gmra.mrb[32].mxu1 %v1951_v24  ;;  %v1662_v19 = vadd.f32 1.0, %v7565_v14  ;;  %v9386_v6 = vpop.eup %7566  ;;  %7572 = vlog2.f32 %v1644_v52  ;;  %2935 = vmatpush1.bf16.msra.mxu0 %v7191_v44  ;;  %v1665_v36 = vmul.f32 -0.5, %v7565_v14  ;;  %v1648_v1 = vadd.f32 1.0, %v1647_v54 }
 0x236   : > { %v1653_v38 = vadd.f32 1.0, %v9386_v6  ;;  %2936 = vmatprep.subr.bf16.mxu0 %v7196_v53  ;;  %v1668_v7 = vand.u32 2147483647, %v7565_v14  ;;  %v1656_v50 = vmul.f32 -0.5, %v9386_v6  ;;  %vm9410_vm1 = vcmp.lt.f32.partialorder %v1650_v25, 0.0004427343 }
 0x237   : > { %7574 = vlog2.f32 %v1662_v19  ;;  %v1666_v62 = vadd.f32 1.0, %v1665_v36  ;;  %v1649_v2 = vmul.f32 %v7563_v61, %v1648_v1  ;;  %v1659_v37 = vand.u32 2147483647, %v9386_v6 }
 0x238   : > { %7576 = vlog2.f32 %v1635_v35  ;;  %vm9414_vm14 = vcmp.lt.f32.partialorder %v1668_v7, 0.0004427343  ;;  %v1657_v49 = vadd.f32 1.0, %v1656_v50  ;;  %v1640_v48 = vmul.f32 %v9381_v15, %v1639_v20 }
 0x239   : > { %7578 = vlog2.f32 %v1653_v38  ;;  %2937 = vmatpush1.bf16.msra.mxu0 %v7194_v4  ;;  %v1667_v26 = vmul.f32 %v7565_v14, %v1666_v62  ;;  %vm9425_vm15 = vcmp.lt.f32.partialorder %v1641_v58, 0.0004427343  ;;  %vm9442_vm0 = vcmp.lt.f32.partialorder %v1659_v37, 0.0004427343 }
 0x23a   : > { %7580 = vpow2.f32 %v1557_v18  ;;  %v1658_v52 = vmul.f32 %v9386_v6, %v1657_v49  ;;  %vm1896_vm3 = vcmp.gt.f32.partialorder %v9377_v16, 20.0  ;;  %vm1895_vm5 = vcmp.gt.f32.partialorder %v9374_v13, 20.0 }
 0x23b   : > { %7582 = vpow2.f32 %v1555_v31  ;;  %vm1898_vm6 = vcmp.gt.f32.partialorder %v9389_v57, 20.0  ;;  %vm1897_vm7 = vcmp.gt.f32.partialorder %v9392_v23, 20.0 }
 0x23d   : > { %v9399_v12 = vpop.eup %7568 }
 0x23e   : > { %v1486_v9 = vpop.f32.mrb[44].mxu0  ;;  %v9407_v22 = vpop.eup %7570  ;;  %v1680_v42 = vadd.f32 1.0, %v9399_v12  ;;  %v1683_v50 = vmul.f32 -0.5, %v9399_v12 }
 0x23f   : > { %v1488_v46 = vpop.f32.mrb[45].mxu0  ;;  %v7573_v30 = vpop.eup %7572  ;;  %v9430_v21 = vadd.f32 %v1486_v9, %v9302_v45  ;;  %v1671_v63 = vadd.f32 1.0, %v9407_v22  ;;  %v1674_v0 = vmul.f32 -0.5, %v9407_v22  ;;  %v1677_v14 = vand.u32 2147483647, %v9407_v22 }
 0x240   : > { %v9405_v27 = vadd.f32 %v1488_v46, %v9305_v47  ;;  %v1490_v56 = vpop.f32.mrb[46].mxu0  ;;  %v1646_v24 = vmul.f32 0.6931472, %v7573_v30  ;;  %v1684_v8 = vadd.f32 1.0, %v1683_v50 }
 0x241   : > { %v1492_v5 = vpop.f32.mrb[47].mxu0  ;;  %v7575_v43 = vpop.eup %7574  ;;  %v9434_v29 = vadd.f32 %v1490_v56, %v9302_v45  ;;  %v1559_v4 = vmul.f32 1.442695, %v9430_v21  ;;  %vm9535_vm9 = vcmp.lt.f32.partialorder %v1677_v14, 0.0004427343 }
 0x242   : > { %v1561_v28 = vmul.f32 1.442695, %v9405_v27  ;;  %v9421_v32 = vadd.f32 %v1492_v5, %v9305_v47  ;;  %v7577_v17 = vpop.eup %7576  ;;  %v1664_v41 = vmul.f32 0.6931472, %v7575_v43  ;;  %v1652_v33 = vsel %vm9410_vm1, %v1649_v2, %v1646_v24 }
 0x243   : > { %v1637_v61 = vmul.f32 0.6931472, %v7577_v17  ;;  %v7579_v15 = vpop.eup %7578  ;;  %v1924_v19 = vsel %vm1892_vm11, %v9334_v55, %v1652_v33  ;;  %v1563_v55 = vmul.f32 1.442695, %v9434_v29  ;;  %v1685_v17 = vmul.f32 %v9399_v12, %v1684_v8 }
 0x244   : > { %7584 = vpow2.f32 %v1561_v28  ;;  %v1565_v51 = vmul.f32 1.442695, %v9421_v32  ;;  %v1670_v39 = vsel %vm9414_vm14, %v1667_v26, %v1664_v41  ;;  %v1655_v54 = vmul.f32 0.6931472, %v7579_v15  ;;  %v9458_v36 = vpop.eup %7580 }
 0x245   : > { %7586 = vlog2.f32 %v1680_v42  ;;  %v1926_v35 = vsel %vm1894_vm12, %v9344_v60, %v1670_v39  ;;  %v1643_v53 = vsel %vm9425_vm15, %v1640_v48, %v1637_v61  ;;  %v9467_v1 = vpop.eup %7582  ;;  %v1698_v58 = vadd.f32 1.0, %v9458_v36 }
 0x246   : > { %v1954_v18 = vpack.c.bf16 %v1926_v35, %v1924_v19  ;;  %7588 = vlog2.f32 %v1671_v63  ;;  %v1661_v31 = vsel %vm9442_vm0, %v1658_v52, %v1655_v54  ;;  %v1923_v7 = vsel %vm1891_vm13, %v9330_v10, %v1643_v53 }
 0x247   : > { %v1496_v44 = vpop.f32.mrb[48].mxu0  ;;  %7590 = vpow2.f32 %v1565_v51  ;;  %v1925_v9 = vsel %vm1893_vm2, %v9339_v11, %v1661_v31  ;;  %v1701_v56 = vmul.f32 -0.5, %v9458_v36  ;;  %v1686_v11 = vand.u32 2147483647, %v9399_v12 }
 0x248   : > { %v9456_v6 = vadd.f32 %v1496_v44, %v9302_v45  ;;  %v1498_v38 = vpop.f32.mrb[49].mxu0  ;;  %2215 = vmatprep.mubr.bf16.mxu1 %v1954_v18  ;;  %v1953_v20 = vpack.c.bf16 %v1925_v9, %v1923_v7  ;;  %7592 = vpow2.f32 %v1559_v4  ;;  %v1689_v49 = vadd.f32 1.0, %v9467_v1 }
 0x249   : > { %v9463_v60 = vadd.f32 %v1498_v38, %v9305_v47  ;;  %v1500_v40 = vpop.f32.mrb[50].mxu0  ;;  %7594 = vpow2.f32 %v1563_v55  ;;  %v1702_v28 = vadd.f32 1.0, %v1701_v56  ;;  %vm9492_vm4 = vcmp.lt.f32.partialorder %v1686_v11, 0.0004427343 }
 0x24a   : > { %v1502_v25 = vpop.f32.mrb[51].mxu0  ;;  %v1567_v46 = vmul.f32 1.442695, %v9456_v6  ;;  %v9476_v62 = vadd.f32 %v1500_v40, %v9302_v45  ;;  %2216 = vmatmul.mubr.bf16.gmra.mrb[36].mxu1 %v1953_v20  ;;  %v1675_v41 = vadd.f32 1.0, %v1674_v0  ;;  %v1704_v61 = vand.u32 2147483647, %v9458_v36 }
 0x24b   : > { %v1569_v5 = vmul.f32 1.442695, %v9463_v60  ;;  %v9482_v10 = vadd.f32 %v1502_v25, %v9305_v47  ;;  %v1692_v15 = vmul.f32 -0.5, %v9467_v1  ;;  %v1703_v12 = vmul.f32 %v9458_v36, %v1702_v28 }
 0x24c   : > { %7596 = vpow2.f32 %v1567_v46  ;;  %v1571_v30 = vmul.f32 1.442695, %v9476_v62  ;;  %v1676_v18 = vmul.f32 %v9407_v22, %v1675_v41  ;;  %v1695_v36 = vand.u32 2147483647, %v9467_v1 }
 0x24d   : > { %7598 = vlog2.f32 %v1698_v58  ;;  %v1573_v37 = vmul.f32 1.442695, %v9482_v10  ;;  %v1693_v25 = vadd.f32 1.0, %v1692_v15  ;;  %vm9531_vm8 = vcmp.lt.f32.partialorder %v1704_v61, 0.0004427343 }
 0x24e   : > { %v9485_v2 = vpop.eup %7584  ;;  %7600 = vpow2.f32 %v1569_v5  ;;  %vm9548_vm10 = vcmp.lt.f32.partialorder %v1695_v36, 0.0004427343  ;;  %vm1900_vm11 = vcmp.gt.f32.partialorder %v9405_v27, 20.0  ;;  %vm1902_vm12 = vcmp.gt.f32.partialorder %v9421_v32, 20.0 }
 0x24f   : > { %v7587_v42 = vpop.eup %7586  ;;  %v1716_v24 = vadd.f32 1.0, %v9485_v2  ;;  %7602 = vlog2.f32 %v1689_v49  ;;  %v1719_v50 = vmul.f32 -0.5, %v9485_v2  ;;  %v1722_v8 = vand.u32 2147483647, %v9485_v2 }
 0x250   : > { %v7589_v26 = vpop.eup %7588  ;;  %v1682_v3 = vmul.f32 0.6931472, %v7587_v42  ;;  %7604 = vpow2.f32 %v1571_v30  ;;  %v1694_v28 = vmul.f32 %v9467_v1, %v1693_v25  ;;  %vm1899_vm13 = vcmp.gt.f32.partialorder %v9430_v21, 20.0 }
 0x251   : > { %v9504_v51 = vpop.eup %7590  ;;  %7606 = vlog2.f32 %v1716_v24  ;;  %v1673_v53 = vmul.f32 0.6931472, %v7589_v26  ;;  %v1720_v24 = vadd.f32 1.0, %v1719_v50  ;;  %vm1901_vm1 = vcmp.gt.f32.partialorder %v9434_v29, 20.0 }
 0x252   : > { %7608 = vpow2.f32 %v1573_v37  ;;  %v9516_v54 = vpop.eup %7592  ;;  %v1688_v38 = vsel %vm9492_vm4, %v1685_v17, %v1682_v3  ;;  %v1734_v7 = vadd.f32 1.0, %v9504_v51  ;;  %v1737_v26 = vmul.f32 -0.5, %v9504_v51 }
 0x253   : > { %v1506_v48 = vpop.f32.mrb[52].mxu0  ;;  %v9523_v55 = vpop.eup %7594  ;;  %v1928_v20 = vsel %vm1896_vm3, %v9377_v16, %v1688_v38  ;;  %v1679_v58 = vsel %vm9535_vm9, %v1676_v18, %v1673_v53  ;;  %v1707_v56 = vadd.f32 1.0, %v9516_v54  ;;  %v1710_v14 = vmul.f32 -0.5, %v9516_v54 }
 0x254   : > { %v9500_v63 = vadd.f32 %v1506_v48, %v9302_v45  ;;  %v1508_v33 = vpop.f32.mrb[53].mxu0  ;;  %v1725_v0 = vadd.f32 1.0, %v9523_v55  ;;  %v1927_v43 = vsel %vm1895_vm5, %v9374_v13, %v1679_v58  ;;  %v1728_v36 = vmul.f32 -0.5, %v9523_v55 }
 0x255   : > { %v9507_v39 = vadd.f32 %v1508_v33, %v9305_v47  ;;  %v1510_v52 = vpop.f32.mrb[54].mxu0  ;;  %v1740_v33 = vand.u32 2147483647, %v9504_v51  ;;  %v1738_v9 = vadd.f32 1.0, %v1737_v26  ;;  %v1713_v58 = vand.u32 2147483647, %v9516_v54 }
 0x256   : > { %v1575_v44 = vmul.f32 1.442695, %v9500_v63  ;;  %v9514_v19 = vadd.f32 %v1510_v52, %v9302_v45  ;;  %v1512_v35 = vpop.f32.mrb[55].mxu0  ;;  %v9540_v46 = vpop.eup %7596  ;;  %vm9605_vm14 = vcmp.lt.f32.partialorder %v1722_v8, 0.0004427343  ;;  %v1711_v11 = vadd.f32 1.0, %v1710_v14 }
 0x257   : > { %v1577_v4 = vmul.f32 1.442695, %v9507_v39  ;;  %v9527_v31 = vadd.f32 %v1512_v35, %v9305_v47  ;;  %v7599_v5 = vpop.eup %7598  ;;  %vm9611_vm15 = vcmp.lt.f32.partialorder %v1740_v33, 0.0004427343  ;;  %v1739_v8 = vmul.f32 %v9504_v51, %v1738_v9 }
 0x258   : > { %v1579_v40 = vmul.f32 1.442695, %v9514_v19  ;;  %7610 = vpow2.f32 %v1575_v44  ;;  %v9554_v42 = vpop.eup %7600  ;;  %v1700_v16 = vmul.f32 0.6931472, %v7599_v5  ;;  %v1721_v5 = vmul.f32 %v9485_v2, %v1720_v24 }
 0x259   : > { %7612 = vpow2.f32 %v1577_v4  ;;  %v1581_v30 = vmul.f32 1.442695, %v9527_v31  ;;  %v7603_v49 = vpop.eup %7602  ;;  %vm9620_vm0 = vcmp.lt.f32.partialorder %v1713_v58, 0.0004427343  ;;  %v1755_v33 = vmul.f32 -0.5, %v9554_v42 }
 0x25a   : > { %7614 = vpow2.f32 %v1579_v40  ;;  %v9562_v48 = vpop.eup %7604  ;;  %v1706_v1 = vsel %vm9531_vm8, %v1703_v12, %v1700_v16  ;;  %v1691_v41 = vmul.f32 0.6931472, %v7603_v49  ;;  %v1729_v16 = vadd.f32 1.0, %v1728_v36 }
 0x25b   : > { %7616 = vlog2.f32 %v1734_v7  ;;  %v7607_v61 = vpop.eup %7606  ;;  %v1930_v52 = vsel %vm1898_vm6, %v9389_v57, %v1706_v1  ;;  %vm1904_vm3 = vcmp.gt.f32.partialorder %v9463_v60, 20.0  ;;  %vm1906_vm5 = vcmp.gt.f32.partialorder %v9482_v10, 20.0 }
 0x25c   : > { %7618 = vlog2.f32 %v1707_v56  ;;  %v9577_v44 = vpop.eup %7608  ;;  %v1956_v4 = vpack.c.bf16 %v1930_v52, %v1928_v20  ;;  %v1697_v18 = vsel %vm9548_vm10, %v1694_v28, %v1691_v41  ;;  %v1718_v7 = vmul.f32 0.6931472, %v7607_v61 }
 0x25d   : > { %v1516_v37 = vpop.f32.mrb[56].mxu0  ;;  %7620 = vlog2.f32 %v1725_v0  ;;  %v1929_v25 = vsel %vm1897_vm7, %v9392_v23, %v1697_v18  ;;  %v1752_v28 = vadd.f32 1.0, %v9554_v42  ;;  %v1712_v41 = vmul.f32 %v9516_v54, %v1711_v11 }
 0x25e   : > { %v9565_v3 = vadd.f32 %v1516_v37, %v9302_v45  ;;  %v1518_v17 = vpop.f32.mrb[57].mxu0  ;;  %7622 = vpow2.f32 %v1581_v30  ;;  %2225 = vmatprep.mubr.bf16.mxu1 %v1956_v4  ;;  %v1955_v20 = vpack.c.bf16 %v1929_v25, %v1927_v43  ;;  %v1724_v2 = vsel %vm9605_vm14, %v1721_v5, %v1718_v7 }
 0x25f   : > { %v9571_v15 = vadd.f32 %v1518_v17, %v9305_v47  ;;  %v1520_v13 = vpop.f32.mrb[58].mxu0  ;;  %v1770_v37 = vadd.f32 1.0, %v9577_v44  ;;  %v1731_v17 = vand.u32 2147483647, %v9523_v55  ;;  %v1932_v52 = vsel %vm1900_vm11, %v9405_v27, %v1724_v2 }
 0x260   : > { %v1583_v12 = vmul.f32 1.442695, %v9565_v3  ;;  %v9582_v35 = vadd.f32 %v1520_v13, %v9302_v45  ;;  %v1522_v53 = vpop.f32.mrb[59].mxu0  ;;  %2226 = vmatmul.mubr.bf16.gmra.mrb[40].mxu1 %v1955_v20  ;;  %v1730_v14 = vmul.f32 %v9523_v55, %v1729_v16  ;;  %v1758_v25 = vand.u32 2147483647, %v9554_v42 }
 0x261   : > { %v1585_v38 = vmul.f32 1.442695, %v9571_v15  ;;  %v9587_v57 = vadd.f32 %v1522_v53, %v9305_v47  ;;  %vm1732_vm2 = vcmp.lt.f32.partialorder %v1731_v17, 0.0004427343  ;;  %v1743_v2 = vadd.f32 1.0, %v9540_v46 }
 0x262   : > { %v1587_v40 = vmul.f32 1.442695, %v9582_v35  ;;  %v9596_v22 = vpop.eup %7610  ;;  %7624 = vpow2.f32 %v1583_v12  ;;  %v1773_v12 = vmul.f32 -0.5, %v9577_v44  ;;  %vm9676_vm4 = vcmp.lt.f32.partialorder %v1758_v25, 0.0004427343 }
 0x263   : > { %v1589_v50 = vmul.f32 1.442695, %v9587_v57  ;;  %v9600_v56 = vpop.eup %7612  ;;  %7626 = vpow2.f32 %v1585_v38  ;;  %v1779_v25 = vadd.f32 1.0, %v9596_v22  ;;  %vm1903_vm7 = vcmp.gt.f32.partialorder %v9456_v6, 20.0 }
 0x264   : > { %v9609_v0 = vpop.eup %7614  ;;  %7628 = vpow2.f32 %v1587_v40  ;;  %v1788_v26 = vadd.f32 1.0, %v9600_v56  ;;  %vm1905_vm8 = vcmp.gt.f32.partialorder %v9476_v62, 20.0  ;;  %vm1908_vm11 = vcmp.gt.f32.partialorder %v9507_v39, 20.0 }
 0x265   : > { %v7617_v49 = vpop.eup %7616  ;;  %7630 = vpow2.f32 %v1589_v50  ;;  %vm1909_vm14 = vcmp.gt.f32.partialorder %v9514_v19, 20.0 }
 0x266   : > { %v7619_v43 = vpop.eup %7618  ;;  %v1736_v24 = vmul.f32 0.6931472, %v7617_v49  ;;  %7632 = vlog2.f32 %v1752_v28  ;;  %v1774_v49 = vadd.f32 1.0, %v1773_v12 }
 0x267   : > { %v1709_v1 = vmul.f32 0.6931472, %v7619_v43  ;;  %7634 = vlog2.f32 %v1770_v37  ;;  %v7621_v61 = vpop.eup %7620 }
 0x268   : > { %v1742_v51 = vsel %vm9611_vm15, %v1739_v8, %v1736_v24  ;;  %v9634_v53 = vpop.eup %7622  ;;  %v1727_v36 = vmul.f32 0.6931472, %v7621_v61  ;;  %v1800_v24 = vmul.f32 -0.5, %v9609_v0 }
 0x269   : > { %v1526_v13 = vpop.f32.mrb[60].mxu0  ;;  %v1934_v38 = vsel %vm1902_vm12, %v9421_v32, %v1742_v51  ;;  %v1715_v18 = vsel %vm9620_vm0, %v1712_v41, %v1709_v1  ;;  %v1756_v32 = vadd.f32 1.0, %v1755_v33  ;;  %v1775_v33 = vmul.f32 %v9577_v44, %v1774_v49 }
 0x26a   : > { %v9637_v54 = vadd.f32 %v1526_v13, %v9302_v45  ;;  %v1528_v4 = vpop.f32.mrb[61].mxu0  ;;  %v1958_v40 = vpack.c.bf16 %v1934_v38, %v1932_v52  ;;  %v1733_v20 = vsel %vm1732_vm2, %v1730_v14, %v1727_v36  ;;  %v1931_v11 = vsel %vm1899_vm13, %v9430_v21, %v1715_v18 }
 0x26b   : > { %v9645_v27 = vadd.f32 %v1528_v4, %v9305_v47  ;;  %v1530_v55 = vpop.f32.mrb[62].mxu0  ;;  %v1776_v21 = vand.u32 2147483647, %v9577_v44  ;;  %v1757_v41 = vmul.f32 %v9554_v42, %v1756_v32  ;;  %v1746_v13 = vmul.f32 -0.5, %v9540_v46 }
 0x26c   : > { %v1591_v7 = vmul.f32 1.442695, %v9637_v54  ;;  %v9650_v9 = vadd.f32 %v1530_v55, %v9302_v45  ;;  %v1532_v50 = vpop.f32.mrb[63].mxu0  ;;  %v9652_v58 = vpop.eup %7624  ;;  %2235 = vmatprep.mubr.bf16.mxu1 %v1958_v40  ;;  %v1933_v45 = vsel %vm1901_vm1, %v9434_v29, %v1733_v20  ;;  %v1761_v29 = vadd.f32 1.0, %v9562_v48 }
 0x26d   : > { %v1593_v5 = vmul.f32 1.442695, %v9645_v27  ;;  %v9656_v23 = vadd.f32 %v1532_v50, %v9305_v47  ;;  %v9664_v30 = vpop.eup %7626  ;;  %v1957_v28 = vpack.c.bf16 %v1933_v45, %v1931_v11  ;;  %v1764_v51 = vmul.f32 -0.5, %v9562_v48 }
 0x26e   : > { %v1595_v16 = vmul.f32 1.442695, %v9650_v9  ;;  %v9668_v8 = vpop.eup %7628  ;;  %7636 = vpow2.f32 %v1591_v7  ;;  %vm1777_vm6 = vcmp.lt.f32.partialorder %v1776_v21, 0.0004427343  ;;  %v1749_v42 = vand.u32 2147483647, %v9540_v46 }
 0x26f   : > { %v9670_v47 = vpop.eup %7630  ;;  %7638 = vpow2.f32 %v1593_v5  ;;  %2236 = vmatmul.mubr.bf16.gmra.mrb[44].mxu1 %v1957_v28  ;;  %v1597_v43 = vmul.f32 1.442695, %v9656_v23  ;;  %v1767_v44 = vand.u32 2147483647, %v9562_v48  ;;  %v1791_v38 = vmul.f32 -0.5, %v9600_v56 }
 0x270   : > { %v7633_v37 = vpop.eup %7632  ;;  %7640 = vpow2.f32 %v1595_v16  ;;  %v1806_v18 = vadd.f32 1.0, %v9634_v53  ;;  %v1747_v55 = vadd.f32 1.0, %v1746_v13  ;;  %v1765_v40 = vadd.f32 1.0, %v1764_v51 }
 0x271   : > { %v7635_v17 = vpop.eup %7634  ;;  %v1754_v1 = vmul.f32 0.6931472, %v7633_v37  ;;  %7642 = vlog2.f32 %v1743_v2  ;;  %v1794_v7 = vand.u32 2147483647, %v9600_v56  ;;  %v1809_v50 = vmul.f32 -0.5, %v9634_v53 }
 0x272   : > { %v1772_v61 = vmul.f32 0.6931472, %v7635_v17  ;;  %7644 = vlog2.f32 %v1761_v29  ;;  %vm9706_vm9 = vcmp.lt.f32.partialorder %v1749_v42, 0.0004427343  ;;  %vm9710_vm10 = vcmp.lt.f32.partialorder %v1767_v44, 0.0004427343 }
 0x273   : > { %v1760_v52 = vsel %vm9676_vm4, %v1757_v41, %v1754_v1  ;;  %7646 = vlog2.f32 %v1788_v26  ;;  %v1792_v11 = vadd.f32 1.0, %v1791_v38  ;;  %v1782_v45 = vmul.f32 -0.5, %v9596_v22 }
 0x274   : > { %7648 = vpow2.f32 %v1597_v43  ;;  %v1778_v14 = vsel %vm1777_vm6, %v1775_v33, %v1772_v61  ;;  %v1936_v12 = vsel %vm1904_vm3, %v9463_v60, %v1760_v52  ;;  %v1797_v60 = vadd.f32 1.0, %v9609_v0 }
 0x275   : > { %v1938_v4 = vsel %vm1906_vm5, %v9482_v10, %v1778_v14  ;;  %7650 = vlog2.f32 %v1806_v18  ;;  %v1748_v28 = vmul.f32 %v9540_v46, %v1747_v55  ;;  %v1766_v49 = vmul.f32 %v9562_v48, %v1765_v40 }
 0x276   : > { %v1960_v36 = vpack.c.bf16 %v1938_v4, %v1936_v12  ;;  %7652 = vlog2.f32 %v1779_v25  ;;  %v1824_v2 = vadd.f32 1.0, %v9664_v30  ;;  %vm9721_vm12 = vcmp.lt.f32.partialorder %v1794_v7, 0.0004427343 }
 0x277   : > { %7654 = vlog2.f32 %v1797_v60  ;;  %v1810_v37 = vadd.f32 1.0, %v1809_v50  ;;  %v1812_v43 = vand.u32 2147483647, %v9634_v53  ;;  %vm1910_vm13 = vcmp.gt.f32.partialorder %v9527_v31, 20.0 }
 0x278   : > { %v9699_v20 = vpop.eup %7636  ;;  %2245 = vmatprep.mubr.bf16.mxu1 %v1960_v36  ;;  %v1785_v48 = vand.u32 2147483647, %v9596_v22  ;;  %7656 = vlog2.f32 %v1824_v2  ;;  %v1842_v17 = vadd.f32 1.0, %v9670_v47  ;;  %v1793_v33 = vmul.f32 %v9600_v56, %v1792_v11 }
 0x279   : > { %v9704_v10 = vpop.eup %7638  ;;  %v1783_v61 = vadd.f32 1.0, %v1782_v45  ;;  %v1803_v13 = vand.u32 2147483647, %v9609_v0  ;;  %v1827_v42 = vmul.f32 -0.5, %v9664_v30  ;;  %vm1907_vm1 = vcmp.gt.f32.partialorder %v9500_v63, 20.0 }
 0x27a   : > { %v9715_v16 = vpop.eup %7640  ;;  %7658 = vlog2.f32 %v1842_v17  ;;  %v1811_v56 = vmul.f32 %v9634_v53, %v1810_v37  ;;  %vm9742_vm15 = vcmp.lt.f32.partialorder %v1812_v43, 0.0004427343  ;;  %v1801_v4 = vadd.f32 1.0, %v1800_v24 }
 0x27b   : > { %v7643_v21 = vpop.eup %7642  ;;  %v1845_v36 = vmul.f32 -0.5, %v9670_v47  ;;  %v1815_v55 = vadd.f32 1.0, %v9652_v58  ;;  %v1784_v7 = vmul.f32 %v9596_v22, %v1783_v61  ;;  %vm9757_vm0 = vcmp.lt.f32.partialorder %v1785_v48, 0.0004427343 }
 0x27c   : > { %v7645_v26 = vpop.eup %7644  ;;  %v1745_v46 = vmul.f32 0.6931472, %v7643_v21  ;;  %vm9761_vm2 = vcmp.lt.f32.partialorder %v1803_v13, 0.0004427343  ;;  %vm1912_vm3 = vcmp.gt.f32.partialorder %v9571_v15, 20.0  ;;  %vm1914_vm4 = vcmp.gt.f32.partialorder %v9587_v57, 20.0 }
 0x27d   : > { %v7647_v1 = vpop.eup %7646  ;;  %v1763_v41 = vmul.f32 0.6931472, %v7645_v26  ;;  %7660 = vlog2.f32 %v1815_v55  ;;  %v1802_v22 = vmul.f32 %v9609_v0, %v1801_v4  ;;  %v1830_v11 = vand.u32 2147483647, %v9664_v30 }
 0x27e   : > { %v9732_v51 = vpop.eup %7648  ;;  %v1751_v52 = vsel %vm9706_vm9, %v1748_v28, %v1745_v46  ;;  %v1790_v14 = vmul.f32 0.6931472, %v7647_v1  ;;  %v1833_v45 = vadd.f32 1.0, %v9668_v8  ;;  %v1846_v21 = vadd.f32 1.0, %v1845_v36 }
 0x27f   : > { %v1769_v44 = vsel %vm9710_vm10, %v1766_v49, %v1763_v41  ;;  %v1935_v38 = vsel %vm1903_vm7, %v9456_v6, %v1751_v52  ;;  %v7651_v40 = vpop.eup %7650  ;;  %v1860_v29 = vadd.f32 1.0, %v9704_v10  ;;  %v1848_v48 = vand.u32 2147483647, %v9670_v47 }
 0x280   : > { %v1937_v18 = vsel %vm1905_vm8, %v9476_v62, %v1769_v44  ;;  %v1796_v53 = vsel %vm9721_vm12, %v1793_v33, %v1790_v14  ;;  %v7653_v6 = vpop.eup %7652  ;;  %v1808_v60 = vmul.f32 0.6931472, %v7651_v40  ;;  %v1828_v62 = vadd.f32 1.0, %v1827_v42 }
 0x281   : > { %v1959_v25 = vpack.c.bf16 %v1937_v18, %v1935_v38  ;;  %v1781_v5 = vmul.f32 0.6931472, %v7653_v6  ;;  %v7655_v28 = vpop.eup %7654  ;;  %v1940_v2 = vsel %vm1908_vm11, %v9507_v39, %v1796_v53  ;;  %7662 = vlog2.f32 %v1833_v45 }
 0x282   : > { %v1814_v49 = vsel %vm9742_vm15, %v1811_v56, %v1808_v60  ;;  %v1799_v43 = vmul.f32 0.6931472, %v7655_v28  ;;  %v7657_v24 = vpop.eup %7656  ;;  %v1829_v46 = vmul.f32 %v9664_v30, %v1828_v62  ;;  %v1818_v39 = vmul.f32 -0.5, %v9652_v58 }
 0x283   : > { %2246 = vmatmul.mubr.bf16.gmra.mrb[48].mxu1 %v1959_v25  ;;  %v1942_v37 = vsel %vm1910_vm13, %v9527_v31, %v1814_v49  ;;  %v1787_v0 = vsel %vm9757_vm0, %v1784_v7, %v1781_v5  ;;  %v1826_v1 = vmul.f32 0.6931472, %v7657_v24  ;;  %v1836_v41 = vmul.f32 -0.5, %v9668_v8 }
 0x284   : > { %v1962_v26 = vpack.c.bf16 %v1942_v37, %v1940_v2  ;;  %v1805_v17 = vsel %vm9761_vm2, %v1802_v22, %v1799_v43  ;;  %7664 = vlog2.f32 %v1860_v29  ;;  %v7659_v31 = vpop.eup %7658  ;;  %v1939_v33 = vsel %vm1907_vm1, %v9500_v63, %v1787_v0 }
 0x285   : > { %v1941_v30 = vsel %vm1909_vm14, %v9514_v19, %v1805_v17  ;;  %vm9793_vm5 = vcmp.lt.f32.partialorder %v1830_v11, 0.0004427343  ;;  %v1878_v13 = vadd.f32 1.0, %v9732_v51  ;;  %v1844_v42 = vmul.f32 0.6931472, %v7659_v31 }
 0x286   : > { %2255 = vmatprep.mubr.bf16.mxu1 %v1962_v26  ;;  %v1961_v52 = vpack.c.bf16 %v1941_v30, %v1939_v33  ;;  %v1832_v14 = vsel %vm9793_vm5, %v1829_v46, %v1826_v1  ;;  %v1847_v44 = vmul.f32 %v9670_v47, %v1846_v21  ;;  %vm1849_vm6 = vcmp.lt.f32.partialorder %v1848_v48, 0.0004427343 }
 0x287   : > { %v1819_v56 = vadd.f32 1.0, %v1818_v39  ;;  %v1821_v63 = vand.u32 2147483647, %v9652_v58  ;;  %7666 = vlog2.f32 %v1878_v13  ;;  %v1837_v12 = vadd.f32 1.0, %v1836_v41  ;;  %v7661_v18 = vpop.eup %7660 }
 0x288   : > { %v1850_v19 = vsel %vm1849_vm6, %v1847_v44, %v1844_v42  ;;  %v1863_v4 = vmul.f32 -0.5, %v9704_v10  ;;  %v1851_v38 = vadd.f32 1.0, %v9699_v20  ;;  %v1944_v36 = vsel %vm1912_vm3, %v9571_v15, %v1832_v14  ;;  %v7199_v42 = vld [vmem:[#allocation3 + $0x274] ss:$8 sps:$4 sm:$0xff]   ;;  %v7202_v44 = vld [vmem:[#allocation3 + $0x284] ss:$8 sps:$4 sm:$0xff]  }
 0x289   : > { %v1946_v47 = vsel %vm1914_vm4, %v9587_v57, %v1850_v19  ;;  %v1839_v55 = vand.u32 2147483647, %v9668_v8  ;;  %v1817_v25 = vmul.f32 0.6931472, %v7661_v18  ;;  %v1881_v53 = vmul.f32 -0.5, %v9732_v51  ;;  %2938 = vmatprep.subr.bf16.mxu0 %v7199_v42 }
 0x28a   : > { %v1964_v40 = vpack.c.bf16 %v1946_v47, %v1944_v36  ;;  %7668 = vlog2.f32 %v1851_v38  ;;  %v1820_v7 = vmul.f32 %v9652_v58, %v1819_v56  ;;  %v1869_v50 = vadd.f32 1.0, %v9715_v16  ;;  %v7200_v56 = vld [vmem:[#allocation3 + $0x280] ss:$8 sps:$4 sm:$0xff]   ;;  %v7208_v19 = vld [vmem:[#allocation3 + $0x2a4] ss:$8 sps:$4 sm:$0xff]  }
 0x28b   : > { %2256 = vmatmul.mubr.bf16.gmra.mrb[52].mxu1 %v1961_v52  ;;  %v7663_v6 = vpop.eup %7662  ;;  %vm9814_vm7 = vcmp.lt.f32.partialorder %v1821_v63, 0.0004427343  ;;  %v1838_v15 = vmul.f32 %v9668_v8, %v1837_v12  ;;  %v1864_v57 = vadd.f32 1.0, %v1863_v4  ;;  %v1866_v5 = vand.u32 2147483647, %v9704_v10 }
 0x28c   : > { %2265 = vmatprep.mubr.bf16.mxu1 %v1964_v40  ;;  %v1823_v32 = vsel %vm9814_vm7, %v1820_v7, %v1817_v25  ;;  %v1835_v62 = vmul.f32 0.6931472, %v7663_v6  ;;  %7670 = vlog2.f32 %v1869_v50  ;;  %vm1911_vm8 = vcmp.gt.f32.partialorder %v9565_v3, 20.0  ;;  %v7203_v63 = vld [vmem:[#allocation3 + $0x290] ss:$8 sps:$4 sm:$0xff]  }
 0x28d   : > { %vm1840_vm9 = vcmp.lt.f32.partialorder %v1839_v55, 0.0004427343  ;;  %v1882_v58 = vadd.f32 1.0, %v1881_v53  ;;  %v1854_v11 = vmul.f32 -0.5, %v9699_v20  ;;  %vm1913_vm10 = vcmp.gt.f32.partialorder %v9582_v35, 20.0 }
 0x28e   : > { %v7665_v22 = vpop.eup %7664  ;;  %v1841_v45 = vsel %vm1840_vm9, %v1838_v15, %v1835_v62  ;;  %v1884_v8 = vand.u32 2147483647, %v9732_v51  ;;  %v1943_v49 = vsel %vm1911_vm8, %v9565_v3, %v1823_v32  ;;  %v1865_v21 = vmul.f32 %v9704_v10, %v1864_v57  ;;  %v7206_v12 = vld [vmem:[#allocation3 + $0x2a0] ss:$8 sps:$4 sm:$0xff]   ;;  %v7214_v4 = vld [vmem:[#allocation3 + $0x2c4] ss:$8 sps:$4 sm:$0xff]  }
 0x28f   : > { %v1862_v28 = vmul.f32 0.6931472, %v7665_v22  ;;  %v1945_v2 = vsel %vm1913_vm10, %v9582_v35, %v1841_v45  ;;  %v1872_v29 = vmul.f32 -0.5, %v9715_v16  ;;  %vm1867_vm11 = vcmp.lt.f32.partialorder %v1866_v5, 0.0004427343 }
 0x290   : > { %v1963_v0 = vpack.c.bf16 %v1945_v2, %v1943_v49  ;;  %v1883_v26 = vmul.f32 %v9732_v51, %v1882_v58  ;;  %v1855_v46 = vadd.f32 1.0, %v1854_v11  ;;  %vm1885_vm12 = vcmp.lt.f32.partialorder %v1884_v8, 0.0004427343  ;;  %v7212_v38 = vld [vmem:[#allocation3 + $0x2c0] ss:$8 sps:$4 sm:$0xff]  }
 0x291   : > { %v7667_v37 = vpop.eup %7666  ;;  %v1868_v43 = vsel %vm1867_vm11, %v1865_v21, %v1862_v28  ;;  %v1857_v48 = vand.u32 2147483647, %v9699_v20  ;;  %vm1916_vm13 = vcmp.gt.f32.partialorder %v9645_v27, 20.0  ;;  %vm1918_vm1 = vcmp.gt.f32.partialorder %v9656_v23, 20.0  ;;  %v7215_v18 = vld [vmem:[#allocation3 + $0x2d0] ss:$8 sps:$4 sm:$0xff]  }
 0x292   : > { %v1880_v24 = vmul.f32 0.6931472, %v7667_v37  ;;  %v1873_v35 = vadd.f32 1.0, %v1872_v29  ;;  %v1948_v10 = vsel %vm1916_vm13, %v9645_v27, %v1868_v43  ;;  %v1875_v41 = vand.u32 2147483647, %v9715_v16 }
 0x293   : > { %2266 = vmatmul.mubr.bf16.gmra.mrb[56].mxu1 %v1963_v0  ;;  %v1856_v31 = vmul.f32 %v9699_v20, %v1855_v46  ;;  %vm1858_vm14 = vcmp.lt.f32.partialorder %v1857_v48, 0.0004427343  ;;  %vm1915_vm0 = vcmp.gt.f32.partialorder %v9637_v54, 20.0  ;;  %vm1917_vm2 = vcmp.gt.f32.partialorder %v9650_v9, 20.0  ;;  %v7197_v20 = vld [vmem:[#allocation3 + $0x270] ss:$8 sps:$4 sm:$0xff]  }
 0x294   : > { %v7669_v39 = vpop.eup %7668  ;;  %v1886_v3 = vsel %vm1885_vm12, %v1883_v26, %v1880_v24  ;;  %v1874_v13 = vmul.f32 %v9715_v16, %v1873_v35  ;;  %vm1876_vm15 = vcmp.lt.f32.partialorder %v1875_v41, 0.0004427343  ;;  %2939 = vmatpush1.bf16.msra.mxu0 %v7197_v20  ;;  %v7205_v16 = vld [vmem:[#allocation3 + $0x294] ss:$8 sps:$4 sm:$0xff]   ;;  %v7220_v47 = vld [vmem:[#allocation3 + $0x2e4] ss:$8 sps:$4 sm:$0xff]  }
 0x295   : > { %v1950_v17 = vsel %vm1918_vm1, %v9656_v23, %v1886_v3  ;;  %v1853_v1 = vmul.f32 0.6931472, %v7669_v39  ;;  %2940 = vmatprep.subr.bf16.mxu0 %v7202_v44  ;;  %v7217_v36 = vld [vmem:[#allocation3 + $0x2d4] ss:$8 sps:$4 sm:$0xff]   ;;  %v7218_v55 = vld [vmem:[#allocation3 + $0x2e0] ss:$8 sps:$4 sm:$0xff]  }
 0x296   : > { %v1966_v51 = vpack.c.bf16 %v1950_v17, %v1948_v10  ;;  %v7671_v33 = vpop.eup %7670  ;;  %v7221_v40 = vld [vmem:[#allocation3 + $0x2f0] ss:$8 sps:$4 sm:$0xff]   ;;  %v7223_v25 = vld [vmem:[#allocation3 + $0x2f4] ss:$8 sps:$4 sm:$0xff]  }
 0x297   : > { %v1859_v30 = vsel %vm1858_vm14, %v1856_v31, %v1853_v1  ;;  %v1871_v61 = vmul.f32 0.6931472, %v7671_v33  ;;  %v6768_v53 = vld [vmem:[%s12847_s4 + $0x1] ss:$8 sm:$0x3] }
 0x298   : > { %2275 = vmatprep.mubr.bf16.mxu1 %v1966_v51  ;;  %v1947_v23 = vsel %vm1915_vm0, %v9637_v54, %v1859_v30  ;;  %2941 = vmatpush1.bf16.msra.mxu0 %v7200_v56  ;;  %v7209_v54 = vld [vmem:[#allocation3 + $0x2b0] ss:$8 sps:$4 sm:$0xff]   ;;  %v9847_v7 = vrot.slane %v6768_v53, %v12914_v34  ;;  %v9850_v50 = vrot.slane %v6768_v53, %v12915_v59 }
 0x299   : > { %v1877_v27 = vsel %vm1876_vm15, %v1874_v13, %v1871_v61  ;;  %2942 = vmatprep.subr.bf16.mxu0 %v7205_v16  ;;  %v7229_v53 = vld [vmem:[%s12848_s5 + $0x14] ss:$8 sps:$4 sm:$0xff]  }
 0x29a   : > { %v1949_v52 = vsel %vm1917_vm2, %v9650_v9, %v1877_v27  ;;  %v7211_v9 = vld [vmem:[#allocation3 + $0x2b4] ss:$8 sps:$4 sm:$0xff]  }
 0x29b   : > { %v1965_v14 = vpack.c.bf16 %v1949_v52, %v1947_v23 }
 0x29c   : > { %2943 = vmatpush1.bf16.msra.mxu0 %v7203_v63 }
 0x29d   : > { %2276 = vmatmul.mubr.bf16.gmra.mrb[60].mxu1 %v1965_v14  ;;  %2944 = vmatprep.subr.bf16.mxu0 %v7208_v19 }
 0x2a0   : > { %2945 = vmatpush1.bf16.msra.mxu0 %v7206_v12 }
 0x2a1   : > { %2946 = vmatprep.subr.bf16.mxu0 %v7211_v9 }
 0x2a4   : > { %2947 = vmatpush1.bf16.msra.mxu0 %v7209_v54 }
 0x2a5   : > { %2948 = vmatprep.subr.bf16.mxu0 %v7214_v4 }
 0x2a8   : > { %2949 = vmatpush1.bf16.msra.mxu0 %v7212_v38 }
 0x2a9   : > { %2950 = vmatprep.subr.bf16.mxu0 %v7217_v36 }
 0x2ac   : > { %2951 = vmatpush1.bf16.msra.mxu0 %v7215_v18 }
 0x2ad   : > { %2952 = vmatprep.subr.bf16.mxu0 %v7220_v47  ;;  %v7224_v47 = vld [vmem:[%s12848_s5] ss:$8 sps:$4 sm:$0xff]  }
 0x2b0   : > { %2953 = vmatpush1.bf16.msra.mxu0 %v7218_v55  ;;  %v7226_v55 = vld [vmem:[%s12848_s5 + $0x4] ss:$8 sps:$4 sm:$0xff]  }
 0x2b1   : > { %2954 = vmatprep.subr.bf16.mxu0 %v7223_v25  ;;  %3661 = vmatprep.subr.bf16.mxu1 %v7226_v55 }
 0x2b2   : > { %3662 = vmatpush1.bf16.msra.mxu1 %v7224_v47 }
 0x2b3   : > { %3663 = vmatprep.subr.bf16.mxu1 %v7229_v53 }
 0x2b4   : > { %2955 = vmatpush1.bf16.msra.mxu0 %v7221_v40 }
 0x308   : > { %v2207_v6 = vpop.f32.mrb[32].mxu1 }
 0x309   : > { %v9853_v60 = vadd.f32 %v2207_v6, %v9847_v7  ;;  %v2209_v15 = vpop.f32.mrb[33].mxu1 }
 0x30a   : > { %v9856_v57 = vadd.f32 %v2209_v15, %v9850_v50  ;;  %v2211_v32 = vpop.f32.mrb[34].mxu1 }
 0x30b   : > { %v2286_v62 = vmul.f32 1.442695, %v9853_v60  ;;  %v9860_v5 = vadd.f32 %v2211_v32, %v9847_v7  ;;  %v2213_v22 = vpop.f32.mrb[35].mxu1  ;;  %vm2638_vm3 = vcmp.gt.f32.partialorder %v9853_v60, 20.0 }
 0x30c   : > { %v2288_v58 = vmul.f32 1.442695, %v9856_v57  ;;  %v9864_v11 = vadd.f32 %v2213_v22, %v9850_v50  ;;  %vm2639_vm9 = vcmp.gt.f32.partialorder %v9856_v57, 20.0 }
 0x30d   : > { %7672 = vpow2.f32 %v2286_v62  ;;  %v2290_v45 = vmul.f32 1.442695, %v9860_v5  ;;  %vm2640_vm5 = vcmp.gt.f32.partialorder %v9860_v5, 20.0 }
 0x30e   : > { %7674 = vpow2.f32 %v2288_v58  ;;  %v2292_v28 = vmul.f32 1.442695, %v9864_v11  ;;  %vm2641_vm10 = vcmp.gt.f32.partialorder %v9864_v11, 20.0 }
 0x30f   : > { %7676 = vpow2.f32 %v2290_v45  ;;  %v7227_v45 = vld [vmem:[%s12848_s5 + $0x10] ss:$8 sps:$4 sm:$0xff]  }
 0x310   : > { %7678 = vpow2.f32 %v2292_v28  ;;  %3664 = vmatpush1.bf16.msra.mxu1 %v7227_v45 }
 0x317   : > { %v7673_v8 = vpop.eup %7672 }
 0x318   : > { %v7675_v49 = vpop.eup %7674  ;;  %v2350_v2 = vadd.f32 1.0, %v7673_v8  ;;  %v2353_v43 = vmul.f32 -0.5, %v7673_v8  ;;  %v2356_v46 = vand.u32 2147483647, %v7673_v8 }
 0x319   : > { %v7677_v21 = vpop.eup %7676  ;;  %v2359_v29 = vadd.f32 1.0, %v7675_v49  ;;  %v2362_v24 = vmul.f32 -0.5, %v7675_v49  ;;  %v2365_v33 = vand.u32 2147483647, %v7675_v49 }
 0x31a   : > { %v7679_v37 = vpop.eup %7678  ;;  %7680 = vlog2.f32 %v2350_v2  ;;  %v2368_v0 = vadd.f32 1.0, %v7677_v21  ;;  %v2371_v48 = vmul.f32 -0.5, %v7677_v21  ;;  %v2354_v39 = vadd.f32 1.0, %v2353_v43 }
 0x31b   : > { %7682 = vlog2.f32 %v2359_v29  ;;  %v2377_v26 = vadd.f32 1.0, %v7679_v37  ;;  %v2363_v35 = vadd.f32 1.0, %v2362_v24  ;;  %v2380_v1 = vmul.f32 -0.5, %v7679_v37 }
 0x31c   : > { %7684 = vlog2.f32 %v2368_v0  ;;  %vm9872_vm4 = vcmp.lt.f32.partialorder %v2356_v46, 0.0004427343  ;;  %v2372_v30 = vadd.f32 1.0, %v2371_v48  ;;  %v2374_v61 = vand.u32 2147483647, %v7677_v21 }
 0x31d   : > { %7686 = vlog2.f32 %v2377_v26  ;;  %v2217_v3 = vpop.f32.mrb[36].mxu1  ;;  %v2355_v14 = vmul.f32 %v7673_v8, %v2354_v39  ;;  %v2364_v44 = vmul.f32 %v7675_v49, %v2363_v35  ;;  %v2381_v19 = vadd.f32 1.0, %v2380_v1  ;;  %v7233_v46 = vld [vmem:[%s12848_s5 + $0x30] ss:$8 sps:$4 sm:$0xff]   ;;  %v7238_v39 = vld [vmem:[%s12848_s5 + $0x44] ss:$8 sps:$4 sm:$0xff]  }
 0x31e   : > { %v9870_v10 = vadd.f32 %v2217_v3, %v9847_v7  ;;  %v2219_v17 = vpop.f32.mrb[37].mxu1  ;;  %v2383_v4 = vand.u32 2147483647, %v7679_v37  ;;  %v2373_v36 = vmul.f32 %v7677_v21, %v2372_v30  ;;  %vm2375_vm6 = vcmp.lt.f32.partialorder %v2374_v61, 0.0004427343 }
 0x31f   : > { %v9878_v51 = vadd.f32 %v2219_v17, %v9850_v50  ;;  %v2221_v31 = vpop.f32.mrb[38].mxu1  ;;  %vm9898_vm7 = vcmp.lt.f32.partialorder %v2365_v33, 0.0004427343  ;;  %v2382_v62 = vmul.f32 %v7679_v37, %v2381_v19  ;;  %v7230_v21 = vld [vmem:[%s12848_s5 + $0x20] ss:$8 sps:$4 sm:$0xff]  }
 0x320   : > { %v2294_v13 = vmul.f32 1.442695, %v9870_v10  ;;  %v9882_v27 = vadd.f32 %v2221_v31, %v9847_v7  ;;  %v2223_v23 = vpop.f32.mrb[39].mxu1  ;;  %vm2384_vm8 = vcmp.lt.f32.partialorder %v2383_v4, 0.0004427343  ;;  %vm2642_vm11 = vcmp.gt.f32.partialorder %v9870_v10, 20.0 }
 0x321   : > { %v2296_v20 = vmul.f32 1.442695, %v9878_v51  ;;  %v9886_v42 = vadd.f32 %v2223_v23, %v9850_v50  ;;  %v7235_v37 = vld [vmem:[%s12848_s5 + $0x34] ss:$8 sps:$4 sm:$0xff]   ;;  %v7236_v17 = vld [vmem:[%s12848_s5 + $0x40] ss:$8 sps:$4 sm:$0xff]  }
 0x322   : > { %7688 = vpow2.f32 %v2294_v13  ;;  %v2298_v63 = vmul.f32 1.442695, %v9882_v27  ;;  %v7241_v33 = vld [vmem:[%s12848_s5 + $0x54] ss:$8 sps:$4 sm:$0xff]   ;;  %v7239_v23 = vld [vmem:[%s12848_s5 + $0x50] ss:$8 sps:$4 sm:$0xff]  }
 0x323   : > { %7690 = vpow2.f32 %v2296_v20  ;;  %v2300_v54 = vmul.f32 1.442695, %v9886_v42  ;;  %vm2643_vm14 = vcmp.gt.f32.partialorder %v9878_v51, 20.0  ;;  %vm2644_vm15 = vcmp.gt.f32.partialorder %v9882_v27, 20.0 }
 0x324   : > { %v7681_v52 = vpop.eup %7680  ;;  %7692 = vpow2.f32 %v2298_v63  ;;  %vm2645_vm2 = vcmp.gt.f32.partialorder %v9886_v42, 20.0 }
 0x325   : > { %v7683_v56 = vpop.eup %7682  ;;  %v2352_v16 = vmul.f32 0.6931472, %v7681_v52  ;;  %7694 = vpow2.f32 %v2300_v54 }
 0x326   : > { %v7685_v12 = vpop.eup %7684  ;;  %v2361_v9 = vmul.f32 0.6931472, %v7683_v56  ;;  %v7244_v56 = vld [vmem:[%s12848_s5 + $0x64] ss:$8 sps:$4 sm:$0xff]  }
 0x327   : > { %v2358_v38 = vsel %vm9872_vm4, %v2355_v14, %v2352_v16  ;;  %v2370_v18 = vmul.f32 0.6931472, %v7685_v12  ;;  %v7687_v40 = vpop.eup %7686 }
 0x328   : > { %v2367_v15 = vsel %vm9898_vm7, %v2364_v44, %v2361_v9  ;;  %v2379_v32 = vmul.f32 0.6931472, %v7687_v40  ;;  %v2670_v22 = vsel %vm2638_vm3, %v9853_v60, %v2358_v38  ;;  %v7232_v60 = vld [vmem:[%s12848_s5 + $0x24] ss:$8 sps:$4 sm:$0xff]  }
 0x329   : > { %v2376_v6 = vsel %vm2375_vm6, %v2373_v36, %v2370_v18  ;;  %v2671_v49 = vsel %vm2639_vm9, %v9856_v57, %v2367_v15  ;;  %3665 = vmatprep.subr.bf16.mxu1 %v7232_v60 }
 0x32a   : > { %v2672_v58 = vsel %vm2640_vm5, %v9860_v5, %v2376_v6  ;;  %v2385_v8 = vsel %vm2384_vm8, %v2382_v62, %v2379_v32  ;;  %3666 = vmatpush1.bf16.msra.mxu1 %v7230_v21  ;;  %v7242_v32 = vld [vmem:[%s12848_s5 + $0x60] ss:$8 sps:$4 sm:$0xff]  }
 0x32b   : > { %v2702_v28 = vpack.c.bf16 %v2672_v58, %v2670_v22  ;;  %v2673_v5 = vsel %vm2641_vm10, %v9864_v11, %v2385_v8  ;;  %3667 = vmatprep.subr.bf16.mxu1 %v7235_v37 }
 0x32c   : > { %v2703_v2 = vpack.c.bf16 %v2673_v5, %v2671_v49  ;;  %v7689_v29 = vpop.eup %7688 }
 0x32d   : > { %v7691_v0 = vpop.eup %7690  ;;  %v2386_v43 = vadd.f32 1.0, %v7689_v29  ;;  %v2389_v3 = vmul.f32 -0.5, %v7689_v29  ;;  %v2392_v41 = vand.u32 2147483647, %v7689_v29 }
 0x32e   : > { %2956 = vmatprep.mubr.bf16.mxu0 %v2703_v2  ;;  %v9929_v24 = vpop.eup %7692  ;;  %v2395_v57 = vadd.f32 1.0, %v7691_v0  ;;  %v2398_v35 = vmul.f32 -0.5, %v7691_v0  ;;  %3668 = vmatpush1.bf16.msra.mxu1 %v7233_v46  ;;  %v2401_v20 = vand.u32 2147483647, %v7691_v0 }
 0x32f   : > { %2957 = vmatmul.mubr.bf16.vlgmr.msra.gmra.mrb[64].mxu0 %v2702_v28  ;;  %v9931_v11 = vpop.eup %7694  ;;  %7696 = vlog2.f32 %v2386_v43  ;;  %v2404_v26 = vadd.f32 1.0, %v9929_v24  ;;  %v2407_v31 = vmul.f32 -0.5, %v9929_v24  ;;  %3669 = vmatprep.subr.bf16.mxu1 %v7238_v39  ;;  %v2390_v44 = vadd.f32 1.0, %v2389_v3 }
 0x330   : > { %7698 = vlog2.f32 %v2395_v57  ;;  %v2413_v48 = vadd.f32 1.0, %v9931_v11  ;;  %v2416_v13 = vmul.f32 -0.5, %v9931_v11  ;;  %v2399_v12 = vadd.f32 1.0, %v2398_v35 }
 0x331   : > { %7700 = vlog2.f32 %v2404_v26  ;;  %v2410_v54 = vand.u32 2147483647, %v9929_v24  ;;  %vm9971_vm12 = vcmp.lt.f32.partialorder %v2392_v41, 0.0004427343  ;;  %v2408_v18 = vadd.f32 1.0, %v2407_v31 }
 0x332   : > { %7702 = vlog2.f32 %v2413_v48  ;;  %3670 = vmatpush1.bf16.msra.mxu1 %v7236_v17  ;;  %v2417_v55 = vadd.f32 1.0, %v2416_v13  ;;  %v2419_v40 = vand.u32 2147483647, %v9931_v11  ;;  %v2391_v15 = vmul.f32 %v7689_v29, %v2390_v44 }
 0x333   : > { %v2227_v1 = vpop.f32.mrb[40].mxu1  ;;  %3671 = vmatprep.subr.bf16.mxu1 %v7241_v33  ;;  %v2400_v58 = vmul.f32 %v7691_v0, %v2399_v12  ;;  %vm9981_vm13 = vcmp.lt.f32.partialorder %v2401_v20, 0.0004427343  ;;  %vm9985_vm1 = vcmp.lt.f32.partialorder %v2410_v54, 0.0004427343  ;;  %v2409_v5 = vmul.f32 %v9929_v24, %v2408_v18 }
 0x334   : > { %v9949_v30 = vadd.f32 %v2227_v1, %v9847_v7  ;;  %v2229_v61 = vpop.f32.mrb[41].mxu1  ;;  %v2418_v29 = vmul.f32 %v9931_v11, %v2417_v55  ;;  %vm2420_vm0 = vcmp.lt.f32.partialorder %v2419_v40, 0.0004427343 }
 0x335   : > { %v9957_v52 = vadd.f32 %v2229_v61, %v9850_v50  ;;  %v2231_v14 = vpop.f32.mrb[42].mxu1 }
 0x336   : > { %v2302_v16 = vmul.f32 1.442695, %v9949_v30  ;;  %v9964_v63 = vadd.f32 %v2231_v14, %v9847_v7  ;;  %v2233_v19 = vpop.f32.mrb[43].mxu1  ;;  %3672 = vmatpush1.bf16.msra.mxu1 %v7239_v23  ;;  %vm2646_vm8 = vcmp.gt.f32.partialorder %v9949_v30, 20.0 }
 0x337   : > { %v2304_v9 = vmul.f32 1.442695, %v9957_v52  ;;  %v9969_v4 = vadd.f32 %v2233_v19, %v9850_v50  ;;  %3673 = vmatprep.subr.bf16.mxu1 %v7244_v56  ;;  %vm2647_vm3 = vcmp.gt.f32.partialorder %v9957_v52, 20.0 }
 0x338   : > { %7704 = vpow2.f32 %v2302_v16  ;;  %v2306_v47 = vmul.f32 1.442695, %v9964_v63  ;;  %vm2648_vm9 = vcmp.gt.f32.partialorder %v9964_v63, 20.0 }
 0x339   : > { %v7697_v36 = vpop.eup %7696  ;;  %7706 = vpow2.f32 %v2304_v9  ;;  %v2308_v53 = vmul.f32 1.442695, %v9969_v4  ;;  %vm2649_vm4 = vcmp.gt.f32.partialorder %v9969_v4, 20.0 }
 0x33a   : > { %v7699_v25 = vpop.eup %7698  ;;  %v2388_v6 = vmul.f32 0.6931472, %v7697_v36  ;;  %3674 = vmatpush1.bf16.msra.mxu1 %v7242_v32 }
 0x33b   : > { %v7701_v62 = vpop.eup %7700  ;;  %v2397_v22 = vmul.f32 0.6931472, %v7699_v25  ;;  %7708 = vpow2.f32 %v2308_v53 }
 0x33c   : > { %v7703_v8 = vpop.eup %7702  ;;  %v2394_v60 = vsel %vm9971_vm12, %v2391_v15, %v2388_v6  ;;  %v2406_v49 = vmul.f32 0.6931472, %v7701_v62  ;;  %7710 = vpow2.f32 %v2306_v47 }
 0x33d   : > { %v2403_v2 = vsel %vm9981_vm13, %v2400_v58, %v2397_v22  ;;  %v2415_v21 = vmul.f32 0.6931472, %v7703_v8  ;;  %v2674_v24 = vsel %vm2642_vm11, %v9870_v10, %v2394_v60 }
 0x33e   : > { %v2412_v37 = vsel %vm9985_vm1, %v2409_v5, %v2406_v49  ;;  %v2675_v46 = vsel %vm2643_vm14, %v9878_v51, %v2403_v2 }
 0x33f   : > { %v2421_v43 = vsel %vm2420_vm0, %v2418_v29, %v2415_v21  ;;  %v2676_v57 = vsel %vm2644_vm15, %v9882_v27, %v2412_v37 }
 0x340   : > { %v2677_v48 = vsel %vm2645_vm2, %v9886_v42, %v2421_v43  ;;  %v2704_v39 = vpack.c.bf16 %v2676_v57, %v2674_v24 }
 0x341   : > { %v2705_v17 = vpack.c.bf16 %v2677_v48, %v2675_v46 }
 0x342   : > { %v2237_v0 = vpop.f32.mrb[44].mxu1  ;;  %v7705_v41 = vpop.eup %7704 }
 0x343   : > { %v10005_v11 = vadd.f32 %v2237_v0, %v9847_v7  ;;  %v2239_v26 = vpop.f32.mrb[45].mxu1  ;;  %2966 = vmatprep.mubr.bf16.mxu0 %v2705_v17  ;;  %v7707_v51 = vpop.eup %7706  ;;  %v2422_v23 = vadd.f32 1.0, %v7705_v41  ;;  %v2425_v19 = vmul.f32 -0.5, %v7705_v41  ;;  %v2428_v40 = vand.u32 2147483647, %v7705_v41 }
 0x344   : > { %v10010_v3 = vadd.f32 %v2239_v26, %v9850_v50  ;;  %v2241_v35 = vpop.f32.mrb[46].mxu1  ;;  %2967 = vmatmul.mubr.bf16.gmra.mrb[68].mxu0 %v2704_v39  ;;  %v2431_v61 = vadd.f32 1.0, %v7707_v51  ;;  %v2434_v16 = vmul.f32 -0.5, %v7707_v51  ;;  %v2437_v38 = vand.u32 2147483647, %v7707_v51 }
 0x345   : > { %v2310_v1 = vmul.f32 1.442695, %v10005_v11  ;;  %v2243_v10 = vpop.f32.mrb[47].mxu1  ;;  %v10015_v31 = vadd.f32 %v2241_v35, %v9847_v7  ;;  %v7709_v13 = vpop.eup %7708  ;;  %v2426_v55 = vadd.f32 1.0, %v2425_v19  ;;  %vm10041_vm7 = vcmp.lt.f32.partialorder %v2428_v40, 0.0004427343 }
 0x346   : > { %v2312_v27 = vmul.f32 1.442695, %v10010_v3  ;;  %v10018_v33 = vadd.f32 %v2243_v10, %v9850_v50  ;;  %v7711_v14 = vpop.eup %7710  ;;  %v2449_v44 = vadd.f32 1.0, %v7709_v13  ;;  %v2452_v12 = vmul.f32 -0.5, %v7709_v13 }
 0x347   : > { %7712 = vpow2.f32 %v2310_v1  ;;  %v2314_v20 = vmul.f32 1.442695, %v10015_v31  ;;  %v2440_v56 = vadd.f32 1.0, %v7711_v14  ;;  %v2443_v54 = vmul.f32 -0.5, %v7711_v14 }
 0x348   : > { %7714 = vpow2.f32 %v2312_v27  ;;  %v2316_v42 = vmul.f32 1.442695, %v10018_v33  ;;  %v2455_v18 = vand.u32 2147483647, %v7709_v13  ;;  %v2435_v47 = vadd.f32 1.0, %v2434_v16 }
 0x349   : > { %v2453_v25 = vadd.f32 1.0, %v2452_v12  ;;  %v2446_v53 = vand.u32 2147483647, %v7711_v14  ;;  %v2444_v32 = vadd.f32 1.0, %v2443_v54  ;;  %vm10032_vm5 = vcmp.lt.f32.partialorder %v2437_v38, 0.0004427343 }
 0x34a   : > { %7716 = vpow2.f32 %v2316_v42  ;;  %vm10036_vm6 = vcmp.lt.f32.partialorder %v2455_v18, 0.0004427343  ;;  %v2436_v5 = vmul.f32 %v7707_v51, %v2435_v47  ;;  %v2427_v2 = vmul.f32 %v7705_v41, %v2426_v55 }
 0x34b   : > { %7718 = vlog2.f32 %v2431_v61  ;;  %v2454_v43 = vmul.f32 %v7709_v13, %v2453_v25  ;;  %vm10047_vm10 = vcmp.lt.f32.partialorder %v2446_v53, 0.0004427343  ;;  %v2445_v39 = vmul.f32 %v7711_v14, %v2444_v32 }
 0x34c   : > { %7720 = vlog2.f32 %v2449_v44  ;;  %vm2651_vm11 = vcmp.gt.f32.partialorder %v10010_v3, 20.0  ;;  %vm2653_vm12 = vcmp.gt.f32.partialorder %v10018_v33, 20.0  ;;  %vm2650_vm14 = vcmp.gt.f32.partialorder %v10005_v11, 20.0 }
 0x34d   : > { %7722 = vlog2.f32 %v2422_v23  ;;  %vm2652_vm0 = vcmp.gt.f32.partialorder %v10015_v31, 20.0 }
 0x34e   : > { %7724 = vpow2.f32 %v2314_v20 }
 0x34f   : > { %7726 = vlog2.f32 %v2440_v56 }
 0x351   : > { %v10022_v9 = vpop.eup %7712 }
 0x352   : > { %v10024_v36 = vpop.eup %7714  ;;  %v2458_v62 = vadd.f32 1.0, %v10022_v9  ;;  %v2461_v13 = vmul.f32 -0.5, %v10022_v9 }
 0x353   : > { %v2467_v6 = vadd.f32 1.0, %v10024_v36  ;;  %v2470_v41 = vmul.f32 -0.5, %v10024_v36  ;;  %v2473_v19 = vand.u32 2147483647, %v10024_v36 }
 0x354   : > { %v10027_v15 = vpop.eup %7716  ;;  %v2462_v55 = vadd.f32 1.0, %v2461_v13 }
 0x355   : > { %v7719_v22 = vpop.eup %7718  ;;  %7728 = vlog2.f32 %v2467_v6  ;;  %v2485_v28 = vadd.f32 1.0, %v10027_v15  ;;  %v2488_v61 = vmul.f32 -0.5, %v10027_v15  ;;  %v2471_v38 = vadd.f32 1.0, %v2470_v41 }
 0x356   : > { %v7721_v8 = vpop.eup %7720  ;;  %v2247_v60 = vpop.f32.mrb[48].mxu1  ;;  %v2433_v49 = vmul.f32 0.6931472, %v7719_v22  ;;  %v2491_v47 = vand.u32 2147483647, %v10027_v15 }
 0x357   : > { %v7723_v29 = vpop.eup %7722  ;;  %v2249_v37 = vpop.f32.mrb[49].mxu1  ;;  %v2451_v0 = vmul.f32 0.6931472, %v7721_v8  ;;  %7730 = vlog2.f32 %v2485_v28  ;;  %v10059_v35 = vadd.f32 %v2247_v60, %v9847_v7  ;;  %v2489_v18 = vadd.f32 1.0, %v2488_v61 }
 0x358   : > { %v10051_v57 = vpop.eup %7724  ;;  %v10054_v26 = vadd.f32 %v2249_v37, %v9850_v50  ;;  %v2251_v46 = vpop.f32.mrb[50].mxu1  ;;  %v2439_v48 = vsel %vm10032_vm5, %v2436_v5, %v2433_v49  ;;  %7732 = vlog2.f32 %v2458_v62  ;;  %v2424_v10 = vmul.f32 0.6931472, %v7723_v29 }
 0x359   : > { %v2253_v17 = vpop.f32.mrb[51].mxu1  ;;  %v2457_v1 = vsel %vm10036_vm6, %v2454_v43, %v2451_v0  ;;  %v7727_v27 = vpop.eup %7726  ;;  %v10071_v23 = vadd.f32 %v2251_v46, %v9847_v7  ;;  %v2679_v14 = vsel %vm2647_vm3, %v9957_v52, %v2439_v48  ;;  %v2476_v44 = vadd.f32 1.0, %v10051_v57 }
 0x35a   : > { %v2320_v51 = vmul.f32 1.442695, %v10054_v26  ;;  %v10066_v42 = vadd.f32 %v2253_v17, %v9850_v50  ;;  %v2681_v20 = vsel %vm2649_vm4, %v9969_v4, %v2457_v1  ;;  %v2318_v12 = vmul.f32 1.442695, %v10059_v35 }
 0x35b   : > { %v2707_v16 = vpack.c.bf16 %v2681_v20, %v2679_v14  ;;  %v2430_v52 = vsel %vm10041_vm7, %v2427_v2, %v2424_v10  ;;  %v2442_v54 = vmul.f32 0.6931472, %v7727_v27  ;;  %v2322_v25 = vmul.f32 1.442695, %v10071_v23 }
 0x35c   : > { %7734 = vpow2.f32 %v2320_v51  ;;  %v2324_v56 = vmul.f32 1.442695, %v10066_v42  ;;  %v2678_v58 = vsel %vm2646_vm8, %v9949_v30, %v2430_v52  ;;  %v2472_v2 = vmul.f32 %v10024_v36, %v2471_v38 }
 0x35d   : > { %2976 = vmatprep.mubr.bf16.mxu0 %v2707_v16  ;;  %v2448_v32 = vsel %vm10047_vm10, %v2445_v39, %v2442_v54  ;;  %vm10111_vm13 = vcmp.lt.f32.partialorder %v2473_v19, 0.0004427343  ;;  %v2490_v36 = vmul.f32 %v10027_v15, %v2489_v18  ;;  %vm2492_vm1 = vcmp.lt.f32.partialorder %v2491_v47, 0.0004427343 }
 0x35e   : > { %7736 = vpow2.f32 %v2324_v56  ;;  %v2257_v4 = vpop.f32.mrb[52].mxu1  ;;  %v2680_v45 = vsel %vm2648_vm9, %v9964_v63, %v2448_v32  ;;  %v2479_v63 = vmul.f32 -0.5, %v10051_v57  ;;  %v2464_v1 = vand.u32 2147483647, %v10022_v9 }
 0x35f   : > { %v7729_v40 = vpop.eup %7728  ;;  %v10090_v53 = vadd.f32 %v2257_v4, %v9847_v7  ;;  %v2259_v6 = vpop.f32.mrb[53].mxu1  ;;  %7738 = vlog2.f32 %v2476_v44  ;;  %v2706_v5 = vpack.c.bf16 %v2680_v45, %v2678_v58  ;;  %v2482_v61 = vand.u32 2147483647, %v10051_v57 }
 0x360   : > { %v10095_v62 = vadd.f32 %v2259_v6, %v9850_v50  ;;  %v2261_v22 = vpop.f32.mrb[54].mxu1  ;;  %v2469_v28 = vmul.f32 0.6931472, %v7729_v40  ;;  %7740 = vpow2.f32 %v2318_v12  ;;  %v2480_v27 = vadd.f32 1.0, %v2479_v63 }
 0x361   : > { %v7731_v8 = vpop.eup %7730  ;;  %v10104_v60 = vadd.f32 %v2261_v22, %v9847_v7  ;;  %v2263_v49 = vpop.f32.mrb[55].mxu1  ;;  %v2326_v0 = vmul.f32 1.442695, %v10090_v53  ;;  %2977 = vmatmul.mubr.bf16.gmra.mrb[72].mxu0 %v2706_v5  ;;  %7742 = vpow2.f32 %v2322_v25  ;;  %v2463_v20 = vmul.f32 %v10022_v9, %v2462_v55 }
 0x362   : > { %v7733_v21 = vpop.eup %7732  ;;  %v2328_v29 = vmul.f32 1.442695, %v10095_v62  ;;  %v10109_v37 = vadd.f32 %v2263_v49, %v9850_v50  ;;  %v2475_v43 = vsel %vm10111_vm13, %v2472_v2, %v2469_v28  ;;  %v2487_v24 = vmul.f32 0.6931472, %v7731_v8 }
 0x363   : > { %v2330_v46 = vmul.f32 1.442695, %v10104_v60  ;;  %v2460_v17 = vmul.f32 0.6931472, %v7733_v21  ;;  %v2683_v41 = vsel %vm2651_vm11, %v10010_v3, %v2475_v43  ;;  %vm10137_vm15 = vcmp.lt.f32.partialorder %v2464_v1, 0.0004427343 }
 0x364   : > { %v2332_v48 = vmul.f32 1.442695, %v10109_v37  ;;  %7744 = vpow2.f32 %v2328_v29  ;;  %v2493_v39 = vsel %vm2492_vm1, %v2490_v36, %v2487_v24  ;;  %v2481_v52 = vmul.f32 %v10051_v57, %v2480_v27 }
 0x365   : > { %v2685_v15 = vsel %vm2653_vm12, %v10018_v33, %v2493_v39  ;;  %v2466_v12 = vsel %vm10137_vm15, %v2463_v20, %v2460_v17  ;;  %vm2483_vm2 = vcmp.lt.f32.partialorder %v2482_v61, 0.0004427343  ;;  %vm2655_vm3 = vcmp.gt.f32.partialorder %v10054_v26, 20.0 }
 0x366   : > { %v10123_v10 = vpop.eup %7734  ;;  %7746 = vpow2.f32 %v2332_v48  ;;  %v2709_v51 = vpack.c.bf16 %v2685_v15, %v2683_v41  ;;  %v2267_v3 = vpop.f32.mrb[56].mxu1  ;;  %v2682_v6 = vsel %vm2650_vm14, %v10005_v11, %v2466_v12  ;;  %vm2657_vm4 = vcmp.gt.f32.partialorder %v10066_v42, 20.0 }
 0x367   : > { %7748 = vpow2.f32 %v2326_v0  ;;  %v2503_v13 = vadd.f32 1.0, %v10123_v10  ;;  %v10143_v16 = vadd.f32 %v2267_v3, %v9847_v7  ;;  %v2269_v19 = vpop.f32.mrb[57].mxu1  ;;  %v2506_v25 = vmul.f32 -0.5, %v10123_v10 }
 0x368   : > { %v10133_v14 = vpop.eup %7736  ;;  %7750 = vpow2.f32 %v2330_v46  ;;  %2986 = vmatprep.mubr.bf16.mxu0 %v2709_v51  ;;  %v10152_v38 = vadd.f32 %v2269_v19, %v9850_v50  ;;  %v2271_v4 = vpop.f32.mrb[58].mxu1  ;;  %v2509_v8 = vand.u32 2147483647, %v10123_v10  ;;  %vm2654_vm7 = vcmp.gt.f32.partialorder %v10059_v35, 20.0 }
 0x369   : > { %v7739_v44 = vpop.eup %7738  ;;  %7752 = vlog2.f32 %v2503_v13  ;;  %v2521_v33 = vadd.f32 1.0, %v10133_v14  ;;  %v2334_v18 = vmul.f32 1.442695, %v10143_v16  ;;  %v10156_v47 = vadd.f32 %v2271_v4, %v9847_v7  ;;  %v2273_v55 = vpop.f32.mrb[59].mxu1 }
 0x36a   : > { %v2478_v9 = vmul.f32 0.6931472, %v7739_v44  ;;  %v10148_v54 = vpop.eup %7740  ;;  %v2336_v57 = vmul.f32 1.442695, %v10152_v38  ;;  %v2524_v22 = vmul.f32 -0.5, %v10133_v14  ;;  %v10173_v2 = vadd.f32 %v2273_v55, %v9850_v50 }
 0x36b   : > { %7754 = vlog2.f32 %v2521_v33  ;;  %v10165_v58 = vpop.eup %7742  ;;  %v2338_v45 = vmul.f32 1.442695, %v10156_v47  ;;  %v2494_v49 = vadd.f32 1.0, %v10148_v54  ;;  %v2497_v11 = vmul.f32 -0.5, %v10148_v54 }
 0x36c   : > { %v2484_v40 = vsel %vm2483_vm2, %v2481_v52, %v2478_v9  ;;  %7756 = vpow2.f32 %v2334_v18  ;;  %v2507_v21 = vadd.f32 1.0, %v2506_v25  ;;  %v2525_v30 = vadd.f32 1.0, %v2524_v22 }
 0x36d   : > { %v2684_v32 = vsel %vm2652_vm0, %v10015_v31, %v2484_v40  ;;  %7758 = vpow2.f32 %v2336_v57  ;;  %v2500_v63 = vand.u32 2147483647, %v10148_v54  ;;  %v2512_v0 = vadd.f32 1.0, %v10165_v58 }
 0x36e   : > { %v2708_v28 = vpack.c.bf16 %v2684_v32, %v2682_v6  ;;  %v10170_v5 = vpop.eup %7744  ;;  %7760 = vpow2.f32 %v2338_v45  ;;  %vm10186_vm5 = vcmp.lt.f32.partialorder %v2509_v8, 0.0004427343  ;;  %v2527_v36 = vand.u32 2147483647, %v10133_v14 }
 0x36f   : > { %7762 = vlog2.f32 %v2494_v49  ;;  %v2539_v46 = vadd.f32 1.0, %v10170_v5  ;;  %v2340_v39 = vmul.f32 1.442695, %v10173_v2  ;;  %v2498_v17 = vadd.f32 1.0, %v2497_v11 }
 0x370   : > { %v10176_v31 = vpop.eup %7746  ;;  %2987 = vmatmul.mubr.bf16.gmra.mrb[76].mxu0 %v2708_v28  ;;  %7764 = vlog2.f32 %v2512_v0  ;;  %v2277_v41 = vpop.f32.mrb[60].mxu1  ;;  %v2508_v27 = vmul.f32 %v10123_v10, %v2507_v21  ;;  %v2515_v51 = vmul.f32 -0.5, %v10165_v58  ;;  %v2526_v44 = vmul.f32 %v10133_v14, %v2525_v30 }
 0x371   : > { %v10180_v29 = vpop.eup %7748  ;;  %v2557_v1 = vadd.f32 1.0, %v10176_v31  ;;  %7766 = vlog2.f32 %v2539_v46  ;;  %v10197_v13 = vadd.f32 %v2277_v41, %v9847_v7  ;;  %v2279_v20 = vpop.f32.mrb[61].mxu1  ;;  %v2518_v3 = vand.u32 2147483647, %v10165_v58 }
 0x372   : > { %v10184_v43 = vpop.eup %7750  ;;  %v10202_v56 = vadd.f32 %v2279_v20, %v9850_v50  ;;  %v2281_v33 = vpop.f32.mrb[62].mxu1  ;;  %v2542_v12 = vmul.f32 -0.5, %v10170_v5  ;;  %vm2528_vm6 = vcmp.lt.f32.partialorder %v2527_v36, 0.0004427343  ;;  %v2499_v14 = vmul.f32 %v10148_v54, %v2498_v17 }
 0x373   : > { %v7753_v48 = vpop.eup %7752  ;;  %7768 = vlog2.f32 %v2557_v1  ;;  %v2342_v9 = vmul.f32 1.442695, %v10197_v13  ;;  %v2283_v52 = vpop.f32.mrb[63].mxu1  ;;  %vm2656_vm8 = vcmp.gt.f32.partialorder %v10071_v23, 20.0  ;;  %v2516_v40 = vadd.f32 1.0, %v2515_v51 }
 0x374   : > { %v2505_v15 = vmul.f32 0.6931472, %v7753_v48  ;;  %7770 = vpow2.f32 %v2340_v39  ;;  %v2344_v4 = vmul.f32 1.442695, %v10202_v56  ;;  %v10213_v18 = vadd.f32 %v2283_v52, %v9850_v50 }
 0x375   : > { %v7755_v61 = vpop.eup %7754  ;;  %vm10223_vm9 = vcmp.lt.f32.partialorder %v2500_v63, 0.0004427343  ;;  %v2545_v32 = vand.u32 2147483647, %v10170_v5  ;;  %vm2659_vm10 = vcmp.gt.f32.partialorder %v10095_v62, 20.0  ;;  %v10232_v22 = vadd.f32 %v2281_v33, %v9847_v7 }
 0x376   : > { %v2511_v10 = vsel %vm10186_vm5, %v2508_v27, %v2505_v15  ;;  %v2523_v19 = vmul.f32 0.6931472, %v7755_v61  ;;  %v10215_v25 = vpop.eup %7756  ;;  %vm10234_vm11 = vcmp.lt.f32.partialorder %v2518_v3, 0.0004427343  ;;  %v2543_v28 = vadd.f32 1.0, %v2542_v12 }
 0x377   : > { %v2687_v57 = vsel %vm2655_vm3, %v10054_v26, %v2511_v10  ;;  %v10228_v50 = vpop.eup %7758  ;;  %7772 = vpow2.f32 %v2342_v9  ;;  %v2348_v8 = vmul.f32 1.442695, %v10213_v18  ;;  %v2560_v49 = vmul.f32 -0.5, %v10176_v31 }
 0x378   : > { %v2529_v55 = vsel %vm2528_vm6, %v2526_v44, %v2523_v19  ;;  %v2530_v11 = vadd.f32 1.0, %v10180_v29  ;;  %7774 = vpow2.f32 %v2344_v4  ;;  %v2517_v7 = vmul.f32 %v10165_v58, %v2516_v40 }
 0x379   : > { %v2689_v54 = vsel %vm2657_vm4, %v10066_v42, %v2529_v55  ;;  %v10238_v42 = vpop.eup %7760  ;;  %v2563_v30 = vand.u32 2147483647, %v10176_v31  ;;  %v2548_v63 = vadd.f32 1.0, %v10184_v43  ;;  %vm10246_vm12 = vcmp.lt.f32.partialorder %v2545_v32, 0.0004427343 }
 0x37a   : > { %v2711_v45 = vpack.c.bf16 %v2689_v54, %v2687_v57  ;;  %v7763_v21 = vpop.eup %7762  ;;  %v2561_v46 = vadd.f32 1.0, %v2560_v49  ;;  %7776 = vlog2.f32 %v2530_v11  ;;  %v2346_v39 = vmul.f32 1.442695, %v10232_v22 }
 0x37b   : > { %v7765_v0 = vpop.eup %7764  ;;  %v2496_v24 = vmul.f32 0.6931472, %v7763_v21  ;;  %v2544_v1 = vmul.f32 %v10170_v5, %v2543_v28  ;;  %7778 = vlog2.f32 %v2548_v63  ;;  %v2533_v27 = vmul.f32 -0.5, %v10180_v29 }
 0x37c   : > { %2996 = vmatprep.mubr.bf16.mxu0 %v2711_v45  ;;  %v7767_v48 = vpop.eup %7766  ;;  %v2514_v17 = vmul.f32 0.6931472, %v7765_v0  ;;  %7780 = vpow2.f32 %v2348_v8  ;;  %v2562_v20 = vmul.f32 %v10176_v31, %v2561_v46  ;;  %vm2564_vm13 = vcmp.lt.f32.partialorder %v2563_v30, 0.0004427343 }
 0x37d   : > { %v7769_v58 = vpop.eup %7768  ;;  %v2502_v41 = vsel %vm10223_vm9, %v2499_v14, %v2496_v24  ;;  %v2541_v15 = vmul.f32 0.6931472, %v7767_v48  ;;  %v2551_v10 = vmul.f32 -0.5, %v10184_v43  ;;  %vm2661_vm1 = vcmp.gt.f32.partialorder %v10109_v37, 20.0 }
 0x37e   : > { %v2520_v51 = vsel %vm10234_vm11, %v2517_v7, %v2514_v17  ;;  %v2559_v61 = vmul.f32 0.6931472, %v7769_v58  ;;  %v10258_v44 = vpop.eup %7770  ;;  %v2686_v5 = vsel %vm2654_vm7, %v10059_v35, %v2502_v41  ;;  %v2575_v12 = vadd.f32 1.0, %v10228_v50 }
 0x37f   : > { %v2688_v3 = vsel %vm2656_vm8, %v10071_v23, %v2520_v51  ;;  %v2547_v33 = vsel %vm10246_vm12, %v2544_v1, %v2541_v15  ;;  %v2536_v52 = vand.u32 2147483647, %v10180_v29  ;;  %v2534_v14 = vadd.f32 1.0, %v2533_v27 }
 0x380   : > { %v2710_v19 = vpack.c.bf16 %v2688_v3, %v2686_v5  ;;  %v2565_v31 = vsel %vm2564_vm13, %v2562_v20, %v2559_v61  ;;  %v2691_v9 = vsel %vm2659_vm10, %v10095_v62, %v2547_v33  ;;  %7782 = vlog2.f32 %v2575_v12  ;;  %v7250_v3 = vld [vmem:[%s12848_s5 + $0x84] ss:$8 sps:$4 sm:$0xff]   ;;  %v7251_v33 = vld [vmem:[%s12848_s5 + $0x90] ss:$8 sps:$4 sm:$0xff]  }
 0x381   : > { %v2693_v35 = vsel %vm2661_vm1, %v10109_v37, %v2565_v31  ;;  %v2593_v4 = vadd.f32 1.0, %v10258_v44  ;;  %v10277_v55 = vpop.eup %7772  ;;  %7784 = vpow2.f32 %v2346_v39  ;;  %v2552_v40 = vadd.f32 1.0, %v2551_v10 }
 0x382   : > { %2997 = vmatmul.mubr.bf16.gmra.mrb[80].mxu0 %v2710_v19  ;;  %v2713_v23 = vpack.c.bf16 %v2693_v35, %v2691_v9  ;;  %v2554_v57 = vand.u32 2147483647, %v10184_v43  ;;  %v2566_v54 = vadd.f32 1.0, %v10215_v25  ;;  %v10281_v6 = vpop.eup %7774  ;;  %v2578_v62 = vmul.f32 -0.5, %v10228_v50  ;;  %v7260_v9 = vld [vmem:[%s12848_s5 + $0xc0] ss:$8 sps:$4 sm:$0xff]  }
 0x383   : > { %7786 = vlog2.f32 %v2593_v4  ;;  %vm2658_vm14 = vcmp.gt.f32.partialorder %v10090_v53, 20.0  ;;  %vm2660_vm15 = vcmp.gt.f32.partialorder %v10104_v60, 20.0  ;;  %v2535_v26 = vmul.f32 %v10180_v29, %v2534_v14 }
 0x384   : > { %3006 = vmatprep.mubr.bf16.mxu0 %v2713_v23  ;;  %v7777_v37 = vpop.eup %7776  ;;  %7788 = vlog2.f32 %v2566_v54  ;;  %vm10287_vm0 = vcmp.lt.f32.partialorder %v2536_v52, 0.0004427343  ;;  %v2584_v8 = vadd.f32 1.0, %v10238_v42  ;;  %v2553_v21 = vmul.f32 %v10184_v43, %v2552_v40 }
 0x385   : > { %v7779_v32 = vpop.eup %7778  ;;  %v2532_v45 = vmul.f32 0.6931472, %v7777_v37  ;;  %vm2555_vm2 = vcmp.lt.f32.partialorder %v2554_v57, 0.0004427343  ;;  %v2596_v7 = vmul.f32 -0.5, %v10258_v44  ;;  %v2579_v63 = vadd.f32 1.0, %v2578_v62 }
 0x386   : > { %v10292_v49 = vpop.eup %7780  ;;  %v2550_v11 = vmul.f32 0.6931472, %v7779_v32  ;;  %7790 = vlog2.f32 %v2584_v8  ;;  %v2611_v29 = vadd.f32 1.0, %v10281_v6  ;;  %v2581_v24 = vand.u32 2147483647, %v10228_v50 }
 0x387   : > { %v2538_v30 = vsel %vm10287_vm0, %v2535_v26, %v2532_v45  ;;  %v2569_v36 = vmul.f32 -0.5, %v10215_v25  ;;  %v2587_v46 = vmul.f32 -0.5, %v10238_v42  ;;  %v2599_v39 = vand.u32 2147483647, %v10258_v44 }
 0x388   : > { %v2556_v0 = vsel %vm2555_vm2, %v2553_v21, %v2550_v11  ;;  %v2690_v43 = vsel %vm2658_vm14, %v10090_v53, %v2538_v30  ;;  %7792 = vlog2.f32 %v2611_v29  ;;  %v2597_v1 = vadd.f32 1.0, %v2596_v7 }
 0x389   : > { %v2692_v48 = vsel %vm2660_vm15, %v10104_v60, %v2556_v0  ;;  %v2572_v58 = vand.u32 2147483647, %v10215_v25  ;;  %v2629_v41 = vadd.f32 1.0, %v10292_v49  ;;  %vm2663_vm3 = vcmp.gt.f32.partialorder %v10152_v38, 20.0 }
 0x38a   : > { %v2712_v17 = vpack.c.bf16 %v2692_v48, %v2690_v43  ;;  %v7783_v15 = vpop.eup %7782  ;;  %vm2665_vm4 = vcmp.gt.f32.partialorder %v10173_v2, 20.0  ;;  %v2580_v53 = vmul.f32 %v10228_v50, %v2579_v63  ;;  %v2602_v27 = vadd.f32 1.0, %v10277_v55 }
 0x38b   : > { %v10315_v51 = vpop.eup %7784  ;;  %v2577_v60 = vmul.f32 0.6931472, %v7783_v15  ;;  %v2570_v61 = vadd.f32 1.0, %v2569_v36  ;;  %v2588_v20 = vadd.f32 1.0, %v2587_v46  ;;  %7794 = vlog2.f32 %v2629_v41 }
 0x38c   : > { %3007 = vmatmul.mubr.bf16.gmra.mrb[84].mxu0 %v2712_v17  ;;  %vm10317_vm5 = vcmp.lt.f32.partialorder %v2581_v24, 0.0004427343  ;;  %vm10321_vm6 = vcmp.lt.f32.partialorder %v2599_v39, 0.0004427343  ;;  %v2614_v50 = vmul.f32 -0.5, %v10281_v6  ;;  %7796 = vlog2.f32 %v2602_v27 }
 0x38d   : > { %v7787_v5 = vpop.eup %7786  ;;  %v2583_v19 = vsel %vm10317_vm5, %v2580_v53, %v2577_v60  ;;  %v2598_v12 = vmul.f32 %v10258_v44, %v2597_v1  ;;  %vm10329_vm7 = vcmp.lt.f32.partialorder %v2572_v58, 0.0004427343  ;;  %v2590_v52 = vand.u32 2147483647, %v10238_v42 }
 0x38e   : > { %v7789_v10 = vpop.eup %7788  ;;  %v2595_v31 = vmul.f32 0.6931472, %v7787_v5  ;;  %v2632_v23 = vmul.f32 -0.5, %v10292_v49  ;;  %v2620_v14 = vadd.f32 1.0, %v10315_v51  ;;  %v2571_v40 = vmul.f32 %v10215_v25, %v2570_v61 }
 0x38f   : > { %v2568_v35 = vmul.f32 0.6931472, %v7789_v10  ;;  %v2589_v57 = vmul.f32 %v10238_v42, %v2588_v20  ;;  %v2617_v44 = vand.u32 2147483647, %v10281_v6  ;;  %v2695_v62 = vsel %vm2663_vm3, %v10152_v38, %v2583_v19  ;;  %v7254_v10 = vld [vmem:[%s12848_s5 + $0xa0] ss:$8 sps:$4 sm:$0xff]  }
 0x390   : > { %v2601_v4 = vsel %vm10321_vm6, %v2598_v12, %v2595_v31  ;;  %v7791_v54 = vpop.eup %7790  ;;  %v2615_v32 = vadd.f32 1.0, %v2614_v50  ;;  %7798 = vlog2.f32 %v2620_v14  ;;  %v2605_v42 = vmul.f32 -0.5, %v10277_v55  ;;  %v7256_v50 = vld [vmem:[%s12848_s5 + $0xa4] ss:$8 sps:$4 sm:$0xff]   ;;  %v7257_v19 = vld [vmem:[%s12848_s5 + $0xb0] ss:$8 sps:$4 sm:$0xff]  }
 0x391   : > { %v2697_v37 = vsel %vm2665_vm4, %v10173_v2, %v2601_v4  ;;  %v2574_v26 = vsel %vm10329_vm7, %v2571_v40, %v2568_v35  ;;  %v2586_v25 = vmul.f32 0.6931472, %v7791_v54  ;;  %vm2662_vm8 = vcmp.gt.f32.partialorder %v10143_v16, 20.0  ;;  %v7259_v31 = vld [vmem:[%s12848_s5 + $0xb4] ss:$8 sps:$4 sm:$0xff]  }
 0x392   : > { %v2715_v45 = vpack.c.bf16 %v2697_v37, %v2695_v62  ;;  %v7793_v28 = vpop.eup %7792  ;;  %vm2664_vm9 = vcmp.gt.f32.partialorder %v10156_v47, 20.0  ;;  %vm2591_vm10 = vcmp.lt.f32.partialorder %v2590_v52, 0.0004427343  ;;  %v2633_v38 = vadd.f32 1.0, %v2632_v23  ;;  %v7262_v12 = vld [vmem:[%s12848_s5 + $0xc4] ss:$8 sps:$4 sm:$0xff]  }
 0x393   : > { %v2592_v8 = vsel %vm2591_vm10, %v2589_v57, %v2586_v25  ;;  %v2613_v11 = vmul.f32 0.6931472, %v7793_v28  ;;  %v2635_v2 = vand.u32 2147483647, %v10292_v49  ;;  %v2623_v21 = vmul.f32 -0.5, %v10315_v51 }
 0x394   : > { %3016 = vmatprep.mubr.bf16.mxu0 %v2715_v45  ;;  %v2694_v7 = vsel %vm2662_vm8, %v10143_v16, %v2574_v26  ;;  %v2696_v30 = vsel %vm2664_vm9, %v10156_v47, %v2592_v8  ;;  %v2616_v63 = vmul.f32 %v10281_v6, %v2615_v32  ;;  %vm10357_vm11 = vcmp.lt.f32.partialorder %v2617_v44, 0.0004427343  ;;  %v7263_v35 = vld [vmem:[%s12848_s5 + $0xd0] ss:$8 sps:$4 sm:$0xff]   ;;  %v7265_v52 = vld [vmem:[%s12848_s5 + $0xd4] ss:$8 sps:$4 sm:$0xff]  }
 0x395   : > { %v7795_v29 = vpop.eup %7794  ;;  %v2714_v0 = vpack.c.bf16 %v2696_v30, %v2694_v7  ;;  %v2606_v36 = vadd.f32 1.0, %v2605_v42  ;;  %v2634_v39 = vmul.f32 %v10292_v49, %v2633_v38  ;;  %v2608_v16 = vand.u32 2147483647, %v10277_v55  ;;  %v7268_v23 = vld [vmem:[%s12848_s5 + $0xe4] ss:$8 sps:$4 sm:$0xff]  }
 0x396   : > { %v7797_v46 = vpop.eup %7796  ;;  %v2619_v43 = vsel %vm10357_vm11, %v2616_v63, %v2613_v11  ;;  %v2631_v48 = vmul.f32 0.6931472, %v7795_v29  ;;  %vm2636_vm12 = vcmp.lt.f32.partialorder %v2635_v2, 0.0004427343  ;;  %v2624_v6 = vadd.f32 1.0, %v2623_v21 }
 0x397   : > { %3017 = vmatmul.mubr.bf16.gmra.mrb[88].mxu0 %v2714_v0  ;;  %v2604_v47 = vmul.f32 0.6931472, %v7797_v46  ;;  %vm2667_vm13 = vcmp.gt.f32.partialorder %v10202_v56, 20.0  ;;  %vm2669_vm1 = vcmp.gt.f32.partialorder %v10213_v18, 20.0  ;;  %v2626_v1 = vand.u32 2147483647, %v10315_v51 }
 0x398   : > { %v2637_v17 = vsel %vm2636_vm12, %v2634_v39, %v2631_v48  ;;  %v2699_v58 = vsel %vm2667_vm13, %v10202_v56, %v2619_v43  ;;  %v2607_v15 = vmul.f32 %v10277_v55, %v2606_v36  ;;  %vm2609_vm14 = vcmp.lt.f32.partialorder %v2608_v16, 0.0004427343  ;;  %v7245_v55 = vld [vmem:[%s12848_s5 + $0x70] ss:$8 sps:$4 sm:$0xff]   ;;  %v7266_v14 = vld [vmem:[%s12848_s5 + $0xe0] ss:$8 sps:$4 sm:$0xff]  }
 0x399   : > { %v2701_v41 = vsel %vm2669_vm1, %v10213_v18, %v2637_v17  ;;  %v2625_v61 = vmul.f32 %v10315_v51, %v2624_v6  ;;  %vm2627_vm15 = vcmp.lt.f32.partialorder %v2626_v1, 0.0004427343  ;;  %vm2666_vm0 = vcmp.gt.f32.partialorder %v10197_v13, 20.0  ;;  %v7247_v51 = vld [vmem:[%s12848_s5 + $0x74] ss:$8 sps:$4 sm:$0xff]  }
 0x39a   : > { %v7799_v49 = vpop.eup %7798  ;;  %v2717_v53 = vpack.c.bf16 %v2701_v41, %v2699_v58  ;;  %v2610_v27 = vsel %vm2609_vm14, %v2607_v15, %v2604_v47  ;;  %vm2668_vm2 = vcmp.gt.f32.partialorder %v10232_v22, 20.0  ;;  %3675 = vmatprep.subr.bf16.mxu1 %v7247_v51  ;;  %v7269_v4 = vld [vmem:[%s12848_s5 + $0xf0] ss:$8 sps:$4 sm:$0xff]   ;;  %v7271_v40 = vld [vmem:[%s12848_s5 + $0xf4] ss:$8 sps:$4 sm:$0xff]  }
 0x39b   : > { %v2622_v60 = vmul.f32 0.6931472, %v7799_v49  ;;  %v2698_v56 = vsel %vm2666_vm0, %v10197_v13, %v2610_v27  ;;  %3676 = vmatpush1.bf16.msra.mxu1 %v7245_v55  ;;  %v7248_v13 = vld [vmem:[%s12848_s5 + $0x80] ss:$8 sps:$4 sm:$0xff]  }
 0x39c   : > { %3026 = vmatprep.mubr.bf16.mxu0 %v2717_v53  ;;  %3677 = vmatprep.subr.bf16.mxu1 %v7250_v3  ;;  %v6801_v57 = vld [vmem:[%s12847_s4 + $0x2] ss:$8 sm:$0x3] }
 0x39d   : > { %v2628_v20 = vsel %vm2627_vm15, %v2625_v61, %v2622_v60  ;;  %v10434_v44 = vrot.slane %v6801_v57, %v12914_v34  ;;  %v10437_v54 = vrot.slane %v6801_v57, %v12915_v59 }
 0x39e   : > { %v2700_v18 = vsel %vm2668_vm2, %v10232_v22, %v2628_v20  ;;  %v7253_v22 = vld [vmem:[%s12848_s5 + $0x94] ss:$8 sps:$4 sm:$0xff]  }
 0x39f   : > { %v2716_v5 = vpack.c.bf16 %v2700_v18, %v2698_v56  ;;  %3678 = vmatpush1.bf16.msra.mxu1 %v7248_v13 }
 0x3a0   : > { %3679 = vmatprep.subr.bf16.mxu1 %v7253_v22 }
 0x3a1   : > { %3027 = vmatmul.mubr.bf16.gmra.mrb[92].mxu0 %v2716_v5 }
 0x3a3   : > { %3680 = vmatpush1.bf16.msra.mxu1 %v7251_v33 }
 0x3a4   : > { %3681 = vmatprep.subr.bf16.mxu1 %v7256_v50 }
 0x3a7   : > { %3682 = vmatpush1.bf16.msra.mxu1 %v7254_v10 }
 0x3a8   : > { %3683 = vmatprep.subr.bf16.mxu1 %v7259_v31 }
 0x3ab   : > { %3684 = vmatpush1.bf16.msra.mxu1 %v7257_v19 }
 0x3ac   : > { %3685 = vmatprep.subr.bf16.mxu1 %v7262_v12 }
 0x3af   : > { %3686 = vmatpush1.bf16.msra.mxu1 %v7260_v9 }
 0x3b0   : > { %3687 = vmatprep.subr.bf16.mxu1 %v7265_v52 }
 0x3b3   : > { %3688 = vmatpush1.bf16.msra.mxu1 %v7263_v35 }
 0x3b4   : > { %3689 = vmatprep.subr.bf16.mxu1 %v7268_v23 }
 0x3b7   : > { %3690 = vmatpush1.bf16.msra.mxu1 %v7266_v14 }
 0x3b8   : > { %3691 = vmatprep.subr.bf16.mxu1 %v7271_v40 }
 0x3bb   : > { %3692 = vmatpush1.bf16.msra.mxu1 %v7269_v4 }
 0x402   : > { %v2958_v62 = vpop.f32.mrb[64].mxu0 }
 0x403   : > { %v10440_v37 = vadd.f32 %v2958_v62, %v10434_v44  ;;  %v2960_v32 = vpop.f32.mrb[65].mxu0 }
 0x404   : > { %v10443_v45 = vadd.f32 %v2960_v32, %v10437_v54  ;;  %v2962_v26 = vpop.f32.mrb[66].mxu0 }
 0x405   : > { %v3037_v25 = vmul.f32 1.442695, %v10440_v37  ;;  %v10447_v42 = vadd.f32 %v2962_v26, %v10434_v44  ;;  %v2964_v28 = vpop.f32.mrb[67].mxu0  ;;  %vm3389_vm4 = vcmp.gt.f32.partialorder %v10440_v37, 20.0 }
 0x406   : > { %v3039_v38 = vmul.f32 1.442695, %v10443_v45  ;;  %v10451_v8 = vadd.f32 %v2964_v28, %v10437_v54  ;;  %vm3390_vm9 = vcmp.gt.f32.partialorder %v10443_v45, 20.0 }
 0x407   : > { %7800 = vpow2.f32 %v3037_v25  ;;  %v3041_v11 = vmul.f32 1.442695, %v10447_v42  ;;  %vm3391_vm6 = vcmp.gt.f32.partialorder %v10447_v42, 20.0 }
 0x408   : > { %7802 = vpow2.f32 %v3039_v38  ;;  %v3043_v2 = vmul.f32 1.442695, %v10451_v8  ;;  %vm3392_vm10 = vcmp.gt.f32.partialorder %v10451_v8, 20.0 }
 0x409   : > { %7804 = vpow2.f32 %v3041_v11  ;;  %v7272_v11 = vld [vmem:[#allocation3 + $0x300] ss:$8 sps:$4 sm:$0xff]  }
 0x40a   : > { %7806 = vpow2.f32 %v3043_v2  ;;  %v7274_v2 = vld [vmem:[#allocation3 + $0x304] ss:$8 sps:$4 sm:$0xff]  }
 0x40b   : > { %4456 = vmatprep.subr.bf16.mxu0 %v7274_v2 }
 0x40c   : > { %4457 = vmatpush1.bf16.msra.mxu0 %v7272_v11  ;;  %v7292_v11 = vld [vmem:[#allocation3 + $0x364] ss:$8 sps:$4 sm:$0xff]  }
 0x411   : > { %v7801_v21 = vpop.eup %7800 }
 0x412   : > { %v7803_v7 = vpop.eup %7802  ;;  %v3101_v30 = vadd.f32 1.0, %v7801_v21  ;;  %v3104_v36 = vmul.f32 -0.5, %v7801_v21  ;;  %v3107_v48 = vand.u32 2147483647, %v7801_v21 }
 0x413   : > { %v7805_v63 = vpop.eup %7804  ;;  %v3110_v29 = vadd.f32 1.0, %v7803_v7  ;;  %v3113_v43 = vmul.f32 -0.5, %v7803_v7  ;;  %v3116_v60 = vand.u32 2147483647, %v7803_v7 }
 0x414   : > { %v7807_v0 = vpop.eup %7806  ;;  %7808 = vlog2.f32 %v3101_v30  ;;  %v3119_v24 = vadd.f32 1.0, %v7805_v63  ;;  %v3122_v39 = vmul.f32 -0.5, %v7805_v63  ;;  %v3105_v47 = vadd.f32 1.0, %v3104_v36 }
 0x415   : > { %7810 = vlog2.f32 %v3110_v29  ;;  %v3128_v46 = vadd.f32 1.0, %v7807_v0  ;;  %v3131_v41 = vmul.f32 -0.5, %v7807_v0  ;;  %v3114_v27 = vadd.f32 1.0, %v3113_v43  ;;  %v7283_v43 = vld [vmem:[#allocation3 + $0x334] ss:$8 sps:$4 sm:$0xff]  }
 0x416   : > { %7812 = vlog2.f32 %v3119_v24  ;;  %vm10465_vm3 = vcmp.lt.f32.partialorder %v3107_v48, 0.0004427343  ;;  %v3123_v20 = vadd.f32 1.0, %v3122_v39  ;;  %v3106_v55 = vmul.f32 %v7801_v21, %v3105_v47  ;;  %v7281_v47 = vld [vmem:[#allocation3 + $0x330] ss:$8 sps:$4 sm:$0xff]  }
 0x417   : > { %7814 = vlog2.f32 %v3128_v46  ;;  %v2968_v16 = vpop.f32.mrb[68].mxu0  ;;  %v3125_v51 = vand.u32 2147483647, %v7805_v63  ;;  %v3132_v50 = vadd.f32 1.0, %v3131_v41  ;;  %v3115_v31 = vmul.f32 %v7803_v7, %v3114_v27  ;;  %v7277_v7 = vld [vmem:[#allocation3 + $0x314] ss:$8 sps:$4 sm:$0xff]  }
 0x418   : > { %v10456_v6 = vadd.f32 %v2968_v16, %v10434_v44  ;;  %v2970_v17 = vpop.f32.mrb[69].mxu0  ;;  %v3134_v12 = vand.u32 2147483647, %v7807_v0  ;;  %v3124_v52 = vmul.f32 %v7805_v63, %v3123_v20  ;;  %vm3117_vm7 = vcmp.lt.f32.partialorder %v3116_v60, 0.0004427343  ;;  %4458 = vmatprep.subr.bf16.mxu0 %v7277_v7 }
 0x419   : > { %v10459_v1 = vadd.f32 %v2970_v17, %v10437_v54  ;;  %v2972_v58 = vpop.f32.mrb[70].mxu0  ;;  %vm3126_vm5 = vcmp.lt.f32.partialorder %v3125_v51, 0.0004427343  ;;  %v3133_v57 = vmul.f32 %v7807_v0, %v3132_v50  ;;  %v7275_v63 = vld [vmem:[#allocation3 + $0x310] ss:$8 sps:$4 sm:$0xff]  }
 0x41a   : > { %v3045_v15 = vmul.f32 1.442695, %v10456_v6  ;;  %v10463_v49 = vadd.f32 %v2972_v58, %v10434_v44  ;;  %v2974_v53 = vpop.f32.mrb[71].mxu0  ;;  %vm3135_vm8 = vcmp.lt.f32.partialorder %v3134_v12, 0.0004427343  ;;  %4459 = vmatpush1.bf16.msra.mxu0 %v7275_v63  ;;  %vm3393_vm0 = vcmp.gt.f32.partialorder %v10456_v6, 20.0 }
 0x41b   : > { %v3047_v56 = vmul.f32 1.442695, %v10459_v1  ;;  %v10471_v18 = vadd.f32 %v2974_v53, %v10437_v54  ;;  %v7278_v46 = vld [vmem:[#allocation3 + $0x320] ss:$8 sps:$4 sm:$0xff]   ;;  %v7286_v58 = vld [vmem:[#allocation3 + $0x344] ss:$8 sps:$4 sm:$0xff]  }
 0x41c   : > { %7816 = vpow2.f32 %v3045_v15  ;;  %v3049_v3 = vmul.f32 1.442695, %v10463_v49  ;;  %vm3394_vm11 = vcmp.gt.f32.partialorder %v10459_v1, 20.0  ;;  %vm3395_vm2 = vcmp.gt.f32.partialorder %v10463_v49, 20.0 }
 0x41d   : > { %7818 = vpow2.f32 %v3047_v56  ;;  %v3051_v33 = vmul.f32 1.442695, %v10471_v18  ;;  %vm3396_vm12 = vcmp.gt.f32.partialorder %v10471_v18, 20.0  ;;  %v7284_v56 = vld [vmem:[#allocation3 + $0x340] ss:$8 sps:$4 sm:$0xff]  }
 0x41e   : > { %v7809_v5 = vpop.eup %7808  ;;  %7820 = vpow2.f32 %v3049_v3 }
 0x41f   : > { %v7811_v13 = vpop.eup %7810  ;;  %v3103_v22 = vmul.f32 0.6931472, %v7809_v5  ;;  %7822 = vpow2.f32 %v3051_v33 }
 0x420   : > { %v7813_v10 = vpop.eup %7812  ;;  %v3112_v19 = vmul.f32 0.6931472, %v7811_v13 }
 0x421   : > { %v3109_v9 = vsel %vm10465_vm3, %v3106_v55, %v3103_v22  ;;  %v3121_v35 = vmul.f32 0.6931472, %v7813_v10  ;;  %v7815_v23 = vpop.eup %7814  ;;  %v7289_v22 = vld [vmem:[#allocation3 + $0x354] ss:$8 sps:$4 sm:$0xff]  }
 0x422   : > { %v3118_v4 = vsel %vm3117_vm7, %v3115_v31, %v3112_v19  ;;  %v3130_v40 = vmul.f32 0.6931472, %v7815_v23  ;;  %v3421_v62 = vsel %vm3389_vm4, %v10440_v37, %v3109_v9 }
 0x423   : > { %v3127_v14 = vsel %vm3126_vm5, %v3124_v52, %v3121_v35  ;;  %v3422_v28 = vsel %vm3390_vm9, %v10443_v45, %v3118_v4  ;;  %v7280_v45 = vld [vmem:[#allocation3 + $0x324] ss:$8 sps:$4 sm:$0xff]  }
 0x424   : > { %v3423_v32 = vsel %vm3391_vm6, %v10447_v42, %v3127_v14  ;;  %v3136_v25 = vsel %vm3135_vm8, %v3133_v57, %v3130_v40  ;;  %4460 = vmatprep.subr.bf16.mxu0 %v7280_v45  ;;  %v7290_v45 = vld [vmem:[#allocation3 + $0x360] ss:$8 sps:$4 sm:$0xff]  }
 0x425   : > { %v3453_v26 = vpack.c.bf16 %v3423_v32, %v3421_v62  ;;  %v3424_v38 = vsel %vm3392_vm10, %v10451_v8, %v3136_v25  ;;  %4461 = vmatpush1.bf16.msra.mxu0 %v7278_v46 }
 0x426   : > { %v3454_v21 = vpack.c.bf16 %v3424_v38, %v3422_v28  ;;  %v10485_v30 = vpop.eup %7816  ;;  %4462 = vmatprep.subr.bf16.mxu0 %v7283_v43 }
 0x427   : > { %v7819_v37 = vpop.eup %7818  ;;  %v3137_v42 = vadd.f32 1.0, %v10485_v30  ;;  %v3140_v39 = vmul.f32 -0.5, %v10485_v30  ;;  %v3143_v16 = vand.u32 2147483647, %v10485_v30 }
 0x428   : > { %3693 = vmatprep.mubr.bf16.mxu1 %v3454_v21  ;;  %v10488_v29 = vpop.eup %7820  ;;  %v3146_v0 = vadd.f32 1.0, %v7819_v37  ;;  %v3149_v48 = vmul.f32 -0.5, %v7819_v37  ;;  %v3152_v41 = vand.u32 2147483647, %v7819_v37 }
 0x429   : > { %3694 = vmatmul.mubr.bf16.vlgmr.msra.gmra.mrb[0].mxu1 %v3453_v26  ;;  %v7823_v8 = vpop.eup %7822  ;;  %7824 = vlog2.f32 %v3137_v42  ;;  %v3155_v24 = vadd.f32 1.0, %v10488_v29  ;;  %v3158_v15 = vmul.f32 -0.5, %v10488_v29  ;;  %v3141_v61 = vadd.f32 1.0, %v3140_v39  ;;  %4463 = vmatpush1.bf16.msra.mxu0 %v7281_v47  ;;  %v7287_v26 = vld [vmem:[#allocation3 + $0x350] ss:$8 sps:$4 sm:$0xff]  }
 0x42a   : > { %7826 = vlog2.f32 %v3146_v0  ;;  %v3164_v36 = vadd.f32 1.0, %v7823_v8  ;;  %v3167_v17 = vmul.f32 -0.5, %v7823_v8  ;;  %v3150_v53 = vadd.f32 1.0, %v3149_v48  ;;  %4464 = vmatprep.subr.bf16.mxu0 %v7286_v58 }
 0x42b   : > { %vm10496_vm13 = vcmp.lt.f32.partialorder %v3143_v16, 0.0004427343  ;;  %v3170_v13 = vand.u32 2147483647, %v7823_v8  ;;  %vm10506_vm1 = vcmp.lt.f32.partialorder %v3152_v41, 0.0004427343  ;;  %v3142_v62 = vmul.f32 %v10485_v30, %v3141_v61 }
 0x42c   : > { %7828 = vlog2.f32 %v3164_v36  ;;  %v3168_v3 = vadd.f32 1.0, %v3167_v17  ;;  %v3159_v31 = vadd.f32 1.0, %v3158_v15  ;;  %v3151_v23 = vmul.f32 %v7819_v37, %v3150_v53 }
 0x42d   : > { %7830 = vlog2.f32 %v3155_v24  ;;  %v3161_v32 = vand.u32 2147483647, %v10488_v29  ;;  %4465 = vmatpush1.bf16.msra.mxu0 %v7284_v56  ;;  %vm3171_vm14 = vcmp.lt.f32.partialorder %v3170_v13, 0.0004427343 }
 0x42e   : > { %v3169_v38 = vmul.f32 %v7823_v8, %v3168_v3  ;;  %4466 = vmatprep.subr.bf16.mxu0 %v7289_v22  ;;  %v3160_v7 = vmul.f32 %v10488_v29, %v3159_v31 }
 0x42f   : > { %vm3162_vm15 = vcmp.lt.f32.partialorder %v3161_v32, 0.0004427343 }
 0x431   : > { %4467 = vmatpush1.bf16.msra.mxu0 %v7287_v26 }
 0x432   : > { %4468 = vmatprep.subr.bf16.mxu0 %v7292_v11 }
 0x433   : > { %v7825_v27 = vpop.eup %7824 }
 0x434   : > { %v2978_v60 = vpop.f32.mrb[72].mxu0  ;;  %v7827_v5 = vpop.eup %7826  ;;  %v3139_v14 = vmul.f32 0.6931472, %v7825_v27 }
 0x435   : > { %v10501_v55 = vadd.f32 %v2978_v60, %v10434_v44  ;;  %v2980_v51 = vpop.f32.mrb[73].mxu0  ;;  %v3148_v10 = vmul.f32 0.6931472, %v7827_v5  ;;  %4469 = vmatpush1.bf16.msra.mxu0 %v7290_v45 }
 0x436   : > { %v10504_v33 = vadd.f32 %v2980_v51, %v10437_v54  ;;  %v2982_v50 = vpop.f32.mrb[74].mxu0  ;;  %v7829_v12 = vpop.eup %7828  ;;  %v3145_v37 = vsel %vm10496_vm13, %v3142_v62, %v3139_v14 }
 0x437   : > { %v3053_v9 = vmul.f32 1.442695, %v10501_v55  ;;  %v10512_v35 = vadd.f32 %v2982_v50, %v10434_v44  ;;  %v2984_v52 = vpop.f32.mrb[75].mxu0  ;;  %v7831_v4 = vpop.eup %7830  ;;  %v3154_v25 = vsel %vm10506_vm1, %v3151_v23, %v3148_v10  ;;  %v3166_v28 = vmul.f32 0.6931472, %v7829_v12 }
 0x438   : > { %v3055_v40 = vmul.f32 1.442695, %v10504_v33  ;;  %v10516_v57 = vadd.f32 %v2984_v52, %v10437_v54  ;;  %v3157_v42 = vmul.f32 0.6931472, %v7831_v4  ;;  %v3426_v63 = vsel %vm3394_vm11, %v10459_v1, %v3154_v25 }
 0x439   : > { %v3057_v2 = vmul.f32 1.442695, %v10512_v35  ;;  %v3172_v30 = vsel %vm3171_vm14, %v3169_v38, %v3166_v28  ;;  %v3425_v24 = vsel %vm3393_vm0, %v10456_v6, %v3145_v37  ;;  %vm3398_vm3 = vcmp.gt.f32.partialorder %v10504_v33, 20.0 }
 0x43a   : > { %7832 = vpow2.f32 %v3055_v40  ;;  %v3059_v21 = vmul.f32 1.442695, %v10516_v57  ;;  %v3428_v0 = vsel %vm3396_vm12, %v10471_v18, %v3172_v30  ;;  %v3163_v8 = vsel %vm3162_vm15, %v3160_v7, %v3157_v42 }
 0x43b   : > { %7834 = vpow2.f32 %v3053_v9  ;;  %v3456_v29 = vpack.c.bf16 %v3428_v0, %v3426_v63  ;;  %v3427_v36 = vsel %vm3395_vm2, %v10463_v49, %v3163_v8  ;;  %vm3400_vm4 = vcmp.gt.f32.partialorder %v10516_v57, 20.0 }
 0x43c   : > { %7836 = vpow2.f32 %v3059_v21  ;;  %v3455_v1 = vpack.c.bf16 %v3427_v36, %v3425_v24  ;;  %vm3397_vm8 = vcmp.gt.f32.partialorder %v10501_v55, 20.0  ;;  %vm3399_vm9 = vcmp.gt.f32.partialorder %v10512_v35, 20.0 }
 0x43d   : > { %7838 = vpow2.f32 %v3057_v2  ;;  %3703 = vmatprep.mubr.bf16.mxu1 %v3456_v29 }
 0x43e   : > { %3704 = vmatmul.mubr.bf16.gmra.mrb[4].mxu1 %v3455_v1 }
 0x443   : > { %v2988_v46 = vpop.f32.mrb[76].mxu0 }
 0x444   : > { %v10538_v18 = vadd.f32 %v2988_v46, %v10434_v44  ;;  %v2990_v43 = vpop.f32.mrb[77].mxu0  ;;  %v7833_v16 = vpop.eup %7832 }
 0x445   : > { %v10541_v48 = vadd.f32 %v2990_v43, %v10437_v54  ;;  %v2992_v39 = vpop.f32.mrb[78].mxu0  ;;  %v7835_v17 = vpop.eup %7834  ;;  %v3182_v27 = vadd.f32 1.0, %v7833_v16  ;;  %v3185_v5 = vmul.f32 -0.5, %v7833_v16  ;;  %v3188_v50 = vand.u32 2147483647, %v7833_v16 }
 0x446   : > { %v3061_v47 = vmul.f32 1.442695, %v10538_v18  ;;  %v10545_v6 = vadd.f32 %v2992_v39, %v10434_v44  ;;  %v2994_v49 = vpop.f32.mrb[79].mxu0  ;;  %v7837_v15 = vpop.eup %7836  ;;  %v3173_v56 = vadd.f32 1.0, %v7835_v17  ;;  %v3176_v13 = vmul.f32 -0.5, %v7835_v17 }
 0x447   : > { %v3063_v58 = vmul.f32 1.442695, %v10541_v48  ;;  %v10549_v41 = vadd.f32 %v2994_v49, %v10437_v54  ;;  %v10553_v61 = vpop.eup %7838  ;;  %v3200_v20 = vadd.f32 1.0, %v7837_v15  ;;  %v3203_v3 = vmul.f32 -0.5, %v7837_v15 }
 0x448   : > { %7840 = vpow2.f32 %v3061_v47  ;;  %v3065_v53 = vmul.f32 1.442695, %v10545_v6  ;;  %v3191_v51 = vadd.f32 1.0, %v10553_v61  ;;  %v3186_v22 = vadd.f32 1.0, %v3185_v5 }
 0x449   : > { %7842 = vpow2.f32 %v3063_v58  ;;  %v3067_v60 = vmul.f32 1.442695, %v10549_v41  ;;  %v3194_v10 = vmul.f32 -0.5, %v10553_v61  ;;  %v3204_v31 = vadd.f32 1.0, %v3203_v3 }
 0x44a   : > { %7844 = vpow2.f32 %v3065_v53  ;;  %v3206_v12 = vand.u32 2147483647, %v7837_v15  ;;  %v3177_v52 = vadd.f32 1.0, %v3176_v13  ;;  %v3179_v23 = vand.u32 2147483647, %v7835_v17 }
 0x44b   : > { %7846 = vpow2.f32 %v3067_v60  ;;  %v3187_v32 = vmul.f32 %v7833_v16, %v3186_v22  ;;  %vm10569_vm5 = vcmp.lt.f32.partialorder %v3188_v50, 0.0004427343  ;;  %v3195_v25 = vadd.f32 1.0, %v3194_v10 }
 0x44c   : > { %7848 = vlog2.f32 %v3182_v27  ;;  %v3205_v38 = vmul.f32 %v7837_v15, %v3204_v31  ;;  %vm10573_vm6 = vcmp.lt.f32.partialorder %v3206_v12, 0.0004427343  ;;  %v3178_v37 = vmul.f32 %v7835_v17, %v3177_v52 }
 0x44d   : > { %7850 = vlog2.f32 %v3200_v20  ;;  %vm10578_vm7 = vcmp.lt.f32.partialorder %v3179_v23, 0.0004427343  ;;  %v3196_v46 = vmul.f32 %v10553_v61, %v3195_v25  ;;  %v3197_v43 = vand.u32 2147483647, %v10553_v61 }
 0x44e   : > { %7852 = vlog2.f32 %v3173_v56  ;;  %vm3402_vm12 = vcmp.gt.f32.partialorder %v10541_v48, 20.0  ;;  %vm3404_vm1 = vcmp.gt.f32.partialorder %v10549_v41, 20.0  ;;  %vm3401_vm15 = vcmp.gt.f32.partialorder %v10538_v18, 20.0 }
 0x44f   : > { %7854 = vlog2.f32 %v3191_v51  ;;  %vm3198_vm10 = vcmp.lt.f32.partialorder %v3197_v43, 0.0004427343  ;;  %vm3403_vm0 = vcmp.gt.f32.partialorder %v10545_v6, 20.0 }
 0x452   : > { %v10557_v19 = vpop.eup %7840 }
 0x453   : > { %v10559_v9 = vpop.eup %7842  ;;  %v3209_v14 = vadd.f32 1.0, %v10557_v19  ;;  %v3212_v10 = vmul.f32 -0.5, %v10557_v19 }
 0x454   : > { %v10562_v4 = vpop.eup %7844  ;;  %v3218_v40 = vadd.f32 1.0, %v10559_v9  ;;  %v3221_v8 = vmul.f32 -0.5, %v10559_v9  ;;  %v3224_v50 = vand.u32 2147483647, %v10559_v9 }
 0x455   : > { %v10566_v62 = vpop.eup %7846  ;;  %v2998_v7 = vpop.f32.mrb[80].mxu0  ;;  %v3227_v60 = vadd.f32 1.0, %v10562_v4 }
 0x456   : > { %v7849_v28 = vpop.eup %7848  ;;  %7856 = vlog2.f32 %v3218_v40  ;;  %v3236_v2 = vadd.f32 1.0, %v10566_v62  ;;  %v10584_v0 = vadd.f32 %v2998_v7, %v10434_v44  ;;  %v3000_v45 = vpop.f32.mrb[81].mxu0  ;;  %v3239_v27 = vmul.f32 -0.5, %v10566_v62 }
 0x457   : > { %v7851_v21 = vpop.eup %7850  ;;  %v3184_v30 = vmul.f32 0.6931472, %v7849_v28  ;;  %7858 = vlog2.f32 %v3209_v14  ;;  %v10588_v24 = vadd.f32 %v3000_v45, %v10437_v54  ;;  %v3002_v36 = vpop.f32.mrb[82].mxu0  ;;  %v3222_v56 = vadd.f32 1.0, %v3221_v8 }
 0x458   : > { %v7853_v63 = vpop.eup %7852  ;;  %v3202_v29 = vmul.f32 0.6931472, %v7851_v21  ;;  %7860 = vlog2.f32 %v3236_v2  ;;  %v3069_v39 = vmul.f32 1.442695, %v10584_v0  ;;  %v10596_v16 = vadd.f32 %v3002_v36, %v10434_v44  ;;  %v3004_v47 = vpop.f32.mrb[83].mxu0 }
 0x459   : > { %v3190_v1 = vsel %vm10569_vm5, %v3187_v32, %v3184_v30  ;;  %v3175_v17 = vmul.f32 0.6931472, %v7853_v63  ;;  %v7855_v58 = vpop.eup %7854  ;;  %v3071_v15 = vmul.f32 1.442695, %v10588_v24  ;;  %v10602_v53 = vadd.f32 %v3004_v47, %v10437_v54 }
 0x45a   : > { %v3208_v49 = vsel %vm10573_vm6, %v3205_v38, %v3202_v29  ;;  %7862 = vpow2.f32 %v3069_v39  ;;  %v3430_v61 = vsel %vm3398_vm3, %v10504_v33, %v3190_v1  ;;  %v3073_v5 = vmul.f32 1.442695, %v10596_v16 }
 0x45b   : > { %v3432_v20 = vsel %vm3400_vm4, %v10516_v57, %v3208_v49  ;;  %7864 = vpow2.f32 %v3071_v15  ;;  %v3075_v51 = vmul.f32 1.442695, %v10602_v53  ;;  %v3181_v13 = vsel %vm10578_vm7, %v3178_v37, %v3175_v17 }
 0x45c   : > { %v3458_v3 = vpack.c.bf16 %v3432_v20, %v3430_v61  ;;  %v3193_v22 = vmul.f32 0.6931472, %v7855_v58  ;;  %v3240_v33 = vadd.f32 1.0, %v3239_v27  ;;  %v3223_v12 = vmul.f32 %v10559_v9, %v3222_v56 }
 0x45d   : > { %7866 = vpow2.f32 %v3075_v51  ;;  %v3242_v52 = vand.u32 2147483647, %v10566_v62  ;;  %v3429_v14 = vsel %vm3397_vm8, %v10501_v55, %v3181_v13  ;;  %vm10625_vm11 = vcmp.lt.f32.partialorder %v3224_v50, 0.0004427343 }
 0x45e   : > { %3713 = vmatprep.mubr.bf16.mxu1 %v3458_v3  ;;  %v3199_v31 = vsel %vm3198_vm10, %v3196_v46, %v3193_v22  ;;  %7868 = vlog2.f32 %v3227_v60  ;;  %v3213_v9 = vadd.f32 1.0, %v3212_v10  ;;  %v3241_v7 = vmul.f32 %v10566_v62, %v3240_v33 }
 0x45f   : > { %7870 = vpow2.f32 %v3073_v5  ;;  %v3431_v40 = vsel %vm3399_vm9, %v10512_v35, %v3199_v31  ;;  %v3008_v25 = vpop.f32.mrb[84].mxu0  ;;  %v3230_v55 = vmul.f32 -0.5, %v10562_v4  ;;  %vm3243_vm13 = vcmp.lt.f32.partialorder %v3242_v52, 0.0004427343 }
 0x460   : > { %v7857_v57 = vpop.eup %7856  ;;  %v3457_v28 = vpack.c.bf16 %v3431_v40, %v3429_v14  ;;  %v3010_v11 = vpop.f32.mrb[85].mxu0  ;;  %v3215_v45 = vand.u32 2147483647, %v10557_v19  ;;  %v3214_v39 = vmul.f32 %v10557_v19, %v3213_v9  ;;  %v3233_v17 = vand.u32 2147483647, %v10562_v4 }
 0x461   : > { %v7859_v23 = vpop.eup %7858  ;;  %v3220_v32 = vmul.f32 0.6931472, %v7857_v57  ;;  %v10635_v35 = vadd.f32 %v3010_v11, %v10437_v54  ;;  %v3012_v30 = vpop.f32.mrb[86].mxu0  ;;  %v3231_v47 = vadd.f32 1.0, %v3230_v55  ;;  %v10653_v27 = vadd.f32 %v3008_v25, %v10434_v44 }
 0x462   : > { %v7861_v26 = vpop.eup %7860  ;;  %3714 = vmatmul.mubr.bf16.gmra.mrb[8].mxu1 %v3457_v28  ;;  %v3014_v37 = vpop.f32.mrb[87].mxu0  ;;  %v3211_v63 = vmul.f32 0.6931472, %v7859_v23  ;;  %vm10655_vm14 = vcmp.lt.f32.partialorder %v3215_v45, 0.0004427343  ;;  %v10667_v56 = vadd.f32 %v3012_v30, %v10434_v44  ;;  %vm3406_vm3 = vcmp.gt.f32.partialorder %v10588_v24, 20.0 }
 0x463   : > { %v3226_v2 = vsel %vm10625_vm11, %v3223_v12, %v3220_v32  ;;  %v3238_v21 = vmul.f32 0.6931472, %v7861_v26  ;;  %v3079_v62 = vmul.f32 1.442695, %v10635_v35  ;;  %v10643_v8 = vadd.f32 %v3014_v37, %v10437_v54 }
 0x464   : > { %v10639_v29 = vpop.eup %7862  ;;  %v3434_v36 = vsel %vm3402_vm12, %v10541_v48, %v3226_v2  ;;  %v3217_v60 = vsel %vm10655_vm14, %v3214_v39, %v3211_v63  ;;  %v3232_v51 = vmul.f32 %v10562_v4, %v3231_v47  ;;  %vm3234_vm2 = vcmp.lt.f32.partialorder %v3233_v17, 0.0004427343 }
 0x465   : > { %v3244_v42 = vsel %vm3243_vm13, %v3241_v7, %v3238_v21  ;;  %v7865_v46 = vpop.eup %7864  ;;  %7872 = vpow2.f32 %v3079_v62  ;;  %v3083_v49 = vmul.f32 1.442695, %v10643_v8  ;;  %v3077_v13 = vmul.f32 1.442695, %v10653_v27 }
 0x466   : > { %v3436_v1 = vsel %vm3404_vm1, %v10549_v41, %v3244_v42  ;;  %v3254_v58 = vadd.f32 1.0, %v7865_v46  ;;  %v3245_v41 = vadd.f32 1.0, %v10639_v29  ;;  %v3257_v3 = vmul.f32 -0.5, %v7865_v46 }
 0x467   : > { %v3460_v43 = vpack.c.bf16 %v3436_v1, %v3434_v36  ;;  %v10650_v15 = vpop.eup %7866  ;;  %7874 = vpow2.f32 %v3083_v49  ;;  %v3433_v33 = vsel %vm3401_vm15, %v10538_v18, %v3217_v60  ;;  %v3248_v4 = vmul.f32 -0.5, %v10639_v29 }
 0x468   : > { %v7869_v19 = vpop.eup %7868  ;;  %v3272_v61 = vadd.f32 1.0, %v10650_v15  ;;  %7876 = vlog2.f32 %v3254_v58  ;;  %v3275_v50 = vmul.f32 -0.5, %v10650_v15  ;;  %v3081_v12 = vmul.f32 1.442695, %v10667_v56 }
 0x469   : > { %3723 = vmatprep.mubr.bf16.mxu1 %v3460_v43  ;;  %v10664_v20 = vpop.eup %7870  ;;  %v3229_v5 = vmul.f32 0.6931472, %v7869_v19  ;;  %v3260_v40 = vand.u32 2147483647, %v7865_v46  ;;  %v3258_v25 = vadd.f32 1.0, %v3257_v3  ;;  %v3249_v21 = vadd.f32 1.0, %v3248_v4 }
 0x46a   : > { %7878 = vlog2.f32 %v3272_v61  ;;  %v3018_v10 = vpop.f32.mrb[88].mxu0  ;;  %v3263_v31 = vadd.f32 1.0, %v10664_v20  ;;  %v3278_v18 = vand.u32 2147483647, %v10650_v15  ;;  %v3276_v28 = vadd.f32 1.0, %v3275_v50 }
 0x46b   : > { %v3235_v22 = vsel %vm3234_vm2, %v3232_v51, %v3229_v5  ;;  %7880 = vlog2.f32 %v3245_v41  ;;  %v10681_v52 = vadd.f32 %v3018_v10, %v10434_v44  ;;  %v3020_v23 = vpop.f32.mrb[89].mxu0  ;;  %vm3408_vm4 = vcmp.gt.f32.partialorder %v10602_v53, 20.0 }
 0x46c   : > { %v3435_v57 = vsel %vm3403_vm0, %v10545_v6, %v3235_v22  ;;  %v10684_v32 = vadd.f32 %v3020_v23, %v10437_v54  ;;  %v3022_v26 = vpop.f32.mrb[90].mxu0  ;;  %7882 = vlog2.f32 %v3263_v31  ;;  %v3266_v55 = vmul.f32 -0.5, %v10664_v20 }
 0x46d   : > { %v3459_v14 = vpack.c.bf16 %v3435_v57, %v3433_v33  ;;  %7884 = vpow2.f32 %v3077_v13  ;;  %v3024_v6 = vpop.f32.mrb[91].mxu0  ;;  %v3085_v9 = vmul.f32 1.442695, %v10681_v52  ;;  %v10697_v7 = vadd.f32 %v3022_v26, %v10434_v44 }
 0x46e   : > { %v3087_v11 = vmul.f32 1.442695, %v10684_v32  ;;  %v10693_v2 = vadd.f32 %v3024_v6, %v10437_v54  ;;  %7886 = vpow2.f32 %v3081_v12  ;;  %v3259_v37 = vmul.f32 %v7865_v46, %v3258_v25 }
 0x46f   : > { %3724 = vmatmul.mubr.bf16.gmra.mrb[12].mxu1 %v3459_v14  ;;  %v10688_v38 = vpop.eup %7872  ;;  %vm10702_vm5 = vcmp.lt.f32.partialorder %v3260_v40, 0.0004427343  ;;  %vm10706_vm6 = vcmp.lt.f32.partialorder %v3278_v18, 0.0004427343  ;;  %v3251_v1 = vand.u32 2147483647, %v10639_v29  ;;  %v3277_v47 = vmul.f32 %v10650_v15, %v3276_v28 }
 0x470   : > { %v3290_v45 = vadd.f32 1.0, %v10688_v38  ;;  %7888 = vpow2.f32 %v3087_v11  ;;  %v3091_v36 = vmul.f32 1.442695, %v10693_v2  ;;  %vm3405_vm7 = vcmp.gt.f32.partialorder %v10584_v0, 20.0 }
 0x471   : > { %v10700_v30 = vpop.eup %7874  ;;  %vm3407_vm8 = vcmp.gt.f32.partialorder %v10596_v16, 20.0  ;;  %7890 = vpow2.f32 %v3085_v9  ;;  %v3250_v49 = vmul.f32 %v10639_v29, %v3249_v21  ;;  %v3089_v58 = vmul.f32 1.442695, %v10697_v7 }
 0x472   : > { %v7877_v62 = vpop.eup %7876  ;;  %v3308_v43 = vadd.f32 1.0, %v10700_v30  ;;  %v3267_v41 = vadd.f32 1.0, %v3266_v55  ;;  %7892 = vlog2.f32 %v3290_v45  ;;  %v3269_v5 = vand.u32 2147483647, %v10664_v20 }
 0x473   : > { %v3256_v46 = vmul.f32 0.6931472, %v7877_v62  ;;  %v3293_v29 = vmul.f32 -0.5, %v10688_v38  ;;  %v3311_v3 = vmul.f32 -0.5, %v10700_v30  ;;  %vm10740_vm9 = vcmp.lt.f32.partialorder %v3251_v1, 0.0004427343 }
 0x474   : > { %v7879_v39 = vpop.eup %7878  ;;  %v3028_v19 = vpop.f32.mrb[92].mxu0  ;;  %7894 = vlog2.f32 %v3308_v43  ;;  %v3268_v14 = vmul.f32 %v10664_v20, %v3267_v41  ;;  %vm3270_vm10 = vcmp.lt.f32.partialorder %v3269_v5, 0.0004427343  ;;  %v3296_v6 = vand.u32 2147483647, %v10688_v38 }
 0x475   : > { %v7881_v17 = vpop.eup %7880  ;;  %v3274_v48 = vmul.f32 0.6931472, %v7879_v39  ;;  %v3262_v60 = vsel %vm10702_vm5, %v3259_v37, %v3256_v46  ;;  %7896 = vpow2.f32 %v3091_v36  ;;  %v3030_v51 = vpop.f32.mrb[93].mxu0  ;;  %v10727_v22 = vadd.f32 %v3028_v19, %v10434_v44 }
 0x476   : > { %v3247_v61 = vmul.f32 0.6931472, %v7881_v17  ;;  %v7883_v13 = vpop.eup %7882  ;;  %v10730_v50 = vadd.f32 %v3030_v51, %v10437_v54  ;;  %v3032_v10 = vpop.f32.mrb[94].mxu0  ;;  %v3438_v33 = vsel %vm3406_vm3, %v10588_v24, %v3262_v60  ;;  %7898 = vpow2.f32 %v3089_v58 }
 0x477   : > { %v3280_v15 = vsel %vm10706_vm6, %v3277_v47, %v3274_v48  ;;  %v10738_v4 = vpop.eup %7884  ;;  %v3034_v31 = vpop.f32.mrb[95].mxu0  ;;  %v3294_v18 = vadd.f32 1.0, %v3293_v29  ;;  %v3312_v28 = vadd.f32 1.0, %v3311_v3  ;;  %v3093_v9 = vmul.f32 1.442695, %v10727_v22 }
 0x478   : > { %v3440_v57 = vsel %vm3408_vm4, %v10602_v53, %v3280_v15  ;;  %v3095_v40 = vmul.f32 1.442695, %v10730_v50  ;;  %v10747_v26 = vadd.f32 %v3034_v31, %v10437_v54  ;;  %v3253_v24 = vsel %vm10740_vm9, %v3250_v49, %v3247_v61  ;;  %v10751_v25 = vpop.eup %7886 }
 0x479   : > { %v3462_v12 = vpack.c.bf16 %v3440_v57, %v3438_v33  ;;  %v3265_v53 = vmul.f32 0.6931472, %v7883_v13  ;;  %v10759_v21 = vadd.f32 %v3032_v10, %v10434_v44  ;;  %v3437_v55 = vsel %vm3405_vm7, %v10584_v0, %v3253_v24 }
 0x47a   : > { %7900 = vpow2.f32 %v3095_v40  ;;  %v3099_v20 = vmul.f32 1.442695, %v10747_v26  ;;  %v10756_v54 = vpop.eup %7888  ;;  %v3281_v42 = vadd.f32 1.0, %v10738_v4  ;;  %v3314_v62 = vand.u32 2147483647, %v10700_v30 }
 0x47b   : > { %3733 = vmatprep.mubr.bf16.mxu1 %v3462_v12  ;;  %v3271_v11 = vsel %vm3270_vm10, %v3268_v14, %v3265_v53  ;;  %v10768_v63 = vpop.eup %7890  ;;  %vm10771_vm11 = vcmp.lt.f32.partialorder %v3296_v6, 0.0004427343  ;;  %v3299_v0 = vadd.f32 1.0, %v10751_v25  ;;  %v3295_v43 = vmul.f32 %v10688_v38, %v3294_v18 }
 0x47c   : > { %v3439_v37 = vsel %vm3407_vm8, %v10596_v16, %v3271_v11  ;;  %7902 = vpow2.f32 %v3099_v20  ;;  %v7893_v36 = vpop.eup %7892  ;;  %v3326_v39 = vadd.f32 1.0, %v10756_v54  ;;  %v3097_v47 = vmul.f32 1.442695, %v10759_v21 }
 0x47d   : > { %v3461_v45 = vpack.c.bf16 %v3439_v37, %v3437_v55  ;;  %7904 = vlog2.f32 %v3281_v42  ;;  %v3292_v16 = vmul.f32 0.6931472, %v7893_v36  ;;  %v3313_v17 = vmul.f32 %v10700_v30, %v3312_v28 }
 0x47e   : > { %v7895_v1 = vpop.eup %7894  ;;  %7906 = vpow2.f32 %v3093_v9  ;;  %vm3315_vm12 = vcmp.lt.f32.partialorder %v3314_v62, 0.0004427343  ;;  %v3284_v48 = vmul.f32 -0.5, %v10738_v4  ;;  %vm3410_vm13 = vcmp.gt.f32.partialorder %v10635_v35, 20.0 }
 0x47f   : > { %3734 = vmatmul.mubr.bf16.gmra.mrb[16].mxu1 %v3461_v45  ;;  %v10778_v46 = vpop.eup %7896  ;;  %v3310_v49 = vmul.f32 0.6931472, %v7895_v1  ;;  %7908 = vlog2.f32 %v3299_v0  ;;  %v3298_v58 = vsel %vm10771_vm11, %v3295_v43, %v3292_v16  ;;  %vm3412_vm1 = vcmp.gt.f32.partialorder %v10643_v8, 20.0 }
 0x480   : > { %7910 = vlog2.f32 %v3326_v39  ;;  %v10785_v41 = vpop.eup %7898  ;;  %v3302_v19 = vmul.f32 -0.5, %v10751_v25  ;;  %v3442_v60 = vsel %vm3410_vm13, %v10635_v35, %v3298_v58  ;;  %v3287_v61 = vand.u32 2147483647, %v10738_v4 }
 0x481   : > { %v3316_v38 = vsel %vm3315_vm12, %v3313_v17, %v3310_v49  ;;  %v3344_v5 = vadd.f32 1.0, %v10778_v46  ;;  %7912 = vpow2.f32 %v3097_v47  ;;  %v3329_v15 = vmul.f32 -0.5, %v10756_v54 }
 0x482   : > { %v3444_v30 = vsel %vm3412_vm1, %v10643_v8, %v3316_v38  ;;  %v3317_v29 = vadd.f32 1.0, %v10768_v63  ;;  %v3285_v13 = vadd.f32 1.0, %v3284_v48  ;;  %v3305_v10 = vand.u32 2147483647, %v10751_v25 }
 0x483   : > { %v3464_v51 = vpack.c.bf16 %v3444_v30, %v3442_v60  ;;  %7914 = vlog2.f32 %v3344_v5  ;;  %vm3409_vm14 = vcmp.gt.f32.partialorder %v10653_v27, 20.0  ;;  %v3303_v35 = vadd.f32 1.0, %v3302_v19 }
 0x484   : > { %v10796_v3 = vpop.eup %7900  ;;  %7916 = vlog2.f32 %v3317_v29  ;;  %v3335_v8 = vadd.f32 1.0, %v10785_v41  ;;  %vm3411_vm15 = vcmp.gt.f32.partialorder %v10667_v56, 20.0  ;;  %vm10804_vm0 = vcmp.lt.f32.partialorder %v3287_v61, 0.0004427343 }
 0x485   : > { %3743 = vmatprep.mubr.bf16.mxu1 %v3464_v51  ;;  %v3332_v31 = vand.u32 2147483647, %v10756_v54  ;;  %v3347_v12 = vmul.f32 -0.5, %v10778_v46  ;;  %v3330_v14 = vadd.f32 1.0, %v3329_v15  ;;  %v3350_v40 = vand.u32 2147483647, %v10778_v46 }
 0x486   : > { %v10801_v33 = vpop.eup %7902  ;;  %7918 = vlog2.f32 %v3335_v8  ;;  %v3362_v24 = vadd.f32 1.0, %v10796_v3  ;;  %vm3414_vm2 = vcmp.gt.f32.partialorder %v10684_v32, 20.0  ;;  %v3286_v6 = vmul.f32 %v10738_v4, %v3285_v13 }
 0x487   : > { %v7905_v23 = vpop.eup %7904  ;;  %vm10816_vm3 = vcmp.lt.f32.partialorder %v3305_v10, 0.0004427343  ;;  %v3320_v9 = vmul.f32 -0.5, %v10768_v63  ;;  %vm3416_vm4 = vcmp.gt.f32.partialorder %v10693_v2, 20.0  ;;  %v3304_v11 = vmul.f32 %v10751_v25, %v3303_v35 }
 0x488   : > { %v10812_v53 = vpop.eup %7906  ;;  %v3283_v18 = vmul.f32 0.6931472, %v7905_v23  ;;  %v3338_v55 = vmul.f32 -0.5, %v10785_v41  ;;  %7920 = vlog2.f32 %v3362_v24  ;;  %v3380_v37 = vadd.f32 1.0, %v10801_v33 }
 0x489   : > { %v7909_v20 = vpop.eup %7908  ;;  %vm10827_vm5 = vcmp.lt.f32.partialorder %v3332_v31, 0.0004427343  ;;  %v3348_v36 = vadd.f32 1.0, %v3347_v12  ;;  %v3331_v0 = vmul.f32 %v10756_v54, %v3330_v14  ;;  %vm10832_vm6 = vcmp.lt.f32.partialorder %v3350_v40, 0.0004427343 }
 0x48a   : > { %v7911_v42 = vpop.eup %7910  ;;  %v3289_v4 = vsel %vm10804_vm0, %v3286_v6, %v3283_v18  ;;  %v3301_v45 = vmul.f32 0.6931472, %v7909_v20  ;;  %v3323_v1 = vand.u32 2147483647, %v10768_v63  ;;  %vm3413_vm7 = vcmp.gt.f32.partialorder %v10681_v52, 20.0 }
 0x48b   : > { %v3328_v44 = vmul.f32 0.6931472, %v7911_v42  ;;  %v3321_v43 = vadd.f32 1.0, %v3320_v9  ;;  %v3365_v39 = vmul.f32 -0.5, %v10796_v3  ;;  %7922 = vlog2.f32 %v3380_v37  ;;  %v10841_v47 = vpop.eup %7912 }
 0x48c   : > { %v3307_v16 = vsel %vm10816_vm3, %v3304_v11, %v3301_v45  ;;  %v3441_v54 = vsel %vm3409_vm14, %v10653_v27, %v3289_v4  ;;  %v3339_v17 = vadd.f32 1.0, %v3338_v55  ;;  %v3353_v58 = vadd.f32 1.0, %v10812_v53  ;;  %v7313_v27 = vld [vmem:[#allocation3 + $0x3d4] ss:$8 sps:$4 sm:$0xff]  }
 0x48d   : > { %v3443_v49 = vsel %vm3411_vm15, %v10667_v56, %v3307_v16  ;;  %v7915_v48 = vpop.eup %7914  ;;  %v3334_v19 = vsel %vm10827_vm5, %v3331_v0, %v3328_v44  ;;  %v3349_v60 = vmul.f32 %v10778_v46, %v3348_v36  ;;  %v3341_v30 = vand.u32 2147483647, %v10785_v41 }
 0x48e   : > { %v3463_v38 = vpack.c.bf16 %v3443_v49, %v3441_v54  ;;  %v7917_v61 = vpop.eup %7916  ;;  %v3346_v5 = vmul.f32 0.6931472, %v7915_v48  ;;  %vm10854_vm8 = vcmp.lt.f32.partialorder %v3323_v1, 0.0004427343  ;;  %v3383_v56 = vmul.f32 -0.5, %v10801_v33 }
 0x48f   : > { %7924 = vlog2.f32 %v3353_v58  ;;  %v3319_v51 = vmul.f32 0.6931472, %v7917_v61  ;;  %v3322_v15 = vmul.f32 %v10768_v63, %v3321_v43  ;;  %v3366_v29 = vadd.f32 1.0, %v3365_v39  ;;  %v7293_v54 = vld [vmem:[#allocation3 + $0x370] ss:$8 sps:$4 sm:$0xff]  }
 0x490   : > { %3744 = vmatmul.mubr.bf16.gmra.mrb[20].mxu1 %v3463_v38  ;;  %v3371_v13 = vadd.f32 1.0, %v10841_v47  ;;  %v7919_v10 = vpop.eup %7918  ;;  %v3352_v46 = vsel %vm10832_vm6, %v3349_v60, %v3346_v5  ;;  %v3446_v35 = vsel %vm3414_vm2, %v10684_v32, %v3334_v19  ;;  %v3340_v8 = vmul.f32 %v10785_v41, %v3339_v17  ;;  %v7295_v49 = vld [vmem:[#allocation3 + $0x374] ss:$8 sps:$4 sm:$0xff]   ;;  %v7298_v17 = vld [vmem:[#allocation3 + $0x384] ss:$8 sps:$4 sm:$0xff]  }
 0x491   : > { %v3368_v57 = vand.u32 2147483647, %v10796_v3  ;;  %v3448_v31 = vsel %vm3416_vm4, %v10693_v2, %v3352_v46  ;;  %v3325_v63 = vsel %vm10854_vm8, %v3322_v15, %v3319_v51  ;;  %v3337_v12 = vmul.f32 0.6931472, %v7919_v10  ;;  %4470 = vmatprep.subr.bf16.mxu0 %v7295_v49  ;;  %v7296_v58 = vld [vmem:[#allocation3 + $0x380] ss:$8 sps:$4 sm:$0xff]  }
 0x492   : > { %7926 = vlog2.f32 %v3371_v13  ;;  %v7921_v23 = vpop.eup %7920  ;;  %v3466_v14 = vpack.c.bf16 %v3448_v31, %v3446_v35  ;;  %vm3342_vm9 = vcmp.lt.f32.partialorder %v3341_v30, 0.0004427343  ;;  %v3384_v40 = vadd.f32 1.0, %v3383_v56  ;;  %4471 = vmatpush1.bf16.msra.mxu0 %v7293_v54  ;;  %v7301_v38 = vld [vmem:[#allocation3 + $0x394] ss:$8 sps:$4 sm:$0xff]  }
 0x493   : > { %v3356_v24 = vmul.f32 -0.5, %v10812_v53  ;;  %vm3415_vm10 = vcmp.gt.f32.partialorder %v10697_v7, 20.0  ;;  %v3343_v32 = vsel %vm3342_vm9, %v3340_v8, %v3337_v12  ;;  %v3364_v41 = vmul.f32 0.6931472, %v7921_v23  ;;  %4472 = vmatprep.subr.bf16.mxu0 %v7298_v17  ;;  %v7304_v19 = vld [vmem:[#allocation3 + $0x3a4] ss:$8 sps:$4 sm:$0xff]  }
 0x494   : > { %v3386_v18 = vand.u32 2147483647, %v10801_v33  ;;  %3753 = vmatprep.mubr.bf16.mxu1 %v3466_v14  ;;  %v3445_v2 = vsel %vm3413_vm7, %v10681_v52, %v3325_v63  ;;  %v3447_v6 = vsel %vm3415_vm10, %v10697_v7, %v3343_v32  ;;  %v3367_v28 = vmul.f32 %v10796_v3, %v3366_v29  ;;  %v7302_v60 = vld [vmem:[#allocation3 + $0x3a0] ss:$8 sps:$4 sm:$0xff]   ;;  %v7305_v30 = vld [vmem:[#allocation3 + $0x3b0] ss:$8 sps:$4 sm:$0xff]  }
 0x495   : > { %v3374_v9 = vmul.f32 -0.5, %v10841_v47  ;;  %v7923_v20 = vpop.eup %7922  ;;  %v3465_v11 = vpack.c.bf16 %v3447_v6, %v3445_v2  ;;  %vm3369_vm11 = vcmp.lt.f32.partialorder %v3368_v57, 0.0004427343  ;;  %v3385_v42 = vmul.f32 %v10801_v33, %v3384_v40  ;;  %v7307_v61 = vld [vmem:[#allocation3 + $0x3b4] ss:$8 sps:$4 sm:$0xff]  }
 0x496   : > { %v3370_v55 = vsel %vm3369_vm11, %v3367_v28, %v3364_v41  ;;  %v3382_v37 = vmul.f32 0.6931472, %v7923_v20  ;;  %v3357_v4 = vadd.f32 1.0, %v3356_v24  ;;  %vm3387_vm12 = vcmp.lt.f32.partialorder %v3386_v18, 0.0004427343  ;;  %4473 = vmatpush1.bf16.msra.mxu0 %v7296_v58 }
 0x497   : > { %v3359_v45 = vand.u32 2147483647, %v10812_v53  ;;  %vm3418_vm13 = vcmp.gt.f32.partialorder %v10730_v50, 20.0  ;;  %vm3420_vm1 = vcmp.gt.f32.partialorder %v10747_v26, 20.0  ;;  %v3375_v7 = vadd.f32 1.0, %v3374_v9  ;;  %4474 = vmatprep.subr.bf16.mxu0 %v7301_v38 }
 0x498   : > { %3754 = vmatmul.mubr.bf16.gmra.mrb[24].mxu1 %v3465_v11  ;;  %v3388_v52 = vsel %vm3387_vm12, %v3385_v42, %v3382_v37  ;;  %v3450_v3 = vsel %vm3418_vm13, %v10730_v50, %v3370_v55  ;;  %v3377_v0 = vand.u32 2147483647, %v10841_v47  ;;  %v3358_v25 = vmul.f32 %v10812_v53, %v3357_v4  ;;  %v7310_v5 = vld [vmem:[#allocation3 + $0x3c4] ss:$8 sps:$4 sm:$0xff]   ;;  %v7314_v51 = vld [vmem:[#allocation3 + $0x3e0] ss:$8 sps:$4 sm:$0xff]  }
 0x499   : > { %v7925_v62 = vpop.eup %7924  ;;  %v3452_v36 = vsel %vm3420_vm1, %v10747_v26, %v3388_v52  ;;  %vm3360_vm14 = vcmp.lt.f32.partialorder %v3359_v45, 0.0004427343  ;;  %v3376_v39 = vmul.f32 %v10841_v47, %v3375_v7  ;;  %vm3417_vm0 = vcmp.gt.f32.partialorder %v10727_v22, 20.0  ;;  %v7299_v47 = vld [vmem:[#allocation3 + $0x390] ss:$8 sps:$4 sm:$0xff]  }
 0x49a   : > { %v3355_v44 = vmul.f32 0.6931472, %v7925_v62  ;;  %v3468_v33 = vpack.c.bf16 %v3452_v36, %v3450_v3  ;;  %vm3378_vm15 = vcmp.lt.f32.partialorder %v3377_v0, 0.0004427343  ;;  %vm3419_vm2 = vcmp.gt.f32.partialorder %v10759_v21, 20.0  ;;  %4475 = vmatpush1.bf16.msra.mxu0 %v7299_v47 }
 0x49b   : > { %4476 = vmatprep.subr.bf16.mxu0 %v7304_v19  ;;  %v7316_v56 = vld [vmem:[#allocation3 + $0x3e4] ss:$8 sps:$4 sm:$0xff]   ;;  %v7317_v15 = vld [vmem:[#allocation3 + $0x3f0] ss:$8 sps:$4 sm:$0xff]   ;;  %v7319_v29 = vld [vmem:[#allocation3 + $0x3f4] ss:$8 sps:$4 sm:$0xff]  }
 0x49c   : > { %v7927_v1 = vpop.eup %7926  ;;  %3763 = vmatprep.mubr.bf16.mxu1 %v3468_v33  ;;  %v3361_v16 = vsel %vm3360_vm14, %v3358_v25, %v3355_v44  ;;  %v3774_v13 = vld [vmem:[%s12849_s6] sm:$0x3] }
 0x49d   : > { %v3373_v43 = vmul.f32 0.6931472, %v7927_v1  ;;  %v3449_v26 = vsel %vm3417_vm0, %v10727_v22, %v3361_v16  ;;  %v7308_v22 = vld [vmem:[#allocation3 + $0x3c0] ss:$8 sps:$4 sm:$0xff]   ;;  %v10899_v10 = vrot.slane %v3774_v13, %v12914_v34  ;;  %v10902_v46 = vrot.slane %v3774_v13, %v12915_v59 }
 0x49e   : > { %4477 = vmatpush1.bf16.msra.mxu0 %v7302_v60 }
 0x49f   : > { %v3379_v50 = vsel %vm3378_vm15, %v3376_v39, %v3373_v43  ;;  %4478 = vmatprep.subr.bf16.mxu0 %v7307_v61 }
 0x4a0   : > { %v3451_v53 = vsel %vm3419_vm2, %v10759_v21, %v3379_v50  ;;  %v7311_v21 = vld [vmem:[#allocation3 + $0x3d0] ss:$8 sps:$4 sm:$0xff]  }
 0x4a1   : > { %v3467_v48 = vpack.c.bf16 %v3451_v53, %v3449_v26 }
 0x4a2   : > { %4479 = vmatpush1.bf16.msra.mxu0 %v7305_v30 }
 0x4a3   : > { %3764 = vmatmul.mubr.bf16.gmra.mrb[28].mxu1 %v3467_v48  ;;  %4480 = vmatprep.subr.bf16.mxu0 %v7310_v5 }
 0x4a6   : > { %4481 = vmatpush1.bf16.msra.mxu0 %v7308_v22 }
 0x4a7   : > { %4482 = vmatprep.subr.bf16.mxu0 %v7313_v27 }
 0x4aa   : > { %4483 = vmatpush1.bf16.msra.mxu0 %v7311_v21 }
 0x4ab   : > { %4484 = vmatprep.subr.bf16.mxu0 %v7316_v56 }
 0x4ae   : > { %4485 = vmatpush1.bf16.msra.mxu0 %v7314_v51 }
 0x4af   : > { %4486 = vmatprep.subr.bf16.mxu0 %v7319_v29 }
 0x4b2   : > { %4487 = vmatpush1.bf16.msra.mxu0 %v7317_v15 }
 0x4fc   : > { %v3695_v35 = vpop.f32.mrb[0].mxu1 }
 0x4fd   : > { %v10905_v8 = vadd.f32 %v10899_v10, %v3695_v35  ;;  %v3697_v57 = vpop.f32.mrb[1].mxu1 }
 0x4fe   : > { %v10908_v31 = vadd.f32 %v10902_v46, %v3697_v57  ;;  %v3699_v63 = vpop.f32.mrb[2].mxu1 }
 0x4ff   : > { %v3818_v12 = vmul.f32 1.442695, %v10905_v8  ;;  %v10912_v23 = vadd.f32 %v10899_v10, %v3699_v63  ;;  %v3701_v14 = vpop.f32.mrb[3].mxu1  ;;  %vm4170_vm4 = vcmp.gt.f32.partialorder %v10905_v8, 20.0 }
 0x500   : > { %v3820_v40 = vmul.f32 1.442695, %v10908_v31  ;;  %v10916_v24 = vadd.f32 %v10902_v46, %v3701_v14  ;;  %vm4171_vm9 = vcmp.gt.f32.partialorder %v10908_v31, 20.0 }
 0x501   : > { %7928 = vpow2.f32 %v3818_v12  ;;  %v3822_v32 = vmul.f32 1.442695, %v10912_v23  ;;  %vm4172_vm6 = vcmp.gt.f32.partialorder %v10912_v23, 20.0 }
 0x502   : > { %7930 = vpow2.f32 %v3820_v40  ;;  %v3824_v41 = vmul.f32 1.442695, %v10916_v24  ;;  %vm4173_vm10 = vcmp.gt.f32.partialorder %v10916_v24, 20.0 }
 0x503   : > { %7932 = vpow2.f32 %v3822_v32 }
 0x504   : > { %7934 = vpow2.f32 %v3824_v41 }
 0x50b   : > { %v7929_v18 = vpop.eup %7928 }
 0x50c   : > { %v7931_v2 = vpop.eup %7930  ;;  %v3882_v6 = vadd.f32 1.0, %v7929_v18  ;;  %v3885_v55 = vmul.f32 -0.5, %v7929_v18  ;;  %v3888_v4 = vand.u32 2147483647, %v7929_v18 }
 0x50d   : > { %v7933_v28 = vpop.eup %7932  ;;  %v3891_v9 = vadd.f32 1.0, %v7931_v2  ;;  %v3894_v37 = vmul.f32 -0.5, %v7931_v2  ;;  %v3897_v1 = vand.u32 2147483647, %v7931_v2 }
 0x50e   : > { %v7935_v20 = vpop.eup %7934  ;;  %7936 = vlog2.f32 %v3882_v6  ;;  %v3900_v11 = vadd.f32 1.0, %v7933_v28  ;;  %v3903_v45 = vmul.f32 -0.5, %v7933_v28  ;;  %v3886_v62 = vadd.f32 1.0, %v3885_v55 }
 0x50f   : > { %7938 = vlog2.f32 %v3891_v9  ;;  %v3909_v42 = vadd.f32 1.0, %v7935_v20  ;;  %v3895_v7 = vadd.f32 1.0, %v3894_v37  ;;  %v3912_v44 = vmul.f32 -0.5, %v7935_v20  ;;  %v7320_v9 = vld [vmem:[#allocation3 + $0x400] ss:$8 sps:$4 sm:$0xff]  }
 0x510   : > { %7940 = vlog2.f32 %v3900_v11  ;;  %vm10923_vm3 = vcmp.lt.f32.partialorder %v3888_v4, 0.0004427343  ;;  %v3904_v16 = vadd.f32 1.0, %v3903_v45  ;;  %v3906_v43 = vand.u32 2147483647, %v7933_v28 }
 0x511   : > { %7942 = vlog2.f32 %v3909_v42  ;;  %v3705_v52 = vpop.f32.mrb[4].mxu1  ;;  %v3887_v50 = vmul.f32 %v7929_v18, %v3886_v62  ;;  %v3896_v58 = vmul.f32 %v7931_v2, %v3895_v7  ;;  %v3913_v19 = vadd.f32 1.0, %v3912_v44  ;;  %v7322_v11 = vld [vmem:[#allocation3 + $0x404] ss:$8 sps:$4 sm:$0xff]   ;;  %v7323_v37 = vld [vmem:[#allocation3 + $0x410] ss:$8 sps:$4 sm:$0xff]  }
 0x512   : > { %v10921_v3 = vadd.f32 %v10899_v10, %v3705_v52  ;;  %v3707_v36 = vpop.f32.mrb[5].mxu1  ;;  %v3915_v5 = vand.u32 2147483647, %v7935_v20  ;;  %v3905_v27 = vmul.f32 %v7933_v28, %v3904_v16  ;;  %vm3907_vm5 = vcmp.lt.f32.partialorder %v3906_v43, 0.0004427343  ;;  %5207 = vmatprep.subr.bf16.mxu1 %v7322_v11 }
 0x513   : > { %v10929_v33 = vadd.f32 %v10902_v46, %v3707_v36  ;;  %v3709_v25 = vpop.f32.mrb[6].mxu1  ;;  %vm3898_vm7 = vcmp.lt.f32.partialorder %v3897_v1, 0.0004427343  ;;  %v3914_v13 = vmul.f32 %v7935_v20, %v3913_v19  ;;  %5208 = vmatpush1.bf16.msra.mxu1 %v7320_v9  ;;  %v7328_v4 = vld [vmem:[#allocation3 + $0x424] ss:$8 sps:$4 sm:$0xff]  }
 0x514   : > { %v3826_v39 = vmul.f32 1.442695, %v10921_v3  ;;  %v10933_v54 = vadd.f32 %v10899_v10, %v3709_v25  ;;  %v3711_v49 = vpop.f32.mrb[7].mxu1  ;;  %vm3916_vm8 = vcmp.lt.f32.partialorder %v3915_v5, 0.0004427343  ;;  %vm4174_vm11 = vcmp.gt.f32.partialorder %v10921_v3, 20.0 }
 0x515   : > { %v3828_v26 = vmul.f32 1.442695, %v10929_v33  ;;  %v10937_v53 = vadd.f32 %v10902_v46, %v3711_v49  ;;  %v7326_v36 = vld [vmem:[#allocation3 + $0x420] ss:$8 sps:$4 sm:$0xff]   ;;  %v7331_v25 = vld [vmem:[#allocation3 + $0x434] ss:$8 sps:$4 sm:$0xff]  }
 0x516   : > { %7944 = vpow2.f32 %v3826_v39  ;;  %v3830_v47 = vmul.f32 1.442695, %v10933_v54  ;;  %vm4175_vm12 = vcmp.gt.f32.partialorder %v10929_v33, 20.0  ;;  %vm4176_vm15 = vcmp.gt.f32.partialorder %v10933_v54, 20.0  ;;  %v7338_v11 = vld [vmem:[#allocation3 + $0x460] ss:$8 sps:$4 sm:$0xff]  }
 0x517   : > { %7946 = vpow2.f32 %v3828_v26  ;;  %v3832_v30 = vmul.f32 1.442695, %v10937_v53  ;;  %vm4177_vm0 = vcmp.gt.f32.partialorder %v10937_v53, 20.0 }
 0x518   : > { %v7937_v17 = vpop.eup %7936  ;;  %7948 = vpow2.f32 %v3830_v47  ;;  %v7329_v47 = vld [vmem:[#allocation3 + $0x430] ss:$8 sps:$4 sm:$0xff]  }
 0x519   : > { %v7939_v48 = vpop.eup %7938  ;;  %v3884_v38 = vmul.f32 0.6931472, %v7937_v17  ;;  %7950 = vpow2.f32 %v3832_v30 }
 0x51a   : > { %v7941_v60 = vpop.eup %7940  ;;  %v3893_v61 = vmul.f32 0.6931472, %v7939_v48 }
 0x51b   : > { %v3890_v22 = vsel %vm10923_vm3, %v3887_v50, %v3884_v38  ;;  %v3902_v21 = vmul.f32 0.6931472, %v7941_v60  ;;  %v7943_v56 = vpop.eup %7942 }
 0x51c   : > { %v3899_v15 = vsel %vm3898_vm7, %v3896_v58, %v3893_v61  ;;  %v3911_v29 = vmul.f32 0.6931472, %v7943_v56  ;;  %v4202_v35 = vsel %vm4170_vm4, %v10905_v8, %v3890_v22  ;;  %v7334_v22 = vld [vmem:[#allocation3 + $0x444] ss:$8 sps:$4 sm:$0xff]  }
 0x51d   : > { %v3908_v51 = vsel %vm3907_vm5, %v3905_v27, %v3902_v21  ;;  %v4203_v14 = vsel %vm4171_vm9, %v10908_v31, %v3899_v15 }
 0x51e   : > { %v4204_v57 = vsel %vm4172_vm6, %v10912_v23, %v3908_v51  ;;  %v3917_v12 = vsel %vm3916_vm8, %v3914_v13, %v3911_v29 }
 0x51f   : > { %v4234_v63 = vpack.c.bf16 %v4204_v57, %v4202_v35  ;;  %v4205_v40 = vsel %vm4173_vm10, %v10916_v24, %v3917_v12  ;;  %v7325_v24 = vld [vmem:[#allocation3 + $0x414] ss:$8 sps:$4 sm:$0xff]   ;;  %v7332_v12 = vld [vmem:[#allocation3 + $0x440] ss:$8 sps:$4 sm:$0xff]  }
 0x520   : > { %v4235_v32 = vpack.c.bf16 %v4205_v40, %v4203_v14  ;;  %v7945_v41 = vpop.eup %7944  ;;  %5209 = vmatprep.subr.bf16.mxu1 %v7325_v24 }
 0x521   : > { %v7947_v18 = vpop.eup %7946  ;;  %v3918_v2 = vadd.f32 1.0, %v7945_v41  ;;  %v3921_v31 = vmul.f32 -0.5, %v7945_v41  ;;  %v3924_v7 = vand.u32 2147483647, %v7945_v41  ;;  %5210 = vmatpush1.bf16.msra.mxu1 %v7323_v37 }
 0x522   : > { %4488 = vmatprep.mubr.bf16.mxu0 %v4235_v32  ;;  %v7949_v8 = vpop.eup %7948  ;;  %v3927_v6 = vadd.f32 1.0, %v7947_v18  ;;  %v3930_v55 = vmul.f32 -0.5, %v7947_v18  ;;  %v3933_v44 = vand.u32 2147483647, %v7947_v18  ;;  %5211 = vmatprep.subr.bf16.mxu1 %v7328_v4 }
 0x523   : > { %4489 = vmatmul.mubr.bf16.vlgmr.msra.gmra.mrb[96].mxu0 %v4234_v63  ;;  %v7951_v23 = vpop.eup %7950  ;;  %7952 = vlog2.f32 %v3918_v2  ;;  %v3936_v28 = vadd.f32 1.0, %v7949_v8  ;;  %v3939_v42 = vmul.f32 -0.5, %v7949_v8  ;;  %v3922_v62 = vadd.f32 1.0, %v3921_v31  ;;  %v7337_v2 = vld [vmem:[#allocation3 + $0x454] ss:$8 sps:$4 sm:$0xff]  }
 0x524   : > { %7954 = vlog2.f32 %v3927_v6  ;;  %v3945_v20 = vadd.f32 1.0, %v7951_v23  ;;  %v3948_v45 = vmul.f32 -0.5, %v7951_v23  ;;  %v3931_v52 = vadd.f32 1.0, %v3930_v55 }
 0x525   : > { %7956 = vlog2.f32 %v3936_v28  ;;  %v3940_v0 = vadd.f32 1.0, %v3939_v42  ;;  %v3942_v43 = vand.u32 2147483647, %v7949_v8  ;;  %v3951_v49 = vand.u32 2147483647, %v7951_v23  ;;  %5212 = vmatpush1.bf16.msra.mxu1 %v7326_v36 }
 0x526   : > { %7958 = vlog2.f32 %v3945_v20  ;;  %v3949_v16 = vadd.f32 1.0, %v3948_v45  ;;  %v3923_v50 = vmul.f32 %v7945_v41, %v3922_v62  ;;  %v3932_v48 = vmul.f32 %v7947_v18, %v3931_v52  ;;  %5213 = vmatprep.subr.bf16.mxu1 %v7331_v25  ;;  %v7340_v20 = vld [vmem:[#allocation3 + $0x464] ss:$8 sps:$4 sm:$0xff]  }
 0x527   : > { %vm10954_vm13 = vcmp.lt.f32.partialorder %v3924_v7, 0.0004427343  ;;  %vm10958_vm1 = vcmp.lt.f32.partialorder %v3933_v44, 0.0004427343  ;;  %v3941_v5 = vmul.f32 %v7949_v8, %v3940_v0  ;;  %vm3943_vm14 = vcmp.lt.f32.partialorder %v3942_v43, 0.0004427343 }
 0x528   : > { %v3950_v56 = vmul.f32 %v7951_v23, %v3949_v16  ;;  %vm3952_vm2 = vcmp.lt.f32.partialorder %v3951_v49, 0.0004427343 }
 0x529   : > { %5214 = vmatpush1.bf16.msra.mxu1 %v7329_v47 }
 0x52a   : > { %5215 = vmatprep.subr.bf16.mxu1 %v7334_v22 }
 0x52d   : > { %v7953_v1 = vpop.eup %7952  ;;  %5216 = vmatpush1.bf16.msra.mxu1 %v7332_v12 }
 0x52e   : > { %v7955_v39 = vpop.eup %7954  ;;  %v3920_v17 = vmul.f32 0.6931472, %v7953_v1  ;;  %5217 = vmatprep.subr.bf16.mxu1 %v7337_v2 }
 0x52f   : > { %v7957_v26 = vpop.eup %7956  ;;  %v3929_v58 = vmul.f32 0.6931472, %v7955_v39 }
 0x530   : > { %v7959_v19 = vpop.eup %7958  ;;  %v3926_v30 = vsel %vm10954_vm13, %v3923_v50, %v3920_v17  ;;  %v3938_v61 = vmul.f32 0.6931472, %v7957_v26 }
 0x531   : > { %v3935_v21 = vsel %vm10958_vm1, %v3932_v48, %v3929_v58  ;;  %v3947_v27 = vmul.f32 0.6931472, %v7959_v19  ;;  %v4206_v57 = vsel %vm4174_vm11, %v10921_v3, %v3926_v30 }
 0x532   : > { %v3944_v15 = vsel %vm3943_vm14, %v3941_v5, %v3938_v61  ;;  %v4207_v32 = vsel %vm4175_vm12, %v10929_v33, %v3935_v21  ;;  %v7335_v33 = vld [vmem:[#allocation3 + $0x450] ss:$8 sps:$4 sm:$0xff]  }
 0x533   : > { %v3953_v35 = vsel %vm3952_vm2, %v3950_v56, %v3947_v27  ;;  %v4208_v63 = vsel %vm4176_vm15, %v10933_v54, %v3944_v15  ;;  %5218 = vmatpush1.bf16.msra.mxu1 %v7335_v33 }
 0x534   : > { %v4209_v41 = vsel %vm4177_vm0, %v10937_v53, %v3953_v35  ;;  %v4236_v18 = vpack.c.bf16 %v4208_v63, %v4206_v57  ;;  %5219 = vmatprep.subr.bf16.mxu1 %v7340_v20 }
 0x535   : > { %v3715_v51 = vpop.f32.mrb[8].mxu1  ;;  %v4237_v6 = vpack.c.bf16 %v4209_v41, %v4207_v32 }
 0x536   : > { %v10969_v29 = vadd.f32 %v10899_v10, %v3715_v51  ;;  %v3717_v13 = vpop.f32.mrb[9].mxu1 }
 0x537   : > { %v10976_v14 = vadd.f32 %v10902_v46, %v3717_v13  ;;  %v3719_v40 = vpop.f32.mrb[10].mxu1  ;;  %4498 = vmatprep.mubr.bf16.mxu0 %v4237_v6  ;;  %5220 = vmatpush1.bf16.msra.mxu1 %v7338_v11 }
 0x538   : > { %v3834_v8 = vmul.f32 1.442695, %v10969_v29  ;;  %v10984_v3 = vadd.f32 %v10899_v10, %v3719_v40  ;;  %v3721_v54 = vpop.f32.mrb[11].mxu1  ;;  %4499 = vmatmul.mubr.bf16.gmra.mrb[100].mxu0 %v4236_v18  ;;  %vm4178_vm6 = vcmp.gt.f32.partialorder %v10969_v29, 20.0 }
 0x539   : > { %v3836_v23 = vmul.f32 1.442695, %v10976_v14  ;;  %v10988_v28 = vadd.f32 %v10902_v46, %v3721_v54  ;;  %vm4179_vm3 = vcmp.gt.f32.partialorder %v10976_v14, 20.0 }
 0x53a   : > { %v3838_v53 = vmul.f32 1.442695, %v10984_v3  ;;  %vm4180_vm7 = vcmp.gt.f32.partialorder %v10984_v3, 20.0 }
 0x53b   : > { %7960 = vpow2.f32 %v3836_v23  ;;  %v3840_v9 = vmul.f32 1.442695, %v10988_v28  ;;  %vm4181_vm8 = vcmp.gt.f32.partialorder %v10988_v28, 20.0 }
 0x53c   : > { %7962 = vpow2.f32 %v3834_v8 }
 0x53d   : > { %7964 = vpow2.f32 %v3840_v9 }
 0x53e   : > { %7966 = vpow2.f32 %v3838_v53 }
 0x542   : > { %v3725_v31 = vpop.f32.mrb[12].mxu1 }
 0x543   : > { %v10993_v24 = vadd.f32 %v10899_v10, %v3725_v31  ;;  %v3727_v55 = vpop.f32.mrb[13].mxu1 }
 0x544   : > { %v10996_v37 = vadd.f32 %v10902_v46, %v3727_v55  ;;  %v3729_v42 = vpop.f32.mrb[14].mxu1 }
 0x545   : > { %v7961_v4 = vpop.eup %7960  ;;  %v3842_v45 = vmul.f32 1.442695, %v10993_v24  ;;  %v3731_v62 = vpop.f32.mrb[15].mxu1  ;;  %v11006_v25 = vadd.f32 %v10899_v10, %v3729_v42  ;;  %vm4182_vm11 = vcmp.gt.f32.partialorder %v10993_v24, 20.0 }
 0x546   : > { %v10999_v52 = vpop.eup %7962  ;;  %v3844_v7 = vmul.f32 1.442695, %v10996_v37  ;;  %v11003_v44 = vadd.f32 %v10902_v46, %v3731_v62  ;;  %v3963_v0 = vadd.f32 1.0, %v7961_v4  ;;  %v3966_v17 = vmul.f32 -0.5, %v7961_v4 }
 0x547   : > { %v7965_v36 = vpop.eup %7964  ;;  %7968 = vpow2.f32 %v3842_v45  ;;  %v3954_v43 = vadd.f32 1.0, %v10999_v52  ;;  %v3846_v49 = vmul.f32 1.442695, %v11006_v25  ;;  %v3969_v58 = vand.u32 2147483647, %v7961_v4 }
 0x548   : > { %7970 = vpow2.f32 %v3844_v7  ;;  %v11008_v1 = vpop.eup %7966  ;;  %v3981_v16 = vadd.f32 1.0, %v7965_v36  ;;  %v3848_v39 = vmul.f32 1.442695, %v11003_v44  ;;  %v3984_v26 = vmul.f32 -0.5, %v7965_v36 }
 0x549   : > { %7972 = vlog2.f32 %v3963_v0  ;;  %v3972_v50 = vadd.f32 1.0, %v11008_v1  ;;  %v3967_v48 = vadd.f32 1.0, %v3966_v17  ;;  %v3987_v38 = vand.u32 2147483647, %v7965_v36 }
 0x54a   : > { %7974 = vlog2.f32 %v3981_v16  ;;  %v3985_v19 = vadd.f32 1.0, %v3984_v26  ;;  %v3957_v60 = vmul.f32 -0.5, %v10999_v52  ;;  %v3975_v30 = vmul.f32 -0.5, %v11008_v1 }
 0x54b   : > { %7976 = vlog2.f32 %v3954_v43  ;;  %vm11022_vm4 = vcmp.lt.f32.partialorder %v3969_v58, 0.0004427343  ;;  %v3968_v15 = vmul.f32 %v7961_v4, %v3967_v48  ;;  %vm11030_vm5 = vcmp.lt.f32.partialorder %v3987_v38, 0.0004427343 }
 0x54c   : > { %7978 = vlog2.f32 %v3972_v50  ;;  %v3960_v35 = vand.u32 2147483647, %v10999_v52  ;;  %v3986_v40 = vmul.f32 %v7965_v36, %v3985_v19  ;;  %v3958_v32 = vadd.f32 1.0, %v3957_v60 }
 0x54d   : > { %7980 = vpow2.f32 %v3848_v39  ;;  %v3976_v41 = vadd.f32 1.0, %v3975_v30  ;;  %v3978_v55 = vand.u32 2147483647, %v11008_v1  ;;  %vm4183_vm12 = vcmp.gt.f32.partialorder %v10996_v37, 20.0 }
 0x54e   : > { %7982 = vpow2.f32 %v3846_v49  ;;  %v3959_v16 = vmul.f32 %v10999_v52, %v3958_v32  ;;  %vm3961_vm9 = vcmp.lt.f32.partialorder %v3960_v35, 0.0004427343  ;;  %vm4184_vm13 = vcmp.gt.f32.partialorder %v11006_v25, 20.0 }
 0x54f   : > { %v3977_v49 = vmul.f32 %v11008_v1, %v3976_v41  ;;  %vm3979_vm10 = vcmp.lt.f32.partialorder %v3978_v55, 0.0004427343  ;;  %vm4185_vm1 = vcmp.gt.f32.partialorder %v11003_v44, 20.0 }
 0x551   : > { %v11014_v47 = vpop.eup %7968 }
 0x552   : > { %v11018_v61 = vpop.eup %7970  ;;  %v3990_v5 = vadd.f32 1.0, %v11014_v47  ;;  %v3735_v22 = vpop.f32.mrb[16].mxu1 }
 0x553   : > { %v3999_v27 = vadd.f32 1.0, %v11018_v61  ;;  %v11028_v56 = vadd.f32 %v10899_v10, %v3735_v22  ;;  %v3737_v51 = vpop.f32.mrb[17].mxu1  ;;  %v7973_v57 = vpop.eup %7972  ;;  %v4002_v58 = vmul.f32 -0.5, %v11018_v61  ;;  %v4005_v30 = vand.u32 2147483647, %v11018_v61 }
 0x554   : > { %v11038_v63 = vadd.f32 %v10902_v46, %v3737_v51  ;;  %v3739_v12 = vpop.f32.mrb[18].mxu1  ;;  %v7975_v18 = vpop.eup %7974  ;;  %v3965_v6 = vmul.f32 0.6931472, %v7973_v57  ;;  %7984 = vlog2.f32 %v3990_v5  ;;  %v3996_v5 = vand.u32 2147483647, %v11014_v47 }
 0x555   : > { %v3850_v2 = vmul.f32 1.442695, %v11028_v56  ;;  %v11042_v8 = vadd.f32 %v10899_v10, %v3739_v12  ;;  %v3741_v54 = vpop.f32.mrb[19].mxu1  ;;  %v7977_v23 = vpop.eup %7976  ;;  %v3983_v9 = vmul.f32 0.6931472, %v7975_v18  ;;  %7986 = vlog2.f32 %v3999_v27 }
 0x556   : > { %v3852_v33 = vmul.f32 1.442695, %v11038_v63  ;;  %v11046_v53 = vadd.f32 %v10902_v46, %v3741_v54  ;;  %v7979_v20 = vpop.eup %7978  ;;  %v3971_v31 = vsel %vm11022_vm4, %v3968_v15, %v3965_v6  ;;  %v3956_v0 = vmul.f32 0.6931472, %v7977_v23 }
 0x557   : > { %7988 = vpow2.f32 %v3850_v2  ;;  %v3854_v11 = vmul.f32 1.442695, %v11042_v8  ;;  %v11052_v42 = vpop.eup %7980  ;;  %v3989_v45 = vsel %vm11030_vm5, %v3986_v40, %v3983_v9  ;;  %v4211_v7 = vsel %vm4179_vm3, %v10976_v14, %v3971_v31 }
 0x558   : > { %7990 = vpow2.f32 %v3852_v33  ;;  %v3856_v4 = vmul.f32 1.442695, %v11046_v53  ;;  %v11058_v62 = vpop.eup %7982  ;;  %v4213_v36 = vsel %vm4181_vm8, %v10988_v28, %v3989_v45  ;;  %v3974_v39 = vmul.f32 0.6931472, %v7979_v20 }
 0x559   : > { %v4239_v43 = vpack.c.bf16 %v4213_v36, %v4211_v7  ;;  %7992 = vpow2.f32 %v3854_v11  ;;  %v3962_v17 = vsel %vm3961_vm9, %v3959_v16, %v3956_v0  ;;  %v4017_v50 = vadd.f32 1.0, %v11052_v42 }
 0x55a   : > { %7994 = vpow2.f32 %v3856_v4  ;;  %v3980_v26 = vsel %vm3979_vm10, %v3977_v49, %v3974_v39  ;;  %v3993_v14 = vmul.f32 -0.5, %v11014_v47  ;;  %v4008_v28 = vadd.f32 1.0, %v11058_v62 }
 0x55b   : > { %4508 = vmatprep.mubr.bf16.mxu0 %v4239_v43  ;;  %v4210_v52 = vsel %vm4178_vm6, %v10969_v29, %v3962_v17  ;;  %v4212_v1 = vsel %vm4180_vm7, %v10984_v3, %v3980_v26  ;;  %7996 = vlog2.f32 %v4017_v50  ;;  %v4020_v38 = vmul.f32 -0.5, %v11052_v42 }
 0x55c   : > { %v4238_v48 = vpack.c.bf16 %v4212_v1, %v4210_v52  ;;  %7998 = vlog2.f32 %v4008_v28  ;;  %v4011_v29 = vmul.f32 -0.5, %v11058_v62  ;;  %v4003_v21 = vadd.f32 1.0, %v4002_v58 }
 0x55d   : > { %v3994_v3 = vadd.f32 1.0, %v3993_v14  ;;  %v4021_v51 = vadd.f32 1.0, %v4020_v38  ;;  %v4023_v15 = vand.u32 2147483647, %v11052_v42  ;;  %v4014_v12 = vand.u32 2147483647, %v11058_v62 }
 0x55e   : > { %v7985_v19 = vpop.eup %7984  ;;  %4509 = vmatmul.mubr.bf16.gmra.mrb[104].mxu0 %v4238_v48  ;;  %vm11092_vm14 = vcmp.lt.f32.partialorder %v4005_v30, 0.0004427343  ;;  %vm11096_vm15 = vcmp.lt.f32.partialorder %v3996_v5, 0.0004427343  ;;  %v4012_v2 = vadd.f32 1.0, %v4011_v29  ;;  %v4004_v33 = vmul.f32 %v11018_v61, %v4003_v21 }
 0x55f   : > { %v7987_v60 = vpop.eup %7986  ;;  %v3992_v13 = vmul.f32 0.6931472, %v7985_v19  ;;  %v3995_v9 = vmul.f32 %v11014_v47, %v3994_v3  ;;  %v4022_v55 = vmul.f32 %v11052_v42, %v4021_v51  ;;  %vm11113_vm0 = vcmp.lt.f32.partialorder %v4023_v15, 0.0004427343 }
 0x560   : > { %v4001_v57 = vmul.f32 0.6931472, %v7987_v60  ;;  %vm11122_vm2 = vcmp.lt.f32.partialorder %v4014_v12, 0.0004427343  ;;  %v4013_v49 = vmul.f32 %v11058_v62, %v4012_v2  ;;  %vm4187_vm3 = vcmp.gt.f32.partialorder %v11038_v63, 20.0 }
 0x561   : > { %v11080_v22 = vpop.eup %7988  ;;  %v3998_v36 = vsel %vm11096_vm15, %v3995_v9, %v3992_v13  ;;  %vm4189_vm4 = vcmp.gt.f32.partialorder %v11046_v53, 20.0  ;;  %vm4186_vm6 = vcmp.gt.f32.partialorder %v11028_v56, 20.0  ;;  %vm4188_vm7 = vcmp.gt.f32.partialorder %v11042_v8, 20.0 }
 0x562   : > { %v11082_v27 = vpop.eup %7990  ;;  %v4026_v35 = vadd.f32 1.0, %v11080_v22  ;;  %v4007_v47 = vsel %vm11092_vm14, %v4004_v33, %v4001_v57  ;;  %v4214_v48 = vsel %vm4182_vm11, %v10993_v24, %v3998_v36  ;;  %v4029_v29 = vmul.f32 -0.5, %v11080_v22 }
 0x563   : > { %v4035_v40 = vadd.f32 1.0, %v11082_v27  ;;  %v3745_v32 = vpop.f32.mrb[20].mxu1  ;;  %v11100_v54 = vpop.eup %7992  ;;  %v4215_v1 = vsel %vm4183_vm12, %v10996_v37, %v4007_v47  ;;  %v4038_v37 = vmul.f32 -0.5, %v11082_v27 }
 0x564   : > { %v11103_v6 = vadd.f32 %v10899_v10, %v3745_v32  ;;  %v3747_v23 = vpop.f32.mrb[21].mxu1  ;;  %8000 = vlog2.f32 %v4026_v35  ;;  %v11107_v20 = vpop.eup %7994  ;;  %v4044_v26 = vadd.f32 1.0, %v11100_v54  ;;  %v4041_v35 = vand.u32 2147483647, %v11082_v27 }
 0x565   : > { %v11110_v11 = vadd.f32 %v10902_v46, %v3747_v23  ;;  %v3749_v31 = vpop.f32.mrb[22].mxu1  ;;  %8002 = vlog2.f32 %v4035_v40  ;;  %v7997_v45 = vpop.eup %7996  ;;  %v4053_v50 = vadd.f32 1.0, %v11107_v20  ;;  %v4056_v51 = vmul.f32 -0.5, %v11107_v20 }
 0x566   : > { %v3858_v7 = vmul.f32 1.442695, %v11103_v6  ;;  %v3751_v61 = vpop.f32.mrb[23].mxu1  ;;  %v7999_v42 = vpop.eup %7998  ;;  %v4019_v39 = vmul.f32 0.6931472, %v7997_v45  ;;  %v11134_v14 = vadd.f32 %v10899_v10, %v3749_v31  ;;  %v4039_v41 = vadd.f32 1.0, %v4038_v37 }
 0x567   : > { %v3860_v16 = vmul.f32 1.442695, %v11110_v11  ;;  %v11128_v43 = vadd.f32 %v10902_v46, %v3751_v61  ;;  %v4010_v17 = vmul.f32 0.6931472, %v7999_v42  ;;  %v4059_v18 = vand.u32 2147483647, %v11107_v20 }
 0x568   : > { %8004 = vpow2.f32 %v3858_v7  ;;  %v4025_v52 = vsel %vm11113_vm0, %v4022_v55, %v4019_v39  ;;  %v3862_v21 = vmul.f32 1.442695, %v11134_v14  ;;  %v4030_v2 = vadd.f32 1.0, %v4029_v29 }
 0x569   : > { %8006 = vpow2.f32 %v3860_v16  ;;  %v3864_v28 = vmul.f32 1.442695, %v11128_v43  ;;  %v4217_v62 = vsel %vm4185_vm1, %v11003_v44, %v4025_v52  ;;  %v4016_v58 = vsel %vm11122_vm2, %v4013_v49, %v4010_v17 }
 0x56a   : > { %v4241_v19 = vpack.c.bf16 %v4217_v62, %v4215_v1  ;;  %v4216_v60 = vsel %vm4184_vm13, %v11006_v25, %v4016_v58  ;;  %v4032_v23 = vand.u32 2147483647, %v11080_v22  ;;  %v4057_v9 = vadd.f32 1.0, %v4056_v51 }
 0x56b   : > { %8008 = vpow2.f32 %v3864_v28  ;;  %v3755_v38 = vpop.f32.mrb[24].mxu1  ;;  %v4240_v5 = vpack.c.bf16 %v4216_v60, %v4214_v48  ;;  %v4047_v31 = vmul.f32 -0.5, %v11100_v54  ;;  %vm11180_vm5 = vcmp.lt.f32.partialorder %v4041_v35, 0.0004427343 }
 0x56c   : > { %v11155_v30 = vadd.f32 %v10899_v10, %v3755_v38  ;;  %v3757_v44 = vpop.f32.mrb[25].mxu1  ;;  %8010 = vlog2.f32 %v4053_v50  ;;  %4518 = vmatprep.mubr.bf16.mxu0 %v4241_v19  ;;  %v4040_v36 = vmul.f32 %v11082_v27, %v4039_v41  ;;  %vm11191_vm8 = vcmp.lt.f32.partialorder %v4059_v18, 0.0004427343 }
 0x56d   : > { %v11160_v24 = vadd.f32 %v10902_v46, %v3757_v44  ;;  %v3759_v3 = vpop.f32.mrb[26].mxu1  ;;  %8012 = vlog2.f32 %v4044_v26  ;;  %4519 = vmatmul.mubr.bf16.gmra.mrb[108].mxu0 %v4240_v5  ;;  %v4031_v16 = vmul.f32 %v11080_v22, %v4030_v2  ;;  %v4058_v17 = vmul.f32 %v11107_v20, %v4057_v9 }
 0x56e   : > { %v8001_v25 = vpop.eup %8000  ;;  %v3866_v15 = vmul.f32 1.442695, %v11155_v30  ;;  %v3761_v13 = vpop.f32.mrb[27].mxu1  ;;  %v11167_v40 = vadd.f32 %v10899_v10, %v3759_v3  ;;  %8014 = vpow2.f32 %v3862_v21  ;;  %vm11200_vm9 = vcmp.lt.f32.partialorder %v4032_v23, 0.0004427343 }
 0x56f   : > { %v8003_v57 = vpop.eup %8002  ;;  %v3868_v12 = vmul.f32 1.442695, %v11160_v24  ;;  %v11170_v32 = vadd.f32 %v10902_v46, %v3761_v13  ;;  %v4028_v7 = vmul.f32 0.6931472, %v8001_v25  ;;  %v4048_v50 = vadd.f32 1.0, %v4047_v31 }
 0x570   : > { %8016 = vpow2.f32 %v3866_v15  ;;  %v4037_v4 = vmul.f32 0.6931472, %v8003_v57  ;;  %v3870_v47 = vmul.f32 1.442695, %v11167_v40  ;;  %v4050_v38 = vand.u32 2147483647, %v11100_v54 }
 0x571   : > { %v3872_v33 = vmul.f32 1.442695, %v11170_v32  ;;  %8018 = vpow2.f32 %v3868_v12  ;;  %v4034_v22 = vsel %vm11200_vm9, %v4031_v16, %v4028_v7  ;;  %v4049_v51 = vmul.f32 %v11100_v54, %v4048_v50 }
 0x572   : > { %v11178_v55 = vpop.eup %8004  ;;  %v4043_v52 = vsel %vm11180_vm5, %v4040_v36, %v4037_v4  ;;  %vm4051_vm10 = vcmp.lt.f32.partialorder %v4050_v38, 0.0004427343  ;;  %v4218_v23 = vsel %vm4186_vm6, %v11028_v56, %v4034_v22  ;;  %vm4191_vm11 = vcmp.gt.f32.partialorder %v11110_v11, 20.0 }
 0x573   : > { %v11184_v61 = vpop.eup %8006  ;;  %v4062_v0 = vadd.f32 1.0, %v11178_v55  ;;  %8020 = vpow2.f32 %v3872_v33  ;;  %v4219_v3 = vsel %vm4187_vm3, %v11038_v63, %v4043_v52  ;;  %v4065_v63 = vmul.f32 -0.5, %v11178_v55 }
 0x574   : > { %v4071_v39 = vadd.f32 1.0, %v11184_v61  ;;  %v4074_v44 = vmul.f32 -0.5, %v11184_v61  ;;  %v4077_v9 = vand.u32 2147483647, %v11184_v61  ;;  %v4068_v56 = vand.u32 2147483647, %v11178_v55 }
 0x575   : > { %v11197_v49 = vpop.eup %8008  ;;  %8022 = vlog2.f32 %v4062_v0  ;;  %v4066_v36 = vadd.f32 1.0, %v4065_v63  ;;  %vm4190_vm12 = vcmp.gt.f32.partialorder %v11103_v6, 20.0  ;;  %vm4193_vm13 = vcmp.gt.f32.partialorder %v11128_v43, 20.0 }
 0x576   : > { %v8011_v26 = vpop.eup %8010  ;;  %v3765_v28 = vpop.f32.mrb[28].mxu1  ;;  %8024 = vlog2.f32 %v4071_v39  ;;  %v4089_v1 = vadd.f32 1.0, %v11197_v49  ;;  %v4092_v13 = vmul.f32 -0.5, %v11197_v49  ;;  %v4075_v18 = vadd.f32 1.0, %v4074_v44 }
 0x577   : > { %v8013_v62 = vpop.eup %8012  ;;  %8026 = vpow2.f32 %v3870_v47  ;;  %v11210_v20 = vadd.f32 %v10899_v10, %v3765_v28  ;;  %v3767_v58 = vpop.f32.mrb[29].mxu1  ;;  %v4055_v48 = vmul.f32 0.6931472, %v8011_v26  ;;  %v4095_v42 = vand.u32 2147483647, %v11197_v49 }
 0x578   : > { %v11214_v19 = vadd.f32 %v10902_v46, %v3767_v58  ;;  %v3769_v60 = vpop.f32.mrb[30].mxu1  ;;  %v4046_v37 = vmul.f32 0.6931472, %v8013_v62  ;;  %8028 = vlog2.f32 %v4089_v1  ;;  %v11234_v35 = vpop.eup %8014  ;;  %v4093_v45 = vadd.f32 1.0, %v4092_v13 }
 0x579   : > { %v11218_v5 = vadd.f32 %v10899_v10, %v3769_v60  ;;  %v3771_v29 = vpop.f32.mrb[31].mxu1  ;;  %v4061_v21 = vsel %vm11191_vm8, %v4058_v17, %v4055_v48  ;;  %v3874_v57 = vmul.f32 1.442695, %v11210_v20  ;;  %v4080_v7 = vadd.f32 1.0, %v11234_v35 }
 0x57a   : > { %v3876_v25 = vmul.f32 1.442695, %v11214_v19  ;;  %v11228_v15 = vadd.f32 %v10902_v46, %v3771_v29  ;;  %v4221_v10 = vsel %vm4189_vm4, %v11046_v53, %v4061_v21  ;;  %v11238_v54 = vpop.eup %8016  ;;  %v4052_v41 = vsel %vm4051_vm10, %v4049_v51, %v4046_v37 }
 0x57b   : > { %v4243_v12 = vpack.c.bf16 %v4221_v10, %v4219_v3  ;;  %v11241_v2 = vpop.eup %8018  ;;  %v3878_v53 = vmul.f32 1.442695, %v11218_v5  ;;  %v4220_v33 = vsel %vm4188_vm7, %v11042_v8, %v4052_v41  ;;  %v4076_v8 = vmul.f32 %v11184_v61, %v4075_v18 }
 0x57c   : > { %8030 = vpow2.f32 %v3876_v25  ;;  %v3880_v46 = vmul.f32 1.442695, %v11228_v15  ;;  %v4242_v4 = vpack.c.bf16 %v4220_v33, %v4218_v23  ;;  %v4107_v16 = vadd.f32 1.0, %v11241_v2 }
 0x57d   : > { %4528 = vmatprep.mubr.bf16.mxu0 %v4243_v12  ;;  %v11251_v31 = vpop.eup %8020  ;;  %v4083_v27 = vmul.f32 -0.5, %v11234_v35  ;;  %vm11265_vm1 = vcmp.lt.f32.partialorder %v4077_v9, 0.0004427343  ;;  %v4094_v28 = vmul.f32 %v11197_v49, %v4093_v45  ;;  %v4110_v62 = vmul.f32 -0.5, %v11241_v2 }
 0x57e   : > { %8032 = vpow2.f32 %v3880_v46  ;;  %4529 = vmatmul.mubr.bf16.gmra.mrb[112].mxu0 %v4242_v4  ;;  %v4125_v50 = vadd.f32 1.0, %v11251_v31  ;;  %vm4096_vm14 = vcmp.lt.f32.partialorder %v4095_v42, 0.0004427343  ;;  %v4067_v58 = vmul.f32 %v11178_v55, %v4066_v36 }
 0x57f   : > { %v8023_v47 = vpop.eup %8022  ;;  %8034 = vpow2.f32 %v3874_v57  ;;  %vm11274_vm15 = vcmp.lt.f32.partialorder %v4068_v56, 0.0004427343  ;;  %vm4192_vm0 = vcmp.gt.f32.partialorder %v11134_v14, 20.0  ;;  %v4084_v49 = vadd.f32 1.0, %v4083_v27 }
 0x580   : > { %v8025_v0 = vpop.eup %8024  ;;  %8036 = vlog2.f32 %v4080_v7  ;;  %v4064_v1 = vmul.f32 0.6931472, %v8023_v47  ;;  %v4086_v60 = vand.u32 2147483647, %v11234_v35  ;;  %v4098_v37 = vadd.f32 1.0, %v11238_v54 }
 0x581   : > { %v11259_v39 = vpop.eup %8026  ;;  %8038 = vpow2.f32 %v3878_v53  ;;  %v4073_v17 = vmul.f32 0.6931472, %v8025_v0  ;;  %v4128_v21 = vmul.f32 -0.5, %v11251_v31  ;;  %v4111_v10 = vadd.f32 1.0, %v4110_v62 }
 0x582   : > { %v8029_v26 = vpop.eup %8028  ;;  %8040 = vlog2.f32 %v4107_v16  ;;  %v4116_v3 = vadd.f32 1.0, %v11259_v39  ;;  %v4070_v25 = vsel %vm11274_vm15, %v4067_v58, %v4064_v1  ;;  %v4113_v57 = vand.u32 2147483647, %v11241_v2 }
 0x583   : > { %v4079_v52 = vsel %vm11265_vm1, %v4076_v8, %v4073_v17  ;;  %v4091_v22 = vmul.f32 0.6931472, %v8029_v26  ;;  %8042 = vlog2.f32 %v4125_v50  ;;  %v4101_v12 = vmul.f32 -0.5, %v11238_v54 }
 0x584   : > { %v4223_v29 = vsel %vm4191_vm11, %v11110_v11, %v4079_v52  ;;  %8044 = vlog2.f32 %v4098_v37  ;;  %v4131_v11 = vand.u32 2147483647, %v11251_v31  ;;  %vm4195_vm2 = vcmp.gt.f32.partialorder %v11160_v24, 20.0 }
 0x585   : > { %v4097_v38 = vsel %vm4096_vm14, %v4094_v28, %v4091_v22  ;;  %8046 = vlog2.f32 %v4116_v3  ;;  %vm4197_vm3 = vcmp.gt.f32.partialorder %v11170_v32, 20.0  ;;  %vm11302_vm4 = vcmp.lt.f32.partialorder %v4086_v60, 0.0004427343 }
 0x586   : > { %v11281_v44 = vpop.eup %8030  ;;  %v4225_v55 = vsel %vm4193_vm13, %v11128_v43, %v4097_v38  ;;  %v4119_v46 = vmul.f32 -0.5, %v11259_v39  ;;  %v4085_v53 = vmul.f32 %v11234_v35, %v4084_v49  ;;  %v4129_v23 = vadd.f32 1.0, %v4128_v21 }
 0x587   : > { %v4245_v51 = vpack.c.bf16 %v4225_v55, %v4223_v29  ;;  %v4143_v41 = vadd.f32 1.0, %v11281_v44  ;;  %v4104_v33 = vand.u32 2147483647, %v11238_v54  ;;  %v4222_v7 = vsel %vm4190_vm12, %v11103_v6, %v4070_v25 }
 0x588   : > { %v11293_v13 = vpop.eup %8032  ;;  %v4112_v47 = vmul.f32 %v11241_v2, %v4111_v10  ;;  %vm11317_vm5 = vcmp.lt.f32.partialorder %v4113_v57, 0.0004427343  ;;  %vm11321_vm6 = vcmp.lt.f32.partialorder %v4131_v11, 0.0004427343  ;;  %v4102_v0 = vadd.f32 1.0, %v4101_v12 }
 0x589   : > { %v11298_v43 = vpop.eup %8034  ;;  %4538 = vmatprep.mubr.bf16.mxu0 %v4245_v51  ;;  %v4161_v9 = vadd.f32 1.0, %v11293_v13  ;;  %8048 = vlog2.f32 %v4143_v41  ;;  %v4120_v16 = vadd.f32 1.0, %v4119_v46  ;;  %v4146_v6 = vmul.f32 -0.5, %v11281_v44 }
 0x58a   : > { %v8037_v18 = vpop.eup %8036  ;;  %v4130_v27 = vmul.f32 %v11251_v31, %v4129_v23  ;;  %vm11332_vm7 = vcmp.lt.f32.partialorder %v4104_v33, 0.0004427343  ;;  %v4134_v26 = vadd.f32 1.0, %v11298_v43  ;;  %v4164_v22 = vmul.f32 -0.5, %v11293_v13 }
 0x58b   : > { %v11311_v4 = vpop.eup %8038  ;;  %v4082_v45 = vmul.f32 0.6931472, %v8037_v18  ;;  %8050 = vlog2.f32 %v4161_v9  ;;  %v4103_v1 = vmul.f32 %v11238_v54, %v4102_v0  ;;  %v4122_v62 = vand.u32 2147483647, %v11259_v39  ;;  %v7341_v9 = vld [vmem:[#allocation3 + $0x470] ss:$8 sps:$4 sm:$0xff]  }
 0x58c   : > { %v8041_v36 = vpop.eup %8040  ;;  %8052 = vlog2.f32 %v4134_v26  ;;  %v4121_v48 = vmul.f32 %v11259_v39, %v4120_v16  ;;  %v4147_v38 = vadd.f32 1.0, %v4146_v6  ;;  %v4152_v49 = vadd.f32 1.0, %v11311_v4  ;;  %v7349_v6 = vld [vmem:[#allocation3 + $0x494] ss:$8 sps:$4 sm:$0xff]   ;;  %v7352_v26 = vld [vmem:[#allocation3 + $0x4a4] ss:$8 sps:$4 sm:$0xff]  }
 0x58d   : > { %v4088_v8 = vsel %vm11302_vm4, %v4085_v53, %v4082_v45  ;;  %v4109_v42 = vmul.f32 0.6931472, %v8041_v36  ;;  %v8043_v2 = vpop.eup %8042  ;;  %v4167_v55 = vand.u32 2147483647, %v11293_v13  ;;  %v4165_v51 = vadd.f32 1.0, %v4164_v22 }
 0x58e   : > { %v4224_v17 = vsel %vm4192_vm0, %v11134_v14, %v4088_v8  ;;  %v4127_v52 = vmul.f32 0.6931472, %v8043_v2  ;;  %v4149_v14 = vand.u32 2147483647, %v11281_v44  ;;  %v8045_v31 = vpop.eup %8044  ;;  %8054 = vlog2.f32 %v4152_v49  ;;  %v7343_v45 = vld [vmem:[#allocation3 + $0x474] ss:$8 sps:$4 sm:$0xff]  }
 0x58f   : > { %v4244_v61 = vpack.c.bf16 %v4224_v17, %v4222_v7  ;;  %v4115_v28 = vsel %vm11317_vm5, %v4112_v47, %v4109_v42  ;;  %v8047_v60 = vpop.eup %8046  ;;  %v4100_v29 = vmul.f32 0.6931472, %v8045_v31  ;;  %vm4194_vm8 = vcmp.gt.f32.partialorder %v11155_v30, 20.0  ;;  %v7346_v7 = vld [vmem:[#allocation3 + $0x484] ss:$8 sps:$4 sm:$0xff]   ;;  %5221 = vmatprep.subr.bf16.mxu1 %v7343_v45 }
 0x590   : > { %v4133_v58 = vsel %vm11321_vm6, %v4130_v27, %v4127_v52  ;;  %v4227_v54 = vsel %vm4195_vm2, %v11160_v24, %v4115_v28  ;;  %v4118_v3 = vmul.f32 0.6931472, %v8047_v60  ;;  %vm4123_vm9 = vcmp.lt.f32.partialorder %v4122_v62, 0.0004427343  ;;  %5222 = vmatpush1.bf16.msra.mxu1 %v7341_v9  ;;  %v7344_v42 = vld [vmem:[#allocation3 + $0x480] ss:$8 sps:$4 sm:$0xff]  }
 0x591   : > { %4539 = vmatmul.mubr.bf16.gmra.mrb[116].mxu0 %v4244_v61  ;;  %v4229_v37 = vsel %vm4197_vm3, %v11170_v32, %v4133_v58  ;;  %v4106_v39 = vsel %vm11332_vm7, %v4103_v1, %v4100_v29  ;;  %v4137_v25 = vmul.f32 -0.5, %v11298_v43  ;;  %vm4196_vm10 = vcmp.gt.f32.partialorder %v11167_v40, 20.0  ;;  %5223 = vmatprep.subr.bf16.mxu1 %v7346_v7  ;;  %v7350_v52 = vld [vmem:[#allocation3 + $0x4a0] ss:$8 sps:$4 sm:$0xff]   ;;  %v7355_v22 = vld [vmem:[#allocation3 + $0x4b4] ss:$8 sps:$4 sm:$0xff]  }
 0x592   : > { %v4247_v21 = vpack.c.bf16 %v4229_v37, %v4227_v54  ;;  %v4124_v32 = vsel %vm4123_vm9, %v4121_v48, %v4118_v3  ;;  %v4148_v10 = vmul.f32 %v11281_v44, %v4147_v38  ;;  %vm11360_vm11 = vcmp.lt.f32.partialorder %v4149_v14, 0.0004427343  ;;  %v7358_v1 = vld [vmem:[#allocation3 + $0x4c4] ss:$8 sps:$4 sm:$0xff]   ;;  %v7356_v62 = vld [vmem:[#allocation3 + $0x4c0] ss:$8 sps:$4 sm:$0xff]  }
 0x593   : > { %v8049_v24 = vpop.eup %8048  ;;  %v4226_v12 = vsel %vm4194_vm8, %v11155_v30, %v4106_v39  ;;  %v4228_v63 = vsel %vm4196_vm10, %v11167_v40, %v4124_v32  ;;  %v4155_v41 = vmul.f32 -0.5, %v11311_v4  ;;  %v4166_v23 = vmul.f32 %v11293_v13, %v4165_v51  ;;  %v7359_v14 = vld [vmem:[#allocation3 + $0x4d0] ss:$8 sps:$4 sm:$0xff]   ;;  %v7361_v31 = vld [vmem:[#allocation3 + $0x4d4] ss:$8 sps:$4 sm:$0xff]  }
 0x594   : > { %4548 = vmatprep.mubr.bf16.mxu0 %v4247_v21  ;;  %v4145_v46 = vmul.f32 0.6931472, %v8049_v24  ;;  %v4246_v18 = vpack.c.bf16 %v4228_v63, %v4226_v12  ;;  %vm4168_vm12 = vcmp.lt.f32.partialorder %v4167_v55, 0.0004427343  ;;  %v4138_v33 = vadd.f32 1.0, %v4137_v25  ;;  %5224 = vmatpush1.bf16.msra.mxu1 %v7344_v42 }
 0x595   : > { %v8051_v11 = vpop.eup %8050  ;;  %vm4199_vm13 = vcmp.gt.f32.partialorder %v11214_v19, 20.0  ;;  %vm4201_vm1 = vcmp.gt.f32.partialorder %v11228_v15, 20.0  ;;  %v4140_v40 = vand.u32 2147483647, %v11298_v43  ;;  %v4156_v56 = vadd.f32 1.0, %v4155_v41  ;;  %5225 = vmatprep.subr.bf16.mxu1 %v7349_v6 }
 0x596   : > { %v4163_v53 = vmul.f32 0.6931472, %v8051_v11  ;;  %v4151_v44 = vsel %vm11360_vm11, %v4148_v10, %v4145_v46  ;;  %v8053_v47 = vpop.eup %8052  ;;  %v4158_v8 = vand.u32 2147483647, %v11311_v4  ;;  %v4139_v16 = vmul.f32 %v11298_v43, %v4138_v33  ;;  %v7364_v58 = vld [vmem:[#allocation3 + $0x4e4] ss:$8 sps:$4 sm:$0xff]  }
 0x597   : > { %v4231_v36 = vsel %vm4199_vm13, %v11214_v19, %v4151_v44  ;;  %v4136_v0 = vmul.f32 0.6931472, %v8053_v47  ;;  %vm4141_vm14 = vcmp.lt.f32.partialorder %v4140_v40, 0.0004427343  ;;  %v4157_v19 = vmul.f32 %v11311_v4, %v4156_v56  ;;  %v7353_v4 = vld [vmem:[#allocation3 + $0x4b0] ss:$8 sps:$4 sm:$0xff]  }
 0x598   : > { %v4169_v30 = vsel %vm4168_vm12, %v4166_v23, %v4163_v53  ;;  %v8055_v2 = vpop.eup %8054  ;;  %vm4159_vm15 = vcmp.lt.f32.partialorder %v4158_v8, 0.0004427343  ;;  %vm4198_vm0 = vcmp.gt.f32.partialorder %v11210_v20, 20.0  ;;  %vm4200_vm2 = vcmp.gt.f32.partialorder %v11218_v5, 20.0  ;;  %v7367_v48 = vld [vmem:[#allocation3 + $0x4f4] ss:$8 sps:$4 sm:$0xff]  }
 0x599   : > { %4549 = vmatmul.mubr.bf16.gmra.mrb[120].mxu0 %v4246_v18  ;;  %v4233_v13 = vsel %vm4201_vm1, %v11228_v15, %v4169_v30  ;;  %v4142_v17 = vsel %vm4141_vm14, %v4139_v16, %v4136_v0  ;;  %v4154_v27 = vmul.f32 0.6931472, %v8055_v2  ;;  %v7347_v15 = vld [vmem:[#allocation3 + $0x490] ss:$8 sps:$4 sm:$0xff]  }
 0x59a   : > { %v4249_v35 = vpack.c.bf16 %v4233_v13, %v4231_v36  ;;  %v4230_v43 = vsel %vm4198_vm0, %v11210_v20, %v4142_v17  ;;  %5226 = vmatpush1.bf16.msra.mxu1 %v7347_v15  ;;  %v7362_v20 = vld [vmem:[#allocation3 + $0x4e0] ss:$8 sps:$4 sm:$0xff]  }
 0x59b   : > { %v4160_v50 = vsel %vm4159_vm15, %v4157_v19, %v4154_v27  ;;  %5227 = vmatprep.subr.bf16.mxu1 %v7352_v26  ;;  %v6866_v38 = vld [vmem:[%s12847_s4 + $0x3] ss:$8 sm:$0x3] }
 0x59c   : > { %4558 = vmatprep.mubr.bf16.mxu0 %v4249_v35  ;;  %v4232_v61 = vsel %vm4200_vm2, %v11218_v5, %v4160_v50  ;;  %v7365_v5 = vld [vmem:[#allocation3 + $0x4f0] ss:$8 sps:$4 sm:$0xff]   ;;  %v11386_v49 = vrot.slane %v6866_v38, %v12914_v34  ;;  %v11389_v60 = vrot.slane %v6866_v38, %v12915_v59 }
 0x59d   : > { %v4248_v28 = vpack.c.bf16 %v4232_v61, %v4230_v43 }
 0x59e   : > { %5228 = vmatpush1.bf16.msra.mxu1 %v7350_v52 }
 0x59f   : > { %5229 = vmatprep.subr.bf16.mxu1 %v7355_v22 }
 0x5a1   : > { %4559 = vmatmul.mubr.bf16.gmra.mrb[124].mxu0 %v4248_v28 }
 0x5a2   : > { %5230 = vmatpush1.bf16.msra.mxu1 %v7353_v4 }
 0x5a3   : > { %5231 = vmatprep.subr.bf16.mxu1 %v7358_v1 }
 0x5a6   : > { %5232 = vmatpush1.bf16.msra.mxu1 %v7356_v62 }
 0x5a7   : > { %5233 = vmatprep.subr.bf16.mxu1 %v7361_v31 }
 0x5aa   : > { %5234 = vmatpush1.bf16.msra.mxu1 %v7359_v14 }
 0x5ab   : > { %5235 = vmatprep.subr.bf16.mxu1 %v7364_v58 }
 0x5ae   : > { %5236 = vmatpush1.bf16.msra.mxu1 %v7362_v20 }
 0x5af   : > { %5237 = vmatprep.subr.bf16.mxu1 %v7367_v48 }
 0x5b2   : > { %5238 = vmatpush1.bf16.msra.mxu1 %v7365_v5 }
 0x5f6   : > { %v4490_v54 = vpop.f32.mrb[96].mxu0 }
 0x5f7   : > { %v11392_v37 = vadd.f32 %v4490_v54, %v11386_v49  ;;  %v4492_v29 = vpop.f32.mrb[97].mxu0 }
 0x5f8   : > { %v11395_v55 = vadd.f32 %v4492_v29, %v11389_v60  ;;  %v4494_v21 = vpop.f32.mrb[98].mxu0 }
 0x5f9   : > { %v4569_v3 = vmul.f32 1.442695, %v11392_v37  ;;  %v11399_v51 = vadd.f32 %v4494_v21, %v11386_v49  ;;  %v4496_v39 = vpop.f32.mrb[99].mxu0  ;;  %vm4921_vm4 = vcmp.gt.f32.partialorder %v11392_v37, 20.0 }
 0x5fa   : > { %v4571_v25 = vmul.f32 1.442695, %v11395_v55  ;;  %v11403_v24 = vadd.f32 %v4496_v39, %v11389_v60  ;;  %vm4922_vm9 = vcmp.gt.f32.partialorder %v11395_v55, 20.0 }
 0x5fb   : > { %8056 = vpow2.f32 %v4569_v3  ;;  %v4573_v32 = vmul.f32 1.442695, %v11399_v51  ;;  %vm4923_vm6 = vcmp.gt.f32.partialorder %v11399_v51, 20.0 }
 0x5fc   : > { %8058 = vpow2.f32 %v4571_v25  ;;  %v4575_v10 = vmul.f32 1.442695, %v11403_v24  ;;  %vm4924_vm10 = vcmp.gt.f32.partialorder %v11403_v24, 20.0 }
 0x5fd   : > { %8060 = vpow2.f32 %v4573_v32 }
 0x5fe   : > { %8062 = vpow2.f32 %v4575_v10 }
 0x605   : > { %v8057_v57 = vpop.eup %8056 }
 0x606   : > { %v8059_v11 = vpop.eup %8058  ;;  %v4633_v12 = vadd.f32 1.0, %v8057_v57  ;;  %v4636_v53 = vmul.f32 -0.5, %v8057_v57  ;;  %v4639_v33 = vand.u32 2147483647, %v8057_v57 }
 0x607   : > { %v8061_v63 = vpop.eup %8060  ;;  %v4642_v46 = vadd.f32 1.0, %v8059_v11  ;;  %v4645_v44 = vmul.f32 -0.5, %v8059_v11  ;;  %v4648_v42 = vand.u32 2147483647, %v8059_v11 }
 0x608   : > { %v8063_v41 = vpop.eup %8062  ;;  %8064 = vlog2.f32 %v4633_v12  ;;  %v4651_v18 = vadd.f32 1.0, %v8061_v63  ;;  %v4654_v9 = vmul.f32 -0.5, %v8061_v63  ;;  %v4637_v30 = vadd.f32 1.0, %v4636_v53 }
 0x609   : > { %8066 = vlog2.f32 %v4642_v46  ;;  %v4660_v23 = vadd.f32 1.0, %v8063_v41  ;;  %v4663_v13 = vmul.f32 -0.5, %v8063_v41  ;;  %v4646_v8 = vadd.f32 1.0, %v4645_v44  ;;  %v7370_v44 = vld [vmem:[#allocation3 + $0x504] ss:$8 sps:$4 sm:$0xff]  }
 0x60a   : > { %8068 = vlog2.f32 %v4651_v18  ;;  %vm11417_vm3 = vcmp.lt.f32.partialorder %v4639_v33, 0.0004427343  ;;  %v4655_v6 = vadd.f32 1.0, %v4654_v9  ;;  %v4638_v19 = vmul.f32 %v8057_v57, %v4637_v30  ;;  %5958 = vmatprep.subr.bf16.mxu0 %v7370_v44  ;;  %6968 = vmatprep.subr.bf16.mxu1 %v7370_v44 }
 0x60b   : > { %8070 = vlog2.f32 %v4660_v23  ;;  %v4500_v45 = vpop.f32.mrb[100].mxu0  ;;  %v4657_v15 = vand.u32 2147483647, %v8061_v63  ;;  %v4664_v28 = vadd.f32 1.0, %v4663_v13  ;;  %v4647_v22 = vmul.f32 %v8059_v11, %v4646_v8  ;;  %v7368_v23 = vld [vmem:[#allocation3 + $0x500] ss:$8 sps:$4 sm:$0xff]  }
 0x60c   : > { %v11408_v40 = vadd.f32 %v4500_v45, %v11386_v49  ;;  %v4502_v7 = vpop.f32.mrb[101].mxu0  ;;  %v4666_v1 = vand.u32 2147483647, %v8063_v41  ;;  %v4656_v31 = vmul.f32 %v8061_v63, %v4655_v6  ;;  %vm4649_vm7 = vcmp.lt.f32.partialorder %v4648_v42, 0.0004427343  ;;  %5959 = vmatpush1.bf16.msra.mxu0 %v7368_v23 }
 0x60d   : > { %v11411_v47 = vadd.f32 %v4502_v7, %v11389_v60  ;;  %v4504_v36 = vpop.f32.mrb[102].mxu0  ;;  %vm4658_vm5 = vcmp.lt.f32.partialorder %v4657_v15, 0.0004427343  ;;  %v4665_v38 = vmul.f32 %v8063_v41, %v4664_v28  ;;  %v7373_v45 = vld [vmem:[#allocation3 + $0x514] ss:$8 sps:$4 sm:$0xff]  }
 0x60e   : > { %v4577_v56 = vmul.f32 1.442695, %v11408_v40  ;;  %v11415_v35 = vadd.f32 %v4504_v36, %v11386_v49  ;;  %v4506_v0 = vpop.f32.mrb[103].mxu0  ;;  %vm4667_vm8 = vcmp.lt.f32.partialorder %v4666_v1, 0.0004427343  ;;  %5960 = vmatprep.subr.bf16.mxu0 %v7373_v45  ;;  %vm4925_vm11 = vcmp.gt.f32.partialorder %v11408_v40, 20.0 }
 0x60f   : > { %v4579_v2 = vmul.f32 1.442695, %v11411_v47  ;;  %v11423_v17 = vadd.f32 %v4506_v0, %v11389_v60  ;;  %v7371_v0 = vld [vmem:[#allocation3 + $0x510] ss:$8 sps:$4 sm:$0xff]   ;;  %vm4926_vm14 = vcmp.gt.f32.partialorder %v11411_v47, 20.0 }
 0x610   : > { %8072 = vpow2.f32 %v4577_v56  ;;  %v4581_v50 = vmul.f32 1.442695, %v11415_v35  ;;  %5961 = vmatpush1.bf16.msra.mxu0 %v7371_v0  ;;  %vm4927_vm15 = vcmp.gt.f32.partialorder %v11415_v35, 20.0 }
 0x611   : > { %8074 = vpow2.f32 %v4579_v2  ;;  %v4583_v61 = vmul.f32 1.442695, %v11423_v17  ;;  %v7376_v2 = vld [vmem:[#allocation3 + $0x524] ss:$8 sps:$4 sm:$0xff]   ;;  %vm4928_vm2 = vcmp.gt.f32.partialorder %v11423_v17, 20.0 }
 0x612   : > { %v8065_v27 = vpop.eup %8064  ;;  %8076 = vpow2.f32 %v4581_v50  ;;  %5962 = vmatprep.subr.bf16.mxu0 %v7376_v2 }
 0x613   : > { %v8067_v26 = vpop.eup %8066  ;;  %v4635_v43 = vmul.f32 0.6931472, %v8065_v27  ;;  %8078 = vpow2.f32 %v4583_v61 }
 0x614   : > { %v8069_v52 = vpop.eup %8068  ;;  %v4644_v4 = vmul.f32 0.6931472, %v8067_v26 }
 0x615   : > { %v4641_v62 = vsel %vm11417_vm3, %v4638_v19, %v4635_v43  ;;  %v4653_v14 = vmul.f32 0.6931472, %v8069_v52  ;;  %v8071_v58 = vpop.eup %8070 }
 0x616   : > { %v4650_v5 = vsel %vm4649_vm7, %v4647_v22, %v4644_v4  ;;  %v4662_v48 = vmul.f32 0.6931472, %v8071_v58  ;;  %v4953_v54 = vsel %vm4921_vm4, %v11392_v37, %v4641_v62  ;;  %v7374_v62 = vld [vmem:[#allocation3 + $0x520] ss:$8 sps:$4 sm:$0xff]  }
 0x617   : > { %v4659_v20 = vsel %vm4658_vm5, %v4656_v31, %v4653_v14  ;;  %v4954_v39 = vsel %vm4922_vm9, %v11395_v55, %v4650_v5  ;;  %v7379_v31 = vld [vmem:[#allocation3 + $0x534] ss:$8 sps:$4 sm:$0xff]   ;;  %5963 = vmatpush1.bf16.msra.mxu0 %v7374_v62 }
 0x618   : > { %v4955_v29 = vsel %vm4923_vm6, %v11399_v51, %v4659_v20  ;;  %v4668_v3 = vsel %vm4667_vm8, %v4665_v38, %v4662_v48  ;;  %5964 = vmatprep.subr.bf16.mxu0 %v7379_v31 }
 0x619   : > { %v4985_v21 = vpack.c.bf16 %v4955_v29, %v4953_v54  ;;  %v4956_v25 = vsel %vm4924_vm10, %v11403_v24, %v4668_v3  ;;  %v7382_v3 = vld [vmem:[#allocation3 + $0x544] ss:$8 sps:$4 sm:$0xff]  }
 0x61a   : > { %v4986_v32 = vpack.c.bf16 %v4956_v25, %v4954_v39  ;;  %v8073_v10 = vpop.eup %8072 }
 0x61b   : > { %v8075_v57 = vpop.eup %8074  ;;  %v4669_v11 = vadd.f32 1.0, %v8073_v10  ;;  %v4672_v41 = vmul.f32 -0.5, %v8073_v10  ;;  %v4675_v9 = vand.u32 2147483647, %v8073_v10 }
 0x61c   : > { %5239 = vmatprep.mubr.bf16.mxu1 %v4986_v32  ;;  %v8077_v12 = vpop.eup %8076  ;;  %v4678_v37 = vadd.f32 1.0, %v8075_v57  ;;  %v4681_v18 = vmul.f32 -0.5, %v8075_v57  ;;  %v4684_v30 = vand.u32 2147483647, %v8075_v57 }
 0x61d   : > { %5240 = vmatmul.mubr.bf16.vlgmr.msra.gmra.mrb[64].mxu1 %v4985_v21  ;;  %v8079_v51 = vpop.eup %8078  ;;  %8080 = vlog2.f32 %v4669_v11  ;;  %v4687_v63 = vadd.f32 1.0, %v8077_v12  ;;  %v4690_v55 = vmul.f32 -0.5, %v8077_v12  ;;  %v4673_v24 = vadd.f32 1.0, %v4672_v41  ;;  %v7377_v21 = vld [vmem:[#allocation3 + $0x530] ss:$8 sps:$4 sm:$0xff]  }
 0x61e   : > { %8082 = vlog2.f32 %v4678_v37  ;;  %v4696_v46 = vadd.f32 1.0, %v8079_v51  ;;  %v4699_v53 = vmul.f32 -0.5, %v8079_v51  ;;  %v4682_v33 = vadd.f32 1.0, %v4681_v18  ;;  %6984 = vmatpush1.bf16.msra.mxu1 %v7368_v23  ;;  %5965 = vmatpush1.bf16.msra.mxu0 %v7377_v21  ;;  %v7385_v11 = vld [vmem:[#allocation3 + $0x554] ss:$8 sps:$4 sm:$0xff]  }
 0x61f   : > { %8084 = vlog2.f32 %v4687_v63  ;;  %v4691_v7 = vadd.f32 1.0, %v4690_v55  ;;  %v4693_v56 = vand.u32 2147483647, %v8077_v12  ;;  %v4702_v42 = vand.u32 2147483647, %v8079_v51  ;;  %6969 = vmatprep.subr.bf16.mxu1 %v7373_v45  ;;  %5966 = vmatprep.subr.bf16.mxu0 %v7382_v3 }
 0x620   : > { %8086 = vlog2.f32 %v4696_v46  ;;  %v4700_v13 = vadd.f32 1.0, %v4699_v53  ;;  %v4674_v6 = vmul.f32 %v8073_v10, %v4673_v24  ;;  %v4683_v15 = vmul.f32 %v8075_v57, %v4682_v33  ;;  %v7383_v63 = vld [vmem:[#allocation3 + $0x550] ss:$8 sps:$4 sm:$0xff]   ;;  %v7388_v41 = vld [vmem:[#allocation3 + $0x564] ss:$8 sps:$4 sm:$0xff]  }
 0x621   : > { %vm11438_vm12 = vcmp.lt.f32.partialorder %v4675_v9, 0.0004427343  ;;  %vm11442_vm13 = vcmp.lt.f32.partialorder %v4684_v30, 0.0004427343  ;;  %v4692_v52 = vmul.f32 %v8077_v12, %v4691_v7  ;;  %vm4694_vm1 = vcmp.lt.f32.partialorder %v4693_v56, 0.0004427343 }
 0x622   : > { %v4701_v1 = vmul.f32 %v8079_v51, %v4700_v13  ;;  %6985 = vmatpush1.bf16.msra.mxu1 %v7371_v0  ;;  %vm4703_vm0 = vcmp.lt.f32.partialorder %v4702_v42, 0.0004427343  ;;  %v7386_v18 = vld [vmem:[#allocation3 + $0x560] ss:$8 sps:$4 sm:$0xff]  }
 0x623   : > { %6970 = vmatprep.subr.bf16.mxu1 %v7376_v2 }
 0x626   : > { %6986 = vmatpush1.bf16.msra.mxu1 %v7374_v62 }
 0x627   : > { %v8081_v36 = vpop.eup %8080  ;;  %6971 = vmatprep.subr.bf16.mxu1 %v7379_v31 }
 0x628   : > { %v8083_v8 = vpop.eup %8082  ;;  %v4671_v16 = vmul.f32 0.6931472, %v8081_v36 }
 0x629   : > { %v8085_v27 = vpop.eup %8084  ;;  %v4680_v19 = vmul.f32 0.6931472, %v8083_v8 }
 0x62a   : > { %v8087_v26 = vpop.eup %8086  ;;  %v4677_v61 = vsel %vm11438_vm12, %v4674_v6, %v4671_v16  ;;  %v4689_v28 = vmul.f32 0.6931472, %v8085_v27  ;;  %6987 = vmatpush1.bf16.msra.mxu1 %v7377_v21 }
 0x62b   : > { %v4686_v4 = vsel %vm11442_vm13, %v4683_v15, %v4680_v19  ;;  %v4698_v22 = vmul.f32 0.6931472, %v8087_v26  ;;  %v4957_v20 = vsel %vm4925_vm11, %v11408_v40, %v4677_v61  ;;  %6972 = vmatprep.subr.bf16.mxu1 %v7382_v3 }
 0x62c   : > { %v4695_v14 = vsel %vm4694_vm1, %v4692_v52, %v4689_v28  ;;  %v4958_v48 = vsel %vm4926_vm14, %v11411_v47, %v4686_v4 }
 0x62d   : > { %v4704_v58 = vsel %vm4703_vm0, %v4701_v1, %v4698_v22  ;;  %v4959_v5 = vsel %vm4927_vm15, %v11415_v35, %v4695_v14 }
 0x62e   : > { %v4960_v38 = vsel %vm4928_vm2, %v11423_v17, %v4704_v58  ;;  %v4987_v54 = vpack.c.bf16 %v4959_v5, %v4957_v20  ;;  %v7380_v17 = vld [vmem:[#allocation3 + $0x540] ss:$8 sps:$4 sm:$0xff]  }
 0x62f   : > { %v4988_v29 = vpack.c.bf16 %v4960_v38, %v4958_v48  ;;  %5967 = vmatpush1.bf16.msra.mxu0 %v7380_v17  ;;  %6988 = vmatpush1.bf16.msra.mxu1 %v7380_v17 }
 0x630   : > { %5968 = vmatprep.subr.bf16.mxu0 %v7385_v11  ;;  %6973 = vmatprep.subr.bf16.mxu1 %v7385_v11 }
 0x631   : > { %v4510_v39 = vpop.f32.mrb[104].mxu0  ;;  %5249 = vmatprep.mubr.bf16.mxu1 %v4988_v29 }
 0x632   : > { %v11460_v25 = vadd.f32 %v4510_v39, %v11386_v49  ;;  %v4512_v40 = vpop.f32.mrb[105].mxu0  ;;  %5250 = vmatmul.mubr.bf16.gmra.mrb[68].mxu1 %v4987_v54 }
 0x633   : > { %v11463_v35 = vadd.f32 %v4512_v40, %v11389_v60  ;;  %v4514_v47 = vpop.f32.mrb[106].mxu0  ;;  %5969 = vmatpush1.bf16.msra.mxu0 %v7383_v63  ;;  %6989 = vmatpush1.bf16.msra.mxu1 %v7383_v63 }
 0x634   : > { %v4585_v32 = vmul.f32 1.442695, %v11460_v25  ;;  %v11467_v10 = vadd.f32 %v4514_v47, %v11386_v49  ;;  %v4516_v57 = vpop.f32.mrb[107].mxu0  ;;  %5970 = vmatprep.subr.bf16.mxu0 %v7388_v41  ;;  %6974 = vmatprep.subr.bf16.mxu1 %v7388_v41  ;;  %vm4929_vm6 = vcmp.gt.f32.partialorder %v11460_v25, 20.0 }
 0x635   : > { %v4587_v12 = vmul.f32 1.442695, %v11463_v35  ;;  %v11471_v37 = vadd.f32 %v4516_v57, %v11389_v60  ;;  %vm4930_vm3 = vcmp.gt.f32.partialorder %v11463_v35, 20.0 }
 0x636   : > { %8088 = vpow2.f32 %v4585_v32  ;;  %v4589_v46 = vmul.f32 1.442695, %v11467_v10  ;;  %vm4931_vm8 = vcmp.gt.f32.partialorder %v11467_v10, 20.0 }
 0x637   : > { %8090 = vpow2.f32 %v4587_v12  ;;  %v4591_v51 = vmul.f32 1.442695, %v11471_v37  ;;  %5971 = vmatpush1.bf16.msra.mxu0 %v7386_v18  ;;  %6990 = vmatpush1.bf16.msra.mxu1 %v7386_v18  ;;  %vm4932_vm4 = vcmp.gt.f32.partialorder %v11471_v37, 20.0 }
 0x639   : > { %8092 = vpow2.f32 %v4591_v51 }
 0x63a   : > { %8094 = vpow2.f32 %v4589_v46 }
 0x640   : > { %v11475_v55 = vpop.eup %8088  ;;  %v4520_v53 = vpop.f32.mrb[108].mxu0 }
 0x641   : > { %v8091_v24 = vpop.eup %8090  ;;  %v11478_v23 = vadd.f32 %v4520_v53, %v11386_v49  ;;  %v4522_v44 = vpop.f32.mrb[109].mxu0  ;;  %v4705_v0 = vadd.f32 1.0, %v11475_v55  ;;  %v4708_v4 = vmul.f32 -0.5, %v11475_v55  ;;  %v4711_v38 = vand.u32 2147483647, %v11475_v55 }
 0x642   : > { %v11481_v33 = vadd.f32 %v4522_v44, %v11389_v60  ;;  %v4524_v9 = vpop.f32.mrb[110].mxu0  ;;  %v4714_v45 = vadd.f32 1.0, %v8091_v24  ;;  %v4717_v19 = vmul.f32 -0.5, %v8091_v24  ;;  %v4720_v43 = vand.u32 2147483647, %v8091_v24 }
 0x643   : > { %v4593_v30 = vmul.f32 1.442695, %v11478_v23  ;;  %v4526_v7 = vpop.f32.mrb[111].mxu0  ;;  %v8093_v36 = vpop.eup %8092  ;;  %v11490_v8 = vadd.f32 %v4524_v9, %v11386_v49  ;;  %v4709_v40 = vadd.f32 1.0, %v4708_v4  ;;  %vm4712_vm9 = vcmp.lt.f32.partialorder %v4711_v38, 0.0004427343 }
 0x644   : > { %v4595_v13 = vmul.f32 1.442695, %v11481_v33  ;;  %v11486_v56 = vadd.f32 %v4526_v7, %v11389_v60  ;;  %8096 = vlog2.f32 %v4714_v45  ;;  %v11492_v42 = vpop.eup %8094  ;;  %v4732_v6 = vadd.f32 1.0, %v8093_v36 }
 0x645   : > { %8098 = vpow2.f32 %v4593_v30  ;;  %v4597_v2 = vmul.f32 1.442695, %v11490_v8  ;;  %v4723_v27 = vadd.f32 1.0, %v11492_v42  ;;  %v4735_v15 = vmul.f32 -0.5, %v8093_v36 }
 0x646   : > { %8100 = vpow2.f32 %v4595_v13  ;;  %v4599_v16 = vmul.f32 1.442695, %v11486_v56  ;;  %v4718_v26 = vadd.f32 1.0, %v4717_v19  ;;  %v4738_v52 = vand.u32 2147483647, %v8093_v36 }
 0x647   : > { %8102 = vlog2.f32 %v4705_v0  ;;  %v4736_v28 = vadd.f32 1.0, %v4735_v15  ;;  %v4726_v62 = vmul.f32 -0.5, %v11492_v42  ;;  %vm11507_vm5 = vcmp.lt.f32.partialorder %v4720_v43, 0.0004427343 }
 0x648   : > { %8104 = vlog2.f32 %v4732_v6  ;;  %v4719_v5 = vmul.f32 %v8091_v24, %v4718_v26  ;;  %vm11516_vm7 = vcmp.lt.f32.partialorder %v4738_v52, 0.0004427343  ;;  %v4729_v44 = vand.u32 2147483647, %v11492_v42 }
 0x649   : > { %8106 = vpow2.f32 %v4599_v16  ;;  %v4737_v3 = vmul.f32 %v8093_v36, %v4736_v28  ;;  %v4727_v46 = vadd.f32 1.0, %v4726_v62  ;;  %v4710_v7 = vmul.f32 %v11475_v55, %v4709_v40 }
 0x64a   : > { %8108 = vlog2.f32 %v4723_v27  ;;  %vm4730_vm10 = vcmp.lt.f32.partialorder %v4729_v44, 0.0004427343  ;;  %vm4933_vm11 = vcmp.gt.f32.partialorder %v11478_v23, 20.0  ;;  %vm4934_vm12 = vcmp.gt.f32.partialorder %v11481_v33, 20.0 }
 0x64b   : > { %8110 = vpow2.f32 %v4597_v2  ;;  %v4728_v6 = vmul.f32 %v11492_v42, %v4727_v46  ;;  %vm4936_vm13 = vcmp.gt.f32.partialorder %v11486_v56, 20.0  ;;  %vm4935_vm2 = vcmp.gt.f32.partialorder %v11490_v8, 20.0 }
 0x64e   : > { %v8097_v50 = vpop.eup %8096 }
 0x64f   : > { %v11497_v61 = vpop.eup %8098  ;;  %v4716_v1 = vmul.f32 0.6931472, %v8097_v50 }
 0x650   : > { %v11500_v22 = vpop.eup %8100  ;;  %v4741_v31 = vadd.f32 1.0, %v11497_v61 }
 0x651   : > { %v4750_v14 = vadd.f32 1.0, %v11500_v22  ;;  %v8103_v58 = vpop.eup %8102  ;;  %v4530_v20 = vpop.f32.mrb[112].mxu0  ;;  %v4722_v57 = vsel %vm11507_vm5, %v4719_v5, %v4716_v1  ;;  %v4753_v19 = vmul.f32 -0.5, %v11500_v22  ;;  %v4756_v28 = vand.u32 2147483647, %v11500_v22 }
 0x652   : > { %v8105_v54 = vpop.eup %8104  ;;  %v11514_v29 = vadd.f32 %v4530_v20, %v11386_v49  ;;  %v4532_v21 = vpop.f32.mrb[113].mxu0  ;;  %v4707_v63 = vmul.f32 0.6931472, %v8103_v58  ;;  %v4962_v45 = vsel %vm4930_vm3, %v11463_v35, %v4722_v57 }
 0x653   : > { %v11520_v47 = vpop.eup %8106  ;;  %v11523_v17 = vadd.f32 %v4532_v21, %v11389_v60  ;;  %v4534_v32 = vpop.f32.mrb[114].mxu0  ;;  %v4734_v11 = vmul.f32 0.6931472, %v8105_v54  ;;  %8112 = vlog2.f32 %v4750_v14  ;;  %v4754_v1 = vadd.f32 1.0, %v4753_v19 }
 0x654   : > { %v4601_v12 = vmul.f32 1.442695, %v11514_v29  ;;  %v4536_v51 = vpop.f32.mrb[115].mxu0  ;;  %8114 = vlog2.f32 %v4741_v31  ;;  %v8109_v41 = vpop.eup %8108  ;;  %v4768_v36 = vadd.f32 1.0, %v11520_v47  ;;  %v4713_v0 = vsel %vm4712_vm9, %v4710_v7, %v4707_v63 }
 0x655   : > { %v4603_v18 = vmul.f32 1.442695, %v11523_v17  ;;  %v11530_v53 = vadd.f32 %v4536_v51, %v11389_v60  ;;  %v4740_v24 = vsel %vm11516_vm7, %v4737_v3, %v4734_v11  ;;  %v11535_v9 = vpop.eup %8110  ;;  %v4725_v16 = vmul.f32 0.6931472, %v8109_v41 }
 0x656   : > { %v4964_v30 = vsel %vm4932_vm4, %v11471_v37, %v4740_v24  ;;  %v4744_v37 = vmul.f32 -0.5, %v11497_v61  ;;  %v4759_v55 = vadd.f32 1.0, %v11535_v9  ;;  %v11551_v2 = vadd.f32 %v4534_v32, %v11386_v49 }
 0x657   : > { %8116 = vpow2.f32 %v4603_v18  ;;  %v4990_v13 = vpack.c.bf16 %v4964_v30, %v4962_v45  ;;  %v4607_v35 = vmul.f32 1.442695, %v11530_v53  ;;  %v4731_v27 = vsel %vm4730_vm10, %v4728_v6, %v4725_v16 }
 0x658   : > { %8118 = vpow2.f32 %v4601_v12  ;;  %v4961_v15 = vsel %vm4929_vm6, %v11460_v25, %v4713_v0  ;;  %v4963_v42 = vsel %vm4931_vm8, %v11467_v10, %v4731_v27  ;;  %v4771_v50 = vmul.f32 -0.5, %v11520_v47 }
 0x659   : > { %5259 = vmatprep.mubr.bf16.mxu1 %v4990_v13  ;;  %8120 = vlog2.f32 %v4768_v36  ;;  %v4989_v26 = vpack.c.bf16 %v4963_v42, %v4961_v15  ;;  %v4605_v4 = vmul.f32 1.442695, %v11551_v2  ;;  %v4745_v62 = vadd.f32 1.0, %v4744_v37 }
 0x65a   : > { %8122 = vlog2.f32 %v4759_v55  ;;  %v4772_v14 = vadd.f32 1.0, %v4771_v50  ;;  %v4747_v25 = vand.u32 2147483647, %v11497_v61  ;;  %v4762_v31 = vmul.f32 -0.5, %v11535_v9 }
 0x65b   : > { %8124 = vpow2.f32 %v4607_v35  ;;  %5260 = vmatmul.mubr.bf16.gmra.mrb[72].mxu1 %v4989_v26  ;;  %v4774_v58 = vand.u32 2147483647, %v11520_v47  ;;  %v4765_v20 = vand.u32 2147483647, %v11535_v9  ;;  %vm11572_vm1 = vcmp.lt.f32.partialorder %v4756_v28, 0.0004427343 }
 0x65c   : > { %8126 = vpow2.f32 %v4605_v4  ;;  %v4755_v3 = vmul.f32 %v11500_v22, %v4754_v1  ;;  %v4746_v39 = vmul.f32 %v11497_v61, %v4745_v62  ;;  %v4773_v11 = vmul.f32 %v11520_v47, %v4772_v14 }
 0x65d   : > { %v8113_v43 = vpop.eup %8112  ;;  %vm11585_vm14 = vcmp.lt.f32.partialorder %v4747_v25, 0.0004427343  ;;  %v4763_v51 = vadd.f32 1.0, %v4762_v31  ;;  %vm11594_vm15 = vcmp.lt.f32.partialorder %v4774_v58, 0.0004427343  ;;  %vm4938_vm3 = vcmp.gt.f32.partialorder %v11523_v17, 20.0 }
 0x65e   : > { %v8115_v52 = vpop.eup %8114  ;;  %v4752_v10 = vmul.f32 0.6931472, %v8113_v43  ;;  %vm11598_vm0 = vcmp.lt.f32.partialorder %v4765_v20, 0.0004427343  ;;  %vm4940_vm4 = vcmp.gt.f32.partialorder %v11530_v53, 20.0  ;;  %vm4937_vm7 = vcmp.gt.f32.partialorder %v11514_v29, 20.0 }
 0x65f   : > { %v4743_v38 = vmul.f32 0.6931472, %v8115_v52  ;;  %v4764_v37 = vmul.f32 %v11535_v9, %v4763_v51  ;;  %vm4939_vm8 = vcmp.gt.f32.partialorder %v11551_v2, 20.0 }
 0x660   : > { %v4758_v61 = vsel %vm11572_vm1, %v4755_v3, %v4752_v10 }
 0x661   : > { %v11567_v5 = vpop.eup %8116  ;;  %v4749_v30 = vsel %vm11585_vm14, %v4746_v39, %v4743_v38  ;;  %v4966_v35 = vsel %vm4934_vm12, %v11481_v33, %v4758_v61 }
 0x662   : > { %v11576_v54 = vpop.eup %8118  ;;  %v4786_v40 = vadd.f32 1.0, %v11567_v5  ;;  %v4965_v9 = vsel %vm4933_vm11, %v11478_v23, %v4749_v30  ;;  %v4789_v52 = vmul.f32 -0.5, %v11567_v5  ;;  %v4792_v48 = vand.u32 2147483647, %v11567_v5 }
 0x663   : > { %v8121_v63 = vpop.eup %8120  ;;  %v4777_v7 = vadd.f32 1.0, %v11576_v54 }
 0x664   : > { %v4540_v21 = vpop.f32.mrb[116].mxu0  ;;  %v8123_v47 = vpop.eup %8122  ;;  %v4770_v45 = vmul.f32 0.6931472, %v8121_v63  ;;  %8128 = vlog2.f32 %v4786_v40  ;;  %v4790_v20 = vadd.f32 1.0, %v4789_v52  ;;  %v4783_v63 = vand.u32 2147483647, %v11576_v54 }
 0x665   : > { %v11582_v32 = vadd.f32 %v4540_v21, %v11386_v49  ;;  %v4542_v57 = vpop.f32.mrb[117].mxu0  ;;  %v4761_v0 = vmul.f32 0.6931472, %v8123_v47  ;;  %v11610_v16 = vpop.eup %8124  ;;  %vm11666_vm5 = vcmp.lt.f32.partialorder %v4792_v48, 0.0004427343 }
 0x666   : > { %v11590_v46 = vadd.f32 %v4542_v57, %v11389_v60  ;;  %v4544_v22 = vpop.f32.mrb[118].mxu0  ;;  %v4776_v6 = vsel %vm11594_vm15, %v4773_v11, %v4770_v45  ;;  %v4804_v26 = vadd.f32 1.0, %v11610_v16  ;;  %v11637_v4 = vpop.eup %8126  ;;  %v4807_v25 = vmul.f32 -0.5, %v11610_v16 }
 0x667   : > { %v4609_v24 = vmul.f32 1.442695, %v11582_v32  ;;  %v4546_v44 = vpop.f32.mrb[119].mxu0  ;;  %v11619_v55 = vadd.f32 %v4544_v22, %v11386_v49  ;;  %v4968_v19 = vsel %vm4936_vm13, %v11486_v56, %v4776_v6  ;;  %v4767_v42 = vsel %vm11598_vm0, %v4764_v37, %v4761_v0 }
 0x668   : > { %v4611_v36 = vmul.f32 1.442695, %v11590_v46  ;;  %v11608_v13 = vadd.f32 %v4546_v44, %v11389_v60  ;;  %v4992_v15 = vpack.c.bf16 %v4968_v19, %v4966_v35  ;;  %v4967_v50 = vsel %vm4935_vm2, %v11490_v8, %v4767_v42 }
 0x669   : > { %8130 = vpow2.f32 %v4609_v24  ;;  %v4991_v28 = vpack.c.bf16 %v4967_v50, %v4965_v9  ;;  %v4613_v1 = vmul.f32 1.442695, %v11619_v55  ;;  %v4780_v8 = vmul.f32 -0.5, %v11576_v54 }
 0x66a   : > { %8132 = vpow2.f32 %v4611_v36  ;;  %v4615_v27 = vmul.f32 1.442695, %v11608_v13  ;;  %5269 = vmatprep.mubr.bf16.mxu1 %v4992_v15  ;;  %v4795_v38 = vadd.f32 1.0, %v11637_v4  ;;  %v4808_v57 = vadd.f32 1.0, %v4807_v25 }
 0x66b   : > { %8134 = vlog2.f32 %v4777_v7  ;;  %5270 = vmatmul.mubr.bf16.gmra.mrb[76].mxu1 %v4991_v28  ;;  %v4781_v39 = vadd.f32 1.0, %v4780_v8  ;;  %v4810_v11 = vand.u32 2147483647, %v11610_v16  ;;  %v4791_v18 = vmul.f32 %v11567_v5, %v4790_v20 }
 0x66c   : > { %8136 = vpow2.f32 %v4615_v27  ;;  %v4550_v33 = vpop.f32.mrb[120].mxu0  ;;  %v4798_v45 = vmul.f32 -0.5, %v11637_v4  ;;  %v4809_v36 = vmul.f32 %v11610_v16, %v4808_v57  ;;  %vm11712_vm9 = vcmp.lt.f32.partialorder %v4783_v63, 0.0004427343 }
 0x66d   : > { %v11634_v43 = vadd.f32 %v4550_v33, %v11386_v49  ;;  %v4552_v56 = vpop.f32.mrb[121].mxu0  ;;  %8138 = vlog2.f32 %v4804_v26  ;;  %v4782_v44 = vmul.f32 %v11576_v54, %v4781_v39  ;;  %vm11676_vm6 = vcmp.lt.f32.partialorder %v4810_v11, 0.0004427343 }
 0x66e   : > { %v11641_v62 = vadd.f32 %v4552_v56, %v11389_v60  ;;  %v4554_v23 = vpop.f32.mrb[122].mxu0  ;;  %v8129_v21 = vpop.eup %8128  ;;  %8140 = vpow2.f32 %v4613_v1  ;;  %v4799_v50 = vadd.f32 1.0, %v4798_v45  ;;  %v4801_v48 = vand.u32 2147483647, %v11637_v4 }
 0x66f   : > { %v4556_v14 = vpop.f32.mrb[123].mxu0  ;;  %v4617_v31 = vmul.f32 1.442695, %v11634_v43  ;;  %v11661_v51 = vadd.f32 %v4554_v23, %v11386_v49  ;;  %v4788_v41 = vmul.f32 0.6931472, %v8129_v21  ;;  %vm4942_vm13 = vcmp.gt.f32.partialorder %v11590_v46, 20.0 }
 0x670   : > { %v4619_v10 = vmul.f32 1.442695, %v11641_v62  ;;  %v11648_v58 = vadd.f32 %v4556_v14, %v11389_v60  ;;  %vm4802_vm10 = vcmp.lt.f32.partialorder %v4801_v48, 0.0004427343  ;;  %vm4944_vm1 = vcmp.gt.f32.partialorder %v11608_v13, 20.0 }
 0x671   : > { %v4621_v35 = vmul.f32 1.442695, %v11661_v51  ;;  %v4794_v15 = vsel %vm11666_vm5, %v4791_v18, %v4788_v41  ;;  %vm4941_vm15 = vcmp.gt.f32.partialorder %v11582_v32, 20.0  ;;  %vm4943_vm0 = vcmp.gt.f32.partialorder %v11619_v55, 20.0 }
 0x672   : > { %v4623_v3 = vmul.f32 1.442695, %v11648_v58  ;;  %8142 = vpow2.f32 %v4619_v10  ;;  %v4970_v14 = vsel %vm4938_vm3, %v11523_v17, %v4794_v15  ;;  %v4800_v17 = vmul.f32 %v11637_v4, %v4799_v50 }
 0x673   : > { %v11653_v40 = vpop.eup %8130  ;;  %8144 = vpow2.f32 %v4617_v31  ;;  %vm4946_vm2 = vcmp.gt.f32.partialorder %v11641_v62, 20.0  ;;  %vm4945_vm5 = vcmp.gt.f32.partialorder %v11634_v43, 20.0 }
 0x674   : > { %v11658_v12 = vpop.eup %8132  ;;  %v4813_v22 = vadd.f32 1.0, %v11653_v40  ;;  %8146 = vlog2.f32 %v4795_v38  ;;  %v4560_v7 = vpop.f32.mrb[124].mxu0 }
 0x675   : > { %v8135_v61 = vpop.eup %8134  ;;  %8148 = vpow2.f32 %v4623_v3  ;;  %v4822_v30 = vadd.f32 1.0, %v11658_v12  ;;  %v11684_v54 = vadd.f32 %v4560_v7, %v11386_v49  ;;  %v4562_v37 = vpop.f32.mrb[125].mxu0  ;;  %v4825_v26 = vmul.f32 -0.5, %v11658_v12 }
 0x676   : > { %v11670_v24 = vpop.eup %8136  ;;  %8150 = vlog2.f32 %v4813_v22  ;;  %v4779_v27 = vmul.f32 0.6931472, %v8135_v61  ;;  %v11687_v16 = vadd.f32 %v4562_v37, %v11389_v60  ;;  %v4564_v19 = vpop.f32.mrb[126].mxu0  ;;  %v4828_v21 = vand.u32 2147483647, %v11658_v12 }
 0x677   : > { %v4840_v5 = vadd.f32 1.0, %v11670_v24  ;;  %v8139_v6 = vpop.eup %8138  ;;  %8152 = vlog2.f32 %v4822_v30  ;;  %v4625_v33 = vmul.f32 1.442695, %v11684_v54  ;;  %v4566_v9 = vpop.f32.mrb[127].mxu0  ;;  %v4843_v56 = vmul.f32 -0.5, %v11670_v24 }
 0x678   : > { %v4806_v42 = vmul.f32 0.6931472, %v8139_v6  ;;  %v4627_v28 = vmul.f32 1.442695, %v11687_v16  ;;  %v11697_v52 = vadd.f32 %v4564_v19, %v11386_v49  ;;  %v11700_v1 = vadd.f32 %v4566_v9, %v11389_v60  ;;  %v11704_v8 = vpop.eup %8140 }
 0x679   : > { %8154 = vlog2.f32 %v4840_v5  ;;  %v4785_v20 = vsel %vm11712_vm9, %v4782_v44, %v4779_v27  ;;  %v4844_v57 = vadd.f32 1.0, %v4843_v56  ;;  %v4831_v11 = vadd.f32 1.0, %v11704_v8 }
 0x67a   : > { %v4812_v23 = vsel %vm11676_vm6, %v4809_v36, %v4806_v42  ;;  %8156 = vpow2.f32 %v4621_v35  ;;  %v4631_v31 = vmul.f32 1.442695, %v11700_v1  ;;  %v4629_v39 = vmul.f32 1.442695, %v11697_v52 }
 0x67b   : > { %v4972_v25 = vsel %vm4940_vm4, %v11530_v53, %v4812_v23  ;;  %8158 = vpow2.f32 %v4627_v28  ;;  %v4826_v53 = vadd.f32 1.0, %v4825_v26  ;;  %v4816_v61 = vmul.f32 -0.5, %v11653_v40 }
 0x67c   : > { %v11716_v60 = vpop.eup %8142  ;;  %v4994_v10 = vpack.c.bf16 %v4972_v25, %v4970_v14  ;;  %8160 = vpow2.f32 %v4625_v33  ;;  %v4969_v18 = vsel %vm4937_vm7, %v11514_v29, %v4785_v20  ;;  %v4846_v47 = vand.u32 2147483647, %v11670_v24 }
 0x67d   : > { %v11722_v38 = vpop.eup %8144  ;;  %8162 = vpow2.f32 %v4631_v31  ;;  %v4858_v41 = vadd.f32 1.0, %v11716_v60  ;;  %v4827_v30 = vmul.f32 %v11658_v12, %v4826_v53  ;;  %vm11737_vm11 = vcmp.lt.f32.partialorder %v4828_v21, 0.0004427343 }
 0x67e   : > { %v8147_v3 = vpop.eup %8146  ;;  %5279 = vmatprep.mubr.bf16.mxu1 %v4994_v10  ;;  %8164 = vlog2.f32 %v4831_v11  ;;  %v4845_v29 = vmul.f32 %v11670_v24, %v4844_v57  ;;  %v4817_v37 = vadd.f32 1.0, %v4816_v61  ;;  %v4834_v27 = vmul.f32 -0.5, %v11704_v8 }
 0x67f   : > { %v11728_v63 = vpop.eup %8148  ;;  %v4797_v22 = vmul.f32 0.6931472, %v8147_v3  ;;  %8166 = vlog2.f32 %v4858_v41  ;;  %vm4847_vm12 = vcmp.lt.f32.partialorder %v4846_v47, 0.0004427343  ;;  %v4819_v19 = vand.u32 2147483647, %v11653_v40 }
 0x680   : > { %v8151_v4 = vpop.eup %8150  ;;  %8168 = vpow2.f32 %v4629_v39  ;;  %v4876_v15 = vadd.f32 1.0, %v11728_v63  ;;  %v4861_v50 = vmul.f32 -0.5, %v11716_v60  ;;  %v4818_v28 = vmul.f32 %v11653_v40, %v4817_v37 }
 0x681   : > { %v8153_v44 = vpop.eup %8152  ;;  %v4803_v45 = vsel %vm4802_vm10, %v4800_v17, %v4797_v22  ;;  %v4815_v24 = vmul.f32 0.6931472, %v8151_v4  ;;  %v4835_v23 = vadd.f32 1.0, %v4834_v27  ;;  %v4849_v14 = vadd.f32 1.0, %v11722_v38 }
 0x682   : > { %v4971_v0 = vsel %vm4939_vm8, %v11551_v2, %v4803_v45  ;;  %v4824_v5 = vmul.f32 0.6931472, %v8153_v44  ;;  %8170 = vlog2.f32 %v4876_v15  ;;  %vm11763_vm14 = vcmp.lt.f32.partialorder %v4819_v19, 0.0004427343  ;;  %v7389_v15 = vld [vmem:[#allocation3 + $0x570] ss:$8 sps:$4 sm:$0xff]  }
 0x683   : > { %v8155_v36 = vpop.eup %8154  ;;  %v4993_v6 = vpack.c.bf16 %v4971_v0, %v4969_v18  ;;  %v4821_v40 = vsel %vm11763_vm14, %v4818_v28, %v4815_v24  ;;  %8172 = vlog2.f32 %v4849_v14  ;;  %v4862_v48 = vadd.f32 1.0, %v4861_v50  ;;  %v7391_v50 = vld [vmem:[#allocation3 + $0x574] ss:$8 sps:$4 sm:$0xff]   ;;  %v7406_v19 = vld [vmem:[#allocation3 + $0x5c4] ss:$8 sps:$4 sm:$0xff]  }
 0x684   : > { %v4842_v35 = vmul.f32 0.6931472, %v8155_v36  ;;  %v4830_v12 = vsel %vm11737_vm11, %v4827_v30, %v4824_v5  ;;  %v11750_v42 = vpop.eup %8156  ;;  %v4864_v17 = vand.u32 2147483647, %v11716_v60  ;;  %v4836_v39 = vmul.f32 %v11704_v8, %v4835_v23  ;;  %5972 = vmatprep.subr.bf16.mxu0 %v7391_v50  ;;  %6975 = vmatprep.subr.bf16.mxu1 %v7391_v50  ;;  %v7400_v30 = vld [vmem:[#allocation3 + $0x5a4] ss:$8 sps:$4 sm:$0xff]  }
 0x685   : > { %5280 = vmatmul.mubr.bf16.gmra.mrb[80].mxu1 %v4993_v6  ;;  %v4974_v33 = vsel %vm4942_vm13, %v11590_v46, %v4830_v12  ;;  %v11757_v26 = vpop.eup %8158  ;;  %v4837_v46 = vand.u32 2147483647, %v11704_v8  ;;  %v4867_v31 = vadd.f32 1.0, %v11750_v42  ;;  %v4882_v57 = vand.u32 2147483647, %v11728_v63  ;;  %5973 = vmatpush1.bf16.msra.mxu0 %v7389_v15 }
 0x686   : > { %v4848_v2 = vsel %vm4847_vm12, %v4845_v29, %v4842_v35  ;;  %v11761_v25 = vpop.eup %8160  ;;  %v4894_v53 = vadd.f32 1.0, %v11757_v26  ;;  %v4852_v11 = vmul.f32 -0.5, %v11722_v38  ;;  %v4973_v61 = vsel %vm4941_vm15, %v11582_v32, %v4821_v40  ;;  %6991 = vmatpush1.bf16.msra.mxu1 %v7389_v15  ;;  %v7407_v15 = vld [vmem:[#allocation3 + $0x5d0] ss:$8 sps:$4 sm:$0xff]  }
 0x687   : > { %v4976_v9 = vsel %vm4944_vm1, %v11608_v13, %v4848_v2  ;;  %v4879_v13 = vmul.f32 -0.5, %v11728_v63  ;;  %v11770_v10 = vpop.eup %8162  ;;  %8174 = vlog2.f32 %v4867_v31  ;;  %vm4838_vm3 = vcmp.lt.f32.partialorder %v4837_v46, 0.0004427343 }
 0x688   : > { %v4996_v56 = vpack.c.bf16 %v4976_v9, %v4974_v33  ;;  %v8165_v20 = vpop.eup %8164  ;;  %8176 = vlog2.f32 %v4894_v53  ;;  %v4870_v47 = vmul.f32 -0.5, %v11750_v42  ;;  %v4912_v44 = vadd.f32 1.0, %v11770_v10 }
 0x689   : > { %v8167_v21 = vpop.eup %8166  ;;  %v4833_v3 = vmul.f32 0.6931472, %v8165_v20  ;;  %v4880_v41 = vadd.f32 1.0, %v4879_v13  ;;  %v4863_v45 = vmul.f32 %v11716_v60, %v4862_v48  ;;  %vm11793_vm4 = vcmp.lt.f32.partialorder %v4864_v17, 0.0004427343 }
 0x68a   : > { %5289 = vmatprep.mubr.bf16.mxu1 %v4996_v56  ;;  %v11782_v22 = vpop.eup %8168  ;;  %v4860_v18 = vmul.f32 0.6931472, %v8167_v21  ;;  %v4855_v32 = vand.u32 2147483647, %v11722_v38  ;;  %vm4947_vm6 = vcmp.gt.f32.partialorder %v11661_v51, 20.0  ;;  %v4853_v0 = vadd.f32 1.0, %v4852_v11 }
 0x68b   : > { %v4839_v4 = vsel %vm4838_vm3, %v4836_v39, %v4833_v3  ;;  %vm11800_vm7 = vcmp.lt.f32.partialorder %v4882_v57, 0.0004427343  ;;  %8178 = vlog2.f32 %v4912_v44  ;;  %v4881_v60 = vmul.f32 %v11728_v63, %v4880_v41  ;;  %v7397_v3 = vld [vmem:[#allocation3 + $0x594] ss:$8 sps:$4 sm:$0xff]  }
 0x68c   : > { %v4975_v8 = vsel %vm4943_vm0, %v11619_v55, %v4839_v4  ;;  %v8171_v55 = vpop.eup %8170  ;;  %v4873_v5 = vand.u32 2147483647, %v11750_v42  ;;  %v4897_v29 = vmul.f32 -0.5, %v11757_v26  ;;  %v4885_v6 = vadd.f32 1.0, %v11761_v25 }
 0x68d   : > { %v4995_v7 = vpack.c.bf16 %v4975_v8, %v4973_v61  ;;  %v4866_v35 = vsel %vm11793_vm4, %v4863_v45, %v4860_v18  ;;  %v4878_v37 = vmul.f32 0.6931472, %v8171_v55  ;;  %v4871_v27 = vadd.f32 1.0, %v4870_v47  ;;  %v8173_v2 = vpop.eup %8172 }
 0x68e   : > { %v4903_v12 = vadd.f32 1.0, %v11782_v22  ;;  %vm4948_vm8 = vcmp.gt.f32.partialorder %v11648_v58, 20.0  ;;  %vm11812_vm9 = vcmp.lt.f32.partialorder %v4855_v32, 0.0004427343  ;;  %v4915_v63 = vmul.f32 -0.5, %v11770_v10 }
 0x68f   : > { %5290 = vmatmul.mubr.bf16.gmra.mrb[84].mxu1 %v4995_v7  ;;  %8180 = vlog2.f32 %v4885_v6  ;;  %v4884_v24 = vsel %vm11800_vm7, %v4881_v60, %v4878_v37  ;;  %v4854_v33 = vmul.f32 %v11722_v38, %v4853_v0  ;;  %v4900_v9 = vand.u32 2147483647, %v11757_v26  ;;  %v7394_v38 = vld [vmem:[#allocation3 + $0x584] ss:$8 sps:$4 sm:$0xff]  }
 0x690   : > { %8182 = vlog2.f32 %v4903_v12  ;;  %v4978_v28 = vsel %vm4946_vm2, %v11641_v62, %v4866_v35  ;;  %v4980_v23 = vsel %vm4948_vm8, %v11648_v58, %v4884_v24  ;;  %v4851_v14 = vmul.f32 0.6931472, %v8173_v2  ;;  %v7392_v58 = vld [vmem:[#allocation3 + $0x580] ss:$8 sps:$4 sm:$0xff]   ;;  %5974 = vmatprep.subr.bf16.mxu0 %v7394_v38  ;;  %6976 = vmatprep.subr.bf16.mxu1 %v7394_v38  ;;  %v7403_v12 = vld [vmem:[#allocation3 + $0x5b4] ss:$8 sps:$4 sm:$0xff]  }
 0x691   : > { %v8175_v56 = vpop.eup %8174  ;;  %v4898_v49 = vadd.f32 1.0, %v4897_v29  ;;  %v4998_v46 = vpack.c.bf16 %v4980_v23, %v4978_v28  ;;  %v4872_v31 = vmul.f32 %v11750_v42, %v4871_v27  ;;  %v4888_v40 = vmul.f32 -0.5, %v11761_v25  ;;  %5975 = vmatpush1.bf16.msra.mxu0 %v7392_v58  ;;  %6992 = vmatpush1.bf16.msra.mxu1 %v7392_v58  ;;  %v7398_v35 = vld [vmem:[#allocation3 + $0x5a0] ss:$8 sps:$4 sm:$0xff]   ;;  %v7412_v2 = vld [vmem:[#allocation3 + $0x5e4] ss:$8 sps:$4 sm:$0xff]  }
 0x692   : > { %v4869_v13 = vmul.f32 0.6931472, %v8175_v56  ;;  %v8177_v20 = vpop.eup %8176  ;;  %v4857_v48 = vsel %vm11812_vm9, %v4854_v33, %v4851_v14  ;;  %vm4874_vm10 = vcmp.lt.f32.partialorder %v4873_v5, 0.0004427343  ;;  %v4916_v17 = vadd.f32 1.0, %v4915_v63  ;;  %5976 = vmatprep.subr.bf16.mxu0 %v7397_v3  ;;  %6977 = vmatprep.subr.bf16.mxu1 %v7397_v3 }
 0x693   : > { %v4906_v62 = vmul.f32 -0.5, %v11782_v22  ;;  %5299 = vmatprep.mubr.bf16.mxu1 %v4998_v46  ;;  %v4896_v21 = vmul.f32 0.6931472, %v8177_v20  ;;  %v4918_v42 = vand.u32 2147483647, %v11770_v10  ;;  %v4977_v39 = vsel %vm4945_vm5, %v11634_v43, %v4857_v48 }
 0x694   : > { %v4875_v53 = vsel %vm4874_vm10, %v4872_v31, %v4869_v13  ;;  %v4899_v11 = vmul.f32 %v11757_v26, %v4898_v49  ;;  %vm11838_vm11 = vcmp.lt.f32.partialorder %v4900_v9, 0.0004427343  ;;  %v4889_v18 = vadd.f32 1.0, %v4888_v40  ;;  %v7404_v63 = vld [vmem:[#allocation3 + $0x5c0] ss:$8 sps:$4 sm:$0xff]  }
 0x695   : > { %v4979_v57 = vsel %vm4947_vm6, %v11661_v51, %v4875_v53  ;;  %v8179_v61 = vpop.eup %8178  ;;  %v4891_v47 = vand.u32 2147483647, %v11761_v25  ;;  %v4917_v8 = vmul.f32 %v11770_v10, %v4916_v17  ;;  %v4907_v45 = vadd.f32 1.0, %v4906_v62  ;;  %v7395_v51 = vld [vmem:[#allocation3 + $0x590] ss:$8 sps:$4 sm:$0xff]  }
 0x696   : > { %v4997_v41 = vpack.c.bf16 %v4979_v57, %v4977_v39  ;;  %v4902_v44 = vsel %vm11838_vm11, %v4899_v11, %v4896_v21  ;;  %v4914_v43 = vmul.f32 0.6931472, %v8179_v61  ;;  %vm4919_vm12 = vcmp.lt.f32.partialorder %v4918_v42, 0.0004427343  ;;  %5977 = vmatpush1.bf16.msra.mxu0 %v7395_v51  ;;  %6993 = vmatpush1.bf16.msra.mxu1 %v7395_v51  ;;  %v7415_v24 = vld [vmem:[#allocation3 + $0x5f4] ss:$8 sps:$4 sm:$0xff]  }
 0x697   : > { %v4909_v26 = vand.u32 2147483647, %v11782_v22  ;;  %vm4950_vm13 = vcmp.gt.f32.partialorder %v11687_v16, 20.0  ;;  %vm4952_vm1 = vcmp.gt.f32.partialorder %v11700_v1, 20.0  ;;  %v4890_v60 = vmul.f32 %v11761_v25, %v4889_v18  ;;  %5978 = vmatprep.subr.bf16.mxu0 %v7400_v30  ;;  %6978 = vmatprep.subr.bf16.mxu1 %v7400_v30  ;;  %v7413_v33 = vld [vmem:[#allocation3 + $0x5f0] ss:$8 sps:$4 sm:$0xff]  }
 0x698   : > { %5300 = vmatmul.mubr.bf16.gmra.mrb[88].mxu1 %v4997_v41  ;;  %v4920_v7 = vsel %vm4919_vm12, %v4917_v8, %v4914_v43  ;;  %v4982_v10 = vsel %vm4950_vm13, %v11687_v16, %v4902_v44  ;;  %vm4892_vm14 = vcmp.lt.f32.partialorder %v4891_v47, 0.0004427343  ;;  %v4908_v6 = vmul.f32 %v11782_v22, %v4907_v45  ;;  %v7401_v22 = vld [vmem:[#allocation3 + $0x5b0] ss:$8 sps:$4 sm:$0xff]  }
 0x699   : > { %v8181_v32 = vpop.eup %8180  ;;  %v4984_v0 = vsel %vm4952_vm1, %v11700_v1, %v4920_v7  ;;  %vm4910_vm15 = vcmp.lt.f32.partialorder %v4909_v26, 0.0004427343  ;;  %vm4949_vm0 = vcmp.gt.f32.partialorder %v11684_v54, 20.0  ;;  %vm4951_vm2 = vcmp.gt.f32.partialorder %v11697_v52, 20.0 }
 0x69a   : > { %v8183_v36 = vpop.eup %8182  ;;  %v4887_v55 = vmul.f32 0.6931472, %v8181_v32  ;;  %v5000_v5 = vpack.c.bf16 %v4984_v0, %v4982_v10  ;;  %5979 = vmatpush1.bf16.msra.mxu0 %v7398_v35  ;;  %6994 = vmatpush1.bf16.msra.mxu1 %v7398_v35  ;;  %v6899_v9 = vld [vmem:[%s12847_s4 + $0x4] ss:$8 sm:$0x3] }
 0x69b   : > { %v4905_v29 = vmul.f32 0.6931472, %v8183_v36  ;;  %5980 = vmatprep.subr.bf16.mxu0 %v7403_v12  ;;  %6979 = vmatprep.subr.bf16.mxu1 %v7403_v12  ;;  %v11861_v50 = vrot.slane %v6899_v9, %v12914_v34  ;;  %v11864_v56 = vrot.slane %v6899_v9, %v12915_v59 }
 0x69c   : > { %v4893_v37 = vsel %vm4892_vm14, %v4890_v60, %v4887_v55  ;;  %5309 = vmatprep.mubr.bf16.mxu1 %v5000_v5 }
 0x69d   : > { %v4911_v16 = vsel %vm4910_vm15, %v4908_v6, %v4905_v29  ;;  %v4981_v1 = vsel %vm4949_vm0, %v11684_v54, %v4893_v37  ;;  %v7409_v54 = vld [vmem:[#allocation3 + $0x5d4] ss:$8 sps:$4 sm:$0xff]  }
 0x69e   : > { %v4983_v25 = vsel %vm4951_vm2, %v11697_v52, %v4911_v16  ;;  %5981 = vmatpush1.bf16.msra.mxu0 %v7401_v22  ;;  %6995 = vmatpush1.bf16.msra.mxu1 %v7401_v22  ;;  %v7410_v52 = vld [vmem:[#allocation3 + $0x5e0] ss:$8 sps:$4 sm:$0xff]  }
 0x69f   : > { %v4999_v27 = vpack.c.bf16 %v4983_v25, %v4981_v1  ;;  %5982 = vmatprep.subr.bf16.mxu0 %v7406_v19  ;;  %6980 = vmatprep.subr.bf16.mxu1 %v7406_v19 }
 0x6a1   : > { %5310 = vmatmul.mubr.bf16.gmra.mrb[92].mxu1 %v4999_v27 }
 0x6a2   : > { %5983 = vmatpush1.bf16.msra.mxu0 %v7404_v63  ;;  %6996 = vmatpush1.bf16.msra.mxu1 %v7404_v63 }
 0x6a3   : > { %5984 = vmatprep.subr.bf16.mxu0 %v7409_v54  ;;  %6981 = vmatprep.subr.bf16.mxu1 %v7409_v54 }
 0x6a6   : > { %5985 = vmatpush1.bf16.msra.mxu0 %v7407_v15  ;;  %6997 = vmatpush1.bf16.msra.mxu1 %v7407_v15 }
 0x6a7   : > { %5986 = vmatprep.subr.bf16.mxu0 %v7412_v2  ;;  %6982 = vmatprep.subr.bf16.mxu1 %v7412_v2 }
 0x6aa   : > { %5987 = vmatpush1.bf16.msra.mxu0 %v7410_v52  ;;  %6998 = vmatpush1.bf16.msra.mxu1 %v7410_v52 }
 0x6ab   : > { %5988 = vmatprep.subr.bf16.mxu0 %v7415_v24  ;;  %6983 = vmatprep.subr.bf16.mxu1 %v7415_v24 }
 0x6ae   : > { %5989 = vmatpush1.bf16.msra.mxu0 %v7413_v33  ;;  %6999 = vmatpush1.bf16.msra.mxu1 %v7413_v33 }
 0x6f0   : > { %v5241_v28 = vpop.f32.mrb[64].mxu1 }
 0x6f1   : > { %v11867_v23 = vadd.f32 %v5241_v28, %v11861_v50  ;;  %v5243_v14 = vpop.f32.mrb[65].mxu1 }
 0x6f2   : > { %v11870_v49 = vadd.f32 %v5243_v14, %v11864_v56  ;;  %v5245_v46 = vpop.f32.mrb[66].mxu1 }
 0x6f3   : > { %v5320_v13 = vmul.f32 1.442695, %v11867_v23  ;;  %v11874_v31 = vadd.f32 %v5245_v46, %v11861_v50  ;;  %v5247_v40 = vpop.f32.mrb[67].mxu1  ;;  %vm5672_vm4 = vcmp.gt.f32.partialorder %v11867_v23, 20.0 }
 0x6f4   : > { %v5322_v38 = vmul.f32 1.442695, %v11870_v49  ;;  %v11878_v20 = vadd.f32 %v5247_v40, %v11864_v56  ;;  %vm5673_vm9 = vcmp.gt.f32.partialorder %v11870_v49, 20.0 }
 0x6f5   : > { %8184 = vpow2.f32 %v5320_v13  ;;  %v5324_v48 = vmul.f32 1.442695, %v11874_v31  ;;  %vm5674_vm6 = vcmp.gt.f32.partialorder %v11874_v31, 20.0 }
 0x6f6   : > { %8186 = vpow2.f32 %v5322_v38  ;;  %v5326_v17 = vmul.f32 1.442695, %v11878_v20  ;;  %vm5675_vm10 = vcmp.gt.f32.partialorder %v11878_v20, 20.0 }
 0x6f7   : > { %8188 = vpow2.f32 %v5324_v48 }
 0x6f8   : > { %8190 = vpow2.f32 %v5326_v17 }
 0x6ff   : > { %v8185_v62 = vpop.eup %8184 }
 0x700   : > { %v8187_v58 = vpop.eup %8186  ;;  %v5384_v53 = vadd.f32 1.0, %v8185_v62  ;;  %v5387_v11 = vmul.f32 -0.5, %v8185_v62  ;;  %v5390_v32 = vand.u32 2147483647, %v8185_v62 }
 0x701   : > { %v8189_v21 = vpop.eup %8188  ;;  %v5393_v42 = vadd.f32 1.0, %v8187_v58  ;;  %v5396_v47 = vmul.f32 -0.5, %v8187_v58  ;;  %v5399_v6 = vand.u32 2147483647, %v8187_v58 }
 0x702   : > { %v8191_v3 = vpop.eup %8190  ;;  %8192 = vlog2.f32 %v5384_v53  ;;  %v5402_v39 = vadd.f32 1.0, %v8189_v21  ;;  %v5405_v41 = vmul.f32 -0.5, %v8189_v21  ;;  %v5388_v8 = vadd.f32 1.0, %v5387_v11 }
 0x703   : > { %8194 = vlog2.f32 %v5393_v42  ;;  %v5411_v57 = vadd.f32 1.0, %v8191_v3  ;;  %v5414_v30 = vmul.f32 -0.5, %v8191_v3  ;;  %v5397_v55 = vadd.f32 1.0, %v5396_v47 }
 0x704   : > { %8196 = vlog2.f32 %v5402_v39  ;;  %v5406_v10 = vadd.f32 1.0, %v5405_v41  ;;  %v5408_v5 = vand.u32 2147483647, %v8189_v21  ;;  %v5389_v16 = vmul.f32 %v8185_v62, %v5388_v8 }
 0x705   : > { %v5251_v61 = vpop.f32.mrb[68].mxu1  ;;  %8198 = vlog2.f32 %v5411_v57  ;;  %v5415_v1 = vadd.f32 1.0, %v5414_v30  ;;  %vm11898_vm3 = vcmp.lt.f32.partialorder %v5390_v32, 0.0004427343  ;;  %v5417_v12 = vand.u32 2147483647, %v8191_v3 }
 0x706   : > { %v11883_v4 = vadd.f32 %v5251_v61, %v11861_v50  ;;  %v5253_v18 = vpop.f32.mrb[69].mxu1  ;;  %v5407_v15 = vmul.f32 %v8189_v21, %v5406_v10  ;;  %v5398_v54 = vmul.f32 %v8187_v58, %v5397_v55  ;;  %vm5409_vm5 = vcmp.lt.f32.partialorder %v5408_v5, 0.0004427343 }
 0x707   : > { %v11886_v44 = vadd.f32 %v5253_v18, %v11864_v56  ;;  %v5255_v43 = vpop.f32.mrb[70].mxu1  ;;  %vm5400_vm7 = vcmp.lt.f32.partialorder %v5399_v6, 0.0004427343  ;;  %v5416_v9 = vmul.f32 %v8191_v3, %v5415_v1  ;;  %vm5418_vm8 = vcmp.lt.f32.partialorder %v5417_v12, 0.0004427343 }
 0x708   : > { %v5328_v45 = vmul.f32 1.442695, %v11883_v4  ;;  %v11890_v51 = vadd.f32 %v5255_v43, %v11861_v50  ;;  %v5257_v26 = vpop.f32.mrb[71].mxu1  ;;  %vm5676_vm11 = vcmp.gt.f32.partialorder %v11883_v4, 20.0 }
 0x709   : > { %v5330_v7 = vmul.f32 1.442695, %v11886_v44  ;;  %v11894_v36 = vadd.f32 %v5257_v26, %v11864_v56  ;;  %vm5677_vm14 = vcmp.gt.f32.partialorder %v11886_v44, 20.0 }
 0x70a   : > { %8200 = vpow2.f32 %v5328_v45  ;;  %v5332_v0 = vmul.f32 1.442695, %v11890_v51  ;;  %vm5678_vm15 = vcmp.gt.f32.partialorder %v11890_v51, 20.0 }
 0x70b   : > { %8202 = vpow2.f32 %v5330_v7  ;;  %v5334_v29 = vmul.f32 1.442695, %v11894_v36  ;;  %vm5679_vm2 = vcmp.gt.f32.partialorder %v11894_v36, 20.0 }
 0x70c   : > { %v8193_v60 = vpop.eup %8192  ;;  %8204 = vpow2.f32 %v5332_v0 }
 0x70d   : > { %v8195_v35 = vpop.eup %8194  ;;  %v5386_v37 = vmul.f32 0.6931472, %v8193_v60  ;;  %8206 = vpow2.f32 %v5334_v29 }
 0x70e   : > { %v8197_v25 = vpop.eup %8196  ;;  %v5395_v22 = vmul.f32 0.6931472, %v8195_v35 }
 0x70f   : > { %v5392_v19 = vsel %vm11898_vm3, %v5389_v16, %v5386_v37  ;;  %v5404_v63 = vmul.f32 0.6931472, %v8197_v25  ;;  %v8199_v2 = vpop.eup %8198 }
 0x710   : > { %v5401_v24 = vsel %vm5400_vm7, %v5398_v54, %v5395_v22  ;;  %v5413_v33 = vmul.f32 0.6931472, %v8199_v2  ;;  %v5704_v28 = vsel %vm5672_vm4, %v11867_v23, %v5392_v19 }
 0x711   : > { %v5410_v52 = vsel %vm5409_vm5, %v5407_v15, %v5404_v63  ;;  %v5705_v40 = vsel %vm5673_vm9, %v11870_v49, %v5401_v24 }
 0x712   : > { %v5706_v14 = vsel %vm5674_vm6, %v11874_v31, %v5410_v52  ;;  %v5419_v13 = vsel %vm5418_vm8, %v5416_v9, %v5413_v33 }
 0x713   : > { %v5736_v46 = vpack.c.bf16 %v5706_v14, %v5704_v28  ;;  %v5707_v38 = vsel %vm5675_vm10, %v11878_v20, %v5419_v13 }
 0x714   : > { %v8201_v48 = vpop.eup %8200  ;;  %v5737_v17 = vpack.c.bf16 %v5707_v38, %v5705_v40 }
 0x715   : > { %v8203_v62 = vpop.eup %8202  ;;  %v5420_v58 = vadd.f32 1.0, %v8201_v48  ;;  %v5423_v3 = vmul.f32 -0.5, %v8201_v48  ;;  %v5426_v61 = vand.u32 2147483647, %v8201_v48 }
 0x716   : > { %v8205_v53 = vpop.eup %8204  ;;  %5990 = vmatprep.mubr.bf16.mxu0 %v5737_v17  ;;  %v5429_v23 = vadd.f32 1.0, %v8203_v62  ;;  %v5432_v39 = vmul.f32 -0.5, %v8203_v62  ;;  %v5435_v41 = vand.u32 2147483647, %v8203_v62 }
 0x717   : > { %v8207_v21 = vpop.eup %8206  ;;  %5991 = vmatmul.mubr.bf16.vlgmr.msra.gmra.mrb[128].mxu0 %v5736_v46  ;;  %8208 = vlog2.f32 %v5420_v58  ;;  %v5438_v31 = vadd.f32 1.0, %v8205_v53  ;;  %v5441_v49 = vmul.f32 -0.5, %v8205_v53  ;;  %v5424_v20 = vadd.f32 1.0, %v5423_v3 }
 0x718   : > { %8210 = vlog2.f32 %v5429_v23  ;;  %v5447_v42 = vadd.f32 1.0, %v8207_v21  ;;  %v5450_v57 = vmul.f32 -0.5, %v8207_v21  ;;  %v5433_v11 = vadd.f32 1.0, %v5432_v39 }
 0x719   : > { %8212 = vlog2.f32 %v5438_v31  ;;  %v5442_v18 = vadd.f32 1.0, %v5441_v49  ;;  %v5444_v8 = vand.u32 2147483647, %v8205_v53  ;;  %v5453_v26 = vand.u32 2147483647, %v8207_v21 }
 0x71a   : > { %8214 = vlog2.f32 %v5447_v42  ;;  %v5451_v43 = vadd.f32 1.0, %v5450_v57  ;;  %v5425_v32 = vmul.f32 %v8201_v48, %v5424_v20  ;;  %v5434_v0 = vmul.f32 %v8203_v62, %v5433_v11 }
 0x71b   : > { %vm11913_vm12 = vcmp.lt.f32.partialorder %v5426_v61, 0.0004427343  ;;  %vm11917_vm13 = vcmp.lt.f32.partialorder %v5435_v41, 0.0004427343  ;;  %v5443_v35 = vmul.f32 %v8205_v53, %v5442_v18  ;;  %vm5445_vm1 = vcmp.lt.f32.partialorder %v5444_v8, 0.0004427343 }
 0x71c   : > { %v5452_v1 = vmul.f32 %v8207_v21, %v5451_v43  ;;  %vm5454_vm0 = vcmp.lt.f32.partialorder %v5453_v26, 0.0004427343 }
 0x721   : > { %v8209_v47 = vpop.eup %8208 }
 0x722   : > { %v8211_v45 = vpop.eup %8210  ;;  %v5422_v30 = vmul.f32 0.6931472, %v8209_v47 }
 0x723   : > { %v8213_v7 = vpop.eup %8212  ;;  %v5431_v10 = vmul.f32 0.6931472, %v8211_v45 }
 0x724   : > { %v8215_v60 = vpop.eup %8214  ;;  %v5428_v29 = vsel %vm11913_vm12, %v5425_v32, %v5422_v30  ;;  %v5440_v6 = vmul.f32 0.6931472, %v8213_v7 }
 0x725   : > { %v5437_v37 = vsel %vm11917_vm13, %v5434_v0, %v5431_v10  ;;  %v5449_v16 = vmul.f32 0.6931472, %v8215_v60  ;;  %v5708_v22 = vsel %vm5676_vm11, %v11883_v4, %v5428_v29 }
 0x726   : > { %v5446_v25 = vsel %vm5445_vm1, %v5443_v35, %v5440_v6  ;;  %v5709_v19 = vsel %vm5677_vm14, %v11886_v44, %v5437_v37 }
 0x727   : > { %v5455_v27 = vsel %vm5454_vm0, %v5452_v1, %v5449_v16  ;;  %v5710_v12 = vsel %vm5678_vm15, %v11890_v51, %v5446_v25 }
 0x728   : > { %v5711_v63 = vsel %vm5679_vm2, %v11894_v36, %v5455_v27  ;;  %v5738_v15 = vpack.c.bf16 %v5710_v12, %v5708_v22 }
 0x729   : > { %v5739_v54 = vpack.c.bf16 %v5711_v63, %v5709_v19 }
 0x72b   : > { %6000 = vmatprep.mubr.bf16.mxu0 %v5739_v54 }
 0x72c   : > { %6001 = vmatmul.mubr.bf16.gmra.mrb[132].mxu0 %v5738_v15 }
 0x72e   : > { %v5261_v2 = vpop.f32.mrb[72].mxu1 }
 0x72f   : > { %v11935_v52 = vadd.f32 %v5261_v2, %v11861_v50  ;;  %v5263_v24 = vpop.f32.mrb[73].mxu1 }
 0x730   : > { %v11938_v33 = vadd.f32 %v5263_v24, %v11864_v56  ;;  %v5265_v9 = vpop.f32.mrb[74].mxu1 }
 0x731   : > { %v5336_v4 = vmul.f32 1.442695, %v11935_v52  ;;  %v11942_v51 = vadd.f32 %v5265_v9, %v11861_v50  ;;  %v5267_v44 = vpop.f32.mrb[75].mxu1  ;;  %vm5680_vm4 = vcmp.gt.f32.partialorder %v11935_v52, 20.0 }
 0x732   : > { %v5338_v36 = vmul.f32 1.442695, %v11938_v33  ;;  %v11946_v28 = vadd.f32 %v5267_v44, %v11864_v56  ;;  %vm5681_vm3 = vcmp.gt.f32.partialorder %v11938_v33, 20.0 }
 0x733   : > { %8216 = vpow2.f32 %v5336_v4  ;;  %v5340_v46 = vmul.f32 1.442695, %v11942_v51  ;;  %vm5682_vm5 = vcmp.gt.f32.partialorder %v11942_v51, 20.0 }
 0x734   : > { %8218 = vpow2.f32 %v5338_v36  ;;  %v5342_v14 = vmul.f32 1.442695, %v11946_v28  ;;  %vm5683_vm6 = vcmp.gt.f32.partialorder %v11946_v28, 20.0 }
 0x736   : > { %8220 = vpow2.f32 %v5342_v14 }
 0x737   : > { %8222 = vpow2.f32 %v5340_v46 }
 0x73d   : > { %v8217_v13 = vpop.eup %8216 }
 0x73e   : > { %v5271_v40 = vpop.f32.mrb[76].mxu1  ;;  %v8219_v38 = vpop.eup %8218  ;;  %v5456_v62 = vadd.f32 1.0, %v8217_v13  ;;  %v5459_v47 = vmul.f32 -0.5, %v8217_v13  ;;  %v5462_v7 = vand.u32 2147483647, %v8217_v13 }
 0x73f   : > { %v11951_v48 = vadd.f32 %v5271_v40, %v11861_v50  ;;  %v5273_v17 = vpop.f32.mrb[77].mxu1  ;;  %v5465_v23 = vadd.f32 1.0, %v8219_v38  ;;  %v5468_v18 = vmul.f32 -0.5, %v8219_v38  ;;  %v5471_v32 = vand.u32 2147483647, %v8219_v38 }
 0x740   : > { %v11954_v58 = vadd.f32 %v5273_v17, %v11864_v56  ;;  %v5275_v53 = vpop.f32.mrb[78].mxu1  ;;  %8224 = vlog2.f32 %v5456_v62  ;;  %v8221_v3 = vpop.eup %8220  ;;  %v5460_v0 = vadd.f32 1.0, %v5459_v47  ;;  %vm11983_vm8 = vcmp.lt.f32.partialorder %v5462_v7, 0.0004427343 }
 0x741   : > { %v5344_v21 = vmul.f32 1.442695, %v11951_v48  ;;  %v11958_v31 = vadd.f32 %v5275_v53, %v11861_v50  ;;  %v5277_v42 = vpop.f32.mrb[79].mxu1  ;;  %8226 = vlog2.f32 %v5465_v23  ;;  %v8223_v20 = vpop.eup %8222  ;;  %v5483_v61 = vadd.f32 1.0, %v8221_v3 }
 0x742   : > { %v5346_v39 = vmul.f32 1.442695, %v11954_v58  ;;  %v11962_v49 = vadd.f32 %v5277_v42, %v11864_v56  ;;  %v5474_v41 = vadd.f32 1.0, %v8223_v20  ;;  %v5486_v43 = vmul.f32 -0.5, %v8221_v3 }
 0x743   : > { %8228 = vpow2.f32 %v5344_v21  ;;  %v5348_v57 = vmul.f32 1.442695, %v11958_v31  ;;  %v5477_v45 = vmul.f32 -0.5, %v8223_v20  ;;  %v5469_v30 = vadd.f32 1.0, %v5468_v18 }
 0x744   : > { %8230 = vpow2.f32 %v5346_v39  ;;  %v5350_v11 = vmul.f32 1.442695, %v11962_v49  ;;  %v5487_v5 = vadd.f32 1.0, %v5486_v43  ;;  %v5489_v29 = vand.u32 2147483647, %v8221_v3 }
 0x745   : > { %8232 = vpow2.f32 %v5348_v57  ;;  %v5478_v37 = vadd.f32 1.0, %v5477_v45  ;;  %v5470_v25 = vmul.f32 %v8219_v38, %v5469_v30  ;;  %vm11979_vm7 = vcmp.lt.f32.partialorder %v5471_v32, 0.0004427343 }
 0x746   : > { %8234 = vpow2.f32 %v5350_v11  ;;  %v5461_v63 = vmul.f32 %v8217_v13, %v5460_v0  ;;  %v5480_v15 = vand.u32 2147483647, %v8223_v20  ;;  %v5488_v9 = vmul.f32 %v8221_v3, %v5487_v5 }
 0x747   : > { %8236 = vlog2.f32 %v5483_v61  ;;  %vm5490_vm9 = vcmp.lt.f32.partialorder %v5489_v29, 0.0004427343  ;;  %v5479_v36 = vmul.f32 %v8223_v20, %v5478_v37  ;;  %vm5685_vm12 = vcmp.gt.f32.partialorder %v11954_v58, 20.0 }
 0x748   : > { %8238 = vlog2.f32 %v5474_v41  ;;  %vm5481_vm10 = vcmp.lt.f32.partialorder %v5480_v15, 0.0004427343  ;;  %vm5687_vm1 = vcmp.gt.f32.partialorder %v11962_v49, 20.0  ;;  %vm5686_vm0 = vcmp.gt.f32.partialorder %v11958_v31, 20.0 }
 0x749   : > { %vm5684_vm2 = vcmp.gt.f32.partialorder %v11951_v48, 20.0 }
 0x74a   : > { %v8225_v8 = vpop.eup %8224 }
 0x74b   : > { %v8227_v26 = vpop.eup %8226  ;;  %v5458_v35 = vmul.f32 0.6931472, %v8225_v8 }
 0x74c   : > { %v5467_v60 = vmul.f32 0.6931472, %v8227_v26 }
 0x74d   : > { %v11966_v10 = vpop.eup %8228  ;;  %v5464_v44 = vsel %vm11983_vm8, %v5461_v63, %v5458_v35 }
 0x74e   : > { %v11969_v55 = vpop.eup %8230  ;;  %v5492_v12 = vadd.f32 1.0, %v11966_v10  ;;  %v5473_v2 = vsel %vm11979_vm7, %v5470_v25, %v5467_v60  ;;  %v5495_v7 = vmul.f32 -0.5, %v11966_v10  ;;  %v5498_v63 = vand.u32 2147483647, %v11966_v10 }
 0x74f   : > { %v11973_v6 = vpop.eup %8232  ;;  %v5501_v16 = vadd.f32 1.0, %v11969_v55  ;;  %v5504_v14 = vmul.f32 -0.5, %v11969_v55  ;;  %v5713_v17 = vsel %vm5681_vm3, %v11938_v33, %v5473_v2  ;;  %v5712_v33 = vsel %vm5680_vm4, %v11935_v52, %v5464_v44 }
 0x750   : > { %v11977_v1 = vpop.eup %8234  ;;  %v5510_v40 = vadd.f32 1.0, %v11973_v6  ;;  %v5513_v47 = vmul.f32 -0.5, %v11973_v6  ;;  %v5507_v52 = vand.u32 2147483647, %v11969_v55  ;;  %v5516_v22 = vand.u32 2147483647, %v11973_v6 }
 0x751   : > { %v8237_v19 = vpop.eup %8236  ;;  %8240 = vlog2.f32 %v5501_v16  ;;  %v5519_v54 = vadd.f32 1.0, %v11977_v1  ;;  %v5522_v53 = vmul.f32 -0.5, %v11977_v1  ;;  %v5505_v20 = vadd.f32 1.0, %v5504_v14 }
 0x752   : > { %v5485_v24 = vmul.f32 0.6931472, %v8237_v19  ;;  %v8239_v4 = vpop.eup %8238  ;;  %v5525_v32 = vand.u32 2147483647, %v11977_v1  ;;  %v5514_v5 = vadd.f32 1.0, %v5513_v47 }
 0x753   : > { %8242 = vlog2.f32 %v5519_v54  ;;  %v5476_v13 = vmul.f32 0.6931472, %v8239_v4  ;;  %v5523_v45 = vadd.f32 1.0, %v5522_v53  ;;  %v5506_v60 = vmul.f32 %v11969_v55, %v5505_v20 }
 0x754   : > { %v5491_v46 = vsel %vm5490_vm9, %v5488_v9, %v5485_v24  ;;  %8244 = vlog2.f32 %v5492_v12  ;;  %vm12029_vm11 = vcmp.lt.f32.partialorder %v5507_v52, 0.0004427343  ;;  %vm5526_vm13 = vcmp.lt.f32.partialorder %v5525_v32, 0.0004427343 }
 0x755   : > { %v5715_v62 = vsel %vm5683_vm6, %v11946_v28, %v5491_v46  ;;  %v5482_v3 = vsel %vm5481_vm10, %v5479_v36, %v5476_v13  ;;  %8246 = vlog2.f32 %v5510_v40  ;;  %v5524_v27 = vmul.f32 %v11977_v1, %v5523_v45 }
 0x756   : > { %v5741_v42 = vpack.c.bf16 %v5715_v62, %v5713_v17  ;;  %v5714_v28 = vsel %vm5682_vm5, %v11942_v51, %v5482_v3  ;;  %v5496_v55 = vadd.f32 1.0, %v5495_v7  ;;  %v5515_v15 = vmul.f32 %v11973_v6, %v5514_v5 }
 0x757   : > { %v5740_v18 = vpack.c.bf16 %v5714_v28, %v5712_v33  ;;  %vm12046_vm14 = vcmp.lt.f32.partialorder %v5516_v22, 0.0004427343  ;;  %vm12057_vm15 = vcmp.lt.f32.partialorder %v5498_v63, 0.0004427343 }
 0x758   : > { %v5281_v38 = vpop.f32.mrb[80].mxu1  ;;  %6010 = vmatprep.mubr.bf16.mxu0 %v5741_v42  ;;  %v5497_v13 = vmul.f32 %v11966_v10, %v5496_v55 }
 0x759   : > { %v12003_v23 = vadd.f32 %v5281_v38, %v11861_v50  ;;  %v5283_v21 = vpop.f32.mrb[81].mxu1  ;;  %6011 = vmatmul.mubr.bf16.gmra.mrb[136].mxu0 %v5740_v18 }
 0x75a   : > { %v12006_v39 = vadd.f32 %v5283_v21, %v11864_v56  ;;  %v5285_v57 = vpop.f32.mrb[82].mxu1 }
 0x75b   : > { %v5352_v11 = vmul.f32 1.442695, %v12003_v23  ;;  %v12016_v61 = vadd.f32 %v5285_v57, %v11861_v50  ;;  %v5287_v41 = vpop.f32.mrb[83].mxu1  ;;  %v8241_v26 = vpop.eup %8240  ;;  %vm5688_vm3 = vcmp.gt.f32.partialorder %v12003_v23, 20.0 }
 0x75c   : > { %v5354_v43 = vmul.f32 1.442695, %v12006_v39  ;;  %v12021_v8 = vadd.f32 %v5287_v41, %v11864_v56  ;;  %v5503_v0 = vmul.f32 0.6931472, %v8241_v26  ;;  %vm5689_vm9 = vcmp.gt.f32.partialorder %v12006_v39, 20.0 }
 0x75d   : > { %8248 = vpow2.f32 %v5352_v11  ;;  %v5356_v51 = vmul.f32 1.442695, %v12016_v61  ;;  %v8243_v29 = vpop.eup %8242  ;;  %vm5690_vm5 = vcmp.gt.f32.partialorder %v12016_v61, 20.0 }
 0x75e   : > { %8250 = vpow2.f32 %v5354_v43  ;;  %v5358_v30 = vmul.f32 1.442695, %v12021_v8  ;;  %v8245_v37 = vpop.eup %8244  ;;  %v5509_v16 = vsel %vm12029_vm11, %v5506_v60, %v5503_v0  ;;  %v5521_v25 = vmul.f32 0.6931472, %v8243_v29 }
 0x75f   : > { %8252 = vpow2.f32 %v5356_v51  ;;  %v8247_v12 = vpop.eup %8246  ;;  %v5717_v2 = vsel %vm5685_vm12, %v11954_v58, %v5509_v16  ;;  %v5494_v24 = vmul.f32 0.6931472, %v8245_v37  ;;  %vm5691_vm10 = vcmp.gt.f32.partialorder %v12021_v8, 20.0 }
 0x760   : > { %8254 = vpow2.f32 %v5358_v30  ;;  %v5527_v19 = vsel %vm5526_vm13, %v5524_v27, %v5521_v25  ;;  %v5512_v9 = vmul.f32 0.6931472, %v8247_v12 }
 0x761   : > { %v5719_v1 = vsel %vm5687_vm1, %v11962_v49, %v5527_v19  ;;  %v5500_v10 = vsel %vm12057_vm15, %v5497_v13, %v5494_v24 }
 0x762   : > { %v5291_v54 = vpop.f32.mrb[84].mxu1  ;;  %v5743_v36 = vpack.c.bf16 %v5719_v1, %v5717_v2  ;;  %v5518_v58 = vsel %vm12046_vm14, %v5515_v15, %v5512_v9  ;;  %v5716_v20 = vsel %vm5684_vm2, %v11951_v48, %v5500_v10 }
 0x763   : > { %v12044_v4 = vadd.f32 %v5291_v54, %v11861_v50  ;;  %v5293_v44 = vpop.f32.mrb[85].mxu1  ;;  %v5718_v3 = vsel %vm5686_vm0, %v11958_v31, %v5518_v58 }
 0x764   : > { %v12051_v46 = vadd.f32 %v5293_v44, %v11864_v56  ;;  %v5295_v6 = vpop.f32.mrb[86].mxu1  ;;  %6020 = vmatprep.mubr.bf16.mxu0 %v5743_v36  ;;  %v5742_v18 = vpack.c.bf16 %v5718_v3, %v5716_v20 }
 0x765   : > { %v5360_v40 = vmul.f32 1.442695, %v12044_v4  ;;  %v5297_v38 = vpop.f32.mrb[87].mxu1  ;;  %v12076_v41 = vadd.f32 %v5295_v6, %v11861_v50  ;;  %vm5692_vm12 = vcmp.gt.f32.partialorder %v12044_v4, 20.0 }
 0x766   : > { %v5362_v21 = vmul.f32 1.442695, %v12051_v46  ;;  %v12070_v28 = vadd.f32 %v5297_v38, %v11864_v56  ;;  %6021 = vmatmul.mubr.bf16.gmra.mrb[140].mxu0 %v5742_v18  ;;  %vm5693_vm11 = vcmp.gt.f32.partialorder %v12051_v46, 20.0 }
 0x767   : > { %v8249_v49 = vpop.eup %8248  ;;  %8256 = vpow2.f32 %v5360_v40  ;;  %v5364_v32 = vmul.f32 1.442695, %v12076_v41  ;;  %vm5694_vm15 = vcmp.gt.f32.partialorder %v12076_v41, 20.0 }
 0x768   : > { %v12061_v62 = vpop.eup %8250  ;;  %v5528_v53 = vadd.f32 1.0, %v8249_v49  ;;  %v5531_v33 = vmul.f32 -0.5, %v8249_v49  ;;  %v5366_v43 = vmul.f32 1.442695, %v12070_v28  ;;  %v5534_v45 = vand.u32 2147483647, %v8249_v49 }
 0x769   : > { %v8253_v42 = vpop.eup %8252  ;;  %v5537_v31 = vadd.f32 1.0, %v12061_v62  ;;  %v5540_v16 = vmul.f32 -0.5, %v12061_v62  ;;  %v5543_v24 = vand.u32 2147483647, %v12061_v62  ;;  %vm5695_vm13 = vcmp.gt.f32.partialorder %v12070_v28, 20.0 }
 0x76a   : > { %8258 = vlog2.f32 %v5528_v53  ;;  %v5546_v57 = vadd.f32 1.0, %v8253_v42  ;;  %v12073_v11 = vpop.eup %8254  ;;  %v5549_v47 = vmul.f32 -0.5, %v8253_v42  ;;  %v5532_v51 = vadd.f32 1.0, %v5531_v33 }
 0x76b   : > { %8260 = vpow2.f32 %v5362_v21  ;;  %v5301_v52 = vpop.f32.mrb[88].mxu1  ;;  %v5555_v48 = vadd.f32 1.0, %v12073_v11  ;;  %v5552_v30 = vand.u32 2147483647, %v8253_v42  ;;  %vm12096_vm4 = vcmp.lt.f32.partialorder %v5534_v45, 0.0004427343 }
 0x76c   : > { %8262 = vlog2.f32 %v5546_v57  ;;  %v5303_v26 = vpop.f32.mrb[89].mxu1  ;;  %v5550_v60 = vadd.f32 1.0, %v5549_v47  ;;  %v12087_v29 = vadd.f32 %v5301_v52, %v11861_v50  ;;  %v5533_v27 = vmul.f32 %v8249_v49, %v5532_v51 }
 0x76d   : > { %8264 = vlog2.f32 %v5537_v31  ;;  %v12083_v7 = vadd.f32 %v5303_v26, %v11864_v56  ;;  %v5305_v0 = vpop.f32.mrb[90].mxu1  ;;  %vm12104_vm6 = vcmp.lt.f32.partialorder %v5552_v30, 0.0004427343  ;;  %v5558_v15 = vmul.f32 -0.5, %v12073_v11 }
 0x76e   : > { %8266 = vpow2.f32 %v5366_v43  ;;  %v5307_v5 = vpop.f32.mrb[91].mxu1  ;;  %v12102_v55 = vadd.f32 %v5305_v0, %v11861_v50  ;;  %v5551_v1 = vmul.f32 %v8253_v42, %v5550_v60  ;;  %v5368_v36 = vmul.f32 1.442695, %v12087_v29 }
 0x76f   : > { %8268 = vlog2.f32 %v5555_v48  ;;  %v5370_v35 = vmul.f32 1.442695, %v12083_v7  ;;  %v12091_v37 = vadd.f32 %v5307_v5, %v11864_v56  ;;  %v5541_v14 = vadd.f32 1.0, %v5540_v16 }
 0x770   : > { %8270 = vpow2.f32 %v5364_v32  ;;  %v5372_v49 = vmul.f32 1.442695, %v12102_v55  ;;  %v5559_v21 = vadd.f32 1.0, %v5558_v15  ;;  %v5561_v10 = vand.u32 2147483647, %v12073_v11 }
 0x771   : > { %v12094_v25 = vpop.eup %8256  ;;  %v5374_v63 = vmul.f32 1.442695, %v12091_v37  ;;  %8272 = vpow2.f32 %v5370_v35  ;;  %v5542_v52 = vmul.f32 %v12061_v62, %v5541_v14  ;;  %vm12142_vm7 = vcmp.lt.f32.partialorder %v5543_v24, 0.0004427343 }
 0x772   : > { %v5564_v9 = vadd.f32 1.0, %v12094_v25  ;;  %vm5562_vm8 = vcmp.lt.f32.partialorder %v5561_v10, 0.0004427343 }
 0x773   : > { %8274 = vpow2.f32 %v5374_v63 }
 0x774   : > { %v8259_v12 = vpop.eup %8258  ;;  %v5311_v40 = vpop.f32.mrb[92].mxu1 }
 0x775   : > { %v12110_v54 = vpop.eup %8260  ;;  %v5530_v2 = vmul.f32 0.6931472, %v8259_v12  ;;  %v12120_v17 = vadd.f32 %v5311_v40, %v11861_v50  ;;  %v5313_v53 = vpop.f32.mrb[93].mxu1 }
 0x776   : > { %v8263_v44 = vpop.eup %8262  ;;  %v5573_v6 = vadd.f32 1.0, %v12110_v54  ;;  %v12126_v3 = vadd.f32 %v5313_v53, %v11864_v56  ;;  %v5315_v57 = vpop.f32.mrb[94].mxu1  ;;  %v5576_v60 = vmul.f32 -0.5, %v12110_v54 }
 0x777   : > { %v5536_v13 = vsel %vm12096_vm4, %v5533_v27, %v5530_v2  ;;  %v5548_v58 = vmul.f32 0.6931472, %v8263_v44  ;;  %v8265_v38 = vpop.eup %8264  ;;  %v5376_v47 = vmul.f32 1.442695, %v12120_v17  ;;  %v5317_v43 = vpop.f32.mrb[95].mxu1  ;;  %v12148_v30 = vadd.f32 %v5315_v57, %v11861_v50 }
 0x778   : > { %8276 = vlog2.f32 %v5573_v6  ;;  %v5539_v33 = vmul.f32 0.6931472, %v8265_v38  ;;  %v12128_v20 = vpop.eup %8266  ;;  %v5720_v18 = vsel %vm5688_vm3, %v12003_v23, %v5536_v13  ;;  %v5378_v26 = vmul.f32 1.442695, %v12126_v3 }
 0x779   : > { %v5554_v42 = vsel %vm12104_vm6, %v5551_v1, %v5548_v58  ;;  %8278 = vlog2.f32 %v5564_v9  ;;  %v8269_v51 = vpop.eup %8268  ;;  %v12140_v48 = vadd.f32 %v5317_v43, %v11864_v56  ;;  %v5591_v5 = vadd.f32 1.0, %v12128_v20 }
 0x77a   : > { %v5722_v31 = vsel %vm5690_vm5, %v12016_v61, %v5554_v42  ;;  %8280 = vpow2.f32 %v5368_v36  ;;  %v5560_v61 = vmul.f32 %v12073_v11, %v5559_v21  ;;  %v5545_v62 = vsel %vm12142_vm7, %v5542_v52, %v5539_v33  ;;  %v12152_v0 = vpop.eup %8270 }
 0x77b   : > { %v5744_v45 = vpack.c.bf16 %v5722_v31, %v5720_v18  ;;  %8282 = vpow2.f32 %v5372_v49  ;;  %v5557_v32 = vmul.f32 0.6931472, %v8269_v51  ;;  %v5382_v56 = vmul.f32 1.442695, %v12140_v48  ;;  %v12159_v11 = vpop.eup %8272 }
 0x77c   : > { %8284 = vpow2.f32 %v5376_v47  ;;  %v5721_v35 = vsel %vm5689_vm9, %v12006_v39, %v5545_v62  ;;  %v5567_v27 = vmul.f32 -0.5, %v12094_v25  ;;  %v5380_v12 = vmul.f32 1.442695, %v12148_v30 }
 0x77d   : > { %8286 = vpow2.f32 %v5378_v26  ;;  %v5563_v50 = vsel %vm5562_vm8, %v5560_v61, %v5557_v32  ;;  %v12164_v22 = vpop.eup %8274  ;;  %v5594_v63 = vmul.f32 -0.5, %v12128_v20  ;;  %v5582_v15 = vadd.f32 1.0, %v12152_v0 }
 0x77e   : > { %v5723_v16 = vsel %vm5691_vm10, %v12021_v8, %v5563_v50  ;;  %8288 = vlog2.f32 %v5591_v5  ;;  %v5577_v1 = vadd.f32 1.0, %v5576_v60  ;;  %v5579_v39 = vand.u32 2147483647, %v12110_v54 }
 0x77f   : > { %v5745_v19 = vpack.c.bf16 %v5723_v16, %v5721_v35  ;;  %8290 = vpow2.f32 %v5382_v56  ;;  %v5597_v8 = vand.u32 2147483647, %v12128_v20  ;;  %v5568_v44 = vadd.f32 1.0, %v5567_v27 }
 0x780   : > { %8292 = vlog2.f32 %v5582_v15  ;;  %v5585_v36 = vmul.f32 -0.5, %v12152_v0  ;;  %v5609_v14 = vadd.f32 1.0, %v12159_v11  ;;  %v5595_v13 = vadd.f32 1.0, %v5594_v63 }
 0x781   : > { %6030 = vmatprep.mubr.bf16.mxu1 %v5745_v19  ;;  %8294 = vpow2.f32 %v5380_v12  ;;  %v5570_v58 = vand.u32 2147483647, %v12094_v25  ;;  %v5627_v49 = vadd.f32 1.0, %v12164_v22  ;;  %v5578_v38 = vmul.f32 %v12110_v54, %v5577_v1 }
 0x782   : > { %v8277_v2 = vpop.eup %8276  ;;  %6031 = vmatmul.mubr.bf16.vlgmr.msra.gmra.mrb[96].mxu1 %v5744_v45  ;;  %v5588_v21 = vand.u32 2147483647, %v12152_v0  ;;  %8296 = vlog2.f32 %v5609_v14  ;;  %vm12184_vm1 = vcmp.lt.f32.partialorder %v5579_v39, 0.0004427343  ;;  %vm12188_vm14 = vcmp.lt.f32.partialorder %v5597_v8, 0.0004427343 }
 0x783   : > { %v8279_v24 = vpop.eup %8278  ;;  %v5575_v9 = vmul.f32 0.6931472, %v8277_v2  ;;  %v5612_v57 = vmul.f32 -0.5, %v12159_v11  ;;  %8298 = vlog2.f32 %v5627_v49  ;;  %v5569_v18 = vmul.f32 %v12094_v25, %v5568_v44 }
 0x784   : > { %v12175_v6 = vpop.eup %8280  ;;  %v5566_v53 = vmul.f32 0.6931472, %v8279_v24  ;;  %v5586_v31 = vadd.f32 1.0, %v5585_v36  ;;  %v5596_v52 = vmul.f32 %v12128_v20, %v5595_v13  ;;  %vm12203_vm0 = vcmp.lt.f32.partialorder %v5570_v58, 0.0004427343 }
 0x785   : > { %v12180_v40 = vpop.eup %8282  ;;  %v5581_v54 = vsel %vm12184_vm1, %v5578_v38, %v5575_v9  ;;  %v5600_v47 = vadd.f32 1.0, %v12175_v6  ;;  %v5615_v45 = vand.u32 2147483647, %v12159_v11  ;;  %vm12211_vm2 = vcmp.lt.f32.partialorder %v5588_v21, 0.0004427343 }
 0x786   : > { %v12193_v33 = vpop.eup %8284  ;;  %v5618_v26 = vadd.f32 1.0, %v12180_v40  ;;  %v5572_v61 = vsel %vm12203_vm0, %v5569_v18, %v5566_v53  ;;  %v5630_v62 = vmul.f32 -0.5, %v12164_v22  ;;  %v5725_v32 = vsel %vm5693_vm11, %v12051_v46, %v5581_v54 }
 0x787   : > { %v12200_v43 = vpop.eup %8286  ;;  %8300 = vlog2.f32 %v5600_v47  ;;  %v5613_v56 = vadd.f32 1.0, %v5612_v57  ;;  %vm5697_vm3 = vcmp.gt.f32.partialorder %v12083_v7, 20.0  ;;  %vm5699_vm4 = vcmp.gt.f32.partialorder %v12091_v37, 20.0 }
 0x788   : > { %v8289_v23 = vpop.eup %8288  ;;  %8302 = vlog2.f32 %v5618_v26  ;;  %v5587_v5 = vmul.f32 %v12152_v0, %v5586_v31  ;;  %v5633_v50 = vand.u32 2147483647, %v12164_v22  ;;  %v5603_v35 = vmul.f32 -0.5, %v12175_v6 }
 0x789   : > { %v5593_v20 = vmul.f32 0.6931472, %v8289_v23  ;;  %v12219_v60 = vpop.eup %8290  ;;  %v5645_v16 = vadd.f32 1.0, %v12200_v43  ;;  %v5724_v12 = vsel %vm5692_vm12, %v12044_v4, %v5572_v61  ;;  %vm12232_vm5 = vcmp.lt.f32.partialorder %v5615_v45, 0.0004427343 }
 0x78a   : > { %v8293_v27 = vpop.eup %8292  ;;  %v5621_v0 = vmul.f32 -0.5, %v12180_v40  ;;  %v5631_v2 = vadd.f32 1.0, %v5630_v62  ;;  %v5614_v39 = vmul.f32 %v12159_v11, %v5613_v56  ;;  %v5606_v4 = vand.u32 2147483647, %v12175_v6 }
 0x78b   : > { %v5599_v46 = vsel %vm12188_vm14, %v5596_v52, %v5593_v20  ;;  %v5584_v15 = vmul.f32 0.6931472, %v8293_v27  ;;  %8304 = vlog2.f32 %v5645_v16  ;;  %v12240_v1 = vpop.eup %8294  ;;  %v5663_v8 = vadd.f32 1.0, %v12219_v60 }
 0x78c   : > { %v5727_v63 = vsel %vm5695_vm13, %v12070_v28, %v5599_v46  ;;  %v8297_v9 = vpop.eup %8296  ;;  %vm5696_vm6 = vcmp.gt.f32.partialorder %v12087_v29, 20.0  ;;  %vm12248_vm7 = vcmp.lt.f32.partialorder %v5633_v50, 0.0004427343  ;;  %v5604_v36 = vadd.f32 1.0, %v5603_v35 }
 0x78d   : > { %v5747_v24 = vpack.c.bf16 %v5727_v63, %v5725_v32  ;;  %v5590_v44 = vsel %vm12211_vm2, %v5587_v5, %v5584_v15  ;;  %v5636_v14 = vadd.f32 1.0, %v12193_v33  ;;  %v8299_v13 = vpop.eup %8298  ;;  %v5611_v58 = vmul.f32 0.6931472, %v8297_v9 }
 0x78e   : > { %v5726_v11 = vsel %vm5694_vm15, %v12076_v41, %v5590_v44  ;;  %v5622_v49 = vadd.f32 1.0, %v5621_v0  ;;  %8306 = vlog2.f32 %v5663_v8  ;;  %v5629_v53 = vmul.f32 0.6931472, %v8299_v13 }
 0x78f   : > { %6040 = vmatprep.mubr.bf16.mxu1 %v5747_v24  ;;  %v5746_v38 = vpack.c.bf16 %v5726_v11, %v5724_v12  ;;  %v5632_v21 = vmul.f32 %v12164_v22, %v5631_v2  ;;  %v5648_v10 = vmul.f32 -0.5, %v12200_v43  ;;  %v5617_v42 = vsel %vm12232_vm5, %v5614_v39, %v5611_v58 }
 0x790   : > { %vm12260_vm8 = vcmp.lt.f32.partialorder %v5606_v4, 0.0004427343  ;;  %v5624_v54 = vand.u32 2147483647, %v12180_v40  ;;  %8308 = vlog2.f32 %v5636_v14  ;;  %v5605_v31 = vmul.f32 %v12175_v6, %v5604_v36 }
 0x791   : > { %v8301_v41 = vpop.eup %8300  ;;  %6041 = vmatmul.mubr.bf16.gmra.mrb[100].mxu1 %v5746_v38  ;;  %v5635_v18 = vsel %vm12248_vm7, %v5632_v21, %v5629_v53  ;;  %v5666_v22 = vmul.f32 -0.5, %v12219_v60  ;;  %v5654_v47 = vadd.f32 1.0, %v12240_v1  ;;  %v5729_v51 = vsel %vm5697_vm3, %v12083_v7, %v5617_v42 }
 0x792   : > { %v8303_v52 = vpop.eup %8302  ;;  %v5731_v45 = vsel %vm5699_vm4, %v12091_v37, %v5635_v18  ;;  %v5602_v26 = vmul.f32 0.6931472, %v8301_v41  ;;  %v5623_v23 = vmul.f32 %v12180_v40, %v5622_v49  ;;  %v5649_v62 = vadd.f32 1.0, %v5648_v10 }
 0x793   : > { %v5749_v61 = vpack.c.bf16 %v5731_v45, %v5729_v51  ;;  %v5620_v25 = vmul.f32 0.6931472, %v8303_v52  ;;  %8310 = vlog2.f32 %v5654_v47  ;;  %vm5625_vm9 = vcmp.lt.f32.partialorder %v5624_v54, 0.0004427343 }
 0x794   : > { %v5608_v6 = vsel %vm12260_vm8, %v5605_v31, %v5602_v26  ;;  %v5651_v20 = vand.u32 2147483647, %v12200_v43  ;;  %v5639_v32 = vmul.f32 -0.5, %v12193_v33  ;;  %vm5698_vm10 = vcmp.gt.f32.partialorder %v12102_v55, 20.0 }
 0x795   : > { %v8305_v7 = vpop.eup %8304  ;;  %6050 = vmatprep.mubr.bf16.mxu1 %v5749_v61  ;;  %v5626_v37 = vsel %vm5625_vm9, %v5623_v23, %v5620_v25  ;;  %v5667_v56 = vadd.f32 1.0, %v5666_v22  ;;  %v5669_v40 = vand.u32 2147483647, %v12219_v60  ;;  %v5728_v5 = vsel %vm5696_vm6, %v12087_v29, %v5608_v6  ;;  %v6487_v61 = vld [vmem:[%s12850_s7] sm:$0x3] }
 0x796   : > { %v5730_v50 = vsel %vm5698_vm10, %v12102_v55, %v5626_v37  ;;  %v5647_v35 = vmul.f32 0.6931472, %v8305_v7  ;;  %v5657_v16 = vmul.f32 -0.5, %v12240_v1  ;;  %v5650_v46 = vmul.f32 %v12200_v43, %v5649_v62 }
 0x797   : > { %v5748_v27 = vpack.c.bf16 %v5730_v50, %v5728_v5  ;;  %vm12289_vm11 = vcmp.lt.f32.partialorder %v5651_v20, 0.0004427343  ;;  %v5640_v0 = vadd.f32 1.0, %v5639_v32  ;;  %v5668_v29 = vmul.f32 %v12219_v60, %v5667_v56 }
 0x798   : > { %v8307_v12 = vpop.eup %8306  ;;  %v5653_v63 = vsel %vm12289_vm11, %v5650_v46, %v5647_v35  ;;  %v5642_v55 = vand.u32 2147483647, %v12193_v33  ;;  %vm5701_vm12 = vcmp.gt.f32.partialorder %v12126_v3, 20.0  ;;  %vm5670_vm13 = vcmp.lt.f32.partialorder %v5669_v40, 0.0004427343 }
 0x799   : > { %6051 = vmatmul.mubr.bf16.gmra.mrb[104].mxu1 %v5748_v27  ;;  %v5665_v15 = vmul.f32 0.6931472, %v8307_v12  ;;  %v5658_v43 = vadd.f32 1.0, %v5657_v16  ;;  %vm5703_vm1 = vcmp.gt.f32.partialorder %v12140_v48, 20.0  ;;  %v5660_v4 = vand.u32 2147483647, %v12240_v1 }
 0x79a   : > { %v8309_v2 = vpop.eup %8308  ;;  %v5733_v8 = vsel %vm5701_vm12, %v12126_v3, %v5653_v63  ;;  %v5641_v44 = vmul.f32 %v12193_v33, %v5640_v0  ;;  %vm5643_vm14 = vcmp.lt.f32.partialorder %v5642_v55, 0.0004427343  ;;  %vm5700_vm0 = vcmp.gt.f32.partialorder %v12120_v17, 20.0  ;;  %v6932_v33 = vld [vmem:[%s12847_s4 + $0x5] ss:$8 sm:$0x3] }
 0x79b   : > { %v5671_v24 = vsel %vm5670_vm13, %v5668_v29, %v5665_v15  ;;  %v5638_v39 = vmul.f32 0.6931472, %v8309_v2  ;;  %v5659_v13 = vmul.f32 %v12240_v1, %v5658_v43  ;;  %vm5661_vm15 = vcmp.lt.f32.partialorder %v5660_v4, 0.0004427343 }
 0x79c   : > { %v5735_v9 = vsel %vm5703_vm1, %v12140_v48, %v5671_v24  ;;  %vm5702_vm2 = vcmp.gt.f32.partialorder %v12148_v30, 20.0  ;;  %v12312_v49 = vrot.slane %v6932_v33, %v12914_v34  ;;  %v12315_v1 = vrot.slane %v6932_v33, %v12915_v59 }
 0x79d   : > { %v8311_v60 = vpop.eup %8310  ;;  %v5751_v28 = vpack.c.bf16 %v5735_v9, %v5733_v8  ;;  %v5644_v36 = vsel %vm5643_vm14, %v5641_v44, %v5638_v39  ;;  %v12346_v40 = vrot.slane %v6487_v61, %v12914_v34  ;;  %v12353_v27 = vrot.slane %v6487_v61, %v12915_v59 }
 0x79e   : > { %v5656_v14 = vmul.f32 0.6931472, %v8311_v60  ;;  %v5732_v3 = vsel %vm5700_vm0, %v12120_v17, %v5644_v36 }
 0x79f   : > { %6060 = vmatprep.mubr.bf16.mxu1 %v5751_v28 }
 0x7a0   : > { %v5662_v11 = vsel %vm5661_vm15, %v5659_v13, %v5656_v14 }
 0x7a1   : > { %v5734_v48 = vsel %vm5702_vm2, %v12148_v30, %v5662_v11 }
 0x7a2   : > { %v5750_v58 = vpack.c.bf16 %v5734_v48, %v5732_v3 }
 0x7a4   : > { %6061 = vmatmul.mubr.bf16.gmra.mrb[108].mxu1 %v5750_v58 }
 0x7ea   : > { %v5992_v38 = vpop.f32.mrb[128].mxu0 }
 0x7eb   : > { %v12318_v53 = vadd.f32 %v5992_v38, %v12312_v49  ;;  %v5994_v21 = vpop.f32.mrb[129].mxu0 }
 0x7ec   : > { %v12321_v17 = vadd.f32 %v5994_v21, %v12315_v1  ;;  %v5996_v30 = vpop.f32.mrb[130].mxu0 }
 0x7ed   : > { %v6071_v10 = vmul.f32 1.442695, %v12318_v53  ;;  %v12325_v42 = vadd.f32 %v5996_v30, %v12312_v49  ;;  %v5998_v57 = vpop.f32.mrb[131].mxu0  ;;  %vm6423_vm3 = vcmp.gt.f32.partialorder %v12318_v53, 20.0 }
 0x7ee   : > { %v6073_v54 = vmul.f32 1.442695, %v12321_v17  ;;  %v12329_v41 = vadd.f32 %v5998_v57, %v12315_v1  ;;  %vm6424_vm4 = vcmp.gt.f32.partialorder %v12321_v17, 20.0 }
 0x7ef   : > { %8312 = vpow2.f32 %v6071_v10  ;;  %v6075_v18 = vmul.f32 1.442695, %v12325_v42  ;;  %vm6425_vm5 = vcmp.gt.f32.partialorder %v12325_v42, 20.0 }
 0x7f0   : > { %8314 = vpow2.f32 %v6073_v54  ;;  %v6077_v31 = vmul.f32 1.442695, %v12329_v41  ;;  %vm6426_vm10 = vcmp.gt.f32.partialorder %v12329_v41, 20.0 }
 0x7f1   : > { %8316 = vpow2.f32 %v6075_v18 }
 0x7f2   : > { %8318 = vpow2.f32 %v6077_v31 }
 0x7f9   : > { %v8313_v22 = vpop.eup %8312 }
 0x7fa   : > { %v8315_v47 = vpop.eup %8314  ;;  %v6135_v52 = vadd.f32 1.0, %v8313_v22  ;;  %v6138_v6 = vmul.f32 -0.5, %v8313_v22  ;;  %v6141_v63 = vand.u32 2147483647, %v8313_v22 }
 0x7fb   : > { %v8317_v51 = vpop.eup %8316  ;;  %v6144_v45 = vadd.f32 1.0, %v8315_v47  ;;  %v6147_v7 = vmul.f32 -0.5, %v8315_v47  ;;  %v6150_v59 = vand.u32 2147483647, %v8315_v47 }
 0x7fc   : > { %v12333_v26 = vpop.eup %8318  ;;  %8320 = vlog2.f32 %v6135_v52  ;;  %v6153_v23 = vadd.f32 1.0, %v8317_v51  ;;  %v6156_v5 = vmul.f32 -0.5, %v8317_v51  ;;  %v6139_v34 = vadd.f32 1.0, %v6138_v6 }
 0x7fd   : > { %8322 = vlog2.f32 %v6144_v45  ;;  %v6162_v25 = vadd.f32 1.0, %v12333_v26  ;;  %v6165_v46 = vmul.f32 -0.5, %v12333_v26  ;;  %v6148_v15 = vadd.f32 1.0, %v6147_v7 }
 0x7fe   : > { %8324 = vlog2.f32 %v6153_v23  ;;  %v6157_v55 = vadd.f32 1.0, %v6156_v5  ;;  %v6159_v43 = vand.u32 2147483647, %v8317_v51  ;;  %v6140_v8 = vmul.f32 %v8313_v22, %v6139_v34 }
 0x7ff   : > { %v6002_v62 = vpop.f32.mrb[132].mxu0  ;;  %8326 = vlog2.f32 %v6162_v25  ;;  %v6166_v24 = vadd.f32 1.0, %v6165_v46  ;;  %vm6142_vm6 = vcmp.lt.f32.partialorder %v6141_v63, 0.0004427343  ;;  %v6149_v60 = vmul.f32 %v8315_v47, %v6148_v15 }
 0x800   : > { %v12340_v20 = vadd.f32 %v6002_v62, %v12312_v49  ;;  %v6004_v32 = vpop.f32.mrb[133].mxu0  ;;  %v6168_v28 = vand.u32 2147483647, %v12333_v26  ;;  %vm6151_vm7 = vcmp.lt.f32.partialorder %v6150_v59, 0.0004427343  ;;  %v6158_v13 = vmul.f32 %v8317_v51, %v6157_v55 }
 0x801   : > { %v12343_v37 = vadd.f32 %v6004_v32, %v12315_v1  ;;  %v6006_v56 = vpop.f32.mrb[134].mxu0  ;;  %vm6160_vm8 = vcmp.lt.f32.partialorder %v6159_v43, 0.0004427343  ;;  %v6167_v58 = vmul.f32 %v12333_v26, %v6166_v24 }
 0x802   : > { %v6079_v50 = vmul.f32 1.442695, %v12340_v20  ;;  %v12350_v35 = vadd.f32 %v6006_v56, %v12312_v49  ;;  %v6008_v16 = vpop.f32.mrb[135].mxu0  ;;  %vm6169_vm9 = vcmp.lt.f32.partialorder %v6168_v28, 0.0004427343  ;;  %vm6427_vm11 = vcmp.gt.f32.partialorder %v12340_v20, 20.0 }
 0x803   : > { %v6081_v12 = vmul.f32 1.442695, %v12343_v37  ;;  %v12359_v19 = vadd.f32 %v6008_v16, %v12315_v1  ;;  %vm6428_vm13 = vcmp.gt.f32.partialorder %v12343_v37, 20.0 }
 0x804   : > { %8328 = vpow2.f32 %v6079_v50  ;;  %v6083_v0 = vmul.f32 1.442695, %v12350_v35  ;;  %vm6429_vm15 = vcmp.gt.f32.partialorder %v12350_v35, 20.0 }
 0x805   : > { %8330 = vpow2.f32 %v6081_v12  ;;  %v6085_v29 = vmul.f32 1.442695, %v12359_v19  ;;  %vm6430_vm2 = vcmp.gt.f32.partialorder %v12359_v19, 20.0 }
 0x806   : > { %v8321_v2 = vpop.eup %8320  ;;  %8332 = vpow2.f32 %v6083_v0 }
 0x807   : > { %v8323_v39 = vpop.eup %8322  ;;  %8334 = vpow2.f32 %v6085_v29  ;;  %v6137_v4 = vmul.f32 0.6931472, %v8321_v2 }
 0x808   : > { %v8325_v9 = vpop.eup %8324  ;;  %v6146_v44 = vmul.f32 0.6931472, %v8323_v39 }
 0x809   : > { %v6143_v36 = vsel %vm6142_vm6, %v6140_v8, %v6137_v4  ;;  %v6155_v14 = vmul.f32 0.6931472, %v8325_v9  ;;  %v8327_v11 = vpop.eup %8326 }
 0x80a   : > { %v6152_v3 = vsel %vm6151_vm7, %v6149_v60, %v6146_v44  ;;  %v6455_v48 = vsel %vm6423_vm3, %v12318_v53, %v6143_v36  ;;  %v6164_v30 = vmul.f32 0.6931472, %v8327_v11 }
 0x80b   : > { %v6456_v33 = vsel %vm6424_vm4, %v12321_v17, %v6152_v3  ;;  %v6499_v38 = vmul.f32 %v12346_v40, %v6455_v48  ;;  %v6161_v21 = vsel %vm6160_vm8, %v6158_v13, %v6155_v14 }
 0x80c   : > { %v6500_v10 = vmul.f32 %v12353_v27, %v6456_v33  ;;  %v6457_v57 = vsel %vm6425_vm5, %v12325_v42, %v6161_v21  ;;  %v6170_v53 = vsel %vm6169_vm9, %v6167_v58, %v6164_v30 }
 0x80d   : > { %v6501_v54 = vmul.f32 %v12346_v40, %v6457_v57  ;;  %v6458_v17 = vsel %vm6426_vm10, %v12329_v41, %v6170_v53 }
 0x80e   : > { %v8329_v18 = vpop.eup %8328  ;;  %v6531_v31 = vadd.f32 %v6500_v10, %v6499_v38  ;;  %v6502_v47 = vmul.f32 %v12353_v27, %v6458_v17 }
 0x80f   : > { %v8331_v22 = vpop.eup %8330  ;;  %v6171_v52 = vadd.f32 1.0, %v8329_v18  ;;  %v6174_v25 = vmul.f32 -0.5, %v8329_v18  ;;  %v6177_v7 = vand.u32 2147483647, %v8329_v18 }
 0x810   : > { %v8333_v51 = vpop.eup %8332  ;;  %6532 = vadd.xlane.f32.xlu0 %v6531_v31  ;;  %v6180_v45 = vadd.f32 1.0, %v8331_v22  ;;  %v6534_v23 = vadd.f32 %v6502_v47, %v6501_v54  ;;  %v6183_v62 = vmul.f32 -0.5, %v8331_v22  ;;  %v6186_v5 = vand.u32 2147483647, %v8331_v22 }
 0x811   : > { %v8335_v26 = vpop.eup %8334  ;;  %8336 = vlog2.f32 %v6171_v52  ;;  %v6189_v42 = vadd.f32 1.0, %v8333_v51  ;;  %v6192_v6 = vmul.f32 -0.5, %v8333_v51  ;;  %v6175_v41 = vadd.f32 1.0, %v6174_v25 }
 0x812   : > { %8338 = vlog2.f32 %v6180_v45  ;;  %v6198_v61 = vadd.f32 1.0, %v8335_v26  ;;  %v6201_v32 = vmul.f32 -0.5, %v8335_v26  ;;  %v6184_v56 = vadd.f32 1.0, %v6183_v62 }
 0x813   : > { %8340 = vlog2.f32 %v6189_v42  ;;  %v6195_v50 = vand.u32 2147483647, %v8333_v51  ;;  %v6193_v46 = vadd.f32 1.0, %v6192_v6  ;;  %v6176_v0 = vmul.f32 %v8329_v18, %v6175_v41 }
 0x814   : > { %6535 = vadd.xlane.f32.xlu0 %v6534_v23  ;;  %8342 = vlog2.f32 %v6198_v61  ;;  %v6202_v63 = vadd.f32 1.0, %v6201_v32  ;;  %vm6178_vm12 = vcmp.lt.f32.partialorder %v6177_v7, 0.0004427343  ;;  %v6185_v29 = vmul.f32 %v8331_v22, %v6184_v56 }
 0x815   : > { %v6204_v59 = vand.u32 2147483647, %v8335_v26  ;;  %vm6187_vm1 = vcmp.lt.f32.partialorder %v6186_v5, 0.0004427343  ;;  %vm12384_vm14 = vcmp.lt.f32.partialorder %v6195_v50, 0.0004427343  ;;  %v6194_v9 = vmul.f32 %v8333_v51, %v6193_v46 }
 0x816   : > { %v6203_v36 = vmul.f32 %v8335_v26, %v6202_v63 }
 0x817   : > { %vm6205_vm0 = vcmp.lt.f32.partialorder %v6204_v59, 0.0004427343 }
 0x81b   : > { %v8337_v16 = vpop.eup %8336 }
 0x81c   : > { %v8339_v12 = vpop.eup %8338  ;;  %v6173_v34 = vmul.f32 0.6931472, %v8337_v16 }
 0x81d   : > { %v6182_v15 = vmul.f32 0.6931472, %v8339_v12  ;;  %v8341_v55 = vpop.eup %8340 }
 0x81e   : > { %v6179_v2 = vsel %vm6178_vm12, %v6176_v0, %v6173_v34  ;;  %v8343_v24 = vpop.eup %8342  ;;  %v6191_v8 = vmul.f32 0.6931472, %v8341_v55 }
 0x81f   : > { %v6188_v39 = vsel %vm6187_vm1, %v6185_v29, %v6182_v15  ;;  %v6459_v4 = vsel %vm6427_vm11, %v12340_v20, %v6179_v2  ;;  %v6200_v28 = vmul.f32 0.6931472, %v8343_v24 }
 0x820   : > { %v6460_v44 = vsel %vm6428_vm13, %v12343_v37, %v6188_v39  ;;  %v6503_v60 = vmul.f32 %v12346_v40, %v6459_v4  ;;  %v6197_v13 = vsel %vm12384_vm14, %v6194_v9, %v6191_v8 }
 0x821   : > { %v6504_v14 = vmul.f32 %v12353_v27, %v6460_v44  ;;  %v6206_v11 = vsel %vm6205_vm0, %v6203_v36, %v6200_v28  ;;  %v6461_v20 = vsel %vm6429_vm15, %v12350_v35, %v6197_v13 }
 0x822   : > { %v6462_v37 = vsel %vm6430_vm2, %v12359_v19, %v6206_v11  ;;  %v6505_v48 = vmul.f32 %v12346_v40, %v6461_v20 }
 0x823   : > { %v6537_v3 = vadd.f32 %v6504_v14, %v6503_v60  ;;  %v6506_v58 = vmul.f32 %v12353_v27, %v6462_v37 }
 0x825   : > { %6538 = vadd.xlane.f32.xlu1 %v6537_v3  ;;  %v6540_v33 = vadd.f32 %v6506_v58, %v6505_v48 }
 0x829   : > { %6541 = vadd.xlane.f32.xlu1 %v6540_v33 }
 0x82c   : > { %v6012_v38 = vpop.f32.mrb[136].mxu0 }
 0x82d   : > { %v12401_v21 = vadd.f32 %v6012_v38, %v12312_v49  ;;  %v6014_v30 = vpop.f32.mrb[137].mxu0 }
 0x82e   : > { %v12404_v10 = vadd.f32 %v6014_v30, %v12315_v1  ;;  %v6016_v57 = vpop.f32.mrb[138].mxu0 }
 0x82f   : > { %v6087_v35 = vmul.f32 1.442695, %v12401_v21  ;;  %v12408_v19 = vadd.f32 %v6016_v57, %v12312_v49  ;;  %v6018_v53 = vpop.f32.mrb[139].mxu0  ;;  %vm6431_vm4 = vcmp.gt.f32.partialorder %v12401_v21, 20.0 }
 0x830   : > { %v6089_v54 = vmul.f32 1.442695, %v12404_v10  ;;  %v12412_v18 = vadd.f32 %v6018_v53, %v12315_v1  ;;  %vm6432_vm6 = vcmp.gt.f32.partialorder %v12404_v10, 20.0 }
 0x831   : > { %8344 = vpow2.f32 %v6087_v35  ;;  %v6091_v31 = vmul.f32 1.442695, %v12408_v19  ;;  %vm6433_vm8 = vcmp.gt.f32.partialorder %v12408_v19, 20.0 }
 0x832   : > { %8346 = vpow2.f32 %v6089_v54  ;;  %v6093_v17 = vmul.f32 1.442695, %v12412_v18  ;;  %vm6434_vm10 = vcmp.gt.f32.partialorder %v12412_v18, 20.0 }
 0x833   : > { %8348 = vpow2.f32 %v6091_v31 }
 0x834   : > { %8350 = vpow2.f32 %v6093_v17 }
 0x839   : > { %v6022_v51 = vpop.f32.mrb[140].mxu0 }
 0x83a   : > { %v12417_v26 = vadd.f32 %v6022_v51, %v12312_v49  ;;  %v6024_v23 = vpop.f32.mrb[141].mxu0 }
 0x83b   : > { %v8345_v22 = vpop.eup %8344  ;;  %v12422_v61 = vadd.f32 %v6024_v23, %v12315_v1  ;;  %v6026_v25 = vpop.f32.mrb[142].mxu0 }
 0x83c   : > { %v8347_v47 = vpop.eup %8346  ;;  %v6207_v52 = vadd.f32 1.0, %v8345_v22  ;;  %v6095_v62 = vmul.f32 1.442695, %v12417_v26  ;;  %v12426_v6 = vadd.f32 %v6026_v25, %v12312_v49  ;;  %v6028_v41 = vpop.f32.mrb[143].mxu0  ;;  %v6210_v56 = vmul.f32 -0.5, %v8345_v22 }
 0x83d   : > { %v6216_v45 = vadd.f32 1.0, %v8347_v47  ;;  %v12419_v42 = vpop.eup %8348  ;;  %v6097_v7 = vmul.f32 1.442695, %v12422_v61  ;;  %v6219_v50 = vmul.f32 -0.5, %v8347_v47  ;;  %v12434_v46 = vadd.f32 %v6028_v41, %v12315_v1 }
 0x83e   : > { %8352 = vlog2.f32 %v6207_v52  ;;  %v12428_v32 = vpop.eup %8350  ;;  %v6099_v5 = vmul.f32 1.442695, %v12426_v6  ;;  %v6225_v16 = vadd.f32 1.0, %v12419_v42  ;;  %v6211_v34 = vadd.f32 1.0, %v6210_v56 }
 0x83f   : > { %8354 = vlog2.f32 %v6216_v45  ;;  %v6234_v12 = vadd.f32 1.0, %v12428_v32  ;;  %v6213_v0 = vand.u32 2147483647, %v8345_v22  ;;  %v6220_v63 = vadd.f32 1.0, %v6219_v50 }
 0x840   : > { %8356 = vpow2.f32 %v6095_v62  ;;  %v6101_v15 = vmul.f32 1.442695, %v12434_v46  ;;  %v6222_v29 = vand.u32 2147483647, %v8347_v47  ;;  %v6212_v43 = vmul.f32 %v8345_v22, %v6211_v34 }
 0x841   : > { %8358 = vpow2.f32 %v6097_v7  ;;  %v6228_v24 = vmul.f32 -0.5, %v12419_v42  ;;  %vm6214_vm3 = vcmp.lt.f32.partialorder %v6213_v0, 0.0004427343  ;;  %v6221_v4 = vmul.f32 %v8347_v47, %v6220_v63 }
 0x842   : > { %8360 = vpow2.f32 %v6099_v5  ;;  %v6237_v8 = vmul.f32 -0.5, %v12428_v32  ;;  %vm6223_vm5 = vcmp.lt.f32.partialorder %v6222_v29, 0.0004427343  ;;  %v6231_v48 = vand.u32 2147483647, %v12419_v42 }
 0x843   : > { %8362 = vlog2.f32 %v6225_v16  ;;  %v6229_v11 = vadd.f32 1.0, %v6228_v24  ;;  %v6240_v38 = vand.u32 2147483647, %v12428_v32  ;;  %vm6435_vm11 = vcmp.gt.f32.partialorder %v12417_v26, 20.0 }
 0x844   : > { %8364 = vlog2.f32 %v6234_v12  ;;  %v6238_v58 = vadd.f32 1.0, %v6237_v8  ;;  %vm6232_vm7 = vcmp.lt.f32.partialorder %v6231_v48, 0.0004427343  ;;  %vm6436_vm1 = vcmp.gt.f32.partialorder %v12422_v61, 20.0 }
 0x845   : > { %8366 = vpow2.f32 %v6101_v15  ;;  %v6230_v53 = vmul.f32 %v12419_v42, %v6229_v11  ;;  %vm6241_vm9 = vcmp.lt.f32.partialorder %v6240_v38, 0.0004427343  ;;  %vm6437_vm15 = vcmp.gt.f32.partialorder %v12426_v6, 20.0 }
 0x846   : > { %v6239_v31 = vmul.f32 %v12428_v32, %v6238_v58  ;;  %vm6438_vm0 = vcmp.gt.f32.partialorder %v12434_v46, 20.0 }
 0x848   : > { %v8353_v59 = vpop.eup %8352 }
 0x849   : > { %v8355_v55 = vpop.eup %8354  ;;  %v6209_v2 = vmul.f32 0.6931472, %v8353_v59 }
 0x84a   : > { %v6218_v39 = vmul.f32 0.6931472, %v8355_v55  ;;  %v12441_v44 = vpop.eup %8356 }
 0x84b   : > { %v6215_v9 = vsel %vm6214_vm3, %v6212_v43, %v6209_v2  ;;  %v12445_v36 = vpop.eup %8358  ;;  %v6243_v20 = vadd.f32 1.0, %v12441_v44  ;;  %v6246_v17 = vmul.f32 -0.5, %v12441_v44  ;;  %v6249_v56 = vand.u32 2147483647, %v12441_v44 }
 0x84c   : > { %v6224_v60 = vsel %vm6223_vm5, %v6221_v4, %v6218_v39  ;;  %v6463_v28 = vsel %vm6431_vm4, %v12401_v21, %v6215_v9  ;;  %v12450_v3 = vpop.eup %8360  ;;  %v6252_v33 = vadd.f32 1.0, %v12445_v36  ;;  %v6255_v52 = vmul.f32 -0.5, %v12445_v36 }
 0x84d   : > { %v6464_v14 = vsel %vm6432_vm6, %v12404_v10, %v6224_v60  ;;  %v6507_v13 = vmul.f32 %v12346_v40, %v6463_v28  ;;  %8368 = vlog2.f32 %v6243_v20  ;;  %v6261_v21 = vadd.f32 1.0, %v12450_v3  ;;  %v8363_v30 = vpop.eup %8362 }
 0x84e   : > { %v6508_v37 = vmul.f32 %v12353_v27, %v6464_v14  ;;  %8370 = vlog2.f32 %v6252_v33  ;;  %v8365_v57 = vpop.eup %8364  ;;  %v6227_v35 = vmul.f32 0.6931472, %v8363_v30  ;;  %v6247_v12 = vadd.f32 1.0, %v6246_v17 }
 0x84f   : > { %8372 = vlog2.f32 %v6261_v21  ;;  %v6236_v54 = vmul.f32 0.6931472, %v8365_v57  ;;  %v12467_v25 = vpop.eup %8366  ;;  %v6256_v0 = vadd.f32 1.0, %v6255_v52  ;;  %v6258_v63 = vand.u32 2147483647, %v12445_v36 }
 0x850   : > { %v6543_v10 = vadd.f32 %v6508_v37, %v6507_v13  ;;  %v6233_v47 = vsel %vm6232_vm7, %v6230_v53, %v6227_v35  ;;  %v6264_v15 = vmul.f32 -0.5, %v12450_v3  ;;  %v6270_v29 = vadd.f32 1.0, %v12467_v25 }
 0x851   : > { %v6242_v23 = vsel %vm6241_vm9, %v6239_v31, %v6236_v54  ;;  %v6465_v42 = vsel %vm6433_vm8, %v12408_v19, %v6233_v47  ;;  %v6248_v24 = vmul.f32 %v12441_v44, %v6247_v12  ;;  %vm6250_vm12 = vcmp.lt.f32.partialorder %v6249_v56, 0.0004427343 }
 0x852   : > { %6544 = vadd.xlane.f32.xlu0 %v6543_v10  ;;  %v6466_v32 = vsel %vm6434_vm10, %v12412_v18, %v6242_v23  ;;  %v6509_v7 = vmul.f32 %v12346_v40, %v6465_v42  ;;  %v6257_v9 = vmul.f32 %v12445_v36, %v6256_v0  ;;  %vm6259_vm13 = vcmp.lt.f32.partialorder %v6258_v63, 0.0004427343 }
 0x853   : > { %v6510_v19 = vmul.f32 %v12353_v27, %v6466_v32  ;;  %v6265_v28 = vadd.f32 1.0, %v6264_v15  ;;  %v6267_v44 = vand.u32 2147483647, %v12450_v3  ;;  %v6273_v58 = vmul.f32 -0.5, %v12467_v25 }
 0x854   : > { %v6276_v54 = vand.u32 2147483647, %v12467_v25 }
 0x855   : > { %v6032_v22 = vpop.f32.mrb[96].mxu1  ;;  %v6546_v18 = vadd.f32 %v6510_v19, %v6509_v7  ;;  %v6266_v33 = vmul.f32 %v12450_v3, %v6265_v28  ;;  %vm12502_vm14 = vcmp.lt.f32.partialorder %v6267_v44, 0.0004427343  ;;  %v6274_v57 = vadd.f32 1.0, %v6273_v58 }
 0x856   : > { %v12464_v51 = vadd.f32 %v6032_v22, %v12312_v49  ;;  %v6034_v45 = vpop.f32.mrb[97].mxu1  ;;  %vm6277_vm2 = vcmp.lt.f32.partialorder %v6276_v54, 0.0004427343 }
 0x857   : > { %v12470_v62 = vadd.f32 %v6034_v45, %v12315_v1  ;;  %v6036_v41 = vpop.f32.mrb[98].mxu1  ;;  %v8369_v59 = vpop.eup %8368  ;;  %6547 = vadd.xlane.f32.xlu1 %v6546_v18  ;;  %v6275_v32 = vmul.f32 %v12467_v25, %v6274_v57 }
 0x858   : > { %v6103_v5 = vmul.f32 1.442695, %v12464_v51  ;;  %v12477_v50 = vadd.f32 %v6036_v41, %v12312_v49  ;;  %v6038_v16 = vpop.f32.mrb[99].mxu1  ;;  %v8371_v55 = vpop.eup %8370  ;;  %v6245_v43 = vmul.f32 0.6931472, %v8369_v59  ;;  %vm6439_vm3 = vcmp.gt.f32.partialorder %v12464_v51, 20.0 }
 0x859   : > { %v6105_v34 = vmul.f32 1.442695, %v12470_v62  ;;  %v8373_v39 = vpop.eup %8372  ;;  %v12488_v4 = vadd.f32 %v6038_v16, %v12315_v1  ;;  %v6254_v8 = vmul.f32 0.6931472, %v8371_v55  ;;  %vm6440_vm4 = vcmp.gt.f32.partialorder %v12470_v62, 20.0 }
 0x85a   : > { %8374 = vpow2.f32 %v6103_v5  ;;  %v6107_v2 = vmul.f32 1.442695, %v12477_v50  ;;  %v6251_v60 = vsel %vm6250_vm12, %v6248_v24, %v6245_v43  ;;  %v6263_v37 = vmul.f32 0.6931472, %v8373_v39 }
 0x85b   : > { %8376 = vpow2.f32 %v6105_v34  ;;  %v6260_v14 = vsel %vm6259_vm13, %v6257_v9, %v6254_v8  ;;  %v6467_v13 = vsel %vm6435_vm11, %v12417_v26, %v6251_v60  ;;  %v6109_v36 = vmul.f32 1.442695, %v12488_v4 }
 0x85c   : > { %8378 = vlog2.f32 %v6270_v29  ;;  %v6468_v11 = vsel %vm6436_vm1, %v12422_v61, %v6260_v14  ;;  %v6511_v20 = vmul.f32 %v12346_v40, %v6467_v13  ;;  %v6269_v61 = vsel %vm12502_vm14, %v6266_v33, %v6263_v37 }
 0x85d   : > { %8380 = vpow2.f32 %v6107_v2  ;;  %v6512_v48 = vmul.f32 %v12353_v27, %v6468_v11  ;;  %v6469_v47 = vsel %vm6437_vm15, %v12426_v6, %v6269_v61  ;;  %vm6441_vm7 = vcmp.gt.f32.partialorder %v12477_v50, 20.0 }
 0x85e   : > { %8382 = vpow2.f32 %v6109_v36  ;;  %v6513_v6 = vmul.f32 %v12346_v40, %v6469_v47  ;;  %vm6442_vm8 = vcmp.gt.f32.partialorder %v12488_v4, 20.0 }
 0x85f   : > { %v6549_v38 = vadd.f32 %v6512_v48, %v6511_v20 }
 0x861   : > { %6550 = vadd.xlane.f32.xlu0 %v6549_v38 }
 0x864   : > { %v8375_v26 = vpop.eup %8374  ;;  %v6042_v10 = vpop.f32.mrb[100].mxu1 }
 0x865   : > { %v12508_v30 = vpop.eup %8376  ;;  %v6279_v35 = vadd.f32 1.0, %v8375_v26  ;;  %v12512_v3 = vadd.f32 %v6042_v10, %v12312_v49  ;;  %v6044_v53 = vpop.f32.mrb[101].mxu1  ;;  %v6282_v7 = vmul.f32 -0.5, %v8375_v26  ;;  %v6285_v18 = vand.u32 2147483647, %v8375_v26 }
 0x866   : > { %v6288_v31 = vadd.f32 1.0, %v12508_v30  ;;  %v12517_v17 = vadd.f32 %v6044_v53, %v12315_v1  ;;  %v6046_v22 = vpop.f32.mrb[102].mxu1  ;;  %v8379_v52 = vpop.eup %8378  ;;  %v6291_v12 = vmul.f32 -0.5, %v12508_v30  ;;  %v6294_v2 = vand.u32 2147483647, %v12508_v30 }
 0x867   : > { %8384 = vlog2.f32 %v6279_v35  ;;  %v6111_v45 = vmul.f32 1.442695, %v12512_v3  ;;  %v6048_v23 = vpop.f32.mrb[103].mxu1  ;;  %v6272_v41 = vmul.f32 0.6931472, %v8379_v52  ;;  %v12524_v56 = vpop.eup %8380  ;;  %v12527_v5 = vadd.f32 %v6046_v22, %v12312_v49 }
 0x868   : > { %8386 = vlog2.f32 %v6288_v31  ;;  %v6113_v42 = vmul.f32 1.442695, %v12517_v17  ;;  %v12531_v16 = vadd.f32 %v6048_v23, %v12315_v1  ;;  %v6283_v63 = vadd.f32 1.0, %v6282_v7  ;;  %v12544_v43 = vpop.eup %8382 }
 0x869   : > { %8388 = vpow2.f32 %v6111_v45  ;;  %v6278_v19 = vsel %vm6277_vm2, %v6275_v32, %v6272_v41  ;;  %v6297_v15 = vadd.f32 1.0, %v12524_v56  ;;  %v6115_v29 = vmul.f32 1.442695, %v12527_v5 }
 0x86a   : > { %8390 = vpow2.f32 %v6113_v42  ;;  %v6470_v25 = vsel %vm6438_vm0, %v12434_v46, %v6278_v19  ;;  %v6117_v24 = vmul.f32 1.442695, %v12531_v16  ;;  %v6292_v8 = vadd.f32 1.0, %v6291_v12 }
 0x86b   : > { %v6514_v0 = vmul.f32 %v12353_v27, %v6470_v25  ;;  %8392 = vlog2.f32 %v6297_v15  ;;  %v6284_v13 = vmul.f32 %v8375_v26, %v6283_v63  ;;  %vm12553_vm5 = vcmp.lt.f32.partialorder %v6285_v18, 0.0004427343 }
 0x86c   : > { %v6052_v34 = vpop.f32.mrb[104].mxu1  ;;  %8394 = vpow2.f32 %v6115_v29  ;;  %vm12557_vm6 = vcmp.lt.f32.partialorder %v6294_v2, 0.0004427343  ;;  %v6306_v36 = vadd.f32 1.0, %v12544_v43  ;;  %v6293_v58 = vmul.f32 %v12508_v30, %v6292_v8 }
 0x86d   : > { %v12541_v59 = vadd.f32 %v6052_v34, %v12312_v49  ;;  %v6054_v55 = vpop.f32.mrb[105].mxu1  ;;  %v6552_v39 = vadd.f32 %v6514_v0, %v6513_v6  ;;  %8396 = vpow2.f32 %v6117_v24  ;;  %v6300_v33 = vmul.f32 -0.5, %v12524_v56 }
 0x86e   : > { %v6056_v46 = vpop.f32.mrb[106].mxu1  ;;  %v12549_v9 = vadd.f32 %v6054_v55, %v12315_v1  ;;  %v6309_v22 = vmul.f32 -0.5, %v12544_v43  ;;  %v6303_v45 = vand.u32 2147483647, %v12524_v56  ;;  %v6312_v19 = vand.u32 2147483647, %v12544_v43 }
 0x86f   : > { %v6058_v60 = vpop.f32.mrb[107].mxu1  ;;  %v6119_v14 = vmul.f32 1.442695, %v12541_v59  ;;  %6553 = vadd.xlane.f32.xlu1 %v6552_v39  ;;  %v12568_v26 = vadd.f32 %v6056_v46, %v12312_v49  ;;  %v6301_v52 = vadd.f32 1.0, %v6300_v33  ;;  %vm6443_vm10 = vcmp.gt.f32.partialorder %v12512_v3, 20.0 }
 0x870   : > { %v6121_v21 = vmul.f32 1.442695, %v12549_v9  ;;  %v12571_v61 = vadd.f32 %v6058_v60, %v12315_v1  ;;  %v6310_v63 = vadd.f32 1.0, %v6309_v22  ;;  %vm12611_vm9 = vcmp.lt.f32.partialorder %v6303_v45, 0.0004427343 }
 0x871   : > { %v8385_v28 = vpop.eup %8384  ;;  %8398 = vpow2.f32 %v6119_v14  ;;  %v6302_v55 = vmul.f32 %v12524_v56, %v6301_v52  ;;  %vm12626_vm11 = vcmp.lt.f32.partialorder %v6312_v19, 0.0004427343  ;;  %vm6444_vm12 = vcmp.gt.f32.partialorder %v12517_v17, 20.0 }
 0x872   : > { %v8387_v11 = vpop.eup %8386  ;;  %v6281_v20 = vmul.f32 0.6931472, %v8385_v28  ;;  %8400 = vlog2.f32 %v6306_v36  ;;  %v6125_v23 = vmul.f32 1.442695, %v12571_v61  ;;  %v6311_v14 = vmul.f32 %v12544_v43, %v6310_v63 }
 0x873   : > { %v6290_v48 = vmul.f32 0.6931472, %v8387_v11  ;;  %v12564_v38 = vpop.eup %8388  ;;  %vm6445_vm14 = vcmp.gt.f32.partialorder %v12527_v5, 20.0  ;;  %vm6446_vm15 = vcmp.gt.f32.partialorder %v12531_v16, 20.0  ;;  %vm6447_vm2 = vcmp.gt.f32.partialorder %v12541_v59, 20.0 }
 0x874   : > { %v6287_v10 = vsel %vm12553_vm5, %v6284_v13, %v6281_v20  ;;  %v12575_v57 = vpop.eup %8390  ;;  %v6315_v53 = vadd.f32 1.0, %v12564_v38  ;;  %v6318_v12 = vmul.f32 -0.5, %v12564_v38  ;;  %v6321_v56 = vand.u32 2147483647, %v12564_v38 }
 0x875   : > { %v6296_v30 = vsel %vm12557_vm6, %v6293_v58, %v6290_v48  ;;  %v6471_v35 = vsel %vm6439_vm3, %v12464_v51, %v6287_v10  ;;  %v6123_v51 = vmul.f32 1.442695, %v12568_v26  ;;  %v8393_v41 = vpop.eup %8392  ;;  %v6327_v39 = vmul.f32 -0.5, %v12575_v57 }
 0x876   : > { %v6472_v54 = vsel %vm6440_vm4, %v12470_v62, %v6296_v30  ;;  %v6515_v31 = vmul.f32 %v12346_v40, %v6471_v35  ;;  %8402 = vlog2.f32 %v6315_v53  ;;  %v6324_v62 = vadd.f32 1.0, %v12575_v57  ;;  %v12608_v2 = vpop.eup %8394 }
 0x877   : > { %v6516_v47 = vmul.f32 %v12353_v27, %v6472_v54  ;;  %8404 = vpow2.f32 %v6121_v21  ;;  %v6062_v42 = vpop.f32.mrb[108].mxu1  ;;  %v6299_v0 = vmul.f32 0.6931472, %v8393_v41  ;;  %v12616_v8 = vpop.eup %8396  ;;  %v6319_v60 = vadd.f32 1.0, %v6318_v12 }
 0x878   : > { %v12595_v32 = vadd.f32 %v6062_v42, %v12312_v49  ;;  %v6064_v7 = vpop.f32.mrb[109].mxu1  ;;  %8406 = vlog2.f32 %v6324_v62  ;;  %v6330_v20 = vand.u32 2147483647, %v12575_v57  ;;  %v6333_v37 = vadd.f32 1.0, %v12608_v2 }
 0x879   : > { %v6555_v6 = vadd.f32 %v6516_v47, %v6515_v31  ;;  %v12600_v25 = vadd.f32 %v6064_v7, %v12315_v1  ;;  %v6066_v34 = vpop.f32.mrb[110].mxu1  ;;  %8408 = vpow2.f32 %v6123_v51  ;;  %v6328_v43 = vadd.f32 1.0, %v6327_v39 }
 0x87a   : > { %v6127_v18 = vmul.f32 1.442695, %v12595_v32  ;;  %v12605_v15 = vadd.f32 %v6066_v34, %v12312_v49  ;;  %v6068_v29 = vpop.f32.mrb[111].mxu1  ;;  %v6305_v49 = vsel %vm12611_vm9, %v6302_v55, %v6299_v0  ;;  %8410 = vpow2.f32 %v6125_v23 }
 0x87b   : > { %6556 = vadd.xlane.f32.xlu0 %v6555_v6  ;;  %v6129_v24 = vmul.f32 1.442695, %v12600_v25  ;;  %v12623_v28 = vadd.f32 %v6068_v29, %v12315_v1  ;;  %v12630_v44 = vpop.eup %8398  ;;  %v6473_v1 = vsel %vm6441_vm7, %v12477_v50, %v6305_v49  ;;  %v6342_v48 = vadd.f32 1.0, %v12616_v8 }
 0x87c   : > { %8412 = vpow2.f32 %v6127_v18  ;;  %v6131_v11 = vmul.f32 1.442695, %v12605_v15  ;;  %v8401_v36 = vpop.eup %8400  ;;  %v6320_v21 = vmul.f32 %v12564_v38, %v6319_v60  ;;  %vm12641_vm13 = vcmp.lt.f32.partialorder %v6321_v56, 0.0004427343 }
 0x87d   : > { %8414 = vpow2.f32 %v6129_v24  ;;  %v6308_v33 = vmul.f32 0.6931472, %v8401_v36  ;;  %v6133_v35 = vmul.f32 1.442695, %v12623_v28  ;;  %v6336_v54 = vmul.f32 -0.5, %v12608_v2 }
 0x87e   : > { %8416 = vlog2.f32 %v6333_v37  ;;  %v6517_v31 = vmul.f32 %v12346_v40, %v6473_v1  ;;  %v6351_v38 = vadd.f32 1.0, %v12630_v44  ;;  %v6329_v45 = vmul.f32 %v12575_v57, %v6328_v43 }
 0x87f   : > { %8418 = vlog2.f32 %v6342_v48  ;;  %v6314_v50 = vsel %vm12626_vm11, %v6311_v14, %v6308_v33  ;;  %v6345_v51 = vmul.f32 -0.5, %v12616_v8  ;;  %v6354_v41 = vmul.f32 -0.5, %v12630_v44 }
 0x880   : > { %v8403_v58 = vpop.eup %8402  ;;  %8420 = vpow2.f32 %v6131_v11  ;;  %v6474_v47 = vsel %vm6442_vm8, %v12488_v4, %v6314_v50  ;;  %vm6331_vm1 = vcmp.lt.f32.partialorder %v6330_v20, 0.0004427343  ;;  %v6337_v4 = vadd.f32 1.0, %v6336_v54 }
 0x881   : > { %v12645_v30 = vpop.eup %8404  ;;  %v6317_v53 = vmul.f32 0.6931472, %v8403_v58  ;;  %v6518_v23 = vmul.f32 %v12353_v27, %v6474_v47  ;;  %v6339_v6 = vand.u32 2147483647, %v12608_v2  ;;  %8422 = vlog2.f32 %v6351_v38 }
 0x882   : > { %v8407_v22 = vpop.eup %8406  ;;  %v6360_v34 = vadd.f32 1.0, %v12645_v30  ;;  %8424 = vpow2.f32 %v6133_v35  ;;  %v6346_v63 = vadd.f32 1.0, %v6345_v51  ;;  %v6348_v18 = vand.u32 2147483647, %v12616_v8 }
 0x883   : > { %v6323_v52 = vsel %vm12641_vm13, %v6320_v21, %v6317_v53  ;;  %v6326_v42 = vmul.f32 0.6931472, %v8407_v22  ;;  %v12665_v7 = vpop.eup %8408  ;;  %v6558_v19 = vadd.f32 %v6518_v23, %v6517_v31  ;;  %v6355_v24 = vadd.f32 1.0, %v6354_v41 }
 0x884   : > { %v6475_v62 = vsel %vm6443_vm10, %v12512_v3, %v6323_v52  ;;  %v12670_v0 = vpop.eup %8410  ;;  %8426 = vlog2.f32 %v6360_v34  ;;  %v6369_v46 = vadd.f32 1.0, %v12665_v7  ;;  %vm12684_vm0 = vcmp.lt.f32.partialorder %v6339_v6, 0.0004427343 }
 0x885   : > { %v6332_v57 = vsel %vm6331_vm1, %v6329_v45, %v6326_v42  ;;  %v6519_v12 = vmul.f32 %v12346_v40, %v6475_v62  ;;  %6559 = vadd.xlane.f32.xlu1 %v6558_v19  ;;  %v6363_v49 = vmul.f32 -0.5, %v12645_v30  ;;  %v6338_v14 = vmul.f32 %v12608_v2, %v6337_v4 }
 0x886   : > { %v6476_v3 = vsel %vm6444_vm12, %v12517_v17, %v6332_v57  ;;  %v12676_v29 = vpop.eup %8412  ;;  %8428 = vlog2.f32 %v6369_v46  ;;  %v6378_v13 = vadd.f32 1.0, %v12670_v0  ;;  %v6347_v37 = vmul.f32 %v12616_v8, %v6346_v63 }
 0x887   : > { %v6520_v55 = vmul.f32 %v12353_v27, %v6476_v3  ;;  %v12680_v39 = vpop.eup %8414  ;;  %vm12693_vm3 = vcmp.lt.f32.partialorder %v6348_v18, 0.0004427343  ;;  %v6372_v1 = vmul.f32 -0.5, %v12665_v7  ;;  %v6356_v58 = vmul.f32 %v12630_v44, %v6355_v24 }
 0x888   : > { %v8417_v60 = vpop.eup %8416  ;;  %v6357_v2 = vand.u32 2147483647, %v12630_v44  ;;  %8430 = vlog2.f32 %v6378_v13  ;;  %vm6448_vm4 = vcmp.gt.f32.partialorder %v12549_v9, 20.0  ;;  %v6364_v33 = vadd.f32 1.0, %v6363_v49 }
 0x889   : > { %v6561_v56 = vadd.f32 %v6520_v55, %v6519_v12  ;;  %v8419_v11 = vpop.eup %8418  ;;  %v6335_v20 = vmul.f32 0.6931472, %v8417_v60  ;;  %v6366_v21 = vand.u32 2147483647, %v12645_v30  ;;  %v6387_v10 = vadd.f32 1.0, %v12676_v29 }
 0x88a   : > { %v12698_v43 = vpop.eup %8420  ;;  %v6344_v48 = vmul.f32 0.6931472, %v8419_v11  ;;  %v6375_v44 = vand.u32 2147483647, %v12665_v7  ;;  %v6381_v54 = vmul.f32 -0.5, %v12670_v0  ;;  %vm6449_vm5 = vcmp.gt.f32.partialorder %v12568_v26, 20.0 }
 0x88b   : > { %6562 = vadd.xlane.f32.xlu0 %v6561_v56  ;;  %v6341_v8 = vsel %vm12684_vm0, %v6338_v14, %v6335_v20  ;;  %v8423_v50 = vpop.eup %8422  ;;  %v6373_v22 = vadd.f32 1.0, %v6372_v1  ;;  %8432 = vlog2.f32 %v6387_v10  ;;  %v6396_v45 = vadd.f32 1.0, %v12680_v39 }
 0x88c   : > { %v6350_v35 = vsel %vm12693_vm3, %v6347_v37, %v6344_v48  ;;  %v6477_v53 = vsel %vm6445_vm14, %v12527_v5, %v6341_v8  ;;  %v6353_v52 = vmul.f32 0.6931472, %v8423_v50  ;;  %v6390_v5 = vmul.f32 -0.5, %v12676_v29  ;;  %v12722_v51 = vpop.eup %8424  ;;  %v12760_v37 = vld [vmem:[#allocation2] ss:$0 sm:$0xff] }
 0x88d   : > { %v6478_v31 = vsel %vm6446_vm15, %v12531_v16, %v6350_v35  ;;  %v6521_v38 = vmul.f32 %v12346_v40, %v6477_v53  ;;  %vm6450_vm6 = vcmp.gt.f32.partialorder %v12571_v61, 20.0  ;;  %vm6358_vm7 = vcmp.lt.f32.partialorder %v6357_v2, 0.0004427343 }
 0x88e   : > { %v6522_v47 = vmul.f32 %v12353_v27, %v6478_v31  ;;  %v6365_v23 = vmul.f32 %v12645_v30, %v6364_v33  ;;  %vm12726_vm8 = vcmp.lt.f32.partialorder %v6366_v21, 0.0004427343  ;;  %v6405_v42 = vadd.f32 1.0, %v12698_v43  ;;  %v8427_v62 = vpop.eup %8426 }
 0x88f   : > { %v6359_v4 = vsel %vm6358_vm7, %v6356_v58, %v6353_v52  ;;  %v6382_v6 = vadd.f32 1.0, %v6381_v54  ;;  %8434 = vlog2.f32 %v6396_v45  ;;  %vm6602_vm9 = vcmask 7168  }
 0x890   : > { %v6564_v41 = vadd.f32 %v6522_v47, %v6521_v38  ;;  %v6362_v19 = vmul.f32 0.6931472, %v8427_v62  ;;  %v6479_v57 = vsel %vm6447_vm2, %v12541_v59, %v6359_v4  ;;  %vm12734_vm10 = vcmp.lt.f32.partialorder %v6375_v44, 0.0004427343  ;;  %v8429_v34 = vpop.eup %8428 }
 0x891   : > { %v6384_v30 = vand.u32 2147483647, %v12670_v0  ;;  %v6374_v3 = vmul.f32 %v12665_v7, %v6373_v22  ;;  %v6391_v63 = vadd.f32 1.0, %v6390_v5  ;;  %v6399_v18 = vmul.f32 -0.5, %v12680_v39 }
 0x892   : > { %6565 = vadd.xlane.f32.xlu1 %v6564_v41  ;;  %8436 = vlog2.f32 %v6405_v42  ;;  %v6368_v55 = vsel %vm12726_vm8, %v6365_v23, %v6362_v19  ;;  %v6523_v59 = vmul.f32 %v12346_v40, %v6479_v57  ;;  %v6371_v24 = vmul.f32 0.6931472, %v8429_v34  ;;  %v8431_v17 = vpop.eup %8430 }
 0x893   : > { %v6414_v46 = vadd.f32 1.0, %v12722_v51  ;;  %v6480_v49 = vsel %vm6448_vm4, %v12549_v9, %v6368_v55  ;;  %v6383_v7 = vmul.f32 %v12670_v0, %v6382_v6  ;;  %v6393_v60 = vand.u32 2147483647, %v12676_v29 }
 0x894   : > { %v6408_v56 = vmul.f32 -0.5, %v12698_v43  ;;  %v6524_v14 = vmul.f32 %v12353_v27, %v6480_v49  ;;  %v6377_v13 = vsel %vm12734_vm10, %v6374_v3, %v6371_v24  ;;  %v6380_v11 = vmul.f32 0.6931472, %v8431_v17 }
 0x895   : > { %8438 = vlog2.f32 %v6414_v46  ;;  %vm6385_vm11 = vcmp.lt.f32.partialorder %v6384_v30, 0.0004427343  ;;  %v6481_v20 = vsel %vm6449_vm5, %v12568_v26, %v6377_v13  ;;  %v6392_v9 = vmul.f32 %v12676_v29, %v6391_v63  ;;  %v8433_v36 = vpop.eup %8432 }
 0x896   : > { %v6402_v0 = vand.u32 2147483647, %v12680_v39  ;;  %v6567_v1 = vadd.f32 %v6524_v14, %v6523_v59  ;;  %v6386_v48 = vsel %vm6385_vm11, %v6383_v7, %v6380_v11  ;;  %v6525_v58 = vmul.f32 %v12346_v40, %v6481_v20 }
 0x897   : > { %v6400_v2 = vadd.f32 1.0, %v6399_v18  ;;  %v6482_v8 = vsel %vm6450_vm6, %v12571_v61, %v6386_v48  ;;  %v6389_v33 = vmul.f32 0.6931472, %v8433_v36  ;;  %v6409_v21 = vadd.f32 1.0, %v6408_v56 }
 0x898   : > { %v6417_v26 = vmul.f32 -0.5, %v12722_v51  ;;  %6568 = vadd.xlane.f32.xlu0 %v6567_v1  ;;  %v6526_v10 = vmul.f32 %v12353_v27, %v6482_v8  ;;  %vm6394_vm12 = vcmp.lt.f32.partialorder %v6393_v60, 0.0004427343  ;;  %vm6451_vm13 = vcmp.gt.f32.partialorder %v12595_v32, 20.0 }
 0x899   : > { %v8435_v53 = vpop.eup %8434  ;;  %vm6452_vm1 = vcmp.gt.f32.partialorder %v12600_v25, 20.0  ;;  %v6395_v61 = vsel %vm6394_vm12, %v6392_v9, %v6389_v33  ;;  %v6411_v44 = vand.u32 2147483647, %v12698_v43  ;;  %v6401_v31 = vmul.f32 %v12680_v39, %v6400_v2 }
 0x89a   : > { %v6570_v54 = vadd.f32 %v6526_v10, %v6525_v58  ;;  %v6398_v50 = vmul.f32 0.6931472, %v8435_v53  ;;  %v6483_v38 = vsel %vm6451_vm13, %v12595_v32, %v6395_v61  ;;  %vm6403_vm14 = vcmp.lt.f32.partialorder %v6402_v0, 0.0004427343 }
 0x89b   : > { %v6410_v47 = vmul.f32 %v12698_v43, %v6409_v21  ;;  %v6418_v52 = vadd.f32 1.0, %v6417_v26  ;;  %v6420_v5 = vand.u32 2147483647, %v12722_v51  ;;  %v6527_v16 = vmul.f32 %v12346_v40, %v6483_v38 }
 0x89c   : > { %v8437_v22 = vpop.eup %8436  ;;  %6571 = vadd.xlane.f32.xlu1 %v6570_v54  ;;  %v6404_v23 = vsel %vm6403_vm14, %v6401_v31, %v6398_v50  ;;  %vm6412_vm15 = vcmp.lt.f32.partialorder %v6411_v44, 0.0004427343  ;;  %vm6453_vm0 = vcmp.gt.f32.partialorder %v12605_v15, 20.0  ;;  %vm6454_vm3 = vcmp.gt.f32.partialorder %v12623_v28, 20.0 }
 0x89d   : > { %v6533_v29 = vpop.xlane.xlu0 %6532  ;;  %v6407_v42 = vmul.f32 0.6931472, %v8437_v22  ;;  %v6484_v32 = vsel %vm6452_vm1, %v12600_v25, %v6404_v23  ;;  %v6419_v6 = vmul.f32 %v12722_v51, %v6418_v52  ;;  %vm6421_vm2 = vcmp.lt.f32.partialorder %v6420_v5, 0.0004427343 }
 0x89e   : > { %v6586_v35 = vadd.f32 %v12760_v37, %v6533_v29  ;;  %v6528_v43 = vmul.f32 %v12353_v27, %v6484_v32 }
 0x89f   : > { %v8439_v62 = vpop.eup %8438  ;;  %v6413_v41 = vsel %vm6412_vm15, %v6410_v47, %v6407_v42 }
 0x8a0   : > { %6603 = vst.msk [vmem:[%s12770_s21] sm:$0xff] %vm6602_vm9, %v6586_v35  ;;  %v6416_v4 = vmul.f32 0.6931472, %v8439_v62  ;;  %v6485_v19 = vsel %vm6453_vm0, %v12605_v15, %v6413_v41  ;;  %v6573_v57 = vadd.f32 %v6528_v43, %v6527_v16 }
 0x8a1   : > { %v6536_v45 = vpop.xlane.xlu0 %6535  ;;  %v6529_v12 = vmul.f32 %v12346_v40, %v6485_v19 }
 0x8a2   : > { %v6587_v39 = vadd.f32 %v12760_v37, %v6536_v45  ;;  %v6422_v25 = vsel %vm6421_vm2, %v6419_v6, %v6416_v4  ;;  %6574 = vadd.xlane.f32.xlu0 %v6573_v57 }
 0x8a3   : > { %v6486_v30 = vsel %vm6454_vm3, %v12623_v28, %v6422_v25 }
 0x8a4   : > { %6604 = vst.msk [vmem:[%s12770_s21 + $0x8] sm:$0xff] %vm6602_vm9, %v6587_v39  ;;  %v6530_v34 = vmul.f32 %v12353_v27, %v6486_v30 }
 0x8a6   : > { %v6576_v3 = vadd.f32 %v6530_v34, %v6529_v12 }
 0x8a8   : > { %6577 = vadd.xlane.f32.xlu1 %v6576_v3 }
 0x8b2   : > { %v6539_v51 = vpop.xlane.xlu1 %6538 }
 0x8b3   : > { %v6588_v15 = vadd.f32 %v12760_v37, %v6539_v51 }
 0x8b5   : > { %6605 = vst.msk [vmem:[%s12770_s21 + $0x10] sm:$0xff] %vm6602_vm9, %v6588_v15 }
 0x8b6   : > { %v6542_v63 = vpop.xlane.xlu1 %6541 }
 0x8b7   : > { %v6589_v18 = vadd.f32 %v12760_v37, %v6542_v63 }
 0x8b9   : > { %6606 = vst.msk [vmem:[%s12770_s21 + $0x18] sm:$0xff] %vm6602_vm9, %v6589_v18 }
 0x8df   : > { %v6545_v40 = vpop.xlane.xlu0 %6544 }
 0x8e0   : > { %v6590_v28 = vadd.f32 %v12760_v37, %v6545_v40 }
 0x8e2   : > { %6607 = vst.msk [vmem:[%s12770_s21 + $0x20] sm:$0xff] %vm6602_vm9, %v6590_v28 }
 0x8e4   : > { %v6548_v27 = vpop.xlane.xlu1 %6547 }
 0x8e5   : > { %v6591_v55 = vadd.f32 %v12760_v37, %v6548_v27 }
 0x8e7   : > { %6608 = vst.msk [vmem:[%s12770_s21 + $0x28] sm:$0xff] %vm6602_vm9, %v6591_v55 }
 0x8ee   : > { %v6551_v59 = vpop.xlane.xlu0 %6550 }
 0x8ef   : > { %v6592_v24 = vadd.f32 %v12760_v37, %v6551_v59 }
 0x8f1   : > { %6609 = vst.msk [vmem:[%s12770_s21 + $0x30] sm:$0xff] %vm6602_vm9, %v6592_v24 }
 0x8fc   : > { %v6554_v46 = vpop.xlane.xlu1 %6553 }
 0x8fd   : > { %v6593_v17 = vadd.f32 %v12760_v37, %v6554_v46 }
 0x8ff   : > { %6610 = vst.msk [vmem:[%s12770_s21 + $0x38] sm:$0xff] %vm6602_vm9, %v6593_v17 }
 0x908   : > { %v6557_v49 = vpop.xlane.xlu0 %6556 }
 0x909   : > { %v6594_v7 = vadd.f32 %v12760_v37, %v6557_v49 }
 0x90b   : > { %6611 = vst.msk [vmem:[%s12770_s21 + $0x40] sm:$0xff] %vm6602_vm9, %v6594_v7 }
 0x912   : > { %v6560_v60 = vpop.xlane.xlu1 %6559 }
 0x913   : > { %v6595_v56 = vadd.f32 %v12760_v37, %v6560_v60 }
 0x915   : > { %6612 = vst.msk [vmem:[%s12770_s21 + $0x48] sm:$0xff] %vm6602_vm9, %v6595_v56 }
 0x918   : > { %v6563_v14 = vpop.xlane.xlu0 %6562 }
 0x919   : > { %v6596_v13 = vadd.f32 %v12760_v37, %v6563_v14 }
 0x91b   : > { %6613 = vst.msk [vmem:[%s12770_s21 + $0x50] sm:$0xff] %vm6602_vm9, %v6596_v13 }
 0x91f   : > { %v6566_v11 = vpop.xlane.xlu1 %6565 }
 0x920   : > { %v6597_v20 = vadd.f32 %v12760_v37, %v6566_v11 }
 0x922   : > { %6614 = vst.msk [vmem:[%s12770_s21 + $0x58] sm:$0xff] %vm6602_vm9, %v6597_v20 }
 0x925   : > { %v6569_v9 = vpop.xlane.xlu0 %6568 }
 0x926   : > { %v6598_v0 = vadd.f32 %v12760_v37, %v6569_v9 }
 0x928   : > { %6615 = vst.msk [vmem:[%s12770_s21 + $0x60] sm:$0xff] %vm6602_vm9, %v6598_v0 }
 0x929   : > { %v6572_v36 = vpop.xlane.xlu1 %6571 }
 0x92a   : > { %v6599_v1 = vadd.f32 %v12760_v37, %v6572_v36 }
 0x92c   : > { %6616 = vst.msk [vmem:[%s12770_s21 + $0x68] sm:$0xff] %vm6602_vm9, %v6599_v1 }
 0x92f   : > { %v6575_v48 = vpop.xlane.xlu0 %6574 }
 0x930   : > { %v6600_v58 = vadd.f32 %v12760_v37, %v6575_v48 }
 0x932   : > { %6617 = vst.msk [vmem:[%s12770_s21 + $0x70] sm:$0xff] %vm6602_vm9, %v6600_v58 }
 0x935   : > { %v6578_v2 = vpop.xlane.xlu1 %6577 }
 0x936   : > { %v6601_v8 = vadd.f32 %v12760_v37, %v6578_v2 }
 0x938   : > { %6618 = vst.msk [vmem:[%s12770_s21 + $0x78] sm:$0xff] %vm6602_vm9, %v6601_v8 }
 0x939 PF: > { %s22_s11 = sadd.s32 1, %s8479_s11  }
 0x93a   : > { %p19_p3 = scmp.ge.s32.totalorder %s22_s11, 4  }
 0x93c   :  { %21 = sbr.rel (!%p19_p3) target bundleno = 4 (0x4), region = 101 }
 0x943   :  { %6641 = vsyncpa [#allocation4], 1 }
 0x944   :  { %6643 = vsyncpa [#allocation4 + $0x1], 1 }

</bundles_post_ra>
